<compile_context>
chip_gen: v7x
topology: tpu7x:2x2x1
jax: 0.10.0
libtpu: 0.0.40
codegen_flags: <defaults>
</compile_context>

<pallas_src>
import functools
import numpy as np
import jax
import jax.numpy as jnp
from jax.experimental import pallas as pl
from jax.experimental.pallas import tpu as pltpu

LEAKY_SLOPE = 0.01          # nn.LeakyReLU() default
ACT_DTYPE = jnp.bfloat16    # inter-layer activation / weight dtype (f32 accumulate)
_MAX_TM = 256               # M-tile (>=2 grid steps for the bigger layers -> v7x 2-TC)


def _apply_act(y, act):
    if act == "leaky":
        return jnp.where(y >= 0, y, LEAKY_SLOPE * y)
    if act == "tanh":
        return jnp.tanh(y)
    if act == "sigmoid":
        return jax.nn.sigmoid(y)
    return y


def _round_up(x, m):
    return (x + m - 1) // m * m


def _tile_m(a, residual=None):
    """Pick the M tile; pad M only if it is not a multiple of the tile."""
    M = a.shape[0]
    if M <= _MAX_TM:
        return M, M, a, residual          # single grid step, full-dim block
    tm = _MAX_TM
    Mp = _round_up(M, tm)
    if Mp != M:
        a = jnp.pad(a, ((0, Mp - M), (0, 0)))
        if residual is not None:
            residual = jnp.pad(residual, ((0, Mp - M), (0, 0)))
    return tm, Mp, a, residual


# ----------------------------------------------------------------------------
# Pallas kernels
# ----------------------------------------------------------------------------
def _mm_kernel(*refs, act, has_res):
    """out = act(a @ w + bias [+ residual]); K and N fully resident, M-tiled."""
    if has_res:
        a_ref, w_ref, b_ref, res_ref, o_ref = refs
    else:
        a_ref, w_ref, b_ref, o_ref = refs
        res_ref = None
    y = jnp.dot(a_ref[...], w_ref[...], preferred_element_type=jnp.float32)
    y = y + b_ref[...]
    if has_res:
        y = y + res_ref[...].astype(jnp.float32)
    o_ref[...] = _apply_act(y, act).astype(o_ref.dtype)


def _dual_kernel(a_ref, w_ref, b_ref, main_ref, res_ref, *, n_main):
    """Fused conv1a+conv2a: first n_main lanes -> LeakyReLU (main), rest -> identity (residual)."""
    y = jnp.dot(a_ref[...], w_ref[...], preferred_element_type=jnp.float32)
    y = y + b_ref[...]
    main = y[:, :n_main]
    res = y[:, n_main:]
    main_ref[...] = jnp.where(main >= 0, main, LEAKY_SLOPE * main).astype(main_ref.dtype)
    res_ref[...] = res.astype(res_ref.dtype)


def _fc_kernel(h_ref, w1_ref, b1_ref, w2_ref, b2_ref, o_ref):
    """tdl: TSFC -> Tanh -> TSFC -> Sigmoid, all weights resident in VMEM, one call."""
    y1 = jnp.dot(h_ref[...], w1_ref[...], preferred_element_type=jnp.float32) + b1_ref[...]
    y1 = jnp.tanh(y1).astype(w2_ref.dtype)
    y2 = jnp.dot(y1, w2_ref[...], preferred_element_type=jnp.float32) + b2_ref[...]
    o_ref[...] = jax.nn.sigmoid(y2).astype(o_ref.dtype)


# ----------------------------------------------------------------------------
# Pallas wrappers
# ----------------------------------------------------------------------------
def pallas_matmul(a, w, bias, residual=None, act="none"):
    M, K = a.shape
    N = w.shape[1]
    has_res = residual is not None
    tm, Mp, a_p, res_p = _tile_m(a, residual)

    in_specs = [pl.BlockSpec((tm, K), lambda i: (i, 0)),
                pl.BlockSpec((K, N), lambda i: (0, 0)),   # constant index -> DMA'd once
                pl.BlockSpec((1, N), lambda i: (0, 0))]
    args = [a_p, w, bias]
    if has_res:
        in_specs.append(pl.BlockSpec((tm, N), lambda i: (i, 0)))
        args.append(res_p)

    out = pl.pallas_call(
        functools.partial(_mm_kernel, act=act, has_res=has_res),
        out_shape=jax.ShapeDtypeStruct((Mp, N), ACT_DTYPE),
        grid_spec=pltpu.PrefetchScalarGridSpec(
            num_scalar_prefetch=0,
            grid=(Mp // tm,),
            in_specs=in_specs,
            out_specs=pl.BlockSpec((tm, N), lambda i: (i, 0)),
        ),
        compiler_params=pltpu.CompilerParams(dimension_semantics=("parallel",)),
    )(*args)
    return out[:M] if Mp != M else out


def pallas_dual_matmul(a, w, bias, n_main):
    M, K = a.shape
    N = w.shape[1]
    tm, Mp, a_p, _ = _tile_m(a)

    main, res = pl.pallas_call(
        functools.partial(_dual_kernel, n_main=n_main),
        out_shape=(jax.ShapeDtypeStruct((Mp, n_main), ACT_DTYPE),
                   jax.ShapeDtypeStruct((Mp, N - n_main), ACT_DTYPE)),
        grid_spec=pltpu.PrefetchScalarGridSpec(
            num_scalar_prefetch=0,
            grid=(Mp // tm,),
            in_specs=[pl.BlockSpec((tm, K), lambda i: (i, 0)),
                      pl.BlockSpec((K, N), lambda i: (0, 0)),
                      pl.BlockSpec((1, N), lambda i: (0, 0))],
            out_specs=(pl.BlockSpec((tm, n_main), lambda i: (i, 0)),
                       pl.BlockSpec((tm, N - n_main), lambda i: (i, 0))),
        ),
        compiler_params=pltpu.CompilerParams(dimension_semantics=("parallel",)),
    )(a_p, w, bias)
    if Mp != M:
        main, res = main[:M], res[:M]
    return main, res


def pallas_fc(h, w1, b1, w2, b2):
    M = h.shape[0]
    N = w2.shape[1]
    return pl.pallas_call(
        _fc_kernel,
        out_shape=jax.ShapeDtypeStruct((M, N), jnp.float32),
    )(h, w1, b1, w2, b2)


# ----------------------------------------------------------------------------
# Pure-JAX references (identical casts / math for the sanity check)
# ----------------------------------------------------------------------------
def jnp_matmul(a, w, bias, residual=None, act="none"):
    y = jnp.dot(a, w, preferred_element_type=jnp.float32) + bias
    if residual is not None:
        y = y + residual.astype(jnp.float32)
    return _apply_act(y, act).astype(ACT_DTYPE)


def jnp_dual_matmul(a, w, bias, n_main):
    y = jnp.dot(a, w, preferred_element_type=jnp.float32) + bias
    main, res = y[:, :n_main], y[:, n_main:]
    main = jnp.where(main >= 0, main, LEAKY_SLOPE * main)
    return main.astype(ACT_DTYPE), res.astype(ACT_DTYPE)


def jnp_fc(h, w1, b1, w2, b2):
    y1 = jnp.tanh(jnp.dot(h, w1, preferred_element_type=jnp.float32) + b1).astype(w2.dtype)
    y2 = jnp.dot(y1, w2, preferred_element_type=jnp.float32) + b2
    return jax.nn.sigmoid(y2).astype(jnp.float32)


# ----------------------------------------------------------------------------
# Conv3d glue: channels-last im2col (plain JAX) + Pallas matmul (hot path)
# ----------------------------------------------------------------------------
def im2col_3d(x, ksize, stride, pad):
    """x: (B, T, H, W, C) channels-last.  K order = (tap, Cin), Cin fastest."""
    B, T, H, W, C = x.shape
    kt, kh, kw = ksize
    st, sh, sw = stride
    pt, ph, pw = pad
    xp = jnp.pad(x, ((0, 0), (pt, pt), (ph, ph), (pw, pw), (0, 0)))
    To = (T + 2 * pt - kt) // st + 1
    Ho = (H + 2 * ph - kh) // sh + 1
    Wo = (W + 2 * pw - kw) // sw + 1
    cols = []
    for dt in range(kt):
        for dh in range(kh):
            for dw in range(kw):
                cols.append(xp[:, dt:dt + st * To:st,
                               dh:dh + sh * Ho:sh,
                               dw:dw + sw * Wo:sw, :])
    cols = jnp.stack(cols, axis=4)                       # (B, To, Ho, Wo, K3, C)
    cols = cols.reshape(B * To * Ho * Wo, kt * kh * kw * C)
    return cols, (To, Ho, Wo)


def _fold_bn(w, bn, eps=1e-5):
    gamma, beta, mean, var = bn
    s = gamma / jnp.sqrt(var + eps)
    return w * s[:, None, None, None, None], beta - mean * s


def prepare_params(params):
    """BN-fold, fuse conv1a+conv2a, re-layout for im2col K order, cast — done ONCE."""
    prep = {}
    for i in range(5):
        p = params[f"b{i + 1}"]
        w1a, b1a = _fold_bn(p["conv1a_w"], p["bn1a"])
        w1b, b1b = _fold_bn(p["conv1b_w"], p["bn1b"])
        w2a, b2a = _fold_bn(p["conv2a_w"], p["bn2a"])
        cout, cin = int(w1a.shape[0]), int(w1a.shape[1])
        k3 = 27
        # (Cout,Cin,kt,kh,kw) -> (kt,kh,kw,Cin,Cout) -> (27*Cin, Cout): matches im2col K order
        w1a_m = jnp.transpose(w1a, (2, 3, 4, 1, 0)).reshape(k3 * cin, cout)
        # 1x1x1 conv2a == centre tap (dt=dh=dw=1 -> tap index 13) of a zero 3x3x3 kernel
        w2a_m = jnp.zeros((k3 * cin, cout), jnp.float32).at[13 * cin:14 * cin, :].set(
            jnp.transpose(w2a.reshape(cout, cin)))
        prep[f"b{i + 1}"] = {
            "w_fused": jnp.concatenate([w1a_m, w2a_m], axis=1).astype(ACT_DTYPE),
            "b_fused": jnp.concatenate([b1a, b2a]).reshape(1, -1).astype(jnp.float32),
            "w1b": jnp.transpose(w1b, (2, 3, 4, 1, 0)).reshape(k3 * cout, cout).astype(ACT_DTYPE),
            "b1b": b1b.reshape(1, -1).astype(jnp.float32),
            "cout": cout,
        }
    prep["fc1_w"] = jnp.transpose(params["fc1_w"]).astype(ACT_DTYPE)      # (d_in, 512)
    prep["fc1_b"] = params["fc1_b"].reshape(1, -1).astype(jnp.float32)
    prep["fc2_w"] = jnp.transpose(params["fc2_w"]).astype(ACT_DTYPE)      # (512, feat)
    prep["fc2_b"] = params["fc2_b"].reshape(1, -1).astype(jnp.float32)
    return prep


def downsample_block(x_cl, p, stride, dual_mm, mm):
    """x_cl: (B, T, H, W, Cin) channels-last -> (B, To, Ho, Wo, Cout)."""
    B = x_cl.shape[0]
    cout = p["cout"]
    cols, (To, Ho, Wo) = im2col_3d(x_cl, (3, 3, 3), stride, (1, 1, 1))
    # fused conv1a (main, LeakyReLU) + conv2a (residual, linear) in one matmul
    main, res = dual_mm(cols, p["w_fused"], p["b_fused"], cout)
    h = main.reshape(B, To, Ho, Wo, cout)
    cols2, _ = im2col_3d(h, (3, 3, 3), (1, 1, 1), (1, 1, 1))
    # conv1b + BN + residual add + LeakyReLU fused in the Pallas epilogue
    y = mm(cols2, p["w1b"], p["b1b"], residual=res, act="leaky")
    return y.reshape(B, To, Ho, Wo, cout)


# ----------------------------------------------------------------------------
# Encoder forward
# ----------------------------------------------------------------------------
STRIDES = [(1, 2, 2), (1, 2, 2), (2, 2, 2), (1, 2, 2), (2, 2, 2)]


def encoder_forward(x, prep, t_length, feature_dim, H, W, dual_mm, mm, fc):
    # NCDHW -> channels-last once; the whole chain stays channels-last / bf16.
    h_cl = jnp.transpose(x, (0, 2, 3, 4, 1)).astype(ACT_DTYPE)
    hs = []
    for i in range(5):
        h_cl = downsample_block(h_cl, prep[f"b{i + 1}"], STRIDES[i], dual_mm, mm)
        hs.append(h_cl)

    B = x.shape[0]
    c, t, hh, ww = 64, (t_length - 1) // 4, H // 32, W // 32      # deepest_shape
    # PyTorch: transpose(h5,1,2).view(-1, t, c*hh*ww)  -> flatten order (c, hh, ww)
    h2d = jnp.transpose(hs[-1], (0, 1, 4, 2, 3)).reshape(B * t, c * hh * ww)
    o = fc(h2d, prep["fc1_w"], prep["fc1_b"], prep["fc2_w"], prep["fc2_b"])
    o = o.reshape(B, t, feature_dim).astype(jnp.float32)

    # back to NCDHW only for the returned intermediates (matches the PyTorch module)
    outs = tuple(jnp.transpose(h, (0, 4, 1, 2, 3)).astype(jnp.float32) for h in hs)
    return (o,) + outs


# ----------------------------------------------------------------------------
# Deterministic parameter initialization
# ----------------------------------------------------------------------------
def _conv_w(key, shape):
    fan_in = int(np.prod(shape[1:]))
    return jax.random.normal(key, shape, jnp.float32) / np.sqrt(fan_in)


def _bn(kg, kb, c):
    gamma = 1.0 + 0.1 * jax.random.normal(kg, (c,), jnp.float32)
    beta = 0.1 * jax.random.normal(kb, (c,), jnp.float32)
    mean = jnp.zeros((c,), jnp.float32)
    var = jnp.ones((c,), jnp.float32)
    return (gamma, beta, mean, var)


def init_block(key, cin, cout):
    ks = jax.random.split(key, 9)
    return {
        "conv1a_w": _conv_w(ks[0], (cout, cin, 3, 3, 3)),
        "conv1b_w": _conv_w(ks[1], (cout, cout, 3, 3, 3)),
        "conv2a_w": _conv_w(ks[2], (cout, cin, 1, 1, 1)),
        "bn1a": _bn(ks[3], ks[4], cout),
        "bn1b": _bn(ks[5], ks[6], cout),
        "bn2a": _bn(ks[7], ks[8], cout),
    }


def init_encoder_params(key, t_length, n_channel, feature_dim, H, W):
    chans = [n_channel, 8, 16, 32, 64, 64]
    ks = jax.random.split(key, 9)
    params = {}
    for i in range(5):
        params[f"b{i+1}"] = init_block(ks[i], chans[i], chans[i + 1])
    d_in = 64 * (H // 32) * (W // 32)
    params["fc1_w"] = jax.random.normal(ks[5], (512, d_in), jnp.float32) / np.sqrt(d_in)
    params["fc1_b"] = 0.01 * jax.random.normal(ks[6], (512,), jnp.float32)
    params["fc2_w"] = jax.random.normal(ks[7], (feature_dim, 512), jnp.float32) / np.sqrt(512)
    params["fc2_b"] = 0.01 * jax.random.normal(ks[8], (feature_dim,), jnp.float32)
    return params


if __name__ == "__main__":
    t_length, n_channel, feature_dim, H, W = 5, 3, 64, 32, 32
    B = 2

    key = jax.random.PRNGKey(0)
    kx, kp = jax.random.split(key)
    # input: (B, C, T, H, W) with T = t_length - 1 = 4 frames (NCDHW)
    x = jax.random.normal(kx, (B, n_channel, t_length - 1, H, W), jnp.float32)
    params = init_encoder_params(kp, t_length, n_channel, feature_dim, H, W)
    prep = prepare_params(params)

    pallas_fwd = jax.jit(functools.partial(
        encoder_forward, prep=prep, t_length=t_length, feature_dim=feature_dim,
        H=H, W=W, dual_mm=pallas_dual_matmul, mm=pallas_matmul, fc=pallas_fc))
    ref_fwd = jax.jit(functools.partial(
        encoder_forward, prep=prep, t_length=t_length, feature_dim=feature_dim,
        H=H, W=W, dual_mm=jnp_dual_matmul, mm=jnp_matmul, fc=jnp_fc))

    outs = jax.block_until_ready(pallas_fwd(x))
    refs = jax.block_until_ready(ref_fwd(x))

    # sanity-check against a pure-JAX reference of the same (bf16-operand) math
    for got, exp in zip(outs, refs):
        assert got.shape == exp.shape, (got.shape, exp.shape)
        g, e = np.asarray(got), np.asarray(exp)
        diff = float(np.max(np.abs(g - e)))
        assert np.allclose(g, e, atol=5e-2, rtol=5e-2), diff

    # expected shapes: o (2,1,64), h1 (2,8,4,16,16), h2 (2,16,4,8,8),
    #                  h3 (2,32,2,4,4), h4 (2,64,2,2,2), h5 (2,64,1,1,1)
    print("KERNEL_OK")
</pallas_src>

<mosaic_0001>
module attributes {stable_mosaic.version = 11 : i64} {
  func.func @_dual_kernel(%arg0: i32, %arg1: memref<256x81xbf16, #tpu.memory_space<vmem>>, %arg2: memref<81x16xbf16, #tpu.memory_space<vmem>>, %arg3: memref<1x16xf32, #tpu.memory_space<vmem>>, %arg4: memref<256x8xbf16, #tpu.memory_space<vmem>>, %arg5: memref<256x8xbf16, #tpu.memory_space<vmem>>) attributes {dimension_semantics = [#tpu.dimension_semantics<parallel>], iteration_bounds = array<i64: 8>, scalar_prefetch = 0 : i64, scratch_operands = 0 : i64, tpu.core_type = #tpu.core_type<tc>, window_params = [{transform_indices = @transform_0, window_bounds = array<i64: 256, 81>}, {pipeline_mode = #tpu.pipeline_mode<synchronous>, transform_indices = @transform_1, window_bounds = array<i64: 81, 16>}, {pipeline_mode = #tpu.pipeline_mode<synchronous>, transform_indices = @transform_2, window_bounds = array<i64: 1, 16>}, {transform_indices = @transform_3, window_bounds = array<i64: 256, 8>}, {transform_indices = @transform_4, window_bounds = array<i64: 256, 8>}]} {
    %c0 = arith.constant 0 : index
    %c0_0 = arith.constant 0 : index
    %0 = vector.load %arg1[%c0, %c0_0] : memref<256x81xbf16, #tpu.memory_space<vmem>>, vector<256x81xbf16>
    %c0_1 = arith.constant 0 : index
    %c0_2 = arith.constant 0 : index
    %1 = vector.load %arg2[%c0_1, %c0_2] : memref<81x16xbf16, #tpu.memory_space<vmem>>, vector<81x16xbf16>
    %cst = arith.constant dense<0.000000e+00> : vector<256x16xf32>
    %2 = tpu.matmul %0, %1, %cst {dimension_numbers = #tpu.dot_dimension_numbers<[1], [0], [0], [1], [0, 0, 1, 1], [], []>} : vector<256x81xbf16>, vector<81x16xbf16>, vector<256x16xf32> -> vector<256x16xf32>
    %c0_3 = arith.constant 0 : index
    %c0_4 = arith.constant 0 : index
    %3 = vector.load %arg3[%c0_3, %c0_4] : memref<1x16xf32, #tpu.memory_space<vmem>>, vector<1x16xf32>
    %4 = vector.broadcast %3 : vector<1x16xf32> to vector<256x16xf32>
    %5 = arith.addf %2, %4 : vector<256x16xf32>
    %6 = vector.extract_strided_slice %5 {offsets = [0, 0], sizes = [256, 8], strides = [1, 1]} : vector<256x16xf32> to vector<256x8xf32>
    %7 = vector.extract_strided_slice %5 {offsets = [0, 8], sizes = [256, 8], strides = [1, 1]} : vector<256x16xf32> to vector<256x8xf32>
    %cst_5 = arith.constant 0.000000e+00 : f32
    %8 = vector.broadcast %cst_5 : f32 to vector<256x8xf32>
    %9 = arith.cmpf oge, %6, %8 : vector<256x8xf32>
    %cst_6 = arith.constant 0.00999999977 : f32
    %10 = vector.broadcast %cst_6 : f32 to vector<256x8xf32>
    %11 = arith.mulf %10, %6 : vector<256x8xf32>
    %12 = arith.select %9, %6, %11 : vector<256x8xi1>, vector<256x8xf32>
    %13 = arith.truncf %12 : vector<256x8xf32> to vector<256x8xbf16>
    %c0_7 = arith.constant 0 : index
    %c0_8 = arith.constant 0 : index
    %14 = vector.load %arg4[%c0_7, %c0_8] : memref<256x8xbf16, #tpu.memory_space<vmem>>, vector<256x8xbf16>
    tpu.vector_store %arg4[%c0_7, %c0_8], %13 {strides = array<i32>} : memref<256x8xbf16, #tpu.memory_space<vmem>>, vector<256x8xbf16>,
    %15 = arith.truncf %7 : vector<256x8xf32> to vector<256x8xbf16>
    %c0_9 = arith.constant 0 : index
    %c0_10 = arith.constant 0 : index
    %16 = vector.load %arg5[%c0_9, %c0_10] : memref<256x8xbf16, #tpu.memory_space<vmem>>, vector<256x8xbf16>
    tpu.vector_store %arg5[%c0_9, %c0_10], %15 {strides = array<i32>} : memref<256x8xbf16, #tpu.memory_space<vmem>>, vector<256x8xbf16>,
    return
  }
  func.func @transform_0(%arg0: i32) -> (i32, i32) {
    %c0_i32 = arith.constant 0 : i32
    %c0_i32_0 = arith.constant 0 : i32
    return %arg0, %c0_i32 : i32, i32
  }
  func.func @transform_1(%arg0: i32) -> (i32, i32) {
    %c0_i32 = arith.constant 0 : i32
    %c0_i32_0 = arith.constant 0 : i32
    %c0_i32_1 = arith.constant 0 : i32
    return %c0_i32, %c0_i32_0 : i32, i32
  }
  func.func @transform_2(%arg0: i32) -> (i32, i32) {
    %c0_i32 = arith.constant 0 : i32
    %c0_i32_0 = arith.constant 0 : i32
    %c0_i32_1 = arith.constant 0 : i32
    return %c0_i32, %c0_i32_0 : i32, i32
  }
  func.func @transform_3(%arg0: i32) -> (i32, i32) {
    %c0_i32 = arith.constant 0 : i32
    %c0_i32_0 = arith.constant 0 : i32
    return %arg0, %c0_i32 : i32, i32
  }
  func.func @transform_4(%arg0: i32) -> (i32, i32) {
    %c0_i32 = arith.constant 0 : i32
    %c0_i32_0 = arith.constant 0 : i32
    return %arg0, %c0_i32 : i32, i32
  }
}

module attributes {stable_mosaic.version = 11 : i64} {
  func.func @_mm_kernel(%arg0: i32, %arg1: memref<256x216xbf16, #tpu.memory_space<vmem>>, %arg2: memref<216x8xbf16, #tpu.memory_space<vmem>>, %arg3: memref<1x8xf32, #tpu.memory_space<vmem>>, %arg4: memref<256x8xbf16, #tpu.memory_space<vmem>>, %arg5: memref<256x8xbf16, #tpu.memory_space<vmem>>) attributes {dimension_semantics = [#tpu.dimension_semantics<parallel>], iteration_bounds = array<i64: 8>, scalar_prefetch = 0 : i64, scratch_operands = 0 : i64, tpu.core_type = #tpu.core_type<tc>, window_params = [{transform_indices = @transform_0, window_bounds = array<i64: 256, 216>}, {pipeline_mode = #tpu.pipeline_mode<synchronous>, transform_indices = @transform_1, window_bounds = array<i64: 216, 8>}, {pipeline_mode = #tpu.pipeline_mode<synchronous>, transform_indices = @transform_2, window_bounds = array<i64: 1, 8>}, {transform_indices = @transform_3, window_bounds = array<i64: 256, 8>}, {transform_indices = @transform_4, window_bounds = array<i64: 256, 8>}]} {
    %c0 = arith.constant 0 : index
    %c0_0 = arith.constant 0 : index
    %0 = vector.load %arg1[%c0, %c0_0] : memref<256x216xbf16, #tpu.memory_space<vmem>>, vector<256x216xbf16>
    %c0_1 = arith.constant 0 : index
    %c0_2 = arith.constant 0 : index
    %1 = vector.load %arg2[%c0_1, %c0_2] : memref<216x8xbf16, #tpu.memory_space<vmem>>, vector<216x8xbf16>
    %cst = arith.constant dense<0.000000e+00> : vector<256x8xf32>
    %2 = tpu.matmul %0, %1, %cst {dimension_numbers = #tpu.dot_dimension_numbers<[1], [0], [0], [1], [0, 0, 1, 1], [], []>} : vector<256x216xbf16>, vector<216x8xbf16>, vector<256x8xf32> -> vector<256x8xf32>
    %c0_3 = arith.constant 0 : index
    %c0_4 = arith.constant 0 : index
    %3 = vector.load %arg3[%c0_3, %c0_4] : memref<1x8xf32, #tpu.memory_space<vmem>>, vector<1x8xf32>
    %4 = vector.broadcast %3 : vector<1x8xf32> to vector<256x8xf32>
    %5 = arith.addf %2, %4 : vector<256x8xf32>
    %c0_5 = arith.constant 0 : index
    %c0_6 = arith.constant 0 : index
    %6 = vector.load %arg4[%c0_5, %c0_6] : memref<256x8xbf16, #tpu.memory_space<vmem>>, vector<256x8xbf16>
    %7 = arith.extf %6 : vector<256x8xbf16> to vector<256x8xf32>
    %8 = arith.addf %5, %7 : vector<256x8xf32>
    %cst_7 = arith.constant 0.000000e+00 : f32
    %9 = vector.broadcast %cst_7 : f32 to vector<256x8xf32>
    %10 = arith.cmpf oge, %8, %9 : vector<256x8xf32>
    %cst_8 = arith.constant 0.00999999977 : f32
    %11 = vector.broadcast %cst_8 : f32 to vector<256x8xf32>
    %12 = arith.mulf %11, %8 : vector<256x8xf32>
    %13 = arith.select %10, %8, %12 : vector<256x8xi1>, vector<256x8xf32>
    %14 = arith.truncf %13 : vector<256x8xf32> to vector<256x8xbf16>
    %c0_9 = arith.constant 0 : index
    %c0_10 = arith.constant 0 : index
    %15 = vector.load %arg5[%c0_9, %c0_10] : memref<256x8xbf16, #tpu.memory_space<vmem>>, vector<256x8xbf16>
    tpu.vector_store %arg5[%c0_9, %c0_10], %14 {strides = array<i32>} : memref<256x8xbf16, #tpu.memory_space<vmem>>, vector<256x8xbf16>,
    return
  }
  func.func @transform_0(%arg0: i32) -> (i32, i32) {
    %c0_i32 = arith.constant 0 : i32
    %c0_i32_0 = arith.constant 0 : i32
    return %arg0, %c0_i32 : i32, i32
  }
  func.func @transform_1(%arg0: i32) -> (i32, i32) {
    %c0_i32 = arith.constant 0 : i32
    %c0_i32_0 = arith.constant 0 : i32
    %c0_i32_1 = arith.constant 0 : i32
    return %c0_i32, %c0_i32_0 : i32, i32
  }
  func.func @transform_2(%arg0: i32) -> (i32, i32) {
    %c0_i32 = arith.constant 0 : i32
    %c0_i32_0 = arith.constant 0 : i32
    %c0_i32_1 = arith.constant 0 : i32
    return %c0_i32, %c0_i32_0 : i32, i32
  }
  func.func @transform_3(%arg0: i32) -> (i32, i32) {
    %c0_i32 = arith.constant 0 : i32
    %c0_i32_0 = arith.constant 0 : i32
    return %arg0, %c0_i32 : i32, i32
  }
  func.func @transform_4(%arg0: i32) -> (i32, i32) {
    %c0_i32 = arith.constant 0 : i32
    %c0_i32_0 = arith.constant 0 : i32
    return %arg0, %c0_i32 : i32, i32
  }
}

module attributes {stable_mosaic.version = 11 : i64} {
  func.func @_dual_kernel(%arg0: i32, %arg1: memref<256x216xbf16, #tpu.memory_space<vmem>>, %arg2: memref<216x32xbf16, #tpu.memory_space<vmem>>, %arg3: memref<1x32xf32, #tpu.memory_space<vmem>>, %arg4: memref<256x16xbf16, #tpu.memory_space<vmem>>, %arg5: memref<256x16xbf16, #tpu.memory_space<vmem>>) attributes {dimension_semantics = [#tpu.dimension_semantics<parallel>], iteration_bounds = array<i64: 2>, scalar_prefetch = 0 : i64, scratch_operands = 0 : i64, tpu.core_type = #tpu.core_type<tc>, window_params = [{transform_indices = @transform_0, window_bounds = array<i64: 256, 216>}, {pipeline_mode = #tpu.pipeline_mode<synchronous>, transform_indices = @transform_1, window_bounds = array<i64: 216, 32>}, {pipeline_mode = #tpu.pipeline_mode<synchronous>, transform_indices = @transform_2, window_bounds = array<i64: 1, 32>}, {transform_indices = @transform_3, window_bounds = array<i64: 256, 16>}, {transform_indices = @transform_4, window_bounds = array<i64: 256, 16>}]} {
    %c0 = arith.constant 0 : index
    %c0_0 = arith.constant 0 : index
    %0 = vector.load %arg1[%c0, %c0_0] : memref<256x216xbf16, #tpu.memory_space<vmem>>, vector<256x216xbf16>
    %c0_1 = arith.constant 0 : index
    %c0_2 = arith.constant 0 : index
    %1 = vector.load %arg2[%c0_1, %c0_2] : memref<216x32xbf16, #tpu.memory_space<vmem>>, vector<216x32xbf16>
    %cst = arith.constant dense<0.000000e+00> : vector<256x32xf32>
    %2 = tpu.matmul %0, %1, %cst {dimension_numbers = #tpu.dot_dimension_numbers<[1], [0], [0], [1], [0, 0, 1, 1], [], []>} : vector<256x216xbf16>, vector<216x32xbf16>, vector<256x32xf32> -> vector<256x32xf32>
    %c0_3 = arith.constant 0 : index
    %c0_4 = arith.constant 0 : index
    %3 = vector.load %arg3[%c0_3, %c0_4] : memref<1x32xf32, #tpu.memory_space<vmem>>, vector<1x32xf32>
    %4 = vector.broadcast %3 : vector<1x32xf32> to vector<256x32xf32>
    %5 = arith.addf %2, %4 : vector<256x32xf32>
    %6 = vector.extract_strided_slice %5 {offsets = [0, 0], sizes = [256, 16], strides = [1, 1]} : vector<256x32xf32> to vector<256x16xf32>
    %7 = vector.extract_strided_slice %5 {offsets = [0, 16], sizes = [256, 16], strides = [1, 1]} : vector<256x32xf32> to vector<256x16xf32>
    %cst_5 = arith.constant 0.000000e+00 : f32
    %8 = vector.broadcast %cst_5 : f32 to vector<256x16xf32>
    %9 = arith.cmpf oge, %6, %8 : vector<256x16xf32>
    %cst_6 = arith.constant 0.00999999977 : f32
    %10 = vector.broadcast %cst_6 : f32 to vector<256x16xf32>
    %11 = arith.mulf %10, %6 : vector<256x16xf32>
    %12 = arith.select %9, %6, %11 : vector<256x16xi1>, vector<256x16xf32>
    %13 = arith.truncf %12 : vector<256x16xf32> to vector<256x16xbf16>
    %c0_7 = arith.constant 0 : index
    %c0_8 = arith.constant 0 : index
    %14 = vector.load %arg4[%c0_7, %c0_8] : memref<256x16xbf16, #tpu.memory_space<vmem>>, vector<256x16xbf16>
    tpu.vector_store %arg4[%c0_7, %c0_8], %13 {strides = array<i32>} : memref<256x16xbf16, #tpu.memory_space<vmem>>, vector<256x16xbf16>,
    %15 = arith.truncf %7 : vector<256x16xf32> to vector<256x16xbf16>
    %c0_9 = arith.constant 0 : index
    %c0_10 = arith.constant 0 : index
    %16 = vector.load %arg5[%c0_9, %c0_10] : memref<256x16xbf16, #tpu.memory_space<vmem>>, vector<256x16xbf16>
    tpu.vector_store %arg5[%c0_9, %c0_10], %15 {strides = array<i32>} : memref<256x16xbf16, #tpu.memory_space<vmem>>, vector<256x16xbf16>,
    return
  }
  func.func @transform_0(%arg0: i32) -> (i32, i32) {
    %c0_i32 = arith.constant 0 : i32
    %c0_i32_0 = arith.constant 0 : i32
    return %arg0, %c0_i32 : i32, i32
  }
  func.func @transform_1(%arg0: i32) -> (i32, i32) {
    %c0_i32 = arith.constant 0 : i32
    %c0_i32_0 = arith.constant 0 : i32
    %c0_i32_1 = arith.constant 0 : i32
    return %c0_i32, %c0_i32_0 : i32, i32
  }
  func.func @transform_2(%arg0: i32) -> (i32, i32) {
    %c0_i32 = arith.constant 0 : i32
    %c0_i32_0 = arith.constant 0 : i32
    %c0_i32_1 = arith.constant 0 : i32
    return %c0_i32, %c0_i32_0 : i32, i32
  }
  func.func @transform_3(%arg0: i32) -> (i32, i32) {
    %c0_i32 = arith.constant 0 : i32
    %c0_i32_0 = arith.constant 0 : i32
    return %arg0, %c0_i32 : i32, i32
  }
  func.func @transform_4(%arg0: i32) -> (i32, i32) {
    %c0_i32 = arith.constant 0 : i32
    %c0_i32_0 = arith.constant 0 : i32
    return %arg0, %c0_i32 : i32, i32
  }
}

module attributes {stable_mosaic.version = 11 : i64} {
  func.func @_mm_kernel(%arg0: i32, %arg1: memref<256x432xbf16, #tpu.memory_space<vmem>>, %arg2: memref<432x16xbf16, #tpu.memory_space<vmem>>, %arg3: memref<1x16xf32, #tpu.memory_space<vmem>>, %arg4: memref<256x16xbf16, #tpu.memory_space<vmem>>, %arg5: memref<256x16xbf16, #tpu.memory_space<vmem>>) attributes {dimension_semantics = [#tpu.dimension_semantics<parallel>], iteration_bounds = array<i64: 2>, scalar_prefetch = 0 : i64, scratch_operands = 0 : i64, tpu.core_type = #tpu.core_type<tc>, window_params = [{transform_indices = @transform_0, window_bounds = array<i64: 256, 432>}, {pipeline_mode = #tpu.pipeline_mode<synchronous>, transform_indices = @transform_1, window_bounds = array<i64: 432, 16>}, {pipeline_mode = #tpu.pipeline_mode<synchronous>, transform_indices = @transform_2, window_bounds = array<i64: 1, 16>}, {transform_indices = @transform_3, window_bounds = array<i64: 256, 16>}, {transform_indices = @transform_4, window_bounds = array<i64: 256, 16>}]} {
    %c0 = arith.constant 0 : index
    %c0_0 = arith.constant 0 : index
    %0 = vector.load %arg1[%c0, %c0_0] : memref<256x432xbf16, #tpu.memory_space<vmem>>, vector<256x432xbf16>
    %c0_1 = arith.constant 0 : index
    %c0_2 = arith.constant 0 : index
    %1 = vector.load %arg2[%c0_1, %c0_2] : memref<432x16xbf16, #tpu.memory_space<vmem>>, vector<432x16xbf16>
    %cst = arith.constant dense<0.000000e+00> : vector<256x16xf32>
    %2 = tpu.matmul %0, %1, %cst {dimension_numbers = #tpu.dot_dimension_numbers<[1], [0], [0], [1], [0, 0, 1, 1], [], []>} : vector<256x432xbf16>, vector<432x16xbf16>, vector<256x16xf32> -> vector<256x16xf32>
    %c0_3 = arith.constant 0 : index
    %c0_4 = arith.constant 0 : index
    %3 = vector.load %arg3[%c0_3, %c0_4] : memref<1x16xf32, #tpu.memory_space<vmem>>, vector<1x16xf32>
    %4 = vector.broadcast %3 : vector<1x16xf32> to vector<256x16xf32>
    %5 = arith.addf %2, %4 : vector<256x16xf32>
    %c0_5 = arith.constant 0 : index
    %c0_6 = arith.constant 0 : index
    %6 = vector.load %arg4[%c0_5, %c0_6] : memref<256x16xbf16, #tpu.memory_space<vmem>>, vector<256x16xbf16>
    %7 = arith.extf %6 : vector<256x16xbf16> to vector<256x16xf32>
    %8 = arith.addf %5, %7 : vector<256x16xf32>
    %cst_7 = arith.constant 0.000000e+00 : f32
    %9 = vector.broadcast %cst_7 : f32 to vector<256x16xf32>
    %10 = arith.cmpf oge, %8, %9 : vector<256x16xf32>
    %cst_8 = arith.constant 0.00999999977 : f32
    %11 = vector.broadcast %cst_8 : f32 to vector<256x16xf32>
    %12 = arith.mulf %11, %8 : vector<256x16xf32>
    %13 = arith.select %10, %8, %12 : vector<256x16xi1>, vector<256x16xf32>
    %14 = arith.truncf %13 : vector<256x16xf32> to vector<256x16xbf16>
    %c0_9 = arith.constant 0 : index
    %c0_10 = arith.constant 0 : index
    %15 = vector.load %arg5[%c0_9, %c0_10] : memref<256x16xbf16, #tpu.memory_space<vmem>>, vector<256x16xbf16>
    tpu.vector_store %arg5[%c0_9, %c0_10], %14 {strides = array<i32>} : memref<256x16xbf16, #tpu.memory_space<vmem>>, vector<256x16xbf16>,
    return
  }
  func.func @transform_0(%arg0: i32) -> (i32, i32) {
    %c0_i32 = arith.constant 0 : i32
    %c0_i32_0 = arith.constant 0 : i32
    return %arg0, %c0_i32 : i32, i32
  }
  func.func @transform_1(%arg0: i32) -> (i32, i32) {
    %c0_i32 = arith.constant 0 : i32
    %c0_i32_0 = arith.constant 0 : i32
    %c0_i32_1 = arith.constant 0 : i32
    return %c0_i32, %c0_i32_0 : i32, i32
  }
  func.func @transform_2(%arg0: i32) -> (i32, i32) {
    %c0_i32 = arith.constant 0 : i32
    %c0_i32_0 = arith.constant 0 : i32
    %c0_i32_1 = arith.constant 0 : i32
    return %c0_i32, %c0_i32_0 : i32, i32
  }
  func.func @transform_3(%arg0: i32) -> (i32, i32) {
    %c0_i32 = arith.constant 0 : i32
    %c0_i32_0 = arith.constant 0 : i32
    return %arg0, %c0_i32 : i32, i32
  }
  func.func @transform_4(%arg0: i32) -> (i32, i32) {
    %c0_i32 = arith.constant 0 : i32
    %c0_i32_0 = arith.constant 0 : i32
    return %arg0, %c0_i32 : i32, i32
  }
}

module attributes {stable_mosaic.version = 11 : i64} {
  func.func @_dual_kernel(%arg0: i32, %arg1: memref<64x432xbf16, #tpu.memory_space<vmem>>, %arg2: memref<432x64xbf16, #tpu.memory_space<vmem>>, %arg3: memref<1x64xf32, #tpu.memory_space<vmem>>, %arg4: memref<64x32xbf16, #tpu.memory_space<vmem>>, %arg5: memref<64x32xbf16, #tpu.memory_space<vmem>>) attributes {dimension_semantics = [#tpu.dimension_semantics<parallel>], iteration_bounds = array<i64: 1>, scalar_prefetch = 0 : i64, scratch_operands = 0 : i64, tpu.core_type = #tpu.core_type<tc>, window_params = [{transform_indices = @transform_0, window_bounds = array<i64: 64, 432>}, {pipeline_mode = #tpu.pipeline_mode<synchronous>, transform_indices = @transform_1, window_bounds = array<i64: 432, 64>}, {pipeline_mode = #tpu.pipeline_mode<synchronous>, transform_indices = @transform_2, window_bounds = array<i64: 1, 64>}, {transform_indices = @transform_3, window_bounds = array<i64: 64, 32>}, {transform_indices = @transform_4, window_bounds = array<i64: 64, 32>}]} {
    %c0 = arith.constant 0 : index
    %c0_0 = arith.constant 0 : index
    %0 = vector.load %arg1[%c0, %c0_0] : memref<64x432xbf16, #tpu.memory_space<vmem>>, vector<64x432xbf16>
    %c0_1 = arith.constant 0 : index
    %c0_2 = arith.constant 0 : index
    %1 = vector.load %arg2[%c0_1, %c0_2] : memref<432x64xbf16, #tpu.memory_space<vmem>>, vector<432x64xbf16>
    %cst = arith.constant dense<0.000000e+00> : vector<64x64xf32>
    %2 = tpu.matmul %0, %1, %cst {dimension_numbers = #tpu.dot_dimension_numbers<[1], [0], [0], [1], [0, 0, 1, 1], [], []>} : vector<64x432xbf16>, vector<432x64xbf16>, vector<64x64xf32> -> vector<64x64xf32>
    %c0_3 = arith.constant 0 : index
    %c0_4 = arith.constant 0 : index
    %3 = vector.load %arg3[%c0_3, %c0_4] : memref<1x64xf32, #tpu.memory_space<vmem>>, vector<1x64xf32>
    %4 = vector.broadcast %3 : vector<1x64xf32> to vector<64x64xf32>
    %5 = arith.addf %2, %4 : vector<64x64xf32>
    %6 = vector.extract_strided_slice %5 {offsets = [0, 0], sizes = [64, 32], strides = [1, 1]} : vector<64x64xf32> to vector<64x32xf32>
    %7 = vector.extract_strided_slice %5 {offsets = [0, 32], sizes = [64, 32], strides = [1, 1]} : vector<64x64xf32> to vector<64x32xf32>
    %cst_5 = arith.constant 0.000000e+00 : f32
    %8 = vector.broadcast %cst_5 : f32 to vector<64x32xf32>
    %9 = arith.cmpf oge, %6, %8 : vector<64x32xf32>
    %cst_6 = arith.constant 0.00999999977 : f32
    %10 = vector.broadcast %cst_6 : f32 to vector<64x32xf32>
    %11 = arith.mulf %10, %6 : vector<64x32xf32>
    %12 = arith.select %9, %6, %11 : vector<64x32xi1>, vector<64x32xf32>
    %13 = arith.truncf %12 : vector<64x32xf32> to vector<64x32xbf16>
    %c0_7 = arith.constant 0 : index
    %c0_8 = arith.constant 0 : index
    %14 = vector.load %arg4[%c0_7, %c0_8] : memref<64x32xbf16, #tpu.memory_space<vmem>>, vector<64x32xbf16>
    tpu.vector_store %arg4[%c0_7, %c0_8], %13 {strides = array<i32>} : memref<64x32xbf16, #tpu.memory_space<vmem>>, vector<64x32xbf16>,
    %15 = arith.truncf %7 : vector<64x32xf32> to vector<64x32xbf16>
    %c0_9 = arith.constant 0 : index
    %c0_10 = arith.constant 0 : index
    %16 = vector.load %arg5[%c0_9, %c0_10] : memref<64x32xbf16, #tpu.memory_space<vmem>>, vector<64x32xbf16>
    tpu.vector_store %arg5[%c0_9, %c0_10], %15 {strides = array<i32>} : memref<64x32xbf16, #tpu.memory_space<vmem>>, vector<64x32xbf16>,
    return
  }
  func.func @transform_0(%arg0: i32) -> (i32, i32) {
    %c0_i32 = arith.constant 0 : i32
    %c0_i32_0 = arith.constant 0 : i32
    return %arg0, %c0_i32 : i32, i32
  }
  func.func @transform_1(%arg0: i32) -> (i32, i32) {
    %c0_i32 = arith.constant 0 : i32
    %c0_i32_0 = arith.constant 0 : i32
    %c0_i32_1 = arith.constant 0 : i32
    return %c0_i32, %c0_i32_0 : i32, i32
  }
  func.func @transform_2(%arg0: i32) -> (i32, i32) {
    %c0_i32 = arith.constant 0 : i32
    %c0_i32_0 = arith.constant 0 : i32
    %c0_i32_1 = arith.constant 0 : i32
    return %c0_i32, %c0_i32_0 : i32, i32
  }
  func.func @transform_3(%arg0: i32) -> (i32, i32) {
    %c0_i32 = arith.constant 0 : i32
    %c0_i32_0 = arith.constant 0 : i32
    return %arg0, %c0_i32 : i32, i32
  }
  func.func @transform_4(%arg0: i32) -> (i32, i32) {
    %c0_i32 = arith.constant 0 : i32
    %c0_i32_0 = arith.constant 0 : i32
    return %arg0, %c0_i32 : i32, i32
  }
}

module attributes {stable_mosaic.version = 11 : i64} {
  func.func @_mm_kernel(%arg0: i32, %arg1: memref<64x864xbf16, #tpu.memory_space<vmem>>, %arg2: memref<864x32xbf16, #tpu.memory_space<vmem>>, %arg3: memref<1x32xf32, #tpu.memory_space<vmem>>, %arg4: memref<64x32xbf16, #tpu.memory_space<vmem>>, %arg5: memref<64x32xbf16, #tpu.memory_space<vmem>>) attributes {dimension_semantics = [#tpu.dimension_semantics<parallel>], iteration_bounds = array<i64: 1>, scalar_prefetch = 0 : i64, scratch_operands = 0 : i64, tpu.core_type = #tpu.core_type<tc>, window_params = [{transform_indices = @transform_0, window_bounds = array<i64: 64, 864>}, {pipeline_mode = #tpu.pipeline_mode<synchronous>, transform_indices = @transform_1, window_bounds = array<i64: 864, 32>}, {pipeline_mode = #tpu.pipeline_mode<synchronous>, transform_indices = @transform_2, window_bounds = array<i64: 1, 32>}, {transform_indices = @transform_3, window_bounds = array<i64: 64, 32>}, {transform_indices = @transform_4, window_bounds = array<i64: 64, 32>}]} {
    %c0 = arith.constant 0 : index
    %c0_0 = arith.constant 0 : index
    %0 = vector.load %arg1[%c0, %c0_0] : memref<64x864xbf16, #tpu.memory_space<vmem>>, vector<64x864xbf16>
    %c0_1 = arith.constant 0 : index
    %c0_2 = arith.constant 0 : index
    %1 = vector.load %arg2[%c0_1, %c0_2] : memref<864x32xbf16, #tpu.memory_space<vmem>>, vector<864x32xbf16>
    %cst = arith.constant dense<0.000000e+00> : vector<64x32xf32>
    %2 = tpu.matmul %0, %1, %cst {dimension_numbers = #tpu.dot_dimension_numbers<[1], [0], [0], [1], [0, 0, 1, 1], [], []>} : vector<64x864xbf16>, vector<864x32xbf16>, vector<64x32xf32> -> vector<64x32xf32>
    %c0_3 = arith.constant 0 : index
    %c0_4 = arith.constant 0 : index
    %3 = vector.load %arg3[%c0_3, %c0_4] : memref<1x32xf32, #tpu.memory_space<vmem>>, vector<1x32xf32>
    %4 = vector.broadcast %3 : vector<1x32xf32> to vector<64x32xf32>
    %5 = arith.addf %2, %4 : vector<64x32xf32>
    %c0_5 = arith.constant 0 : index
    %c0_6 = arith.constant 0 : index
    %6 = vector.load %arg4[%c0_5, %c0_6] : memref<64x32xbf16, #tpu.memory_space<vmem>>, vector<64x32xbf16>
    %7 = arith.extf %6 : vector<64x32xbf16> to vector<64x32xf32>
    %8 = arith.addf %5, %7 : vector<64x32xf32>
    %cst_7 = arith.constant 0.000000e+00 : f32
    %9 = vector.broadcast %cst_7 : f32 to vector<64x32xf32>
    %10 = arith.cmpf oge, %8, %9 : vector<64x32xf32>
    %cst_8 = arith.constant 0.00999999977 : f32
    %11 = vector.broadcast %cst_8 : f32 to vector<64x32xf32>
    %12 = arith.mulf %11, %8 : vector<64x32xf32>
    %13 = arith.select %10, %8, %12 : vector<64x32xi1>, vector<64x32xf32>
    %14 = arith.truncf %13 : vector<64x32xf32> to vector<64x32xbf16>
    %c0_9 = arith.constant 0 : index
    %c0_10 = arith.constant 0 : index
    %15 = vector.load %arg5[%c0_9, %c0_10] : memref<64x32xbf16, #tpu.memory_space<vmem>>, vector<64x32xbf16>
    tpu.vector_store %arg5[%c0_9, %c0_10], %14 {strides = array<i32>} : memref<64x32xbf16, #tpu.memory_space<vmem>>, vector<64x32xbf16>,
    return
  }
  func.func @transform_0(%arg0: i32) -> (i32, i32) {
    %c0_i32 = arith.constant 0 : i32
    %c0_i32_0 = arith.constant 0 : i32
    return %arg0, %c0_i32 : i32, i32
  }
  func.func @transform_1(%arg0: i32) -> (i32, i32) {
    %c0_i32 = arith.constant 0 : i32
    %c0_i32_0 = arith.constant 0 : i32
    %c0_i32_1 = arith.constant 0 : i32
    return %c0_i32, %c0_i32_0 : i32, i32
  }
  func.func @transform_2(%arg0: i32) -> (i32, i32) {
    %c0_i32 = arith.constant 0 : i32
    %c0_i32_0 = arith.constant 0 : i32
    %c0_i32_1 = arith.constant 0 : i32
    return %c0_i32, %c0_i32_0 : i32, i32
  }
  func.func @transform_3(%arg0: i32) -> (i32, i32) {
    %c0_i32 = arith.constant 0 : i32
    %c0_i32_0 = arith.constant 0 : i32
    return %arg0, %c0_i32 : i32, i32
  }
  func.func @transform_4(%arg0: i32) -> (i32, i32) {
    %c0_i32 = arith.constant 0 : i32
    %c0_i32_0 = arith.constant 0 : i32
    return %arg0, %c0_i32 : i32, i32
  }
}

module attributes {stable_mosaic.version = 11 : i64} {
  func.func @_dual_kernel(%arg0: i32, %arg1: memref<16x864xbf16, #tpu.memory_space<vmem>>, %arg2: memref<864x128xbf16, #tpu.memory_space<vmem>>, %arg3: memref<1x128xf32, #tpu.memory_space<vmem>>, %arg4: memref<16x64xbf16, #tpu.memory_space<vmem>>, %arg5: memref<16x64xbf16, #tpu.memory_space<vmem>>) attributes {dimension_semantics = [#tpu.dimension_semantics<parallel>], iteration_bounds = array<i64: 1>, scalar_prefetch = 0 : i64, scratch_operands = 0 : i64, tpu.core_type = #tpu.core_type<tc>, window_params = [{transform_indices = @transform_0, window_bounds = array<i64: 16, 864>}, {pipeline_mode = #tpu.pipeline_mode<synchronous>, transform_indices = @transform_1, window_bounds = array<i64: 864, 128>}, {pipeline_mode = #tpu.pipeline_mode<synchronous>, transform_indices = @transform_2, window_bounds = array<i64: 1, 128>}, {transform_indices = @transform_3, window_bounds = array<i64: 16, 64>}, {transform_indices = @transform_4, window_bounds = array<i64: 16, 64>}]} {
    %c0 = arith.constant 0 : index
    %c0_0 = arith.constant 0 : index
    %0 = vector.load %arg1[%c0, %c0_0] : memref<16x864xbf16, #tpu.memory_space<vmem>>, vector<16x864xbf16>
    %c0_1 = arith.constant 0 : index
    %c0_2 = arith.constant 0 : index
    %1 = vector.load %arg2[%c0_1, %c0_2] : memref<864x128xbf16, #tpu.memory_space<vmem>>, vector<864x128xbf16>
    %cst = arith.constant dense<0.000000e+00> : vector<16x128xf32>
    %2 = tpu.matmul %0, %1, %cst {dimension_numbers = #tpu.dot_dimension_numbers<[1], [0], [0], [1], [0, 0, 1, 1], [], []>} : vector<16x864xbf16>, vector<864x128xbf16>, vector<16x128xf32> -> vector<16x128xf32>
    %c0_3 = arith.constant 0 : index
    %c0_4 = arith.constant 0 : index
    %3 = vector.load %arg3[%c0_3, %c0_4] : memref<1x128xf32, #tpu.memory_space<vmem>>, vector<1x128xf32>
    %4 = vector.broadcast %3 : vector<1x128xf32> to vector<16x128xf32>
    %5 = arith.addf %2, %4 : vector<16x128xf32>
    %6 = vector.extract_strided_slice %5 {offsets = [0, 0], sizes = [16, 64], strides = [1, 1]} : vector<16x128xf32> to vector<16x64xf32>
    %7 = vector.extract_strided_slice %5 {offsets = [0, 64], sizes = [16, 64], strides = [1, 1]} : vector<16x128xf32> to vector<16x64xf32>
    %cst_5 = arith.constant 0.000000e+00 : f32
    %8 = vector.broadcast %cst_5 : f32 to vector<16x64xf32>
    %9 = arith.cmpf oge, %6, %8 : vector<16x64xf32>
    %cst_6 = arith.constant 0.00999999977 : f32
    %10 = vector.broadcast %cst_6 : f32 to vector<16x64xf32>
    %11 = arith.mulf %10, %6 : vector<16x64xf32>
    %12 = arith.select %9, %6, %11 : vector<16x64xi1>, vector<16x64xf32>
    %13 = arith.truncf %12 : vector<16x64xf32> to vector<16x64xbf16>
    %c0_7 = arith.constant 0 : index
    %c0_8 = arith.constant 0 : index
    %14 = vector.load %arg4[%c0_7, %c0_8] : memref<16x64xbf16, #tpu.memory_space<vmem>>, vector<16x64xbf16>
    tpu.vector_store %arg4[%c0_7, %c0_8], %13 {strides = array<i32>} : memref<16x64xbf16, #tpu.memory_space<vmem>>, vector<16x64xbf16>,
    %15 = arith.truncf %7 : vector<16x64xf32> to vector<16x64xbf16>
    %c0_9 = arith.constant 0 : index
    %c0_10 = arith.constant 0 : index
    %16 = vector.load %arg5[%c0_9, %c0_10] : memref<16x64xbf16, #tpu.memory_space<vmem>>, vector<16x64xbf16>
    tpu.vector_store %arg5[%c0_9, %c0_10], %15 {strides = array<i32>} : memref<16x64xbf16, #tpu.memory_space<vmem>>, vector<16x64xbf16>,
    return
  }
  func.func @transform_0(%arg0: i32) -> (i32, i32) {
    %c0_i32 = arith.constant 0 : i32
    %c0_i32_0 = arith.constant 0 : i32
    return %arg0, %c0_i32 : i32, i32
  }
  func.func @transform_1(%arg0: i32) -> (i32, i32) {
    %c0_i32 = arith.constant 0 : i32
    %c0_i32_0 = arith.constant 0 : i32
    %c0_i32_1 = arith.constant 0 : i32
    return %c0_i32, %c0_i32_0 : i32, i32
  }
  func.func @transform_2(%arg0: i32) -> (i32, i32) {
    %c0_i32 = arith.constant 0 : i32
    %c0_i32_0 = arith.constant 0 : i32
    %c0_i32_1 = arith.constant 0 : i32
    return %c0_i32, %c0_i32_0 : i32, i32
  }
  func.func @transform_3(%arg0: i32) -> (i32, i32) {
    %c0_i32 = arith.constant 0 : i32
    %c0_i32_0 = arith.constant 0 : i32
    return %arg0, %c0_i32 : i32, i32
  }
  func.func @transform_4(%arg0: i32) -> (i32, i32) {
    %c0_i32 = arith.constant 0 : i32
    %c0_i32_0 = arith.constant 0 : i32
    return %arg0, %c0_i32 : i32, i32
  }
}

module attributes {stable_mosaic.version = 11 : i64} {
  func.func @_mm_kernel(%arg0: i32, %arg1: memref<16x1728xbf16, #tpu.memory_space<vmem>>, %arg2: memref<1728x64xbf16, #tpu.memory_space<vmem>>, %arg3: memref<1x64xf32, #tpu.memory_space<vmem>>, %arg4: memref<16x64xbf16, #tpu.memory_space<vmem>>, %arg5: memref<16x64xbf16, #tpu.memory_space<vmem>>) attributes {dimension_semantics = [#tpu.dimension_semantics<parallel>], iteration_bounds = array<i64: 1>, scalar_prefetch = 0 : i64, scratch_operands = 0 : i64, tpu.core_type = #tpu.core_type<tc>, window_params = [{transform_indices = @transform_0, window_bounds = array<i64: 16, 1728>}, {pipeline_mode = #tpu.pipeline_mode<synchronous>, transform_indices = @transform_1, window_bounds = array<i64: 1728, 64>}, {pipeline_mode = #tpu.pipeline_mode<synchronous>, transform_indices = @transform_2, window_bounds = array<i64: 1, 64>}, {transform_indices = @transform_3, window_bounds = array<i64: 16, 64>}, {transform_indices = @transform_4, window_bounds = array<i64: 16, 64>}]} {
    %c0 = arith.constant 0 : index
    %c0_0 = arith.constant 0 : index
    %0 = vector.load %arg1[%c0, %c0_0] : memref<16x1728xbf16, #tpu.memory_space<vmem>>, vector<16x1728xbf16>
    %c0_1 = arith.constant 0 : index
    %c0_2 = arith.constant 0 : index
    %1 = vector.load %arg2[%c0_1, %c0_2] : memref<1728x64xbf16, #tpu.memory_space<vmem>>, vector<1728x64xbf16>
    %cst = arith.constant dense<0.000000e+00> : vector<16x64xf32>
    %2 = tpu.matmul %0, %1, %cst {dimension_numbers = #tpu.dot_dimension_numbers<[1], [0], [0], [1], [0, 0, 1, 1], [], []>} : vector<16x1728xbf16>, vector<1728x64xbf16>, vector<16x64xf32> -> vector<16x64xf32>
    %c0_3 = arith.constant 0 : index
    %c0_4 = arith.constant 0 : index
    %3 = vector.load %arg3[%c0_3, %c0_4] : memref<1x64xf32, #tpu.memory_space<vmem>>, vector<1x64xf32>
    %4 = vector.broadcast %3 : vector<1x64xf32> to vector<16x64xf32>
    %5 = arith.addf %2, %4 : vector<16x64xf32>
    %c0_5 = arith.constant 0 : index
    %c0_6 = arith.constant 0 : index
    %6 = vector.load %arg4[%c0_5, %c0_6] : memref<16x64xbf16, #tpu.memory_space<vmem>>, vector<16x64xbf16>
    %7 = arith.extf %6 : vector<16x64xbf16> to vector<16x64xf32>
    %8 = arith.addf %5, %7 : vector<16x64xf32>
    %cst_7 = arith.constant 0.000000e+00 : f32
    %9 = vector.broadcast %cst_7 : f32 to vector<16x64xf32>
    %10 = arith.cmpf oge, %8, %9 : vector<16x64xf32>
    %cst_8 = arith.constant 0.00999999977 : f32
    %11 = vector.broadcast %cst_8 : f32 to vector<16x64xf32>
    %12 = arith.mulf %11, %8 : vector<16x64xf32>
    %13 = arith.select %10, %8, %12 : vector<16x64xi1>, vector<16x64xf32>
    %14 = arith.truncf %13 : vector<16x64xf32> to vector<16x64xbf16>
    %c0_9 = arith.constant 0 : index
    %c0_10 = arith.constant 0 : index
    %15 = vector.load %arg5[%c0_9, %c0_10] : memref<16x64xbf16, #tpu.memory_space<vmem>>, vector<16x64xbf16>
    tpu.vector_store %arg5[%c0_9, %c0_10], %14 {strides = array<i32>} : memref<16x64xbf16, #tpu.memory_space<vmem>>, vector<16x64xbf16>,
    return
  }
  func.func @transform_0(%arg0: i32) -> (i32, i32) {
    %c0_i32 = arith.constant 0 : i32
    %c0_i32_0 = arith.constant 0 : i32
    return %arg0, %c0_i32 : i32, i32
  }
  func.func @transform_1(%arg0: i32) -> (i32, i32) {
    %c0_i32 = arith.constant 0 : i32
    %c0_i32_0 = arith.constant 0 : i32
    %c0_i32_1 = arith.constant 0 : i32
    return %c0_i32, %c0_i32_0 : i32, i32
  }
  func.func @transform_2(%arg0: i32) -> (i32, i32) {
    %c0_i32 = arith.constant 0 : i32
    %c0_i32_0 = arith.constant 0 : i32
    %c0_i32_1 = arith.constant 0 : i32
    return %c0_i32, %c0_i32_0 : i32, i32
  }
  func.func @transform_3(%arg0: i32) -> (i32, i32) {
    %c0_i32 = arith.constant 0 : i32
    %c0_i32_0 = arith.constant 0 : i32
    return %arg0, %c0_i32 : i32, i32
  }
  func.func @transform_4(%arg0: i32) -> (i32, i32) {
    %c0_i32 = arith.constant 0 : i32
    %c0_i32_0 = arith.constant 0 : i32
    return %arg0, %c0_i32 : i32, i32
  }
}

module attributes {stable_mosaic.version = 11 : i64} {
  func.func @_dual_kernel(%arg0: i32, %arg1: memref<2x1728xbf16, #tpu.memory_space<vmem>>, %arg2: memref<1728x128xbf16, #tpu.memory_space<vmem>>, %arg3: memref<1x128xf32, #tpu.memory_space<vmem>>, %arg4: memref<2x64xbf16, #tpu.memory_space<vmem>>, %arg5: memref<2x64xbf16, #tpu.memory_space<vmem>>) attributes {dimension_semantics = [#tpu.dimension_semantics<parallel>], iteration_bounds = array<i64: 1>, scalar_prefetch = 0 : i64, scratch_operands = 0 : i64, tpu.core_type = #tpu.core_type<tc>, window_params = [{transform_indices = @transform_0, window_bounds = array<i64: 2, 1728>}, {pipeline_mode = #tpu.pipeline_mode<synchronous>, transform_indices = @transform_1, window_bounds = array<i64: 1728, 128>}, {pipeline_mode = #tpu.pipeline_mode<synchronous>, transform_indices = @transform_2, window_bounds = array<i64: 1, 128>}, {transform_indices = @transform_3, window_bounds = array<i64: 2, 64>}, {transform_indices = @transform_4, window_bounds = array<i64: 2, 64>}]} {
    %c0 = arith.constant 0 : index
    %c0_0 = arith.constant 0 : index
    %0 = vector.load %arg1[%c0, %c0_0] : memref<2x1728xbf16, #tpu.memory_space<vmem>>, vector<2x1728xbf16>
    %c0_1 = arith.constant 0 : index
    %c0_2 = arith.constant 0 : index
    %1 = vector.load %arg2[%c0_1, %c0_2] : memref<1728x128xbf16, #tpu.memory_space<vmem>>, vector<1728x128xbf16>
    %cst = arith.constant dense<0.000000e+00> : vector<2x128xf32>
    %2 = tpu.matmul %0, %1, %cst {dimension_numbers = #tpu.dot_dimension_numbers<[1], [0], [0], [1], [0, 0, 1, 1], [], []>} : vector<2x1728xbf16>, vector<1728x128xbf16>, vector<2x128xf32> -> vector<2x128xf32>
    %c0_3 = arith.constant 0 : index
    %c0_4 = arith.constant 0 : index
    %3 = vector.load %arg3[%c0_3, %c0_4] : memref<1x128xf32, #tpu.memory_space<vmem>>, vector<1x128xf32>
    %4 = vector.broadcast %3 : vector<1x128xf32> to vector<2x128xf32>
    %5 = arith.addf %2, %4 : vector<2x128xf32>
    %6 = vector.extract_strided_slice %5 {offsets = [0, 0], sizes = [2, 64], strides = [1, 1]} : vector<2x128xf32> to vector<2x64xf32>
    %7 = vector.extract_strided_slice %5 {offsets = [0, 64], sizes = [2, 64], strides = [1, 1]} : vector<2x128xf32> to vector<2x64xf32>
    %cst_5 = arith.constant 0.000000e+00 : f32
    %8 = vector.broadcast %cst_5 : f32 to vector<2x64xf32>
    %9 = arith.cmpf oge, %6, %8 : vector<2x64xf32>
    %cst_6 = arith.constant 0.00999999977 : f32
    %10 = vector.broadcast %cst_6 : f32 to vector<2x64xf32>
    %11 = arith.mulf %10, %6 : vector<2x64xf32>
    %12 = arith.select %9, %6, %11 : vector<2x64xi1>, vector<2x64xf32>
    %13 = arith.truncf %12 : vector<2x64xf32> to vector<2x64xbf16>
    %c0_7 = arith.constant 0 : index
    %c0_8 = arith.constant 0 : index
    %14 = vector.load %arg4[%c0_7, %c0_8] : memref<2x64xbf16, #tpu.memory_space<vmem>>, vector<2x64xbf16>
    tpu.vector_store %arg4[%c0_7, %c0_8], %13 {strides = array<i32>} : memref<2x64xbf16, #tpu.memory_space<vmem>>, vector<2x64xbf16>,
    %15 = arith.truncf %7 : vector<2x64xf32> to vector<2x64xbf16>
    %c0_9 = arith.constant 0 : index
    %c0_10 = arith.constant 0 : index
    %16 = vector.load %arg5[%c0_9, %c0_10] : memref<2x64xbf16, #tpu.memory_space<vmem>>, vector<2x64xbf16>
    tpu.vector_store %arg5[%c0_9, %c0_10], %15 {strides = array<i32>} : memref<2x64xbf16, #tpu.memory_space<vmem>>, vector<2x64xbf16>,
    return
  }
  func.func @transform_0(%arg0: i32) -> (i32, i32) {
    %c0_i32 = arith.constant 0 : i32
    %c0_i32_0 = arith.constant 0 : i32
    return %arg0, %c0_i32 : i32, i32
  }
  func.func @transform_1(%arg0: i32) -> (i32, i32) {
    %c0_i32 = arith.constant 0 : i32
    %c0_i32_0 = arith.constant 0 : i32
    %c0_i32_1 = arith.constant 0 : i32
    return %c0_i32, %c0_i32_0 : i32, i32
  }
  func.func @transform_2(%arg0: i32) -> (i32, i32) {
    %c0_i32 = arith.constant 0 : i32
    %c0_i32_0 = arith.constant 0 : i32
    %c0_i32_1 = arith.constant 0 : i32
    return %c0_i32, %c0_i32_0 : i32, i32
  }
  func.func @transform_3(%arg0: i32) -> (i32, i32) {
    %c0_i32 = arith.constant 0 : i32
    %c0_i32_0 = arith.constant 0 : i32
    return %arg0, %c0_i32 : i32, i32
  }
  func.func @transform_4(%arg0: i32) -> (i32, i32) {
    %c0_i32 = arith.constant 0 : i32
    %c0_i32_0 = arith.constant 0 : i32
    return %arg0, %c0_i32 : i32, i32
  }
}

module attributes {stable_mosaic.version = 11 : i64} {
  func.func @_mm_kernel(%arg0: i32, %arg1: memref<2x1728xbf16, #tpu.memory_space<vmem>>, %arg2: memref<1728x64xbf16, #tpu.memory_space<vmem>>, %arg3: memref<1x64xf32, #tpu.memory_space<vmem>>, %arg4: memref<2x64xbf16, #tpu.memory_space<vmem>>, %arg5: memref<2x64xbf16, #tpu.memory_space<vmem>>) attributes {dimension_semantics = [#tpu.dimension_semantics<parallel>], iteration_bounds = array<i64: 1>, scalar_prefetch = 0 : i64, scratch_operands = 0 : i64, tpu.core_type = #tpu.core_type<tc>, window_params = [{transform_indices = @transform_0, window_bounds = array<i64: 2, 1728>}, {pipeline_mode = #tpu.pipeline_mode<synchronous>, transform_indices = @transform_1, window_bounds = array<i64: 1728, 64>}, {pipeline_mode = #tpu.pipeline_mode<synchronous>, transform_indices = @transform_2, window_bounds = array<i64: 1, 64>}, {transform_indices = @transform_3, window_bounds = array<i64: 2, 64>}, {transform_indices = @transform_4, window_bounds = array<i64: 2, 64>}]} {
    %c0 = arith.constant 0 : index
    %c0_0 = arith.constant 0 : index
    %0 = vector.load %arg1[%c0, %c0_0] : memref<2x1728xbf16, #tpu.memory_space<vmem>>, vector<2x1728xbf16>
    %c0_1 = arith.constant 0 : index
    %c0_2 = arith.constant 0 : index
    %1 = vector.load %arg2[%c0_1, %c0_2] : memref<1728x64xbf16, #tpu.memory_space<vmem>>, vector<1728x64xbf16>
    %cst = arith.constant dense<0.000000e+00> : vector<2x64xf32>
    %2 = tpu.matmul %0, %1, %cst {dimension_numbers = #tpu.dot_dimension_numbers<[1], [0], [0], [1], [0, 0, 1, 1], [], []>} : vector<2x1728xbf16>, vector<1728x64xbf16>, vector<2x64xf32> -> vector<2x64xf32>
    %c0_3 = arith.constant 0 : index
    %c0_4 = arith.constant 0 : index
    %3 = vector.load %arg3[%c0_3, %c0_4] : memref<1x64xf32, #tpu.memory_space<vmem>>, vector<1x64xf32>
    %4 = vector.broadcast %3 : vector<1x64xf32> to vector<2x64xf32>
    %5 = arith.addf %2, %4 : vector<2x64xf32>
    %c0_5 = arith.constant 0 : index
    %c0_6 = arith.constant 0 : index
    %6 = vector.load %arg4[%c0_5, %c0_6] : memref<2x64xbf16, #tpu.memory_space<vmem>>, vector<2x64xbf16>
    %7 = arith.extf %6 : vector<2x64xbf16> to vector<2x64xf32>
    %8 = arith.addf %5, %7 : vector<2x64xf32>
    %cst_7 = arith.constant 0.000000e+00 : f32
    %9 = vector.broadcast %cst_7 : f32 to vector<2x64xf32>
    %10 = arith.cmpf oge, %8, %9 : vector<2x64xf32>
    %cst_8 = arith.constant 0.00999999977 : f32
    %11 = vector.broadcast %cst_8 : f32 to vector<2x64xf32>
    %12 = arith.mulf %11, %8 : vector<2x64xf32>
    %13 = arith.select %10, %8, %12 : vector<2x64xi1>, vector<2x64xf32>
    %14 = arith.truncf %13 : vector<2x64xf32> to vector<2x64xbf16>
    %c0_9 = arith.constant 0 : index
    %c0_10 = arith.constant 0 : index
    %15 = vector.load %arg5[%c0_9, %c0_10] : memref<2x64xbf16, #tpu.memory_space<vmem>>, vector<2x64xbf16>
    tpu.vector_store %arg5[%c0_9, %c0_10], %14 {strides = array<i32>} : memref<2x64xbf16, #tpu.memory_space<vmem>>, vector<2x64xbf16>,
    return
  }
  func.func @transform_0(%arg0: i32) -> (i32, i32) {
    %c0_i32 = arith.constant 0 : i32
    %c0_i32_0 = arith.constant 0 : i32
    return %arg0, %c0_i32 : i32, i32
  }
  func.func @transform_1(%arg0: i32) -> (i32, i32) {
    %c0_i32 = arith.constant 0 : i32
    %c0_i32_0 = arith.constant 0 : i32
    %c0_i32_1 = arith.constant 0 : i32
    return %c0_i32, %c0_i32_0 : i32, i32
  }
  func.func @transform_2(%arg0: i32) -> (i32, i32) {
    %c0_i32 = arith.constant 0 : i32
    %c0_i32_0 = arith.constant 0 : i32
    %c0_i32_1 = arith.constant 0 : i32
    return %c0_i32, %c0_i32_0 : i32, i32
  }
  func.func @transform_3(%arg0: i32) -> (i32, i32) {
    %c0_i32 = arith.constant 0 : i32
    %c0_i32_0 = arith.constant 0 : i32
    return %arg0, %c0_i32 : i32, i32
  }
  func.func @transform_4(%arg0: i32) -> (i32, i32) {
    %c0_i32 = arith.constant 0 : i32
    %c0_i32_0 = arith.constant 0 : i32
    return %arg0, %c0_i32 : i32, i32
  }
}

module attributes {stable_mosaic.version = 11 : i64} {
  func.func @_fc_kernel(%arg0: memref<2x64xbf16, #tpu.memory_space<vmem>>, %arg1: memref<64x512xbf16, #tpu.memory_space<vmem>>, %arg2: memref<1x512xf32, #tpu.memory_space<vmem>>, %arg3: memref<512x64xbf16, #tpu.memory_space<vmem>>, %arg4: memref<1x64xf32, #tpu.memory_space<vmem>>, %arg5: memref<2x64xf32, #tpu.memory_space<vmem>>) attributes {dimension_semantics = [], scalar_prefetch = 0 : i64, scratch_operands = 0 : i64, tpu.core_type = #tpu.core_type<tc>} {
    %c0 = arith.constant 0 : index
    %c0_0 = arith.constant 0 : index
    %0 = vector.load %arg0[%c0, %c0_0] : memref<2x64xbf16, #tpu.memory_space<vmem>>, vector<2x64xbf16>
    %c0_1 = arith.constant 0 : index
    %c0_2 = arith.constant 0 : index
    %1 = vector.load %arg1[%c0_1, %c0_2] : memref<64x512xbf16, #tpu.memory_space<vmem>>, vector<64x512xbf16>
    %cst = arith.constant dense<0.000000e+00> : vector<2x512xf32>
    %2 = tpu.matmul %0, %1, %cst {dimension_numbers = #tpu.dot_dimension_numbers<[1], [0], [0], [1], [0, 0, 1, 1], [], []>} : vector<2x64xbf16>, vector<64x512xbf16>, vector<2x512xf32> -> vector<2x512xf32>
    %c0_3 = arith.constant 0 : index
    %c0_4 = arith.constant 0 : index
    %3 = vector.load %arg2[%c0_3, %c0_4] : memref<1x512xf32, #tpu.memory_space<vmem>>, vector<1x512xf32>
    %4 = vector.broadcast %3 : vector<1x512xf32> to vector<2x512xf32>
    %5 = arith.addf %2, %4 : vector<2x512xf32>
    %6 = math.tanh %5 : vector<2x512xf32>
    %7 = arith.truncf %6 : vector<2x512xf32> to vector<2x512xbf16>
    %c0_5 = arith.constant 0 : index
    %c0_6 = arith.constant 0 : index
    %8 = vector.load %arg3[%c0_5, %c0_6] : memref<512x64xbf16, #tpu.memory_space<vmem>>, vector<512x64xbf16>
    %cst_7 = arith.constant dense<0.000000e+00> : vector<2x64xf32>
    %9 = tpu.matmul %7, %8, %cst_7 {dimension_numbers = #tpu.dot_dimension_numbers<[1], [0], [0], [1], [0, 0, 1, 1], [], []>} : vector<2x512xbf16>, vector<512x64xbf16>, vector<2x64xf32> -> vector<2x64xf32>
    %c0_8 = arith.constant 0 : index
    %c0_9 = arith.constant 0 : index
    %10 = vector.load %arg4[%c0_8, %c0_9] : memref<1x64xf32, #tpu.memory_space<vmem>>, vector<1x64xf32>
    %11 = vector.broadcast %10 : vector<1x64xf32> to vector<2x64xf32>
    %12 = arith.addf %9, %11 : vector<2x64xf32>
    %13 = arith.negf %12 : vector<2x64xf32>
    %14 = math.exp %13 : vector<2x64xf32>
    %cst_10 = arith.constant 1.000000e+00 : f32
    %15 = vector.broadcast %cst_10 : f32 to vector<2x64xf32>
    %16 = arith.addf %15, %14 : vector<2x64xf32>
    %17 = arith.divf %15, %16 : vector<2x64xf32>
    %c0_11 = arith.constant 0 : index
    %c0_12 = arith.constant 0 : index
    %18 = vector.load %arg5[%c0_11, %c0_12] : memref<2x64xf32, #tpu.memory_space<vmem>>, vector<2x64xf32>
    tpu.vector_store %arg5[%c0_11, %c0_12], %17 {strides = array<i32>} : memref<2x64xf32, #tpu.memory_space<vmem>>, vector<2x64xf32>,
    return
  }
}

</mosaic_0001>

<bundles_post_ra>
// kernel: encoder_forward.12
= control target key start
LH: loop header
LB: loop body
LE: loop exit
PB: predicated region body
PF: predicated region fallthrough
CT: control target
= control target key end

     0   :  { %s1491_s15 = smov 0   ;;  %s1980_s0 = inlined_call_operand.vmem [shape: bf16[2048,81], index: 0, kind: input, shape index: {}]   ;;  %s1981_s1 = inlined_call_operand.vmem [shape: bf16[81,16], index: 1, kind: input, shape index: {}]   ;;  %s1982_s2 = inlined_call_operand.vmem [shape: f32[1,16], index: 2, kind: input, shape index: {}]   ;;  %s1983_s3 = inlined_call_operand.vmem [shape: bf16[2048,8], index: 3, kind: output, shape index: {0}]   ;;  %s1984_s4 = inlined_call_operand.vmem [shape: bf16[2048,8], index: 4, kind: output, shape index: {1}]  }
   0x1 LB: > { %s1166_s16 = sadd.s32 4294967295, %s1462_s15   ;;  %p1170_p0 = scmp.ge.s32.totalorder %s1462_s15, 1  ;;  %s1462_s15 = sphi %s1491_s15, %s15_s15  }
   0x2   : > { %p166_p1 = scmp.lt.s32.totalorder %s1462_s15, 9 }
   0x4   : > { %p167_p2 = pnand %p1170_p0, %p166_p1 }
   0x5   : > { %v1434_v0 = vld [vmem:[%s1981_s1] sm:$0xff] (!%p167_p2)   ;;  %v1435_v1 = vld [vmem:[%s1981_s1 + $0x8] sm:$0xff] (!%p167_p2)   ;;  %s1171_s21 = sshll.u32 (!%p167_p2), %s1166_s16, 5  ;;  %v1436_v2 = vld [vmem:[%s1981_s1 + $0x10] sm:$0xff] (!%p167_p2)   ;;  %vm428_vm0 = vcmask (!%p167_p2), 1040384   ;;  %vm379_vm1 = vcmask (!%p167_p2), 662528  }
   0x6   : > { %170 = sbr.rel (%p167_p2) target bundleno = 429 (0x1ad), region = 32  ;;  %1368 = vmatprep.subr.bf16.mxu0 (!%p167_p2), %v1434_v0  ;;  %1412 = vmatprep.subr.bf16.mxu1 (!%p167_p2), %v1434_v0  ;;  %p198_p3 = scmp.lt.s32.totalorder (!%p167_p2), %s1171_s21, 255  ;;  %v1437_v3 = vld [vmem:[%s1981_s1 + $0x18] sm:$0xff] (!%p167_p2)   ;;  %v1439_v4 = vld [vmem:[%s1981_s1 + $0x28] ss:$0 sps:$4 sm:$0x11] (!%p167_p2)  }
   0x7   : > { %1369 = vmatpush3.bf16.msra.mxu0 (!%p167_p2), %v1434_v0  ;;  %1418 = vmatpush3.bf16.msra.mxu1 (!%p167_p2), %v1434_v0  ;;  %v1438_v7 = vld [vmem:[%s1981_s1 + $0x20] sm:$0xff] (!%p167_p2)   ;;  %v1464_v8 = vmov (!%p167_p2), 0   ;;  %vm819_vm2 = vcmask (!%p167_p2), 60416   ;;  %s1465_s13 = smov (!%p167_p2), 120  }
   0x8   : > { %1370 = vmatprep.subr.bf16.mxu0 (!%p167_p2), %v1435_v1  ;;  %1413 = vmatprep.subr.bf16.mxu1 (!%p167_p2), %v1435_v1  ;;  %v430_v9 = vsel (!%p167_p2), %vm428_vm0, 65535, %v1464_v8  ;;  %v1560_v25 = vld [vmem:[%s1982_s2] ss:$0 sm:$0xff] (!%p167_p2) }
   0x9   : > { %v432_v10 = vand.u32 (!%p167_p2), %v1439_v4, %v430_v9 }
   0xb   : > { %1371 = vmatpush3.bf16.msra.mxu0 (!%p167_p2), %v1435_v1  ;;  %1419 = vmatpush3.bf16.msra.mxu1 (!%p167_p2), %v1435_v1 }
   0xc   : > { %1372 = vmatprep.subr.bf16.mxu0 (!%p167_p2), %v1436_v2  ;;  %1414 = vmatprep.subr.bf16.mxu1 (!%p167_p2), %v1436_v2 }
   0xd   : > { %s1986_s21 = smov (!%p198_p3, %s1171_s21), 255 }
   0xe   : > { %s1511_s26 = sshll.u32 %s1986_s21, 2 }
   0xf   : > { %s1517_s29 = scalar_lea.vmem %s1980_s0, %s1511_s26  ;;  %1373 = vmatpush3.bf16.msra.mxu0 %v1436_v2  ;;  %1420 = vmatpush3.bf16.msra.mxu1 %v1436_v2  ;;  %s1578_s12 = scalar_lea.vmem %s1983_s3, %s1511_s26 }
  0x10   : > { %v1440_v5 = vld [vmem:[%s1517_s29] sm:$0xff]   ;;  %1374 = vmatprep.subr.bf16.mxu0 %v1437_v3  ;;  %1415 = vmatprep.subr.bf16.mxu1 %v1437_v3  ;;  %v1442_v11 = vld [vmem:[%s1517_s29 + $0x8] sm:$0xff]   ;;  %v1444_v13 = vld [vmem:[%s1517_s29 + $0x10] sm:$0xff]   ;;  %s1911_s17 = scalar_lea.vmem %s1984_s4, %s1511_s26 }
  0x11   : > { %v1441_v6 = vld [vmem:[%s1517_s29 + $0x40] sm:$0xff]   ;;  %1380 = vmatprep.mubr.msk.bf16.mxu0 %vm379_vm1, %v1440_v5  ;;  %v1443_v12 = vld [vmem:[%s1517_s29 + $0x48] sm:$0xff]   ;;  %v1446_v14 = vld [vmem:[%s1517_s29 + $0x50] sm:$0xff]  }
  0x12   : > { %1396 = vmatprep.mubr.msk.bf16.mxu1 %vm379_vm1, %v1441_v6  ;;  %v1445_v15 = vld [vmem:[%s1517_s29 + $0x18] sm:$0xff]   ;;  %v1448_v17 = vld [vmem:[%s1517_s29 + $0x20] sm:$0xff]   ;;  %v1449_v19 = vld [vmem:[%s1517_s29 + $0x28] sm:$0xff]  }
  0x13   : > { %1375 = vmatpush3.bf16.msra.mxu0 %v1437_v3  ;;  %1421 = vmatpush3.bf16.msra.mxu1 %v1437_v3  ;;  %v1447_v16 = vld [vmem:[%s1517_s29 + $0x58] sm:$0xff]   ;;  %v1450_v18 = vld [vmem:[%s1517_s29 + $0x60] sm:$0xff]   ;;  %v1451_v20 = vld [vmem:[%s1517_s29 + $0x68] sm:$0xff]  }
  0x14   : > { %1376 = vmatprep.subr.bf16.mxu0 %v1438_v7  ;;  %1416 = vmatprep.subr.bf16.mxu1 %v1438_v7  ;;  %v1452_v21 = vld [vmem:[%s1517_s29 + $0x30] sm:$0xff]   ;;  %v1453_v23 = vld [vmem:[%s1517_s29 + $0x38] sm:$0xff]  }
  0x15   : > { %v1454_v22 = vld [vmem:[%s1517_s29 + $0x70] sm:$0xff]   ;;  %v1455_v24 = vld [vmem:[%s1517_s29 + $0x78] sm:$0xff]  }
  0x17   : > { %1377 = vmatpush3.bf16.msra.mxu0 %v1438_v7  ;;  %1422 = vmatpush3.bf16.msra.mxu1 %v1438_v7 }
  0x18   : > { %1378 = vmatprep.subr.bf16.mxu0 %v432_v10  ;;  %1417 = vmatprep.subr.bf16.mxu1 %v432_v10 }
  0x1b   : > { %1379 = vmatpush3.bf16.msra.mxu0 %v432_v10  ;;  %1423 = vmatpush3.bf16.msra.mxu1 %v432_v10 }
  0x1e   : > { %1381 = vmatmul.mubr.msk.bf16.vlgmr.msra.gmra.mrb[0].mxu0 %vm379_vm1, %v1442_v11  ;;  %1397 = vmatmul.mubr.msk.bf16.vlgmr.msra.gmra.mrb[0].mxu1 %vm379_vm1, %v1443_v12 }
  0x1f   : > { %1384 = vmatprep.mubr.msk.bf16.mxu0 %vm379_vm1, %v1444_v13  ;;  %1400 = vmatprep.mubr.msk.bf16.mxu1 %vm379_vm1, %v1446_v14 }
  0x26   : > { %1385 = vmatmul.mubr.msk.bf16.gmra.mrb[4].mxu0 %vm379_vm1, %v1445_v15  ;;  %1401 = vmatmul.mubr.msk.bf16.gmra.mrb[4].mxu1 %vm379_vm1, %v1447_v16 }
  0x27   : > { %1388 = vmatprep.mubr.msk.bf16.mxu0 %vm379_vm1, %v1448_v17  ;;  %1404 = vmatprep.mubr.msk.bf16.mxu1 %vm379_vm1, %v1450_v18 }
  0x2e   : > { %1389 = vmatmul.mubr.msk.bf16.gmra.mrb[8].mxu0 %vm379_vm1, %v1449_v19  ;;  %1405 = vmatmul.mubr.msk.bf16.gmra.mrb[8].mxu1 %vm379_vm1, %v1451_v20 }
  0x2f   : > { %1392 = vmatprep.mubr.msk.bf16.mxu0 %vm379_vm1, %v1452_v21  ;;  %1408 = vmatprep.mubr.msk.bf16.mxu1 %vm379_vm1, %v1454_v22 }
  0x36   : > { %1393 = vmatmul.mubr.msk.bf16.gmra.mrb[12].mxu0 %vm379_vm1, %v1453_v23  ;;  %1409 = vmatmul.mubr.msk.bf16.gmra.mrb[12].mxu1 %vm379_vm1, %v1455_v24 }
  0xf1   : > { %v1382_v26 = vpop.f32.mrb[0].mxu0  ;;  %v1398_v27 = vpop.f32.mrb[0].mxu1 }
  0xf2   : > { %v477_v28 = vadd.f32 %v1382_v26, %v1560_v25  ;;  %v541_v29 = vadd.f32 %v1398_v27, %v1560_v25  ;;  %v468_v30 = vpop.f32.mrb[1].mxu0  ;;  %v532_v31 = vpop.f32.mrb[1].mxu1 }
  0xf3   : > { %v1565_v32 = vadd.f32 %v1560_v25, %v468_v30  ;;  %v1568_v33 = vadd.f32 %v1560_v25, %v532_v31  ;;  %v1383_v34 = vpop.f32.mrb[2].mxu0  ;;  %v1399_v35 = vpop.f32.mrb[2].mxu1 }
  0xf4   : > { %vm597_vm3 = vcmp.ge.f32.partialorder %v477_v28, 0.0  ;;  %v629_v36 = vmul.f32 0.01, %v477_v28  ;;  %vm613_vm4 = vcmp.ge.f32.partialorder %v541_v29, 0.0  ;;  %v645_v37 = vmul.f32 0.01, %v541_v29 }
  0xf5   : > { %vm595_vm5 = vcmp.ge.f32.partialorder %v1565_v32, 0.0  ;;  %v627_v38 = vmul.f32 0.01, %v1565_v32  ;;  %vm611_vm6 = vcmp.ge.f32.partialorder %v1568_v33, 0.0  ;;  %v643_v39 = vmul.f32 0.01, %v1568_v33 }
  0xf6   : > { %v661_v40 = vsel %vm597_vm3, %v477_v28, %v629_v36  ;;  %v677_v41 = vsel %vm613_vm4, %v541_v29, %v645_v37  ;;  %v480_v42 = vadd.f32 %v1383_v34, %v1560_v25  ;;  %v1582_v43 = vadd.f32 %v1399_v35, %v1560_v25  ;;  %v471_v44 = vpop.f32.mrb[3].mxu0  ;;  %v535_v45 = vpop.f32.mrb[3].mxu1 }
  0xf7   : > { %v1284_v46 = vpack.c.bf16 %v661_v40, %v661_v40  ;;  %v1300_v47 = vpack.c.bf16 %v677_v41, %v677_v41  ;;  %v659_v48 = vsel %vm595_vm5, %v1565_v32, %v627_v38  ;;  %v675_v49 = vsel %vm611_vm6, %v1568_v33, %v643_v39 }
  0xf8   : > { %v1282_v50 = vpack.c.bf16 %v659_v48, %v659_v48  ;;  %v1298_v51 = vpack.c.bf16 %v675_v49, %v675_v49  ;;  %vm598_vm7 = vcmp.ge.f32.partialorder %v480_v42, 0.0  ;;  %v630_v52 = vmul.f32 0.01, %v480_v42 }
  0xf9   : > { %822 = vst.msk [vmem:[%s1578_s12 + $0x8] sm:$0xf] %vm819_vm2, %v1284_v46  ;;  %838 = vst.msk [vmem:[%s1578_s12 + $0x48] sm:$0xf] %vm819_vm2, %v1300_v47  ;;  %vm614_vm8 = vcmp.ge.f32.partialorder %v1582_v43, 0.0  ;;  %v1593_v54 = vadd.f32 %v1560_v25, %v471_v44  ;;  %v1596_v55 = vadd.f32 %v1560_v25, %v535_v45  ;;  %v1386_v56 = vpop.f32.mrb[4].mxu0  ;;  %v1332_v59 = vpack.c.bf16 %v541_v29, %v541_v29 }
  0xfa   : > { %v646_v53 = vmul.f32 0.01, %v1582_v43  ;;  %v1402_v57 = vpop.f32.mrb[4].mxu1  ;;  %820 = vst.msk [vmem:[%s1578_s12] sm:$0xf] %vm819_vm2, %v1282_v50  ;;  %v662_v58 = vsel %vm598_vm7, %v480_v42, %v630_v52  ;;  %v1316_v60 = vpack.c.bf16 %v477_v28, %v477_v28  ;;  %v1317_v61 = vpack.c.bf16 %v480_v42, %v480_v42  ;;  %v484_v62 = vpop.f32.mrb[5].mxu0 }
  0xfb   : > { %836 = vst.msk [vmem:[%s1578_s12 + $0x40] sm:$0xf] %vm819_vm2, %v1298_v51  ;;  %v548_v63 = vpop.f32.mrb[5].mxu1  ;;  %v1285_v0 = vpack.c.bf16 %v662_v58, %v662_v58  ;;  %vm596_vm9 = vcmp.ge.f32.partialorder %v1593_v54, 0.0  ;;  %v628_v2 = vmul.f32 0.01, %v1593_v54  ;;  %984 = vrot.lane.b32.xlu0 %v1332_v59, %s1465_s13  ;;  %v1610_v7 = vadd.f32 %v1386_v56, %v1560_v25 }
  0xfc   : > { %v678_v1 = vsel %vm614_vm8, %v1582_v43, %v646_v53  ;;  %v1387_v3 = vpop.f32.mrb[6].mxu0  ;;  %v1403_v4 = vpop.f32.mrb[6].mxu1  ;;  %vm612_vm10 = vcmp.ge.f32.partialorder %v1596_v55, 0.0  ;;  %v644_v6 = vmul.f32 0.01, %v1596_v55  ;;  %952 = vrot.lane.b32.xlu1 %v1316_v60, %s1465_s13  ;;  %v1314_v11 = vpack.c.bf16 %v1565_v32, %v1565_v32 }
  0xfd   : > { %v1301_v5 = vpack.c.bf16 %v678_v1, %v678_v1  ;;  %v487_v8 = vpop.f32.mrb[7].mxu0  ;;  %v551_v9 = vpop.f32.mrb[7].mxu1  ;;  %823 = vst.msk [vmem:[%s1578_s12 + $0xc] sm:$0xf] %vm819_vm2, %v1285_v0  ;;  %v660_v10 = vsel %vm596_vm9, %v1593_v54, %v628_v2  ;;  %v1618_v12 = vadd.f32 %v1560_v25, %v484_v62  ;;  %v1621_v13 = vadd.f32 %v1387_v3, %v1560_v25 }
  0xfe   : > { %v1283_v14 = vpack.c.bf16 %v660_v10, %v660_v10  ;;  %v676_v15 = vsel %vm612_vm10, %v1596_v55, %v644_v6  ;;  %vm601_vm11 = vcmp.ge.f32.partialorder %v1610_v7, 0.0  ;;  %v633_v16 = vmul.f32 0.01, %v1610_v7 }
  0xff   : > { %839 = vst.msk [vmem:[%s1578_s12 + $0x4c] sm:$0xf] %vm819_vm2, %v1301_v5  ;;  %v1299_v17 = vpack.c.bf16 %v676_v15, %v676_v15  ;;  %vm599_vm12 = vcmp.ge.f32.partialorder %v1618_v12, 0.0  ;;  %v631_v18 = vmul.f32 0.01, %v1618_v12  ;;  %vm602_vm13 = vcmp.ge.f32.partialorder %v1621_v13, 0.0  ;;  %948 = vrot.lane.b32.xlu0 %v1314_v11, %s1465_s13 }
 0x100   : > { %821 = vst.msk [vmem:[%s1578_s12 + $0x4] sm:$0xf] %vm819_vm2, %v1283_v14  ;;  %954 = vrot.lane.b32.xlu1 %v1317_v61, %s1465_s13  ;;  %v665_v19 = vsel %vm601_vm11, %v1610_v7, %v633_v16  ;;  %v634_v20 = vmul.f32 0.01, %v1621_v13  ;;  %v1638_v21 = vadd.f32 %v1560_v25, %v487_v8  ;;  %v1641_v22 = vadd.f32 %v1402_v57, %v1560_v25 }
 0x101   : > { %837 = vst.msk [vmem:[%s1578_s12 + $0x44] sm:$0xf] %vm819_vm2, %v1299_v17  ;;  %v1288_v23 = vpack.c.bf16 %v665_v19, %v665_v19  ;;  %v663_v24 = vsel %vm599_vm12, %v1618_v12, %v631_v18  ;;  %v1333_v26 = vpack.c.bf16 %v1582_v43, %v1582_v43  ;;  %v1330_v27 = vpack.c.bf16 %v1568_v33, %v1568_v33  ;;  %v1390_v28 = vpop.f32.mrb[8].mxu0  ;;  %v1406_v29 = vpop.f32.mrb[8].mxu1 }
 0x102   : > { %v1286_v30 = vpack.c.bf16 %v663_v24, %v663_v24  ;;  %v666_v31 = vsel %vm602_vm13, %v1621_v13, %v634_v20  ;;  %vm600_vm14 = vcmp.ge.f32.partialorder %v1638_v21, 0.0  ;;  %v632_v32 = vmul.f32 0.01, %v1638_v21  ;;  %v500_v34 = vpop.f32.mrb[9].mxu0  ;;  %v1655_v35 = vpop.f32.mrb[9].mxu1 }
 0x103   : > { %826 = vst.msk [vmem:[%s1578_s12 + $0x18] sm:$0xf] %vm819_vm2, %v1288_v23  ;;  %v1289_v36 = vpack.c.bf16 %v666_v31, %v666_v31  ;;  %vm617_vm15 = vcmp.ge.f32.partialorder %v1641_v22, 0.0  ;;  %v649_v33 = vmul.f32 0.01, %v1641_v22  ;;  %v1662_v37 = vadd.f32 %v1560_v25, %v548_v63  ;;  %v1391_v38 = vpop.f32.mrb[10].mxu0  ;;  %980 = vrot.lane.b32.xlu0 %v1330_v27, %s1465_s13 }
 0x104   : > { %v1664_v39 = vpop.f32.mrb[10].mxu1  ;;  %824 = vst.msk [vmem:[%s1578_s12 + $0x10] sm:$0xf] %vm819_vm2, %v1286_v30  ;;  %v664_v40 = vsel %vm600_vm14, %v1638_v21, %v632_v32  ;;  %986 = vrot.lane.b32.xlu1 %v1333_v26, %s1465_s13  ;;  %v1672_v41 = vadd.f32 %v1403_v4, %v1560_v25  ;;  %v1675_v42 = vadd.f32 %v1560_v25, %v551_v9  ;;  %v503_v43 = vpop.f32.mrb[11].mxu0 }
 0x105   : > { %v1677_v44 = vpop.f32.mrb[11].mxu1  ;;  %827 = vst.msk [vmem:[%s1578_s12 + $0x1c] sm:$0xf] %vm819_vm2, %v1289_v36  ;;  %v1287_v45 = vpack.c.bf16 %v664_v40, %v664_v40  ;;  %v681_v46 = vsel %vm617_vm15, %v1641_v22, %v649_v33  ;;  %vm615_vm0 = vcmp.ge.f32.partialorder %v1662_v37, 0.0  ;;  %v647_v47 = vmul.f32 0.01, %v1662_v37 }
 0x106   : > { %v1304_v48 = vpack.c.bf16 %v681_v46, %v681_v46  ;;  %vm618_vm1 = vcmp.ge.f32.partialorder %v1672_v41, 0.0  ;;  %v650_v49 = vmul.f32 0.01, %v1672_v41  ;;  %vm616_vm3 = vcmp.ge.f32.partialorder %v1675_v42, 0.0 }
 0x107   : > { %825 = vst.msk [vmem:[%s1578_s12 + $0x14] sm:$0xf] %vm819_vm2, %v1287_v45  ;;  %v679_v50 = vsel %vm615_vm0, %v1662_v37, %v647_v47  ;;  %v648_v51 = vmul.f32 0.01, %v1675_v42  ;;  %v1331_v52 = vpack.c.bf16 %v1596_v55, %v1596_v55  ;;  %v1315_v53 = vpack.c.bf16 %v1593_v54, %v1593_v54 }
 0x108   : > { %842 = vst.msk [vmem:[%s1578_s12 + $0x58] sm:$0xf] %vm819_vm2, %v1304_v48  ;;  %v1302_v56 = vpack.c.bf16 %v679_v50, %v679_v50  ;;  %v682_v57 = vsel %vm618_vm1, %v1672_v41, %v650_v49  ;;  %v1321_v58 = vpack.c.bf16 %v1621_v13, %v1621_v13  ;;  %v1320_v55 = vpack.c.bf16 %v1610_v7, %v1610_v7 }
 0x109   : > { %v1305_v59 = vpack.c.bf16 %v682_v57, %v682_v57  ;;  %v680_v60 = vsel %vm616_vm3, %v1675_v42, %v648_v51  ;;  %982 = vrot.lane.b32.xlu1 %v1331_v52, %s1465_s13  ;;  %950 = vrot.lane.b32.xlu0 %v1315_v53, %s1465_s13  ;;  %v1394_v54 = vpop.f32.mrb[12].mxu0  ;;  %v1705_v61 = vpop.f32.mrb[12].mxu1  ;;  %v1337_v63 = vpack.c.bf16 %v1672_v41, %v1672_v41 }
 0x10a   : > { %840 = vst.msk [vmem:[%s1578_s12 + $0x50] sm:$0xf] %vm819_vm2, %v1302_v56  ;;  %v1303_v62 = vpack.c.bf16 %v680_v60, %v680_v60  ;;  %v1712_v0 = vadd.f32 %v1390_v28, %v1560_v25  ;;  %v1715_v1 = vadd.f32 %v1560_v25, %v500_v34  ;;  %v1717_v2 = vpop.f32.mrb[13].mxu0  ;;  %v1719_v3 = vpop.f32.mrb[13].mxu1  ;;  %v1336_v4 = vpack.c.bf16 %v1641_v22, %v1641_v22 }
 0x10b   : > { %843 = vst.msk [vmem:[%s1578_s12 + $0x5c] sm:$0xf] %vm819_vm2, %v1305_v59  ;;  %v1726_v5 = vadd.f32 %v1391_v38, %v1560_v25  ;;  %v1729_v6 = vadd.f32 %v1560_v25, %v503_v43  ;;  %v1732_v7 = vadd.f32 %v1406_v29, %v1560_v25  ;;  %v1734_v8 = vpop.f32.mrb[14].mxu0  ;;  %v1736_v9 = vpop.f32.mrb[14].mxu1  ;;  %v1767_v30 = vadd.f32 %v1560_v25, %v1655_v35 }
 0x10c   : > { %841 = vst.msk [vmem:[%s1578_s12 + $0x54] sm:$0xf] %vm819_vm2, %v1303_v62  ;;  %vm605_vm4 = vcmp.ge.f32.partialorder %v1712_v0, 0.0  ;;  %v637_v10 = vmul.f32 0.01, %v1712_v0  ;;  %vm603_vm5 = vcmp.ge.f32.partialorder %v1715_v1, 0.0  ;;  %v1771_v31 = vadd.f32 %v1664_v39, %v1560_v25 }
 0x10d   : > { %v635_v11 = vmul.f32 0.01, %v1715_v1  ;;  %962 = vrot.lane.b32.xlu1 %v1321_v58, %s1465_s13  ;;  %960 = vrot.lane.b32.xlu0 %v1320_v55, %s1465_s13  ;;  %vm606_vm6 = vcmp.ge.f32.partialorder %v1726_v5, 0.0  ;;  %v638_v13 = vmul.f32 0.01, %v1726_v5  ;;  %vm604_vm7 = vcmp.ge.f32.partialorder %v1729_v6, 0.0 }
 0x10e   : > { %v636_v14 = vmul.f32 0.01, %v1729_v6  ;;  %v669_v15 = vsel %vm605_vm4, %v1712_v0, %v637_v10  ;;  %vm621_vm8 = vcmp.ge.f32.partialorder %v1732_v7, 0.0  ;;  %v653_v17 = vmul.f32 0.01, %v1732_v7  ;;  %v519_v18 = vpop.f32.mrb[15].mxu0 }
 0x10f   : > { %v667_v16 = vsel %vm603_vm5, %v1715_v1, %v635_v11  ;;  %v1754_v19 = vpop.f32.mrb[15].mxu1  ;;  %v1292_v20 = vpack.c.bf16 %v669_v15, %v669_v15  ;;  %v670_v23 = vsel %vm606_vm6, %v1726_v5, %v638_v13  ;;  %v1319_v32 = vpack.c.bf16 %v1638_v21, %v1638_v21 }
 0x110   : > { %v1290_v22 = vpack.c.bf16 %v667_v16, %v667_v16  ;;  %v668_v24 = vsel %vm604_vm7, %v1729_v6, %v636_v14  ;;  %v1293_v26 = vpack.c.bf16 %v670_v23, %v670_v23  ;;  %v685_v28 = vsel %vm621_vm8, %v1732_v7, %v653_v17 }
 0x111   : > { %v1291_v27 = vpack.c.bf16 %v668_v24, %v668_v24  ;;  %994 = vrot.lane.b32.xlu1 %v1337_v63, %s1465_s13  ;;  %830 = vst.msk [vmem:[%s1578_s12 + $0x28] sm:$0xf] %vm819_vm2, %v1292_v20  ;;  %992 = vrot.lane.b32.xlu0 %v1336_v4, %s1465_s13  ;;  %v1308_v29 = vpack.c.bf16 %v685_v28, %v685_v28  ;;  %vm619_vm9 = vcmp.ge.f32.partialorder %v1767_v30, 0.0  ;;  %v651_v35 = vmul.f32 0.01, %v1767_v30 }
 0x112   : > { %828 = vst.msk [vmem:[%s1578_s12 + $0x20] sm:$0xf] %vm819_vm2, %v1290_v22  ;;  %831 = vst.msk [vmem:[%s1578_s12 + $0x2c] sm:$0xf] %vm819_vm2, %v1293_v26  ;;  %v1318_v34 = vpack.c.bf16 %v1618_v12, %v1618_v12  ;;  %v1783_v36 = vadd.f32 %v1560_v25, %v1677_v44  ;;  %vm622_vm10 = vcmp.ge.f32.partialorder %v1771_v31, 0.0  ;;  %v1794_v12 = vadd.f32 %v1394_v54, %v1560_v25 }
 0x113   : > { %829 = vst.msk [vmem:[%s1578_s12 + $0x24] sm:$0xf] %vm819_vm2, %v1291_v27  ;;  %846 = vst.msk [vmem:[%s1578_s12 + $0x68] sm:$0xf] %vm819_vm2, %v1308_v29  ;;  %v654_v33 = vmul.f32 0.01, %v1771_v31  ;;  %v683_v38 = vsel %vm619_vm9, %v1767_v30, %v651_v35  ;;  %v1335_v40 = vpack.c.bf16 %v1675_v42, %v1675_v42  ;;  %v1334_v46 = vpack.c.bf16 %v1662_v37, %v1662_v37 }
 0x114   : > { %vm620_vm11 = vcmp.ge.f32.partialorder %v1783_v36, 0.0  ;;  %v652_v21 = vmul.f32 0.01, %v1783_v36  ;;  %v1306_v41 = vpack.c.bf16 %v683_v38, %v683_v38  ;;  %vm609_vm12 = vcmp.ge.f32.partialorder %v1794_v12, 0.0 }
 0x115   : > { %958 = vrot.lane.b32.xlu1 %v1319_v32, %s1465_s13  ;;  %956 = vrot.lane.b32.xlu0 %v1318_v34, %s1465_s13  ;;  %v686_v39 = vsel %vm622_vm10, %v1771_v31, %v654_v33  ;;  %v641_v47 = vmul.f32 0.01, %v1794_v12  ;;  %v1809_v48 = vadd.f32 %v1560_v25, %v1717_v2  ;;  %v1325_v42 = vpack.c.bf16 %v1726_v5, %v1726_v5 }
 0x116   : > { %v1309_v43 = vpack.c.bf16 %v686_v39, %v686_v39  ;;  %v684_v44 = vsel %vm620_vm11, %v1783_v36, %v652_v21  ;;  %844 = vst.msk [vmem:[%s1578_s12 + $0x60] sm:$0xf] %vm819_vm2, %v1306_v41  ;;  %v1324_v49 = vpack.c.bf16 %v1712_v0, %v1712_v0  ;;  %v1821_v50 = vadd.f32 %v1734_v8, %v1560_v25 }
 0x117   : > { %v1307_v45 = vpack.c.bf16 %v684_v44, %v684_v44  ;;  %v1824_v37 = vadd.f32 %v1560_v25, %v519_v18  ;;  %v673_v51 = vsel %vm609_vm12, %v1794_v12, %v641_v47  ;;  %vm607_vm13 = vcmp.ge.f32.partialorder %v1809_v48, 0.0 }
 0x118   : > { %847 = vst.msk [vmem:[%s1578_s12 + $0x6c] sm:$0xf] %vm819_vm2, %v1309_v43  ;;  %v639_v52 = vmul.f32 0.01, %v1809_v48  ;;  %v1835_v53 = vadd.f32 %v1705_v61, %v1560_v25  ;;  %v1296_v56 = vpack.c.bf16 %v673_v51, %v673_v51  ;;  %vm610_vm14 = vcmp.ge.f32.partialorder %v1821_v50, 0.0 }
 0x119   : > { %845 = vst.msk [vmem:[%s1578_s12 + $0x64] sm:$0xf] %vm819_vm2, %v1307_v45  ;;  %990 = vrot.lane.b32.xlu1 %v1335_v40, %s1465_s13  ;;  %988 = vrot.lane.b32.xlu0 %v1334_v46, %s1465_s13  ;;  %v642_v57 = vmul.f32 0.01, %v1821_v50  ;;  %vm608_vm15 = vcmp.ge.f32.partialorder %v1824_v37, 0.0  ;;  %v581_v61 = vadd.f32 %v1560_v25, %v1719_v3  ;;  %v1341_v3 = vpack.c.bf16 %v1771_v31, %v1771_v31 }
 0x11a   : > { %v671_v58 = vsel %vm607_vm13, %v1809_v48, %v639_v52  ;;  %v640_v59 = vmul.f32 0.01, %v1824_v37  ;;  %vm625_vm0 = vcmp.ge.f32.partialorder %v1835_v53, 0.0  ;;  %v657_v60 = vmul.f32 0.01, %v1835_v53 }
 0x11b   : > { %834 = vst.msk [vmem:[%s1578_s12 + $0x38] sm:$0xf] %vm819_vm2, %v1296_v56  ;;  %v1294_v55 = vpack.c.bf16 %v671_v58, %v671_v58  ;;  %v674_v54 = vsel %vm610_vm14, %v1821_v50, %v642_v57  ;;  %vm623_vm1 = vcmp.ge.f32.partialorder %v581_v61, 0.0  ;;  %v655_v5 = vmul.f32 0.01, %v581_v61 }
 0x11c   : > { %v1297_v62 = vpack.c.bf16 %v674_v54, %v674_v54  ;;  %v672_v63 = vsel %vm608_vm15, %v1824_v37, %v640_v59  ;;  %v689_v0 = vsel %vm625_vm0, %v1835_v53, %v657_v60  ;;  %v1340_v8 = vpack.c.bf16 %v1732_v7, %v1732_v7 }
 0x11d   : > { %970 = vrot.lane.b32.xlu1 %v1325_v42, %s1465_s13  ;;  %968 = vrot.lane.b32.xlu0 %v1324_v49, %s1465_s13  ;;  %832 = vst.msk [vmem:[%s1578_s12 + $0x30] sm:$0xf] %vm819_vm2, %v1294_v55  ;;  %v1295_v2 = vpack.c.bf16 %v672_v63, %v672_v63  ;;  %v1312_v4 = vpack.c.bf16 %v689_v0, %v689_v0 }
 0x11e   : > { %835 = vst.msk [vmem:[%s1578_s12 + $0x3c] sm:$0xf] %vm819_vm2, %v1297_v62  ;;  %v592_v10 = vadd.f32 %v1736_v9, %v1560_v25  ;;  %v584_v11 = vadd.f32 %v1560_v25, %v1754_v19  ;;  %v687_v13 = vsel %vm623_vm1, %v581_v61, %v655_v5  ;;  %v1323_v9 = vpack.c.bf16 %v1729_v6, %v1729_v6 }
 0x11f   : > { %833 = vst.msk [vmem:[%s1578_s12 + $0x34] sm:$0xf] %vm819_vm2, %v1295_v2  ;;  %850 = vst.msk [vmem:[%s1578_s12 + $0x78] sm:$0xf] %vm819_vm2, %v1312_v4  ;;  %v1310_v7 = vpack.c.bf16 %v687_v13, %v687_v13  ;;  %v1322_v25 = vpack.c.bf16 %v1715_v1, %v1715_v1  ;;  %v1339_v20 = vpack.c.bf16 %v1783_v36, %v1783_v36 }
 0x120   : > { %vm626_vm3 = vcmp.ge.f32.partialorder %v592_v10, 0.0  ;;  %v658_v14 = vmul.f32 0.01, %v592_v10  ;;  %vm624_vm4 = vcmp.ge.f32.partialorder %v584_v11, 0.0  ;;  %v656_v15 = vmul.f32 0.01, %v584_v11 }
 0x121   : > { %1002 = vrot.lane.b32.xlu1 %v1341_v3, %s1465_s13  ;;  %1000 = vrot.lane.b32.xlu0 %v1340_v8, %s1465_s13  ;;  %848 = vst.msk [vmem:[%s1578_s12 + $0x70] sm:$0xf] %vm819_vm2, %v1310_v7  ;;  %v1338_v6 = vpack.c.bf16 %v1767_v30, %v1767_v30  ;;  %v1329_v1 = vpack.c.bf16 %v1821_v50, %v1821_v50 }
 0x122   : > { %v690_v16 = vsel %vm626_vm3, %v592_v10, %v658_v14  ;;  %v688_v18 = vsel %vm624_vm4, %v584_v11, %v656_v15  ;;  %v1328_v22 = vpack.c.bf16 %v1794_v12, %v1794_v12  ;;  %v1327_v23 = vpack.c.bf16 %v1824_v37, %v1824_v37 }
 0x123   : > { %v1313_v17 = vpack.c.bf16 %v690_v16, %v690_v16  ;;  %v1311_v19 = vpack.c.bf16 %v688_v18, %v688_v18  ;;  %v1326_v24 = vpack.c.bf16 %v1809_v48, %v1809_v48  ;;  %v1343_v26 = vpack.c.bf16 %v584_v11, %v584_v11 }
 0x124   : > { %v1342_v27 = vpack.c.bf16 %v581_v61, %v581_v61  ;;  %v1345_v28 = vpack.c.bf16 %v592_v10, %v592_v10  ;;  %v1344_v29 = vpack.c.bf16 %v1835_v53, %v1835_v53 }
 0x125   : > { %966 = vrot.lane.b32.xlu1 %v1323_v9, %s1465_s13  ;;  %964 = vrot.lane.b32.xlu0 %v1322_v25, %s1465_s13  ;;  %851 = vst.msk [vmem:[%s1578_s12 + $0x7c] sm:$0xf] %vm819_vm2, %v1313_v17  ;;  %849 = vst.msk [vmem:[%s1578_s12 + $0x74] sm:$0xf] %vm819_vm2, %v1311_v19 }
 0x129   : > { %998 = vrot.lane.b32.xlu1 %v1339_v20, %s1465_s13  ;;  %996 = vrot.lane.b32.xlu0 %v1338_v6, %s1465_s13 }
 0x12d   : > { %978 = vrot.lane.b32.xlu1 %v1329_v1, %s1465_s13  ;;  %976 = vrot.lane.b32.xlu0 %v1328_v22, %s1465_s13 }
 0x131   : > { %974 = vrot.lane.b32.xlu1 %v1327_v23, %s1465_s13  ;;  %972 = vrot.lane.b32.xlu0 %v1326_v24, %s1465_s13 }
 0x135   : > { %1006 = vrot.lane.b32.xlu1 %v1343_v26, %s1465_s13  ;;  %1004 = vrot.lane.b32.xlu0 %v1342_v27, %s1465_s13 }
 0x139   : > { %1010 = vrot.lane.b32.xlu1 %v1345_v28, %s1465_s13  ;;  %1008 = vrot.lane.b32.xlu0 %v1344_v29, %s1465_s13 }
 0x16d   : > { %v985_v30 = vpop.permute.xlu0 %984 }
 0x16e   : > { %v953_v31 = vpop.permute.xlu1 %952  ;;  %1062 = vst.msk [vmem:[%s1911_s17 + $0x48] sm:$0xf] %vm819_vm2, %v985_v30 }
 0x16f   : > { %1046 = vst.msk [vmem:[%s1911_s17 + $0x8] sm:$0xf] %vm819_vm2, %v953_v31 }
 0x171   : > { %v949_v34 = vpop.permute.xlu0 %948 }
 0x172   : > { %v955_v32 = vpop.permute.xlu1 %954  ;;  %1044 = vst.msk [vmem:[%s1911_s17] sm:$0xf] %vm819_vm2, %v949_v34 }
 0x173   : > { %1047 = vst.msk [vmem:[%s1911_s17 + $0xc] sm:$0xf] %vm819_vm2, %v955_v32 }
 0x175   : > { %v981_v35 = vpop.permute.xlu0 %980 }
 0x176   : > { %v987_v36 = vpop.permute.xlu1 %986  ;;  %1060 = vst.msk [vmem:[%s1911_s17 + $0x40] sm:$0xf] %vm819_vm2, %v981_v35 }
 0x177   : > { %1063 = vst.msk [vmem:[%s1911_s17 + $0x4c] sm:$0xf] %vm819_vm2, %v987_v36 }
 0x17b   : > { %v983_v33 = vpop.permute.xlu1 %982  ;;  %v951_v21 = vpop.permute.xlu0 %950 }
 0x17c   : > { %1061 = vst.msk [vmem:[%s1911_s17 + $0x44] sm:$0xf] %vm819_vm2, %v983_v33  ;;  %1045 = vst.msk [vmem:[%s1911_s17 + $0x4] sm:$0xf] %vm819_vm2, %v951_v21 }
 0x17f   : > { %v963_v12 = vpop.permute.xlu1 %962  ;;  %v961_v38 = vpop.permute.xlu0 %960 }
 0x180   : > { %1051 = vst.msk [vmem:[%s1911_s17 + $0x1c] sm:$0xf] %vm819_vm2, %v963_v12  ;;  %1050 = vst.msk [vmem:[%s1911_s17 + $0x18] sm:$0xf] %vm819_vm2, %v961_v38 }
 0x183   : > { %v995_v39 = vpop.permute.xlu1 %994  ;;  %v993_v40 = vpop.permute.xlu0 %992 }
 0x184   : > { %1067 = vst.msk [vmem:[%s1911_s17 + $0x5c] sm:$0xf] %vm819_vm2, %v995_v39  ;;  %1066 = vst.msk [vmem:[%s1911_s17 + $0x58] sm:$0xf] %vm819_vm2, %v993_v40 }
 0x187   : > { %v959_v41 = vpop.permute.xlu1 %958  ;;  %v957_v43 = vpop.permute.xlu0 %956 }
 0x188   : > { %1049 = vst.msk [vmem:[%s1911_s17 + $0x14] sm:$0xf] %vm819_vm2, %v959_v41  ;;  %1048 = vst.msk [vmem:[%s1911_s17 + $0x10] sm:$0xf] %vm819_vm2, %v957_v43 }
 0x18b   : > { %v991_v44 = vpop.permute.xlu1 %990  ;;  %v989_v45 = vpop.permute.xlu0 %988 }
 0x18c   : > { %1065 = vst.msk [vmem:[%s1911_s17 + $0x54] sm:$0xf] %vm819_vm2, %v991_v44  ;;  %1064 = vst.msk [vmem:[%s1911_s17 + $0x50] sm:$0xf] %vm819_vm2, %v989_v45 }
 0x18f   : > { %v971_v46 = vpop.permute.xlu1 %970  ;;  %v969_v47 = vpop.permute.xlu0 %968 }
 0x190   : > { %1055 = vst.msk [vmem:[%s1911_s17 + $0x2c] sm:$0xf] %vm819_vm2, %v971_v46  ;;  %1054 = vst.msk [vmem:[%s1911_s17 + $0x28] sm:$0xf] %vm819_vm2, %v969_v47 }
 0x193   : > { %v1003_v48 = vpop.permute.xlu1 %1002  ;;  %v1001_v42 = vpop.permute.xlu0 %1000 }
 0x194   : > { %1071 = vst.msk [vmem:[%s1911_s17 + $0x6c] sm:$0xf] %vm819_vm2, %v1003_v48  ;;  %1070 = vst.msk [vmem:[%s1911_s17 + $0x68] sm:$0xf] %vm819_vm2, %v1001_v42 }
 0x197   : > { %v967_v49 = vpop.permute.xlu1 %966  ;;  %v965_v50 = vpop.permute.xlu0 %964 }
 0x198   : > { %1053 = vst.msk [vmem:[%s1911_s17 + $0x24] sm:$0xf] %vm819_vm2, %v967_v49  ;;  %1052 = vst.msk [vmem:[%s1911_s17 + $0x20] sm:$0xf] %vm819_vm2, %v965_v50 }
 0x19b   : > { %v999_v37 = vpop.permute.xlu1 %998  ;;  %v997_v51 = vpop.permute.xlu0 %996 }
 0x19c   : > { %1069 = vst.msk [vmem:[%s1911_s17 + $0x64] sm:$0xf] %vm819_vm2, %v999_v37  ;;  %1068 = vst.msk [vmem:[%s1911_s17 + $0x60] sm:$0xf] %vm819_vm2, %v997_v51 }
 0x19f   : > { %v979_v52 = vpop.permute.xlu1 %978  ;;  %v977_v53 = vpop.permute.xlu0 %976 }
 0x1a0   : > { %1059 = vst.msk [vmem:[%s1911_s17 + $0x3c] sm:$0xf] %vm819_vm2, %v979_v52  ;;  %1058 = vst.msk [vmem:[%s1911_s17 + $0x38] sm:$0xf] %vm819_vm2, %v977_v53 }
 0x1a3   : > { %v975_v56 = vpop.permute.xlu1 %974  ;;  %v973_v57 = vpop.permute.xlu0 %972 }
 0x1a4   : > { %1057 = vst.msk [vmem:[%s1911_s17 + $0x34] sm:$0xf] %vm819_vm2, %v975_v56  ;;  %1056 = vst.msk [vmem:[%s1911_s17 + $0x30] sm:$0xf] %vm819_vm2, %v973_v57 }
 0x1a7   : > { %v1007_v58 = vpop.permute.xlu1 %1006  ;;  %v1005_v59 = vpop.permute.xlu0 %1004 }
 0x1a8   : > { %1073 = vst.msk [vmem:[%s1911_s17 + $0x74] sm:$0xf] %vm819_vm2, %v1007_v58  ;;  %1072 = vst.msk [vmem:[%s1911_s17 + $0x70] sm:$0xf] %vm819_vm2, %v1005_v59 }
 0x1ab   : > { %v1011_v60 = vpop.permute.xlu1 %1010  ;;  %v1009_v55 = vpop.permute.xlu0 %1008 }
 0x1ac   : > { %1075 = vst.msk [vmem:[%s1911_s17 + $0x7c] sm:$0xf] %vm819_vm2, %v1011_v60  ;;  %1074 = vst.msk [vmem:[%s1911_s17 + $0x78] sm:$0xf] %vm819_vm2, %v1009_v55 }
 0x1ad PF: > { %s15_s15 = sadd.s32 1, %s1462_s15  }
 0x1ae   : > { %p12_p4 = scmp.ge.s32.totalorder %s15_s15, 10  }
 0x1b0   :  { %14 = sbr.rel (!%p12_p4) target bundleno = 1 (0x1), region = 74 }

// kernel: encoder_forward.13
= control target key start
LH: loop header
LB: loop body
LE: loop exit
PB: predicated region body
PF: predicated region fallthrough
CT: control target
= control target key end

     0   :  { %s1507_s15 = smov 0   ;;  %s1776_s0 = inlined_call_operand.vmem [shape: bf16[2048,216], index: 0, kind: input, shape index: {}]   ;;  %s1777_s1 = inlined_call_operand.vmem [shape: bf16[216,8], index: 1, kind: input, shape index: {}]   ;;  %s1778_s2 = inlined_call_operand.vmem [shape: f32[1,8], index: 2, kind: input, shape index: {}]   ;;  %s1779_s3 = inlined_call_operand.vmem [shape: bf16[2048,8], index: 3, kind: input, shape index: {}]   ;;  %s1780_s4 = inlined_call_operand.vmem [shape: bf16[2048,8], index: 4, kind: output, shape index: {}]  }
   0x1 LB: > { %s1153_s16 = sadd.s32 4294967295, %s1479_s15   ;;  %p1157_p0 = scmp.ge.s32.totalorder %s1479_s15, 1  ;;  %s1479_s15 = sphi %s1507_s15, %s14_s15  }
   0x2   : > { %p175_p1 = scmp.lt.s32.totalorder %s1479_s15, 9 }
   0x4   : > { %p176_p2 = pnand %p1157_p0, %p175_p1 }
   0x5   : > { %v1411_v0 = vld [vmem:[%s1777_s1] sm:$0xff] (!%p176_p2)   ;;  %v1481_v1 = vmov (!%p176_p2), 0   ;;  %v1412_v2 = vld [vmem:[%s1777_s1 + $0x8] sm:$0xff] (!%p176_p2)   ;;  %s1158_s21 = sshll.u32 (!%p176_p2), %s1153_s16, 5  ;;  %v1413_v3 = vld [vmem:[%s1777_s1 + $0x10] sm:$0xff] (!%p176_p2)   ;;  %vm518_vm0 = vcmask (!%p176_p2), 719872  }
   0x6   : > { %179 = sbr.rel (%p176_p2) target bundleno = 344 (0x158), region = 36  ;;  %571 = vmatprep.subr.bf16.mxu0 (!%p176_p2), %v1481_v1  ;;  %1374 = vmatprep.subr.bf16.mxu1 (!%p176_p2), %v1481_v1  ;;  %p208_p3 = scmp.lt.s32.totalorder (!%p176_p2), %s1158_s21, 255  ;;  %v1414_v4 = vld [vmem:[%s1777_s1 + $0x18] sm:$0xff] (!%p176_p2)   ;;  %v1415_v5 = vld [vmem:[%s1777_s1 + $0x20] sm:$0xff] (!%p176_p2)   ;;  %v1416_v8 = vld [vmem:[%s1777_s1 + $0x28] sm:$0xff] (!%p176_p2)   ;;  %vm567_vm1 = vcmask (!%p176_p2), 1043456  }
   0x7   : > { %572 = vmatpush1.bf16.msra.mxu0 (!%p176_p2), %v1411_v0  ;;  %1388 = vmatpush1.bf16.msra.mxu1 (!%p176_p2), %v1411_v0  ;;  %v1417_v9 = vld [vmem:[%s1777_s1 + $0x30] sm:$0xff] (!%p176_p2)   ;;  %v1418_v10 = vld [vmem:[%s1777_s1 + $0x38] sm:$0xff] (!%p176_p2)   ;;  %v1419_v11 = vld [vmem:[%s1777_s1 + $0x40] sm:$0xff] (!%p176_p2)   ;;  %vm1052_vm4 = vcmask (!%p176_p2), 60416  }
   0x8   : > { %573 = vmatprep.subr.bf16.mxu0 (!%p176_p2), %v1481_v1  ;;  %1375 = vmatprep.subr.bf16.mxu1 (!%p176_p2), %v1481_v1  ;;  %v1420_v12 = vld [vmem:[%s1777_s1 + $0x48] sm:$0xff] (!%p176_p2)   ;;  %v1421_v13 = vld [vmem:[%s1777_s1 + $0x50] sm:$0xff] (!%p176_p2)   ;;  %v1422_v14 = vld [vmem:[%s1777_s1 + $0x58] sm:$0xff] (!%p176_p2)  }
   0x9   : > { %v1423_v15 = vld [vmem:[%s1777_s1 + $0x60] sm:$0xff] (!%p176_p2)   ;;  %v1424_v16 = vld [vmem:[%s1777_s1 + $0x68] ss:$0 sps:$4 sm:$0xff] (!%p176_p2)  }
   0xa   : > { %v569_v17 = vsel (!%p176_p2), %vm567_vm1, %v1424_v16, 0  ;;  %v1654_v50 = vld [vmem:[%s1778_s2] ss:$0 sm:$0xff] (!%p176_p2) }
   0xb   : > { %574 = vmatpush1.bf16.msra.mxu0 (!%p176_p2), %v1412_v2  ;;  %1389 = vmatpush1.bf16.msra.mxu1 (!%p176_p2), %v1412_v2 }
   0xc   : > { %575 = vmatprep.subr.bf16.mxu0 (!%p176_p2), %v1481_v1  ;;  %1376 = vmatprep.subr.bf16.mxu1 (!%p176_p2), %v1481_v1 }
   0xd   : > { %s1782_s21 = smov (!%p208_p3, %s1158_s21), 255 }
   0xe   : > { %s1262_s24 = sshll.u32 %s1782_s21, 3  ;;  %s1162_s26 = sshll.u32 %s1782_s21, 2 }
   0xf   : > { %576 = vmatpush1.bf16.msra.mxu0 %v1413_v3  ;;  %1390 = vmatpush1.bf16.msra.mxu1 %v1413_v3  ;;  %s1541_s29 = scalar_lea.vmem %s1776_s0, %s1262_s24  ;;  %s1647_s30 = scalar_lea.vmem %s1779_s3, %s1162_s26 }
  0x10   : > { %577 = vmatprep.subr.bf16.mxu0 %v1481_v1  ;;  %1377 = vmatprep.subr.bf16.mxu1 %v1481_v1  ;;  %v1427_v6 = vld [vmem:[%s1541_s29 + $0x4] ss:$8 sps:$4 sm:$0xff]   ;;  %v1425_v18 = vld [vmem:[%s1541_s29] ss:$8 sps:$4 sm:$0xff]   ;;  %v1431_v20 = vld [vmem:[%s1541_s29 + $0x14] ss:$8 sps:$4 sm:$0xff]   ;;  %s1667_s8 = scalar_lea.vmem %s1780_s4, %s1162_s26 }
  0x11   : > { %1212 = vmatprep.mubr.msk.bf16.mxu0 %vm518_vm0, %v1427_v6  ;;  %v1430_v7 = vld [vmem:[%s1541_s29 + $0x84] ss:$8 sps:$4 sm:$0xff]   ;;  %v1428_v19 = vld [vmem:[%s1541_s29 + $0x80] ss:$8 sps:$4 sm:$0xff]   ;;  %v1433_v21 = vld [vmem:[%s1541_s29 + $0x94] ss:$8 sps:$4 sm:$0xff]  }
  0x12   : > { %1220 = vmatprep.mubr.msk.bf16.mxu1 %vm518_vm0, %v1430_v7  ;;  %v1435_v22 = vld [vmem:[%s1541_s29 + $0x10] ss:$8 sps:$4 sm:$0xff]   ;;  %v1437_v24 = vld [vmem:[%s1541_s29 + $0x24] ss:$8 sps:$4 sm:$0xff]   ;;  %v1441_v26 = vld [vmem:[%s1541_s29 + $0x20] ss:$8 sps:$4 sm:$0xff]  }
  0x13   : > { %578 = vmatpush1.bf16.msra.mxu0 %v1414_v4  ;;  %1391 = vmatpush1.bf16.msra.mxu1 %v1414_v4  ;;  %v1436_v23 = vld [vmem:[%s1541_s29 + $0x90] ss:$8 sps:$4 sm:$0xff]   ;;  %v1439_v25 = vld [vmem:[%s1541_s29 + $0xa4] ss:$8 sps:$4 sm:$0xff]   ;;  %v1442_v27 = vld [vmem:[%s1541_s29 + $0xa0] ss:$8 sps:$4 sm:$0xff]  }
  0x14   : > { %579 = vmatprep.subr.bf16.mxu0 %v1481_v1  ;;  %1378 = vmatprep.subr.bf16.mxu1 %v1481_v1  ;;  %v1443_v28 = vld [vmem:[%s1541_s29 + $0x34] ss:$8 sps:$4 sm:$0xff]   ;;  %v1447_v30 = vld [vmem:[%s1541_s29 + $0x30] ss:$8 sps:$4 sm:$0xff]   ;;  %v1449_v32 = vld [vmem:[%s1541_s29 + $0x44] ss:$8 sps:$4 sm:$0xff]  }
  0x15   : > { %v1445_v29 = vld [vmem:[%s1541_s29 + $0xb4] ss:$8 sps:$4 sm:$0xff]   ;;  %v1448_v31 = vld [vmem:[%s1541_s29 + $0xb0] ss:$8 sps:$4 sm:$0xff]   ;;  %v1451_v33 = vld [vmem:[%s1541_s29 + $0xc4] ss:$8 sps:$4 sm:$0xff]  }
  0x16   : > { %v1453_v34 = vld [vmem:[%s1541_s29 + $0x40] ss:$8 sps:$4 sm:$0xff]   ;;  %v1455_v36 = vld [vmem:[%s1541_s29 + $0x54] ss:$8 sps:$4 sm:$0xff]   ;;  %v1459_v38 = vld [vmem:[%s1541_s29 + $0x50] ss:$8 sps:$4 sm:$0xff]  }
  0x17   : > { %580 = vmatpush1.bf16.msra.mxu0 %v1415_v5  ;;  %1392 = vmatpush1.bf16.msra.mxu1 %v1415_v5  ;;  %v1454_v35 = vld [vmem:[%s1541_s29 + $0xc0] ss:$8 sps:$4 sm:$0xff]   ;;  %v1457_v37 = vld [vmem:[%s1541_s29 + $0xd4] ss:$8 sps:$4 sm:$0xff]   ;;  %v1460_v39 = vld [vmem:[%s1541_s29 + $0xd0] ss:$8 sps:$4 sm:$0xff]  }
  0x18   : > { %581 = vmatprep.subr.bf16.mxu0 %v1481_v1  ;;  %1379 = vmatprep.subr.bf16.mxu1 %v1481_v1  ;;  %v1461_v40 = vld [vmem:[%s1541_s29 + $0x64] ss:$8 sps:$4 sm:$0xff]   ;;  %v1465_v42 = vld [vmem:[%s1541_s29 + $0x60] ss:$8 sps:$4 sm:$0xff]   ;;  %v1467_v44 = vld [vmem:[%s1541_s29 + $0x74] ss:$8 sps:$4 sm:$0xff]  }
  0x19   : > { %v1463_v41 = vld [vmem:[%s1541_s29 + $0xe4] ss:$8 sps:$4 sm:$0xff]   ;;  %v1466_v43 = vld [vmem:[%s1541_s29 + $0xe0] ss:$8 sps:$4 sm:$0xff]   ;;  %v1469_v45 = vld [vmem:[%s1541_s29 + $0xf4] ss:$8 sps:$4 sm:$0xff]  }
  0x1a   : > { %v1471_v46 = vld [vmem:[%s1541_s29 + $0x70] ss:$8 sps:$4 sm:$0xff]   ;;  %v1296_v48 = vld [vmem:[%s1647_s30] sm:$0xff]   ;;  %v1359_v5 = vld [vmem:[%s1647_s30 + $0x8] sm:$0xff]  }
  0x1b   : > { %582 = vmatpush1.bf16.msra.mxu0 %v1416_v8  ;;  %1393 = vmatpush1.bf16.msra.mxu1 %v1416_v8  ;;  %v1472_v47 = vld [vmem:[%s1541_s29 + $0xf0] ss:$8 sps:$4 sm:$0xff]   ;;  %v1366_v49 = vld [vmem:[%s1647_s30 + $0x40] sm:$0xff]   ;;  %v1297_v51 = vunpack.c.l.bf16 %v1296_v48  ;;  %v1298_v60 = vunpack.c.h.bf16 %v1296_v48  ;;  %v1367_v6 = vld [vmem:[%s1647_s30 + $0x48] sm:$0xff]  }
  0x1c   : > { %583 = vmatprep.subr.bf16.mxu0 %v1481_v1  ;;  %1380 = vmatprep.subr.bf16.mxu1 %v1481_v1  ;;  %v1329_v52 = vunpack.c.l.bf16 %v1366_v49  ;;  %v1330_v62 = vunpack.c.h.bf16 %v1366_v49 }
  0x1f   : > { %584 = vmatpush1.bf16.msra.mxu0 %v1417_v9  ;;  %1394 = vmatpush1.bf16.msra.mxu1 %v1417_v9 }
  0x20   : > { %585 = vmatprep.subr.bf16.mxu0 %v1481_v1  ;;  %1381 = vmatprep.subr.bf16.mxu1 %v1481_v1 }
  0x23   : > { %586 = vmatpush1.bf16.msra.mxu0 %v1418_v10  ;;  %1395 = vmatpush1.bf16.msra.mxu1 %v1418_v10 }
  0x24   : > { %587 = vmatprep.subr.bf16.mxu0 %v1481_v1  ;;  %1382 = vmatprep.subr.bf16.mxu1 %v1481_v1 }
  0x27   : > { %588 = vmatpush1.bf16.msra.mxu0 %v1419_v11  ;;  %1396 = vmatpush1.bf16.msra.mxu1 %v1419_v11 }
  0x28   : > { %589 = vmatprep.subr.bf16.mxu0 %v1481_v1  ;;  %1383 = vmatprep.subr.bf16.mxu1 %v1481_v1 }
  0x2b   : > { %590 = vmatpush1.bf16.msra.mxu0 %v1420_v12  ;;  %1397 = vmatpush1.bf16.msra.mxu1 %v1420_v12 }
  0x2c   : > { %591 = vmatprep.subr.bf16.mxu0 %v1481_v1  ;;  %1384 = vmatprep.subr.bf16.mxu1 %v1481_v1 }
  0x2f   : > { %592 = vmatpush1.bf16.msra.mxu0 %v1421_v13  ;;  %1398 = vmatpush1.bf16.msra.mxu1 %v1421_v13  ;;  %v1301_v13 = vunpack.c.l.bf16 %v1359_v5 }
  0x30   : > { %593 = vmatprep.subr.bf16.mxu0 %v1481_v1  ;;  %1385 = vmatprep.subr.bf16.mxu1 %v1481_v1 }
  0x33   : > { %594 = vmatpush1.bf16.msra.mxu0 %v1422_v14  ;;  %1399 = vmatpush1.bf16.msra.mxu1 %v1422_v14  ;;  %v1333_v14 = vunpack.c.l.bf16 %v1367_v6 }
  0x34   : > { %595 = vmatprep.subr.bf16.mxu0 %v1481_v1  ;;  %1386 = vmatprep.subr.bf16.mxu1 %v1481_v1 }
  0x37   : > { %596 = vmatpush1.bf16.msra.mxu0 %v1423_v15  ;;  %1400 = vmatpush1.bf16.msra.mxu1 %v1423_v15 }
  0x38   : > { %597 = vmatprep.subr.bf16.mxu0 %v1481_v1  ;;  %1387 = vmatprep.subr.bf16.mxu1 %v1481_v1 }
  0x3b   : > { %598 = vmatpush1.bf16.msra.mxu0 %v569_v17  ;;  %1401 = vmatpush1.bf16.msra.mxu1 %v569_v17 }
  0x3e   : > { %604 = vmatmul.mubr.bf16.vlgmr.msra.gmra.mrb[0].mxu0 %v1425_v18  ;;  %668 = vmatmul.mubr.bf16.vlgmr.msra.gmra.mrb[0].mxu1 %v1428_v19 }
  0x3f   : > { %1213 = vmatprep.mubr.msk.bf16.mxu0 %vm518_vm0, %v1431_v20  ;;  %1221 = vmatprep.mubr.msk.bf16.mxu1 %vm518_vm0, %v1433_v21 }
  0x46   : > { %612 = vmatmul.mubr.bf16.gmra.mrb[4].mxu0 %v1435_v22  ;;  %676 = vmatmul.mubr.bf16.gmra.mrb[4].mxu1 %v1436_v23 }
  0x47   : > { %1214 = vmatprep.mubr.msk.bf16.mxu0 %vm518_vm0, %v1437_v24  ;;  %1222 = vmatprep.mubr.msk.bf16.mxu1 %vm518_vm0, %v1439_v25 }
  0x4e   : > { %620 = vmatmul.mubr.bf16.gmra.mrb[8].mxu0 %v1441_v26  ;;  %684 = vmatmul.mubr.bf16.gmra.mrb[8].mxu1 %v1442_v27  ;;  %v1302_v27 = vunpack.c.h.bf16 %v1359_v5 }
  0x4f   : > { %1215 = vmatprep.mubr.msk.bf16.mxu0 %vm518_vm0, %v1443_v28  ;;  %1223 = vmatprep.mubr.msk.bf16.mxu1 %vm518_vm0, %v1445_v29  ;;  %v1334_v29 = vunpack.c.h.bf16 %v1367_v6 }
  0x56   : > { %628 = vmatmul.mubr.bf16.gmra.mrb[12].mxu0 %v1447_v30  ;;  %692 = vmatmul.mubr.bf16.gmra.mrb[12].mxu1 %v1448_v31 }
  0x57   : > { %1216 = vmatprep.mubr.msk.bf16.mxu0 %vm518_vm0, %v1449_v32  ;;  %1224 = vmatprep.mubr.msk.bf16.mxu1 %vm518_vm0, %v1451_v33 }
  0x5e   : > { %636 = vmatmul.mubr.bf16.gmra.mrb[16].mxu0 %v1453_v34  ;;  %700 = vmatmul.mubr.bf16.gmra.mrb[16].mxu1 %v1454_v35 }
  0x5f   : > { %1217 = vmatprep.mubr.msk.bf16.mxu0 %vm518_vm0, %v1455_v36  ;;  %1225 = vmatprep.mubr.msk.bf16.mxu1 %vm518_vm0, %v1457_v37 }
  0x66   : > { %644 = vmatmul.mubr.bf16.gmra.mrb[20].mxu0 %v1459_v38  ;;  %708 = vmatmul.mubr.bf16.gmra.mrb[20].mxu1 %v1460_v39  ;;  %v1360_v39 = vld [vmem:[%s1647_s30 + $0x10] sm:$0xff]  }
  0x67   : > { %1218 = vmatprep.mubr.msk.bf16.mxu0 %vm518_vm0, %v1461_v40  ;;  %1226 = vmatprep.mubr.msk.bf16.mxu1 %vm518_vm0, %v1463_v41  ;;  %v1368_v40 = vld [vmem:[%s1647_s30 + $0x50] sm:$0xff]  }
  0x68   : > { %v1337_v48 = vunpack.c.l.bf16 %v1368_v40 }
  0x6e   : > { %652 = vmatmul.mubr.bf16.gmra.mrb[24].mxu0 %v1465_v42  ;;  %716 = vmatmul.mubr.bf16.gmra.mrb[24].mxu1 %v1466_v43 }
  0x6f   : > { %1219 = vmatprep.mubr.msk.bf16.mxu0 %vm518_vm0, %v1467_v44  ;;  %1227 = vmatprep.mubr.msk.bf16.mxu1 %vm518_vm0, %v1469_v45 }
  0x76   : > { %660 = vmatmul.mubr.bf16.gmra.mrb[28].mxu0 %v1471_v46  ;;  %724 = vmatmul.mubr.bf16.gmra.mrb[28].mxu1 %v1472_v47  ;;  %v1305_v47 = vunpack.c.l.bf16 %v1360_v39 }
 0x111   : > { %v605_v53 = vpop.f32.mrb[0].mxu0  ;;  %v669_v54 = vpop.f32.mrb[0].mxu1 }
 0x112   : > { %v606_v55 = vadd.f32 %v1654_v50, %v605_v53  ;;  %v670_v56 = vadd.f32 %v1654_v50, %v669_v54  ;;  %v607_v57 = vpop.f32.mrb[1].mxu0  ;;  %v671_v58 = vpop.f32.mrb[1].mxu1 }
 0x113   : > { %v608_v59 = vpop.f32.mrb[2].mxu0  ;;  %v672_v61 = vpop.f32.mrb[2].mxu1 }
 0x114   : > { %v796_v63 = vadd.f32 %v1297_v51, %v606_v55  ;;  %v812_v0 = vadd.f32 %v1329_v52, %v670_v56  ;;  %v609_v1 = vadd.f32 %v1654_v50, %v608_v59  ;;  %v673_v2 = vadd.f32 %v1654_v50, %v672_v61  ;;  %v610_v3 = vpop.f32.mrb[3].mxu0  ;;  %v674_v4 = vpop.f32.mrb[3].mxu1 }
 0x116   : > { %vm828_vm2 = vcmp.ge.f32.partialorder %v796_v63, 0.0  ;;  %v860_v7 = vmul.f32 0.01, %v796_v63  ;;  %vm844_vm3 = vcmp.ge.f32.partialorder %v812_v0, 0.0  ;;  %v876_v8 = vmul.f32 0.01, %v812_v0 }
 0x117   : > { %v797_v9 = vadd.f32 %v1298_v60, %v609_v1  ;;  %v813_v10 = vadd.f32 %v1330_v62, %v673_v2  ;;  %v1306_v62 = vunpack.c.h.bf16 %v1360_v39 }
 0x118   : > { %v892_v11 = vsel %vm828_vm2, %v796_v63, %v860_v7  ;;  %v908_v12 = vsel %vm844_vm3, %v812_v0, %v876_v8  ;;  %v1338_v0 = vunpack.c.h.bf16 %v1368_v40 }
 0x119   : > { %v1263_v15 = vpack.c.bf16 %v892_v11, %v892_v11  ;;  %v1279_v16 = vpack.c.bf16 %v908_v12, %v908_v12  ;;  %vm829_vm5 = vcmp.ge.f32.partialorder %v797_v9, 0.0  ;;  %v861_v17 = vmul.f32 0.01, %v797_v9  ;;  %v613_v18 = vpop.f32.mrb[4].mxu0  ;;  %v677_v19 = vpop.f32.mrb[4].mxu1  ;;  %v1369_v11 = vld [vmem:[%s1647_s30 + $0x58] sm:$0xff]  }
 0x11a   : > { %vm845_vm6 = vcmp.ge.f32.partialorder %v813_v10, 0.0  ;;  %v877_v20 = vmul.f32 0.01, %v813_v10  ;;  %v614_v21 = vadd.f32 %v1654_v50, %v613_v18  ;;  %v678_v22 = vadd.f32 %v1654_v50, %v677_v19  ;;  %v615_v23 = vpop.f32.mrb[5].mxu0  ;;  %v679_v24 = vpop.f32.mrb[5].mxu1 }
 0x11b   : > { %1053 = vst.msk [vmem:[%s1667_s8] sm:$0xf] %vm1052_vm4, %v1263_v15  ;;  %1069 = vst.msk [vmem:[%s1667_s8 + $0x40] sm:$0xf] %vm1052_vm4, %v1279_v16  ;;  %v893_v25 = vsel %vm829_vm5, %v797_v9, %v861_v17  ;;  %v616_v26 = vpop.f32.mrb[6].mxu0  ;;  %v680_v28 = vpop.f32.mrb[6].mxu1  ;;  %v1341_v19 = vunpack.c.l.bf16 %v1369_v11 }
 0x11c   : > { %v1264_v30 = vpack.c.bf16 %v893_v25, %v893_v25  ;;  %v909_v31 = vsel %vm845_vm6, %v813_v10, %v877_v20  ;;  %v798_v32 = vadd.f32 %v1301_v13, %v614_v21  ;;  %v814_v33 = vadd.f32 %v1333_v14, %v678_v22  ;;  %v618_v34 = vpop.f32.mrb[7].mxu0  ;;  %v682_v35 = vpop.f32.mrb[7].mxu1  ;;  %v1361_v10 = vld [vmem:[%s1647_s30 + $0x18] sm:$0xff]  }
 0x11d   : > { %v1280_v36 = vpack.c.bf16 %v909_v31, %v909_v31  ;;  %v617_v37 = vadd.f32 %v1654_v50, %v616_v26  ;;  %v681_v38 = vadd.f32 %v1654_v50, %v680_v28  ;;  %v1309_v18 = vunpack.c.l.bf16 %v1361_v10 }
 0x11e   : > { %1054 = vst.msk [vmem:[%s1667_s8 + $0x4] sm:$0xf] %vm1052_vm4, %v1264_v30  ;;  %vm830_vm7 = vcmp.ge.f32.partialorder %v798_v32, 0.0  ;;  %v862_v41 = vmul.f32 0.01, %v798_v32  ;;  %vm846_vm8 = vcmp.ge.f32.partialorder %v814_v33, 0.0  ;;  %v1342_v34 = vunpack.c.h.bf16 %v1369_v11 }
 0x11f   : > { %v878_v42 = vmul.f32 0.01, %v814_v33  ;;  %1070 = vst.msk [vmem:[%s1667_s8 + $0x44] sm:$0xf] %vm1052_vm4, %v1280_v36  ;;  %v799_v43 = vadd.f32 %v1302_v27, %v617_v37  ;;  %v815_v44 = vadd.f32 %v1334_v29, %v681_v38 }
 0x120   : > { %v894_v45 = vsel %vm830_vm7, %v798_v32, %v862_v41  ;;  %v1310_v32 = vunpack.c.h.bf16 %v1361_v10 }
 0x121   : > { %v910_v46 = vsel %vm846_vm8, %v814_v33, %v878_v42  ;;  %v1265_v49 = vpack.c.bf16 %v894_v45, %v894_v45  ;;  %vm831_vm9 = vcmp.ge.f32.partialorder %v799_v43, 0.0  ;;  %v863_v52 = vmul.f32 0.01, %v799_v43  ;;  %v621_v53 = vpop.f32.mrb[8].mxu0  ;;  %v685_v54 = vpop.f32.mrb[8].mxu1  ;;  %v1370_v45 = vld [vmem:[%s1647_s30 + $0x60] sm:$0xff]  }
 0x122   : > { %v1281_v51 = vpack.c.bf16 %v910_v46, %v910_v46  ;;  %vm847_vm10 = vcmp.ge.f32.partialorder %v815_v44, 0.0  ;;  %v879_v55 = vmul.f32 0.01, %v815_v44  ;;  %v622_v56 = vadd.f32 %v1654_v50, %v621_v53  ;;  %v623_v58 = vpop.f32.mrb[9].mxu0  ;;  %v687_v59 = vpop.f32.mrb[9].mxu1 }
 0x123   : > { %v686_v57 = vadd.f32 %v1654_v50, %v685_v54  ;;  %1055 = vst.msk [vmem:[%s1667_s8 + $0x8] sm:$0xf] %vm1052_vm4, %v1265_v49  ;;  %v895_v60 = vsel %vm831_vm9, %v799_v43, %v863_v52  ;;  %v624_v61 = vpop.f32.mrb[10].mxu0  ;;  %v688_v63 = vpop.f32.mrb[10].mxu1  ;;  %v1345_v54 = vunpack.c.l.bf16 %v1370_v45 }
 0x124   : > { %1071 = vst.msk [vmem:[%s1667_s8 + $0x48] sm:$0xf] %vm1052_vm4, %v1281_v51  ;;  %v1266_v1 = vpack.c.bf16 %v895_v60, %v895_v60  ;;  %v911_v2 = vsel %vm847_vm10, %v815_v44, %v879_v55  ;;  %v800_v3 = vadd.f32 %v1305_v47, %v622_v56  ;;  %v626_v5 = vpop.f32.mrb[11].mxu0  ;;  %v690_v6 = vpop.f32.mrb[11].mxu1  ;;  %v625_v8 = vadd.f32 %v1654_v50, %v624_v61  ;;  %v1362_v44 = vld [vmem:[%s1647_s30 + $0x20] sm:$0xff]  }
 0x125   : > { %v816_v4 = vadd.f32 %v1337_v48, %v686_v57  ;;  %v1282_v7 = vpack.c.bf16 %v911_v2, %v911_v2  ;;  %v689_v9 = vadd.f32 %v1654_v50, %v688_v63  ;;  %v1313_v53 = vunpack.c.l.bf16 %v1362_v44 }
 0x126   : > { %1056 = vst.msk [vmem:[%s1667_s8 + $0xc] sm:$0xf] %vm1052_vm4, %v1266_v1  ;;  %vm832_vm11 = vcmp.ge.f32.partialorder %v800_v3, 0.0  ;;  %v864_v12 = vmul.f32 0.01, %v800_v3  ;;  %v801_v14 = vadd.f32 %v1306_v62, %v625_v8  ;;  %v1346_v5 = vunpack.c.h.bf16 %v1370_v45 }
 0x127   : > { %vm848_vm12 = vcmp.ge.f32.partialorder %v816_v4, 0.0  ;;  %v880_v13 = vmul.f32 0.01, %v816_v4  ;;  %1072 = vst.msk [vmem:[%s1667_s8 + $0x4c] sm:$0xf] %vm1052_vm4, %v1282_v7  ;;  %v817_v15 = vadd.f32 %v1338_v0, %v689_v9 }
 0x128   : > { %v896_v16 = vsel %vm832_vm11, %v800_v3, %v864_v12  ;;  %vm833_vm13 = vcmp.ge.f32.partialorder %v801_v14, 0.0  ;;  %v865_v22 = vmul.f32 0.01, %v801_v14  ;;  %v1314_v3 = vunpack.c.h.bf16 %v1362_v44 }
 0x129   : > { %v912_v17 = vsel %vm848_vm12, %v816_v4, %v880_v13  ;;  %v1267_v20 = vpack.c.bf16 %v896_v16, %v896_v16  ;;  %v629_v23 = vpop.f32.mrb[12].mxu0  ;;  %v693_v24 = vpop.f32.mrb[12].mxu1  ;;  %vm849_vm14 = vcmp.ge.f32.partialorder %v817_v15, 0.0  ;;  %v881_v25 = vmul.f32 0.01, %v817_v15  ;;  %v1371_v16 = vld [vmem:[%s1647_s30 + $0x68] sm:$0xff]  }
 0x12a   : > { %v1283_v21 = vpack.c.bf16 %v912_v17, %v912_v17  ;;  %v630_v26 = vadd.f32 %v1654_v50, %v629_v23  ;;  %v694_v27 = vadd.f32 %v1654_v50, %v693_v24  ;;  %v631_v28 = vpop.f32.mrb[13].mxu0  ;;  %v695_v29 = vpop.f32.mrb[13].mxu1  ;;  %v897_v30 = vsel %vm833_vm13, %v801_v14, %v865_v22 }
 0x12b   : > { %1057 = vst.msk [vmem:[%s1667_s8 + $0x10] sm:$0xf] %vm1052_vm4, %v1267_v20  ;;  %v632_v31 = vpop.f32.mrb[14].mxu0  ;;  %v696_v33 = vpop.f32.mrb[14].mxu1  ;;  %v1268_v35 = vpack.c.bf16 %v897_v30, %v897_v30  ;;  %v913_v36 = vsel %vm849_vm14, %v817_v15, %v881_v25  ;;  %v1363_v15 = vld [vmem:[%s1647_s30 + $0x28] sm:$0xff]   ;;  %v1349_v24 = vunpack.c.l.bf16 %v1371_v16 }
 0x12c   : > { %1073 = vst.msk [vmem:[%s1667_s8 + $0x50] sm:$0xf] %vm1052_vm4, %v1283_v21  ;;  %v802_v37 = vadd.f32 %v1309_v18, %v630_v26  ;;  %v818_v38 = vadd.f32 %v1341_v19, %v694_v27  ;;  %v634_v39 = vpop.f32.mrb[15].mxu0  ;;  %v698_v40 = vpop.f32.mrb[15].mxu1  ;;  %v1284_v41 = vpack.c.bf16 %v913_v36, %v913_v36  ;;  %v633_v42 = vadd.f32 %v1654_v50, %v632_v31 }
 0x12d   : > { %v697_v43 = vadd.f32 %v1654_v50, %v696_v33  ;;  %1058 = vst.msk [vmem:[%s1667_s8 + $0x14] sm:$0xf] %vm1052_vm4, %v1268_v35  ;;  %v1317_v23 = vunpack.c.l.bf16 %v1363_v15  ;;  %v1350_v39 = vunpack.c.h.bf16 %v1371_v16 }
 0x12e   : > { %vm834_vm15 = vcmp.ge.f32.partialorder %v802_v37, 0.0  ;;  %v866_v46 = vmul.f32 0.01, %v802_v37  ;;  %vm850_vm0 = vcmp.ge.f32.partialorder %v818_v38, 0.0  ;;  %v882_v47 = vmul.f32 0.01, %v818_v38 }
 0x12f   : > { %1074 = vst.msk [vmem:[%s1667_s8 + $0x54] sm:$0xf] %vm1052_vm4, %v1284_v41  ;;  %v803_v48 = vadd.f32 %v1310_v32, %v633_v42  ;;  %v819_v49 = vadd.f32 %v1342_v34, %v697_v43 }
 0x130   : > { %v898_v51 = vsel %vm834_vm15, %v802_v37, %v866_v46  ;;  %v914_v52 = vsel %vm850_vm0, %v818_v38, %v882_v47  ;;  %v1318_v37 = vunpack.c.h.bf16 %v1363_v15 }
 0x131   : > { %v1269_v55 = vpack.c.bf16 %v898_v51, %v898_v51  ;;  %v1285_v56 = vpack.c.bf16 %v914_v52, %v914_v52  ;;  %vm835_vm1 = vcmp.ge.f32.partialorder %v803_v48, 0.0  ;;  %v867_v57 = vmul.f32 0.01, %v803_v48  ;;  %v637_v58 = vpop.f32.mrb[16].mxu0  ;;  %v701_v59 = vpop.f32.mrb[16].mxu1  ;;  %v1372_v51 = vld [vmem:[%s1647_s30 + $0x70] sm:$0xff]  }
 0x132   : > { %vm851_vm2 = vcmp.ge.f32.partialorder %v819_v49, 0.0  ;;  %v883_v60 = vmul.f32 0.01, %v819_v49  ;;  %v638_v61 = vadd.f32 %v1654_v50, %v637_v58  ;;  %v702_v62 = vadd.f32 %v1654_v50, %v701_v59  ;;  %v639_v63 = vpop.f32.mrb[17].mxu0  ;;  %v703_v0 = vpop.f32.mrb[17].mxu1 }
 0x133   : > { %1059 = vst.msk [vmem:[%s1667_s8 + $0x18] sm:$0xf] %vm1052_vm4, %v1269_v55  ;;  %1075 = vst.msk [vmem:[%s1667_s8 + $0x58] sm:$0xf] %vm1052_vm4, %v1285_v56  ;;  %v899_v1 = vsel %vm835_vm1, %v803_v48, %v867_v57  ;;  %v640_v2 = vpop.f32.mrb[18].mxu0  ;;  %v704_v4 = vpop.f32.mrb[18].mxu1  ;;  %v1353_v59 = vunpack.c.l.bf16 %v1372_v51 }
 0x134   : > { %v1270_v6 = vpack.c.bf16 %v899_v1, %v899_v1  ;;  %v915_v7 = vsel %vm851_vm2, %v819_v49, %v883_v60  ;;  %v804_v8 = vadd.f32 %v1313_v53, %v638_v61  ;;  %v820_v9 = vadd.f32 %v1345_v54, %v702_v62  ;;  %v642_v10 = vpop.f32.mrb[19].mxu0  ;;  %v706_v11 = vpop.f32.mrb[19].mxu1  ;;  %v1364_v49 = vld [vmem:[%s1647_s30 + $0x30] sm:$0xff]  }
 0x135   : > { %v1286_v12 = vpack.c.bf16 %v915_v7, %v915_v7  ;;  %v641_v13 = vadd.f32 %v1654_v50, %v640_v2  ;;  %v705_v14 = vadd.f32 %v1654_v50, %v704_v4  ;;  %v1321_v58 = vunpack.c.l.bf16 %v1364_v49 }
 0x136   : > { %1060 = vst.msk [vmem:[%s1667_s8 + $0x1c] sm:$0xf] %vm1052_vm4, %v1270_v6  ;;  %vm836_vm3 = vcmp.ge.f32.partialorder %v804_v8, 0.0  ;;  %v868_v17 = vmul.f32 0.01, %v804_v8  ;;  %vm852_vm5 = vcmp.ge.f32.partialorder %v820_v9, 0.0  ;;  %v1354_v10 = vunpack.c.h.bf16 %v1372_v51 }
 0x137   : > { %v884_v18 = vmul.f32 0.01, %v820_v9  ;;  %1076 = vst.msk [vmem:[%s1667_s8 + $0x5c] sm:$0xf] %vm1052_vm4, %v1286_v12  ;;  %v805_v19 = vadd.f32 %v1314_v3, %v641_v13  ;;  %v821_v20 = vadd.f32 %v1346_v5, %v705_v14 }
 0x138   : > { %v900_v21 = vsel %vm836_vm3, %v804_v8, %v868_v17  ;;  %v1322_v8 = vunpack.c.h.bf16 %v1364_v49 }
 0x139   : > { %v916_v22 = vsel %vm852_vm5, %v820_v9, %v884_v18  ;;  %v1271_v25 = vpack.c.bf16 %v900_v21, %v900_v21  ;;  %vm837_vm6 = vcmp.ge.f32.partialorder %v805_v19, 0.0  ;;  %v869_v27 = vmul.f32 0.01, %v805_v19  ;;  %v645_v28 = vpop.f32.mrb[20].mxu0  ;;  %v709_v29 = vpop.f32.mrb[20].mxu1  ;;  %v1373_v21 = vld [vmem:[%s1647_s30 + $0x78] sm:$0xff]  }
 0x13a   : > { %v1287_v26 = vpack.c.bf16 %v916_v22, %v916_v22  ;;  %vm853_vm7 = vcmp.ge.f32.partialorder %v821_v20, 0.0  ;;  %v885_v30 = vmul.f32 0.01, %v821_v20  ;;  %v646_v31 = vadd.f32 %v1654_v50, %v645_v28  ;;  %v647_v33 = vpop.f32.mrb[21].mxu0  ;;  %v711_v34 = vpop.f32.mrb[21].mxu1 }
 0x13b   : > { %v710_v32 = vadd.f32 %v1654_v50, %v709_v29  ;;  %1061 = vst.msk [vmem:[%s1667_s8 + $0x20] sm:$0xf] %vm1052_vm4, %v1271_v25  ;;  %v901_v35 = vsel %vm837_vm6, %v805_v19, %v869_v27  ;;  %v648_v36 = vpop.f32.mrb[22].mxu0  ;;  %v712_v38 = vpop.f32.mrb[22].mxu1  ;;  %v1357_v29 = vunpack.c.l.bf16 %v1373_v21 }
 0x13c   : > { %1077 = vst.msk [vmem:[%s1667_s8 + $0x60] sm:$0xf] %vm1052_vm4, %v1287_v26  ;;  %v1272_v40 = vpack.c.bf16 %v901_v35, %v901_v35  ;;  %v917_v41 = vsel %vm853_vm7, %v821_v20, %v885_v30  ;;  %v806_v42 = vadd.f32 %v1317_v23, %v646_v31  ;;  %v650_v44 = vpop.f32.mrb[23].mxu0  ;;  %v714_v45 = vpop.f32.mrb[23].mxu1  ;;  %v649_v47 = vadd.f32 %v1654_v50, %v648_v36  ;;  %v1365_v20 = vld [vmem:[%s1647_s30 + $0x38] sm:$0xff]  }
 0x13d   : > { %v822_v43 = vadd.f32 %v1349_v24, %v710_v32  ;;  %v1288_v46 = vpack.c.bf16 %v917_v41, %v917_v41  ;;  %v713_v48 = vadd.f32 %v1654_v50, %v712_v38  ;;  %v1325_v28 = vunpack.c.l.bf16 %v1365_v20 }
 0x13e   : > { %1062 = vst.msk [vmem:[%s1667_s8 + $0x24] sm:$0xf] %vm1052_vm4, %v1272_v40  ;;  %vm838_vm8 = vcmp.ge.f32.partialorder %v806_v42, 0.0  ;;  %v870_v52 = vmul.f32 0.01, %v806_v42  ;;  %v807_v54 = vadd.f32 %v1318_v37, %v649_v47  ;;  %v1358_v44 = vunpack.c.h.bf16 %v1373_v21 }
 0x13f   : > { %vm854_vm9 = vcmp.ge.f32.partialorder %v822_v43, 0.0  ;;  %v886_v53 = vmul.f32 0.01, %v822_v43  ;;  %1078 = vst.msk [vmem:[%s1667_s8 + $0x64] sm:$0xf] %vm1052_vm4, %v1288_v46  ;;  %v823_v55 = vadd.f32 %v1350_v39, %v713_v48 }
 0x140   : > { %v902_v56 = vsel %vm838_vm8, %v806_v42, %v870_v52  ;;  %vm839_vm10 = vcmp.ge.f32.partialorder %v807_v54, 0.0  ;;  %v871_v62 = vmul.f32 0.01, %v807_v54  ;;  %v1326_v42 = vunpack.c.h.bf16 %v1365_v20 }
 0x141   : > { %v918_v57 = vsel %vm854_vm9, %v822_v43, %v886_v53  ;;  %v1273_v60 = vpack.c.bf16 %v902_v56, %v902_v56  ;;  %v653_v63 = vpop.f32.mrb[24].mxu0  ;;  %v717_v0 = vpop.f32.mrb[24].mxu1  ;;  %vm855_vm11 = vcmp.ge.f32.partialorder %v823_v55, 0.0  ;;  %v887_v1 = vmul.f32 0.01, %v823_v55 }
 0x142   : > { %v1289_v61 = vpack.c.bf16 %v918_v57, %v918_v57  ;;  %v654_v2 = vadd.f32 %v1654_v50, %v653_v63  ;;  %v718_v3 = vadd.f32 %v1654_v50, %v717_v0  ;;  %v655_v4 = vpop.f32.mrb[25].mxu0  ;;  %v719_v5 = vpop.f32.mrb[25].mxu1  ;;  %v903_v6 = vsel %vm839_vm10, %v807_v54, %v871_v62 }
 0x143   : > { %1063 = vst.msk [vmem:[%s1667_s8 + $0x28] sm:$0xf] %vm1052_vm4, %v1273_v60  ;;  %v656_v7 = vpop.f32.mrb[26].mxu0  ;;  %v720_v9 = vpop.f32.mrb[26].mxu1  ;;  %v1274_v11 = vpack.c.bf16 %v903_v6, %v903_v6  ;;  %v919_v12 = vsel %vm855_vm11, %v823_v55, %v887_v1 }
 0x144   : > { %1079 = vst.msk [vmem:[%s1667_s8 + $0x68] sm:$0xf] %vm1052_vm4, %v1289_v61  ;;  %v808_v13 = vadd.f32 %v1321_v58, %v654_v2  ;;  %v824_v14 = vadd.f32 %v1353_v59, %v718_v3  ;;  %v658_v15 = vpop.f32.mrb[27].mxu0  ;;  %v722_v16 = vpop.f32.mrb[27].mxu1  ;;  %v1290_v17 = vpack.c.bf16 %v919_v12, %v919_v12  ;;  %v657_v18 = vadd.f32 %v1654_v50, %v656_v7 }
 0x145   : > { %v721_v19 = vadd.f32 %v1654_v50, %v720_v9  ;;  %1064 = vst.msk [vmem:[%s1667_s8 + $0x2c] sm:$0xf] %vm1052_vm4, %v1274_v11 }
 0x146   : > { %vm840_vm12 = vcmp.ge.f32.partialorder %v808_v13, 0.0  ;;  %v872_v22 = vmul.f32 0.01, %v808_v13  ;;  %vm856_vm13 = vcmp.ge.f32.partialorder %v824_v14, 0.0  ;;  %v888_v23 = vmul.f32 0.01, %v824_v14 }
 0x147   : > { %1080 = vst.msk [vmem:[%s1667_s8 + $0x6c] sm:$0xf] %vm1052_vm4, %v1290_v17  ;;  %v809_v24 = vadd.f32 %v1322_v8, %v657_v18  ;;  %v825_v25 = vadd.f32 %v1354_v10, %v721_v19 }
 0x148   : > { %v904_v26 = vsel %vm840_vm12, %v808_v13, %v872_v22  ;;  %v920_v27 = vsel %vm856_vm13, %v824_v14, %v888_v23 }
 0x149   : > { %v1275_v30 = vpack.c.bf16 %v904_v26, %v904_v26  ;;  %v1291_v31 = vpack.c.bf16 %v920_v27, %v920_v27  ;;  %vm841_vm14 = vcmp.ge.f32.partialorder %v809_v24, 0.0  ;;  %v873_v32 = vmul.f32 0.01, %v809_v24  ;;  %v661_v33 = vpop.f32.mrb[28].mxu0  ;;  %v725_v34 = vpop.f32.mrb[28].mxu1 }
 0x14a   : > { %vm857_vm15 = vcmp.ge.f32.partialorder %v825_v25, 0.0  ;;  %v889_v35 = vmul.f32 0.01, %v825_v25  ;;  %v662_v36 = vadd.f32 %v1654_v50, %v661_v33  ;;  %v726_v37 = vadd.f32 %v1654_v50, %v725_v34  ;;  %v663_v38 = vpop.f32.mrb[29].mxu0  ;;  %v727_v39 = vpop.f32.mrb[29].mxu1 }
 0x14b   : > { %1065 = vst.msk [vmem:[%s1667_s8 + $0x30] sm:$0xf] %vm1052_vm4, %v1275_v30  ;;  %1081 = vst.msk [vmem:[%s1667_s8 + $0x70] sm:$0xf] %vm1052_vm4, %v1291_v31  ;;  %v905_v40 = vsel %vm841_vm14, %v809_v24, %v873_v32  ;;  %v664_v41 = vpop.f32.mrb[30].mxu0  ;;  %v728_v43 = vpop.f32.mrb[30].mxu1 }
 0x14c   : > { %v1276_v45 = vpack.c.bf16 %v905_v40, %v905_v40  ;;  %v921_v46 = vsel %vm857_vm15, %v825_v25, %v889_v35  ;;  %v810_v47 = vadd.f32 %v1325_v28, %v662_v36  ;;  %v826_v48 = vadd.f32 %v1357_v29, %v726_v37  ;;  %v666_v49 = vpop.f32.mrb[31].mxu0  ;;  %v730_v51 = vpop.f32.mrb[31].mxu1 }
 0x14d   : > { %v1292_v52 = vpack.c.bf16 %v921_v46, %v921_v46  ;;  %v665_v53 = vadd.f32 %v1654_v50, %v664_v41  ;;  %v729_v54 = vadd.f32 %v1654_v50, %v728_v43 }
 0x14e   : > { %1066 = vst.msk [vmem:[%s1667_s8 + $0x34] sm:$0xf] %vm1052_vm4, %v1276_v45  ;;  %vm842_vm0 = vcmp.ge.f32.partialorder %v810_v47, 0.0  ;;  %v874_v55 = vmul.f32 0.01, %v810_v47  ;;  %vm858_vm1 = vcmp.ge.f32.partialorder %v826_v48, 0.0 }
 0x14f   : > { %v890_v56 = vmul.f32 0.01, %v826_v48  ;;  %1082 = vst.msk [vmem:[%s1667_s8 + $0x74] sm:$0xf] %vm1052_vm4, %v1292_v52  ;;  %v811_v57 = vadd.f32 %v1326_v42, %v665_v53  ;;  %v827_v58 = vadd.f32 %v1358_v44, %v729_v54 }
 0x150   : > { %v906_v59 = vsel %vm842_vm0, %v810_v47, %v874_v55 }
 0x151   : > { %v922_v60 = vsel %vm858_vm1, %v826_v48, %v890_v56  ;;  %v1277_v61 = vpack.c.bf16 %v906_v59, %v906_v59  ;;  %vm843_vm2 = vcmp.ge.f32.partialorder %v811_v57, 0.0  ;;  %v875_v50 = vmul.f32 0.01, %v811_v57 }
 0x152   : > { %v1293_v62 = vpack.c.bf16 %v922_v60, %v922_v60  ;;  %vm859_vm3 = vcmp.ge.f32.partialorder %v827_v58, 0.0  ;;  %v891_v63 = vmul.f32 0.01, %v827_v58 }
 0x153   : > { %1067 = vst.msk [vmem:[%s1667_s8 + $0x38] sm:$0xf] %vm1052_vm4, %v1277_v61  ;;  %v907_v0 = vsel %vm843_vm2, %v811_v57, %v875_v50 }
 0x154   : > { %1083 = vst.msk [vmem:[%s1667_s8 + $0x78] sm:$0xf] %vm1052_vm4, %v1293_v62  ;;  %v1278_v1 = vpack.c.bf16 %v907_v0, %v907_v0  ;;  %v923_v2 = vsel %vm859_vm3, %v827_v58, %v891_v63 }
 0x155   : > { %v1294_v3 = vpack.c.bf16 %v923_v2, %v923_v2 }
 0x156   : > { %1068 = vst.msk [vmem:[%s1667_s8 + $0x3c] sm:$0xf] %vm1052_vm4, %v1278_v1 }
 0x157   : > { %1084 = vst.msk [vmem:[%s1667_s8 + $0x7c] sm:$0xf] %vm1052_vm4, %v1294_v3 }
 0x158 PF: > { %s14_s15 = sadd.s32 1, %s1479_s15  }
 0x159   : > { %p11_p4 = scmp.ge.s32.totalorder %s14_s15, 10  }
 0x15b   :  { %13 = sbr.rel (!%p11_p4) target bundleno = 1 (0x1), region = 69 }

// kernel: encoder_forward.14
= control target key start
LH: loop header
LB: loop body
LE: loop exit
PB: predicated region body
PF: predicated region fallthrough
CT: control target
= control target key end

     0   :  { %s1636_s15 = smov 0   ;;  %s1985_s0 = inlined_call_operand.vmem [shape: bf16[512,216], index: 0, kind: input, shape index: {}]   ;;  %s1986_s1 = inlined_call_operand.vmem [shape: bf16[216,32], index: 1, kind: input, shape index: {}]   ;;  %s1987_s2 = inlined_call_operand.vmem [shape: f32[1,32], index: 2, kind: input, shape index: {}]   ;;  %s1988_s3 = inlined_call_operand.vmem [shape: bf16[512,16], index: 3, kind: output, shape index: {0}]   ;;  %s1989_s4 = inlined_call_operand.vmem [shape: bf16[512,16], index: 4, kind: output, shape index: {1}]  }
   0x1 LB: > { %s1295_s16 = sadd.s32 4294967295, %s1607_s15   ;;  %p1299_p0 = scmp.ge.s32.totalorder %s1607_s15, 1  ;;  %s1607_s15 = sphi %s1636_s15, %s15_s15  }
   0x2   : > { %p167_p1 = scmp.lt.s32.totalorder %s1607_s15, 3 }
   0x4   : > { %p168_p2 = pnand %p1299_p0, %p167_p1 }
   0x5   : > { %v1539_v0 = vld [vmem:[%s1986_s1] sm:$0xff] (!%p168_p2)   ;;  %v1609_v1 = vmov (!%p168_p2), 0   ;;  %v1540_v2 = vld [vmem:[%s1986_s1 + $0x8] sm:$0xff] (!%p168_p2)   ;;  %s1300_s21 = sshll.u32 (!%p168_p2), %s1295_s16, 5  ;;  %v1541_v3 = vld [vmem:[%s1986_s1 + $0x10] sm:$0xff] (!%p168_p2)   ;;  %vm510_vm0 = vcmask (!%p168_p2), 719872  }
   0x6   : > { %171 = sbr.rel (%p168_p2) target bundleno = 459 (0x1cb), region = 32  ;;  %563 = vmatprep.subr.bf16.mxu0 (!%p168_p2), %v1609_v1  ;;  %1501 = vmatprep.subr.bf16.mxu1 (!%p168_p2), %v1609_v1  ;;  %p200_p3 = scmp.lt.s32.totalorder (!%p168_p2), %s1300_s21, 63  ;;  %v1542_v4 = vld [vmem:[%s1986_s1 + $0x18] sm:$0xff] (!%p168_p2)   ;;  %v1543_v5 = vld [vmem:[%s1986_s1 + $0x20] sm:$0xff] (!%p168_p2)   ;;  %v1544_v8 = vld [vmem:[%s1986_s1 + $0x28] sm:$0xff] (!%p168_p2)   ;;  %vm559_vm1 = vcmask (!%p168_p2), 1043456  }
   0x7   : > { %564 = vmatpush1.bf16.msra.mxu0 (!%p168_p2), %v1539_v0  ;;  %1515 = vmatpush1.bf16.msra.mxu1 (!%p168_p2), %v1539_v0  ;;  %v1545_v9 = vld [vmem:[%s1986_s1 + $0x30] sm:$0xff] (!%p168_p2)   ;;  %v1546_v10 = vld [vmem:[%s1986_s1 + $0x38] sm:$0xff] (!%p168_p2)   ;;  %v1547_v11 = vld [vmem:[%s1986_s1 + $0x40] sm:$0xff] (!%p168_p2)   ;;  %vm948_vm4 = vcmask (!%p168_p2), 125952   ;;  %s1610_s6 = smov (!%p168_p2), 112  }
   0x8   : > { %565 = vmatprep.subr.bf16.mxu0 (!%p168_p2), %v1609_v1  ;;  %1502 = vmatprep.subr.bf16.mxu1 (!%p168_p2), %v1609_v1  ;;  %v1548_v12 = vld [vmem:[%s1986_s1 + $0x48] sm:$0xff] (!%p168_p2)   ;;  %v1549_v13 = vld [vmem:[%s1986_s1 + $0x50] sm:$0xff] (!%p168_p2)   ;;  %v1550_v14 = vld [vmem:[%s1986_s1 + $0x58] sm:$0xff] (!%p168_p2)  }
   0x9   : > { %v1551_v15 = vld [vmem:[%s1986_s1 + $0x60] sm:$0xff] (!%p168_p2)   ;;  %v1552_v16 = vld [vmem:[%s1986_s1 + $0x68] ss:$0 sps:$4 sm:$0xff] (!%p168_p2)  }
   0xa   : > { %v561_v17 = vsel (!%p168_p2), %vm559_vm1, %v1552_v16, 0  ;;  %v1773_v48 = vld [vmem:[%s1987_s2] ss:$0 sm:$0xff] (!%p168_p2) }
   0xb   : > { %566 = vmatpush1.bf16.msra.mxu0 (!%p168_p2), %v1540_v2  ;;  %1516 = vmatpush1.bf16.msra.mxu1 (!%p168_p2), %v1540_v2 }
   0xc   : > { %567 = vmatprep.subr.bf16.mxu0 (!%p168_p2), %v1609_v1  ;;  %1503 = vmatprep.subr.bf16.mxu1 (!%p168_p2), %v1609_v1 }
   0xd   : > { %s1991_s21 = smov (!%p200_p3, %s1300_s21), 63 }
   0xe   : > { %s1436_s24 = sshll.u32 %s1991_s21, 3  ;;  %s1304_s28 = sshll.u32 %s1991_s21, 2 }
   0xf   : > { %568 = vmatpush1.bf16.msra.mxu0 %v1541_v3  ;;  %1517 = vmatpush1.bf16.msra.mxu1 %v1541_v3  ;;  %s1670_s29 = scalar_lea.vmem %s1985_s0, %s1436_s24  ;;  %s1785_s5 = scalar_lea.vmem %s1988_s3, %s1304_s28 }
  0x10   : > { %569 = vmatprep.subr.bf16.mxu0 %v1609_v1  ;;  %1504 = vmatprep.subr.bf16.mxu1 %v1609_v1  ;;  %v1555_v6 = vld [vmem:[%s1670_s29 + $0x4] ss:$8 sps:$4 sm:$0xff]   ;;  %v1553_v18 = vld [vmem:[%s1670_s29] ss:$8 sps:$4 sm:$0xff]   ;;  %v1559_v20 = vld [vmem:[%s1670_s29 + $0x14] ss:$8 sps:$4 sm:$0xff]   ;;  %s1916_s9 = scalar_lea.vmem %s1989_s4, %s1304_s28 }
  0x11   : > { %1354 = vmatprep.mubr.msk.bf16.mxu0 %vm510_vm0, %v1555_v6  ;;  %v1558_v7 = vld [vmem:[%s1670_s29 + $0x84] ss:$8 sps:$4 sm:$0xff]   ;;  %v1556_v19 = vld [vmem:[%s1670_s29 + $0x80] ss:$8 sps:$4 sm:$0xff]   ;;  %v1562_v21 = vld [vmem:[%s1670_s29 + $0x94] ss:$8 sps:$4 sm:$0xff]  }
  0x12   : > { %1362 = vmatprep.mubr.msk.bf16.mxu1 %vm510_vm0, %v1558_v7  ;;  %v1561_v22 = vld [vmem:[%s1670_s29 + $0x10] ss:$8 sps:$4 sm:$0xff]   ;;  %v1565_v24 = vld [vmem:[%s1670_s29 + $0x24] ss:$8 sps:$4 sm:$0xff]   ;;  %v1567_v26 = vld [vmem:[%s1670_s29 + $0x20] ss:$8 sps:$4 sm:$0xff]  }
  0x13   : > { %570 = vmatpush1.bf16.msra.mxu0 %v1542_v4  ;;  %1518 = vmatpush1.bf16.msra.mxu1 %v1542_v4  ;;  %v1564_v23 = vld [vmem:[%s1670_s29 + $0x90] ss:$8 sps:$4 sm:$0xff]   ;;  %v1568_v25 = vld [vmem:[%s1670_s29 + $0xa4] ss:$8 sps:$4 sm:$0xff]   ;;  %v1570_v27 = vld [vmem:[%s1670_s29 + $0xa0] ss:$8 sps:$4 sm:$0xff]  }
  0x14   : > { %571 = vmatprep.subr.bf16.mxu0 %v1609_v1  ;;  %1505 = vmatprep.subr.bf16.mxu1 %v1609_v1  ;;  %v1571_v28 = vld [vmem:[%s1670_s29 + $0x34] ss:$8 sps:$4 sm:$0xff]   ;;  %v1573_v30 = vld [vmem:[%s1670_s29 + $0x30] ss:$8 sps:$4 sm:$0xff]   ;;  %v1577_v32 = vld [vmem:[%s1670_s29 + $0x44] ss:$8 sps:$4 sm:$0xff]  }
  0x15   : > { %v1574_v29 = vld [vmem:[%s1670_s29 + $0xb4] ss:$8 sps:$4 sm:$0xff]   ;;  %v1576_v31 = vld [vmem:[%s1670_s29 + $0xb0] ss:$8 sps:$4 sm:$0xff]   ;;  %v1580_v33 = vld [vmem:[%s1670_s29 + $0xc4] ss:$8 sps:$4 sm:$0xff]  }
  0x16   : > { %v1579_v34 = vld [vmem:[%s1670_s29 + $0x40] ss:$8 sps:$4 sm:$0xff]   ;;  %v1583_v36 = vld [vmem:[%s1670_s29 + $0x54] ss:$8 sps:$4 sm:$0xff]   ;;  %v1585_v38 = vld [vmem:[%s1670_s29 + $0x50] ss:$8 sps:$4 sm:$0xff]  }
  0x17   : > { %572 = vmatpush1.bf16.msra.mxu0 %v1543_v5  ;;  %1519 = vmatpush1.bf16.msra.mxu1 %v1543_v5  ;;  %v1582_v35 = vld [vmem:[%s1670_s29 + $0xc0] ss:$8 sps:$4 sm:$0xff]   ;;  %v1586_v37 = vld [vmem:[%s1670_s29 + $0xd4] ss:$8 sps:$4 sm:$0xff]   ;;  %v1588_v39 = vld [vmem:[%s1670_s29 + $0xd0] ss:$8 sps:$4 sm:$0xff]  }
  0x18   : > { %573 = vmatprep.subr.bf16.mxu0 %v1609_v1  ;;  %1506 = vmatprep.subr.bf16.mxu1 %v1609_v1  ;;  %v1589_v40 = vld [vmem:[%s1670_s29 + $0x64] ss:$8 sps:$4 sm:$0xff]   ;;  %v1591_v42 = vld [vmem:[%s1670_s29 + $0x60] ss:$8 sps:$4 sm:$0xff]   ;;  %v1595_v44 = vld [vmem:[%s1670_s29 + $0x74] ss:$8 sps:$4 sm:$0xff]  }
  0x19   : > { %v1592_v41 = vld [vmem:[%s1670_s29 + $0xe4] ss:$8 sps:$4 sm:$0xff]   ;;  %v1594_v43 = vld [vmem:[%s1670_s29 + $0xe0] ss:$8 sps:$4 sm:$0xff]   ;;  %v1598_v45 = vld [vmem:[%s1670_s29 + $0xf4] ss:$8 sps:$4 sm:$0xff]  }
  0x1a   : > { %v1597_v46 = vld [vmem:[%s1670_s29 + $0x70] ss:$8 sps:$4 sm:$0xff]  }
  0x1b   : > { %574 = vmatpush1.bf16.msra.mxu0 %v1544_v8  ;;  %1520 = vmatpush1.bf16.msra.mxu1 %v1544_v8  ;;  %v1600_v47 = vld [vmem:[%s1670_s29 + $0xf0] ss:$8 sps:$4 sm:$0xff]  }
  0x1c   : > { %575 = vmatprep.subr.bf16.mxu0 %v1609_v1  ;;  %1507 = vmatprep.subr.bf16.mxu1 %v1609_v1 }
  0x1f   : > { %576 = vmatpush1.bf16.msra.mxu0 %v1545_v9  ;;  %1521 = vmatpush1.bf16.msra.mxu1 %v1545_v9 }
  0x20   : > { %577 = vmatprep.subr.bf16.mxu0 %v1609_v1  ;;  %1508 = vmatprep.subr.bf16.mxu1 %v1609_v1 }
  0x23   : > { %578 = vmatpush1.bf16.msra.mxu0 %v1546_v10  ;;  %1522 = vmatpush1.bf16.msra.mxu1 %v1546_v10 }
  0x24   : > { %579 = vmatprep.subr.bf16.mxu0 %v1609_v1  ;;  %1509 = vmatprep.subr.bf16.mxu1 %v1609_v1 }
  0x27   : > { %580 = vmatpush1.bf16.msra.mxu0 %v1547_v11  ;;  %1523 = vmatpush1.bf16.msra.mxu1 %v1547_v11 }
  0x28   : > { %581 = vmatprep.subr.bf16.mxu0 %v1609_v1  ;;  %1510 = vmatprep.subr.bf16.mxu1 %v1609_v1 }
  0x2b   : > { %582 = vmatpush1.bf16.msra.mxu0 %v1548_v12  ;;  %1524 = vmatpush1.bf16.msra.mxu1 %v1548_v12 }
  0x2c   : > { %583 = vmatprep.subr.bf16.mxu0 %v1609_v1  ;;  %1511 = vmatprep.subr.bf16.mxu1 %v1609_v1 }
  0x2f   : > { %584 = vmatpush1.bf16.msra.mxu0 %v1549_v13  ;;  %1525 = vmatpush1.bf16.msra.mxu1 %v1549_v13 }
  0x30   : > { %585 = vmatprep.subr.bf16.mxu0 %v1609_v1  ;;  %1512 = vmatprep.subr.bf16.mxu1 %v1609_v1 }
  0x33   : > { %586 = vmatpush1.bf16.msra.mxu0 %v1550_v14  ;;  %1526 = vmatpush1.bf16.msra.mxu1 %v1550_v14 }
  0x34   : > { %587 = vmatprep.subr.bf16.mxu0 %v1609_v1  ;;  %1513 = vmatprep.subr.bf16.mxu1 %v1609_v1 }
  0x37   : > { %588 = vmatpush1.bf16.msra.mxu0 %v1551_v15  ;;  %1527 = vmatpush1.bf16.msra.mxu1 %v1551_v15 }
  0x38   : > { %589 = vmatprep.subr.bf16.mxu0 %v1609_v1  ;;  %1514 = vmatprep.subr.bf16.mxu1 %v1609_v1 }
  0x3b   : > { %590 = vmatpush1.bf16.msra.mxu0 %v561_v17  ;;  %1528 = vmatpush1.bf16.msra.mxu1 %v561_v17 }
  0x3e   : > { %596 = vmatmul.mubr.bf16.vlgmr.msra.gmra.mrb[0].mxu0 %v1553_v18  ;;  %660 = vmatmul.mubr.bf16.vlgmr.msra.gmra.mrb[0].mxu1 %v1556_v19 }
  0x3f   : > { %1355 = vmatprep.mubr.msk.bf16.mxu0 %vm510_vm0, %v1559_v20  ;;  %1363 = vmatprep.mubr.msk.bf16.mxu1 %vm510_vm0, %v1562_v21 }
  0x46   : > { %604 = vmatmul.mubr.bf16.gmra.mrb[4].mxu0 %v1561_v22  ;;  %668 = vmatmul.mubr.bf16.gmra.mrb[4].mxu1 %v1564_v23 }
  0x47   : > { %1356 = vmatprep.mubr.msk.bf16.mxu0 %vm510_vm0, %v1565_v24  ;;  %1364 = vmatprep.mubr.msk.bf16.mxu1 %vm510_vm0, %v1568_v25 }
  0x4e   : > { %612 = vmatmul.mubr.bf16.gmra.mrb[8].mxu0 %v1567_v26  ;;  %676 = vmatmul.mubr.bf16.gmra.mrb[8].mxu1 %v1570_v27 }
  0x4f   : > { %1357 = vmatprep.mubr.msk.bf16.mxu0 %vm510_vm0, %v1571_v28  ;;  %1365 = vmatprep.mubr.msk.bf16.mxu1 %vm510_vm0, %v1574_v29 }
  0x56   : > { %620 = vmatmul.mubr.bf16.gmra.mrb[12].mxu0 %v1573_v30  ;;  %684 = vmatmul.mubr.bf16.gmra.mrb[12].mxu1 %v1576_v31 }
  0x57   : > { %1358 = vmatprep.mubr.msk.bf16.mxu0 %vm510_vm0, %v1577_v32  ;;  %1366 = vmatprep.mubr.msk.bf16.mxu1 %vm510_vm0, %v1580_v33 }
  0x5e   : > { %628 = vmatmul.mubr.bf16.gmra.mrb[16].mxu0 %v1579_v34  ;;  %692 = vmatmul.mubr.bf16.gmra.mrb[16].mxu1 %v1582_v35 }
  0x5f   : > { %1359 = vmatprep.mubr.msk.bf16.mxu0 %vm510_vm0, %v1583_v36  ;;  %1367 = vmatprep.mubr.msk.bf16.mxu1 %vm510_vm0, %v1586_v37 }
  0x66   : > { %636 = vmatmul.mubr.bf16.gmra.mrb[20].mxu0 %v1585_v38  ;;  %700 = vmatmul.mubr.bf16.gmra.mrb[20].mxu1 %v1588_v39 }
  0x67   : > { %1360 = vmatprep.mubr.msk.bf16.mxu0 %vm510_vm0, %v1589_v40  ;;  %1368 = vmatprep.mubr.msk.bf16.mxu1 %vm510_vm0, %v1592_v41 }
  0x6e   : > { %644 = vmatmul.mubr.bf16.gmra.mrb[24].mxu0 %v1591_v42  ;;  %708 = vmatmul.mubr.bf16.gmra.mrb[24].mxu1 %v1594_v43 }
  0x6f   : > { %1361 = vmatprep.mubr.msk.bf16.mxu0 %vm510_vm0, %v1595_v44  ;;  %1369 = vmatprep.mubr.msk.bf16.mxu1 %vm510_vm0, %v1598_v45 }
  0x76   : > { %652 = vmatmul.mubr.bf16.gmra.mrb[28].mxu0 %v1597_v46  ;;  %716 = vmatmul.mubr.bf16.gmra.mrb[28].mxu1 %v1600_v47 }
 0x111   : > { %v597_v49 = vpop.f32.mrb[0].mxu0  ;;  %v661_v50 = vpop.f32.mrb[0].mxu1 }
 0x112   : > { %v598_v51 = vadd.f32 %v1773_v48, %v597_v49  ;;  %v662_v52 = vadd.f32 %v1773_v48, %v661_v50  ;;  %v599_v53 = vpop.f32.mrb[1].mxu0  ;;  %v663_v54 = vpop.f32.mrb[1].mxu1 }
 0x113   : > { %v600_v55 = vpop.f32.mrb[2].mxu0  ;;  %v664_v56 = vpop.f32.mrb[2].mxu1 }
 0x114   : > { %vm724_vm2 = vcmp.ge.f32.partialorder %v598_v51, 0.0  ;;  %v756_v57 = vmul.f32 0.01, %v598_v51  ;;  %vm740_vm3 = vcmp.ge.f32.partialorder %v662_v52, 0.0  ;;  %v772_v58 = vmul.f32 0.01, %v662_v52 }
 0x115   : > { %v601_v59 = vadd.f32 %v1773_v48, %v600_v55  ;;  %v665_v60 = vadd.f32 %v1773_v48, %v664_v56  ;;  %v602_v61 = vpop.f32.mrb[3].mxu0  ;;  %v666_v62 = vpop.f32.mrb[3].mxu1  ;;  %v1469_v63 = vpack.c.bf16 %v598_v51, %v598_v51  ;;  %v1485_v9 = vpack.c.bf16 %v662_v52, %v662_v52 }
 0x116   : > { %v788_v0 = vsel %vm724_vm2, %v598_v51, %v756_v57  ;;  %v804_v1 = vsel %vm740_vm3, %v662_v52, %v772_v58 }
 0x117   : > { %v1437_v2 = vpack.c.bf16 %v788_v0, %v788_v0  ;;  %v1453_v3 = vpack.c.bf16 %v804_v1, %v804_v1  ;;  %vm725_vm5 = vcmp.ge.f32.partialorder %v601_v59, 0.0  ;;  %v757_v4 = vmul.f32 0.01, %v601_v59  ;;  %1077 = vrot.lane.b32.xlu0 %v1469_v63, %s1610_s6 }
 0x118   : > { %vm741_vm6 = vcmp.ge.f32.partialorder %v665_v60, 0.0  ;;  %v773_v5 = vmul.f32 0.01, %v665_v60  ;;  %v1486_v6 = vpack.c.bf16 %v665_v60, %v665_v60  ;;  %v1470_v27 = vpack.c.bf16 %v601_v59, %v601_v59 }
 0x119   : > { %949 = vst.msk [vmem:[%s1785_s5] sm:$0xf] %vm948_vm4, %v1437_v2  ;;  %965 = vst.msk [vmem:[%s1785_s5 + $0x40] sm:$0xf] %vm948_vm4, %v1453_v3  ;;  %v789_v7 = vsel %vm725_vm5, %v601_v59, %v757_v4  ;;  %v605_v8 = vpop.f32.mrb[4].mxu0  ;;  %v669_v10 = vpop.f32.mrb[4].mxu1 }
 0x11a   : > { %v1438_v11 = vpack.c.bf16 %v789_v7, %v789_v7  ;;  %v805_v12 = vsel %vm741_vm6, %v665_v60, %v773_v5  ;;  %1111 = vrot.lane.b32.xlu1 %v1486_v6, %s1610_s6  ;;  %v606_v13 = vadd.f32 %v1773_v48, %v605_v8  ;;  %v607_v14 = vpop.f32.mrb[5].mxu0  ;;  %v670_v15 = vadd.f32 %v1773_v48, %v669_v10  ;;  %v671_v16 = vpop.f32.mrb[5].mxu1 }
 0x11b   : > { %v1454_v17 = vpack.c.bf16 %v805_v12, %v805_v12  ;;  %1109 = vrot.lane.b32.xlu0 %v1485_v9, %s1610_s6  ;;  %v608_v18 = vpop.f32.mrb[6].mxu0  ;;  %v672_v19 = vpop.f32.mrb[6].mxu1 }
 0x11c   : > { %950 = vst.msk [vmem:[%s1785_s5 + $0x4] sm:$0xf] %vm948_vm4, %v1438_v11  ;;  %vm726_vm7 = vcmp.ge.f32.partialorder %v606_v13, 0.0  ;;  %v758_v20 = vmul.f32 0.01, %v606_v13  ;;  %v609_v21 = vadd.f32 %v1773_v48, %v608_v18  ;;  %vm742_vm8 = vcmp.ge.f32.partialorder %v670_v15, 0.0 }
 0x11d   : > { %v610_v22 = vpop.f32.mrb[7].mxu0  ;;  %v674_v23 = vpop.f32.mrb[7].mxu1  ;;  %966 = vst.msk [vmem:[%s1785_s5 + $0x44] sm:$0xf] %vm948_vm4, %v1454_v17  ;;  %v774_v24 = vmul.f32 0.01, %v670_v15  ;;  %v673_v25 = vadd.f32 %v1773_v48, %v672_v19  ;;  %v1471_v26 = vpack.c.bf16 %v606_v13, %v606_v13  ;;  %v1487_v30 = vpack.c.bf16 %v670_v15, %v670_v15 }
 0x11e   : > { %v790_v28 = vsel %vm726_vm7, %v606_v13, %v758_v20  ;;  %vm727_vm9 = vcmp.ge.f32.partialorder %v609_v21, 0.0  ;;  %v759_v29 = vmul.f32 0.01, %v609_v21  ;;  %v1472_v39 = vpack.c.bf16 %v609_v21, %v609_v21 }
 0x11f   : > { %v1439_v31 = vpack.c.bf16 %v790_v28, %v790_v28  ;;  %v806_v32 = vsel %vm742_vm8, %v670_v15, %v774_v24  ;;  %vm743_vm10 = vcmp.ge.f32.partialorder %v673_v25, 0.0  ;;  %v775_v33 = vmul.f32 0.01, %v673_v25  ;;  %1081 = vrot.lane.b32.xlu1 %v1471_v26, %s1610_s6  ;;  %1079 = vrot.lane.b32.xlu0 %v1470_v27, %s1610_s6 }
 0x120   : > { %v791_v34 = vsel %vm727_vm9, %v609_v21, %v759_v29  ;;  %v1455_v35 = vpack.c.bf16 %v806_v32, %v806_v32  ;;  %v1488_v55 = vpack.c.bf16 %v673_v25, %v673_v25 }
 0x121   : > { %951 = vst.msk [vmem:[%s1785_s5 + $0x8] sm:$0xf] %vm948_vm4, %v1439_v31  ;;  %v1440_v36 = vpack.c.bf16 %v791_v34, %v791_v34  ;;  %v807_v37 = vsel %vm743_vm10, %v673_v25, %v775_v33  ;;  %v613_v38 = vpop.f32.mrb[8].mxu0  ;;  %v677_v40 = vpop.f32.mrb[8].mxu1 }
 0x122   : > { %967 = vst.msk [vmem:[%s1785_s5 + $0x48] sm:$0xf] %vm948_vm4, %v1455_v35  ;;  %v1456_v41 = vpack.c.bf16 %v807_v37, %v807_v37  ;;  %v614_v42 = vadd.f32 %v1773_v48, %v613_v38  ;;  %v615_v43 = vpop.f32.mrb[9].mxu0  ;;  %v678_v44 = vadd.f32 %v1773_v48, %v677_v40  ;;  %v679_v45 = vpop.f32.mrb[9].mxu1 }
 0x123   : > { %952 = vst.msk [vmem:[%s1785_s5 + $0xc] sm:$0xf] %vm948_vm4, %v1440_v36  ;;  %1083 = vrot.lane.b32.xlu1 %v1472_v39, %s1610_s6  ;;  %v616_v46 = vpop.f32.mrb[10].mxu0  ;;  %1113 = vrot.lane.b32.xlu0 %v1487_v30, %s1610_s6  ;;  %v680_v47 = vpop.f32.mrb[10].mxu1 }
 0x124   : > { %968 = vst.msk [vmem:[%s1785_s5 + $0x4c] sm:$0xf] %vm948_vm4, %v1456_v41  ;;  %vm728_vm11 = vcmp.ge.f32.partialorder %v614_v42, 0.0  ;;  %v760_v49 = vmul.f32 0.01, %v614_v42  ;;  %v617_v50 = vadd.f32 %v1773_v48, %v616_v46  ;;  %vm744_vm12 = vcmp.ge.f32.partialorder %v678_v44, 0.0 }
 0x125   : > { %v618_v51 = vpop.f32.mrb[11].mxu0  ;;  %v682_v52 = vpop.f32.mrb[11].mxu1  ;;  %v776_v53 = vmul.f32 0.01, %v678_v44  ;;  %v681_v54 = vadd.f32 %v1773_v48, %v680_v47  ;;  %v1473_v56 = vpack.c.bf16 %v614_v42, %v614_v42  ;;  %v1489_v59 = vpack.c.bf16 %v678_v44, %v678_v44 }
 0x126   : > { %v792_v57 = vsel %vm728_vm11, %v614_v42, %v760_v49  ;;  %vm729_vm13 = vcmp.ge.f32.partialorder %v617_v50, 0.0  ;;  %v761_v58 = vmul.f32 0.01, %v617_v50  ;;  %v1474_v4 = vpack.c.bf16 %v617_v50, %v617_v50 }
 0x127   : > { %v1441_v60 = vpack.c.bf16 %v792_v57, %v792_v57  ;;  %v808_v61 = vsel %vm744_vm12, %v678_v44, %v776_v53  ;;  %vm745_vm14 = vcmp.ge.f32.partialorder %v681_v54, 0.0  ;;  %v777_v62 = vmul.f32 0.01, %v681_v54  ;;  %1115 = vrot.lane.b32.xlu1 %v1488_v55, %s1610_s6  ;;  %1085 = vrot.lane.b32.xlu0 %v1473_v56, %s1610_s6 }
 0x128   : > { %v793_v63 = vsel %vm729_vm13, %v617_v50, %v761_v58  ;;  %v1457_v0 = vpack.c.bf16 %v808_v61, %v808_v61  ;;  %v1490_v19 = vpack.c.bf16 %v681_v54, %v681_v54 }
 0x129   : > { %953 = vst.msk [vmem:[%s1785_s5 + $0x10] sm:$0xf] %vm948_vm4, %v1441_v60  ;;  %v1442_v1 = vpack.c.bf16 %v793_v63, %v793_v63  ;;  %v809_v2 = vsel %vm745_vm14, %v681_v54, %v777_v62  ;;  %v621_v3 = vpop.f32.mrb[12].mxu0  ;;  %v685_v5 = vpop.f32.mrb[12].mxu1 }
 0x12a   : > { %969 = vst.msk [vmem:[%s1785_s5 + $0x50] sm:$0xf] %vm948_vm4, %v1457_v0  ;;  %v1458_v6 = vpack.c.bf16 %v809_v2, %v809_v2  ;;  %v622_v7 = vadd.f32 %v1773_v48, %v621_v3  ;;  %v623_v8 = vpop.f32.mrb[13].mxu0  ;;  %v686_v9 = vadd.f32 %v1773_v48, %v685_v5  ;;  %v687_v10 = vpop.f32.mrb[13].mxu1 }
 0x12b   : > { %954 = vst.msk [vmem:[%s1785_s5 + $0x14] sm:$0xf] %vm948_vm4, %v1442_v1  ;;  %1087 = vrot.lane.b32.xlu1 %v1474_v4, %s1610_s6  ;;  %v624_v11 = vpop.f32.mrb[14].mxu0  ;;  %1117 = vrot.lane.b32.xlu0 %v1489_v59, %s1610_s6  ;;  %v688_v12 = vpop.f32.mrb[14].mxu1 }
 0x12c   : > { %970 = vst.msk [vmem:[%s1785_s5 + $0x54] sm:$0xf] %vm948_vm4, %v1458_v6  ;;  %vm730_vm15 = vcmp.ge.f32.partialorder %v622_v7, 0.0  ;;  %v762_v13 = vmul.f32 0.01, %v622_v7  ;;  %v625_v14 = vadd.f32 %v1773_v48, %v624_v11  ;;  %vm746_vm0 = vcmp.ge.f32.partialorder %v686_v9, 0.0 }
 0x12d   : > { %v626_v15 = vpop.f32.mrb[15].mxu0  ;;  %v690_v16 = vpop.f32.mrb[15].mxu1  ;;  %v778_v17 = vmul.f32 0.01, %v686_v9  ;;  %v689_v18 = vadd.f32 %v1773_v48, %v688_v12  ;;  %v1475_v20 = vpack.c.bf16 %v622_v7, %v622_v7  ;;  %v1491_v23 = vpack.c.bf16 %v686_v9, %v686_v9 }
 0x12e   : > { %v794_v21 = vsel %vm730_vm15, %v622_v7, %v762_v13  ;;  %vm731_vm1 = vcmp.ge.f32.partialorder %v625_v14, 0.0  ;;  %v763_v22 = vmul.f32 0.01, %v625_v14  ;;  %v1476_v32 = vpack.c.bf16 %v625_v14, %v625_v14 }
 0x12f   : > { %v1443_v24 = vpack.c.bf16 %v794_v21, %v794_v21  ;;  %v810_v25 = vsel %vm746_vm0, %v686_v9, %v778_v17  ;;  %vm747_vm2 = vcmp.ge.f32.partialorder %v689_v18, 0.0  ;;  %v779_v26 = vmul.f32 0.01, %v689_v18  ;;  %1119 = vrot.lane.b32.xlu1 %v1490_v19, %s1610_s6  ;;  %1089 = vrot.lane.b32.xlu0 %v1475_v20, %s1610_s6 }
 0x130   : > { %v795_v27 = vsel %vm731_vm1, %v625_v14, %v763_v22  ;;  %v1459_v28 = vpack.c.bf16 %v810_v25, %v810_v25  ;;  %v1492_v47 = vpack.c.bf16 %v689_v18, %v689_v18 }
 0x131   : > { %955 = vst.msk [vmem:[%s1785_s5 + $0x18] sm:$0xf] %vm948_vm4, %v1443_v24  ;;  %v1444_v29 = vpack.c.bf16 %v795_v27, %v795_v27  ;;  %v811_v30 = vsel %vm747_vm2, %v689_v18, %v779_v26  ;;  %v629_v31 = vpop.f32.mrb[16].mxu0  ;;  %v693_v33 = vpop.f32.mrb[16].mxu1 }
 0x132   : > { %971 = vst.msk [vmem:[%s1785_s5 + $0x58] sm:$0xf] %vm948_vm4, %v1459_v28  ;;  %v1460_v34 = vpack.c.bf16 %v811_v30, %v811_v30  ;;  %v630_v35 = vadd.f32 %v1773_v48, %v629_v31  ;;  %v631_v36 = vpop.f32.mrb[17].mxu0  ;;  %v694_v37 = vadd.f32 %v1773_v48, %v693_v33  ;;  %v695_v38 = vpop.f32.mrb[17].mxu1 }
 0x133   : > { %956 = vst.msk [vmem:[%s1785_s5 + $0x1c] sm:$0xf] %vm948_vm4, %v1444_v29  ;;  %1091 = vrot.lane.b32.xlu1 %v1476_v32, %s1610_s6  ;;  %v632_v39 = vpop.f32.mrb[18].mxu0  ;;  %1121 = vrot.lane.b32.xlu0 %v1491_v23, %s1610_s6  ;;  %v696_v40 = vpop.f32.mrb[18].mxu1 }
 0x134   : > { %972 = vst.msk [vmem:[%s1785_s5 + $0x5c] sm:$0xf] %vm948_vm4, %v1460_v34  ;;  %vm732_vm3 = vcmp.ge.f32.partialorder %v630_v35, 0.0  ;;  %v764_v41 = vmul.f32 0.01, %v630_v35  ;;  %v633_v42 = vadd.f32 %v1773_v48, %v632_v39  ;;  %vm748_vm5 = vcmp.ge.f32.partialorder %v694_v37, 0.0 }
 0x135   : > { %v634_v43 = vpop.f32.mrb[19].mxu0  ;;  %v698_v44 = vpop.f32.mrb[19].mxu1  ;;  %v780_v45 = vmul.f32 0.01, %v694_v37  ;;  %v697_v46 = vadd.f32 %v1773_v48, %v696_v40  ;;  %v1477_v49 = vpack.c.bf16 %v630_v35, %v630_v35  ;;  %v1493_v52 = vpack.c.bf16 %v694_v37, %v694_v37 }
 0x136   : > { %v796_v50 = vsel %vm732_vm3, %v630_v35, %v764_v41  ;;  %vm733_vm6 = vcmp.ge.f32.partialorder %v633_v42, 0.0  ;;  %v765_v51 = vmul.f32 0.01, %v633_v42  ;;  %v1478_v61 = vpack.c.bf16 %v633_v42, %v633_v42 }
 0x137   : > { %v1445_v53 = vpack.c.bf16 %v796_v50, %v796_v50  ;;  %v812_v54 = vsel %vm748_vm5, %v694_v37, %v780_v45  ;;  %vm749_vm7 = vcmp.ge.f32.partialorder %v697_v46, 0.0  ;;  %v781_v55 = vmul.f32 0.01, %v697_v46  ;;  %1123 = vrot.lane.b32.xlu1 %v1492_v47, %s1610_s6  ;;  %1093 = vrot.lane.b32.xlu0 %v1477_v49, %s1610_s6 }
 0x138   : > { %v797_v56 = vsel %vm733_vm6, %v633_v42, %v765_v51  ;;  %v1461_v57 = vpack.c.bf16 %v812_v54, %v812_v54  ;;  %v1494_v12 = vpack.c.bf16 %v697_v46, %v697_v46 }
 0x139   : > { %957 = vst.msk [vmem:[%s1785_s5 + $0x20] sm:$0xf] %vm948_vm4, %v1445_v53  ;;  %v1446_v58 = vpack.c.bf16 %v797_v56, %v797_v56  ;;  %v813_v59 = vsel %vm749_vm7, %v697_v46, %v781_v55  ;;  %v637_v60 = vpop.f32.mrb[20].mxu0  ;;  %v701_v62 = vpop.f32.mrb[20].mxu1 }
 0x13a   : > { %973 = vst.msk [vmem:[%s1785_s5 + $0x60] sm:$0xf] %vm948_vm4, %v1461_v57  ;;  %v1462_v63 = vpack.c.bf16 %v813_v59, %v813_v59  ;;  %v638_v0 = vadd.f32 %v1773_v48, %v637_v60  ;;  %v639_v1 = vpop.f32.mrb[21].mxu0  ;;  %v702_v2 = vadd.f32 %v1773_v48, %v701_v62  ;;  %v703_v3 = vpop.f32.mrb[21].mxu1 }
 0x13b   : > { %958 = vst.msk [vmem:[%s1785_s5 + $0x24] sm:$0xf] %vm948_vm4, %v1446_v58  ;;  %1095 = vrot.lane.b32.xlu1 %v1478_v61, %s1610_s6  ;;  %v640_v4 = vpop.f32.mrb[22].mxu0  ;;  %1125 = vrot.lane.b32.xlu0 %v1493_v52, %s1610_s6  ;;  %v704_v5 = vpop.f32.mrb[22].mxu1 }
 0x13c   : > { %974 = vst.msk [vmem:[%s1785_s5 + $0x64] sm:$0xf] %vm948_vm4, %v1462_v63  ;;  %vm734_vm8 = vcmp.ge.f32.partialorder %v638_v0, 0.0  ;;  %v766_v6 = vmul.f32 0.01, %v638_v0  ;;  %v641_v7 = vadd.f32 %v1773_v48, %v640_v4  ;;  %vm750_vm9 = vcmp.ge.f32.partialorder %v702_v2, 0.0 }
 0x13d   : > { %v642_v8 = vpop.f32.mrb[23].mxu0  ;;  %v706_v9 = vpop.f32.mrb[23].mxu1  ;;  %v782_v10 = vmul.f32 0.01, %v702_v2  ;;  %v705_v11 = vadd.f32 %v1773_v48, %v704_v5  ;;  %v1479_v13 = vpack.c.bf16 %v638_v0, %v638_v0  ;;  %v1495_v16 = vpack.c.bf16 %v702_v2, %v702_v2 }
 0x13e   : > { %v798_v14 = vsel %vm734_vm8, %v638_v0, %v766_v6  ;;  %vm735_vm10 = vcmp.ge.f32.partialorder %v641_v7, 0.0  ;;  %v767_v15 = vmul.f32 0.01, %v641_v7  ;;  %v1480_v25 = vpack.c.bf16 %v641_v7, %v641_v7 }
 0x13f   : > { %v1447_v17 = vpack.c.bf16 %v798_v14, %v798_v14  ;;  %v814_v18 = vsel %vm750_vm9, %v702_v2, %v782_v10  ;;  %vm751_vm11 = vcmp.ge.f32.partialorder %v705_v11, 0.0  ;;  %v783_v19 = vmul.f32 0.01, %v705_v11  ;;  %1127 = vrot.lane.b32.xlu1 %v1494_v12, %s1610_s6  ;;  %1097 = vrot.lane.b32.xlu0 %v1479_v13, %s1610_s6 }
 0x140   : > { %v799_v20 = vsel %vm735_vm10, %v641_v7, %v767_v15  ;;  %v1463_v21 = vpack.c.bf16 %v814_v18, %v814_v18  ;;  %v1496_v40 = vpack.c.bf16 %v705_v11, %v705_v11 }
 0x141   : > { %959 = vst.msk [vmem:[%s1785_s5 + $0x28] sm:$0xf] %vm948_vm4, %v1447_v17  ;;  %v1448_v22 = vpack.c.bf16 %v799_v20, %v799_v20  ;;  %v815_v23 = vsel %vm751_vm11, %v705_v11, %v783_v19  ;;  %v645_v24 = vpop.f32.mrb[24].mxu0  ;;  %v709_v26 = vpop.f32.mrb[24].mxu1 }
 0x142   : > { %975 = vst.msk [vmem:[%s1785_s5 + $0x68] sm:$0xf] %vm948_vm4, %v1463_v21  ;;  %v1464_v27 = vpack.c.bf16 %v815_v23, %v815_v23  ;;  %v646_v28 = vadd.f32 %v1773_v48, %v645_v24  ;;  %v647_v29 = vpop.f32.mrb[25].mxu0  ;;  %v710_v30 = vadd.f32 %v1773_v48, %v709_v26  ;;  %v711_v31 = vpop.f32.mrb[25].mxu1 }
 0x143   : > { %960 = vst.msk [vmem:[%s1785_s5 + $0x2c] sm:$0xf] %vm948_vm4, %v1448_v22  ;;  %1099 = vrot.lane.b32.xlu1 %v1480_v25, %s1610_s6  ;;  %v648_v32 = vpop.f32.mrb[26].mxu0  ;;  %1129 = vrot.lane.b32.xlu0 %v1495_v16, %s1610_s6  ;;  %v712_v33 = vpop.f32.mrb[26].mxu1 }
 0x144   : > { %976 = vst.msk [vmem:[%s1785_s5 + $0x6c] sm:$0xf] %vm948_vm4, %v1464_v27  ;;  %vm736_vm12 = vcmp.ge.f32.partialorder %v646_v28, 0.0  ;;  %v768_v34 = vmul.f32 0.01, %v646_v28  ;;  %v649_v35 = vadd.f32 %v1773_v48, %v648_v32  ;;  %vm752_vm13 = vcmp.ge.f32.partialorder %v710_v30, 0.0 }
 0x145   : > { %v650_v36 = vpop.f32.mrb[27].mxu0  ;;  %v714_v37 = vpop.f32.mrb[27].mxu1  ;;  %v784_v38 = vmul.f32 0.01, %v710_v30  ;;  %v713_v39 = vadd.f32 %v1773_v48, %v712_v33  ;;  %v1481_v41 = vpack.c.bf16 %v646_v28, %v646_v28  ;;  %v1497_v44 = vpack.c.bf16 %v710_v30, %v710_v30 }
 0x146   : > { %v800_v42 = vsel %vm736_vm12, %v646_v28, %v768_v34  ;;  %vm737_vm14 = vcmp.ge.f32.partialorder %v649_v35, 0.0  ;;  %v769_v43 = vmul.f32 0.01, %v649_v35  ;;  %v1482_v54 = vpack.c.bf16 %v649_v35, %v649_v35 }
 0x147   : > { %v1449_v45 = vpack.c.bf16 %v800_v42, %v800_v42  ;;  %v816_v46 = vsel %vm752_vm13, %v710_v30, %v784_v38  ;;  %vm753_vm15 = vcmp.ge.f32.partialorder %v713_v39, 0.0  ;;  %v785_v47 = vmul.f32 0.01, %v713_v39  ;;  %1131 = vrot.lane.b32.xlu1 %v1496_v40, %s1610_s6  ;;  %1101 = vrot.lane.b32.xlu0 %v1481_v41, %s1610_s6 }
 0x148   : > { %v801_v49 = vsel %vm737_vm14, %v649_v35, %v769_v43  ;;  %v1465_v50 = vpack.c.bf16 %v816_v46, %v816_v46  ;;  %v1498_v5 = vpack.c.bf16 %v713_v39, %v713_v39 }
 0x149   : > { %961 = vst.msk [vmem:[%s1785_s5 + $0x30] sm:$0xf] %vm948_vm4, %v1449_v45  ;;  %v1450_v51 = vpack.c.bf16 %v801_v49, %v801_v49  ;;  %v817_v52 = vsel %vm753_vm15, %v713_v39, %v785_v47  ;;  %v653_v53 = vpop.f32.mrb[28].mxu0  ;;  %v717_v55 = vpop.f32.mrb[28].mxu1 }
 0x14a   : > { %977 = vst.msk [vmem:[%s1785_s5 + $0x70] sm:$0xf] %vm948_vm4, %v1465_v50  ;;  %v1466_v56 = vpack.c.bf16 %v817_v52, %v817_v52  ;;  %v654_v57 = vadd.f32 %v1773_v48, %v653_v53  ;;  %v655_v58 = vpop.f32.mrb[29].mxu0  ;;  %v718_v59 = vadd.f32 %v1773_v48, %v717_v55  ;;  %v719_v60 = vpop.f32.mrb[29].mxu1 }
 0x14b   : > { %962 = vst.msk [vmem:[%s1785_s5 + $0x34] sm:$0xf] %vm948_vm4, %v1450_v51  ;;  %1103 = vrot.lane.b32.xlu1 %v1482_v54, %s1610_s6  ;;  %v656_v61 = vpop.f32.mrb[30].mxu0  ;;  %1133 = vrot.lane.b32.xlu0 %v1497_v44, %s1610_s6  ;;  %v720_v62 = vpop.f32.mrb[30].mxu1 }
 0x14c   : > { %978 = vst.msk [vmem:[%s1785_s5 + $0x74] sm:$0xf] %vm948_vm4, %v1466_v56  ;;  %vm738_vm0 = vcmp.ge.f32.partialorder %v654_v57, 0.0  ;;  %v770_v63 = vmul.f32 0.01, %v654_v57  ;;  %v657_v0 = vadd.f32 %v1773_v48, %v656_v61  ;;  %vm754_vm1 = vcmp.ge.f32.partialorder %v718_v59, 0.0 }
 0x14d   : > { %v658_v1 = vpop.f32.mrb[31].mxu0  ;;  %v722_v2 = vpop.f32.mrb[31].mxu1  ;;  %v786_v3 = vmul.f32 0.01, %v718_v59  ;;  %v721_v4 = vadd.f32 %v1773_v48, %v720_v62  ;;  %v1483_v6 = vpack.c.bf16 %v654_v57, %v654_v57  ;;  %v1499_v9 = vpack.c.bf16 %v718_v59, %v718_v59 }
 0x14e   : > { %v802_v7 = vsel %vm738_vm0, %v654_v57, %v770_v63  ;;  %vm739_vm2 = vcmp.ge.f32.partialorder %v657_v0, 0.0  ;;  %v771_v8 = vmul.f32 0.01, %v657_v0  ;;  %v1484_v16 = vpack.c.bf16 %v657_v0, %v657_v0 }
 0x14f   : > { %v1451_v10 = vpack.c.bf16 %v802_v7, %v802_v7  ;;  %v818_v11 = vsel %vm754_vm1, %v718_v59, %v786_v3  ;;  %vm755_vm3 = vcmp.ge.f32.partialorder %v721_v4, 0.0  ;;  %v787_v12 = vmul.f32 0.01, %v721_v4  ;;  %1135 = vrot.lane.b32.xlu1 %v1498_v5, %s1610_s6  ;;  %1105 = vrot.lane.b32.xlu0 %v1483_v6, %s1610_s6 }
 0x150   : > { %v803_v13 = vsel %vm739_vm2, %v657_v0, %v771_v8  ;;  %v1467_v48 = vpack.c.bf16 %v818_v11, %v818_v11  ;;  %v1500_v18 = vpack.c.bf16 %v721_v4, %v721_v4 }
 0x151   : > { %963 = vst.msk [vmem:[%s1785_s5 + $0x38] sm:$0xf] %vm948_vm4, %v1451_v10  ;;  %v1452_v14 = vpack.c.bf16 %v803_v13, %v803_v13  ;;  %v819_v15 = vsel %vm755_vm3, %v721_v4, %v787_v12 }
 0x152   : > { %979 = vst.msk [vmem:[%s1785_s5 + $0x78] sm:$0xf] %vm948_vm4, %v1467_v48  ;;  %v1468_v17 = vpack.c.bf16 %v819_v15, %v819_v15 }
 0x153   : > { %964 = vst.msk [vmem:[%s1785_s5 + $0x3c] sm:$0xf] %vm948_vm4, %v1452_v14  ;;  %1107 = vrot.lane.b32.xlu1 %v1484_v16, %s1610_s6  ;;  %1137 = vrot.lane.b32.xlu0 %v1499_v9, %s1610_s6 }
 0x154   : > { %980 = vst.msk [vmem:[%s1785_s5 + $0x7c] sm:$0xf] %vm948_vm4, %v1468_v17 }
 0x157   : > { %1139 = vrot.lane.b32.xlu1 %v1500_v18, %s1610_s6 }
 0x189   : > { %v1078_v19 = vpop.permute.xlu0 %1077 }
 0x18a   : > { %1173 = vst.msk [vmem:[%s1916_s9] sm:$0xf] %vm948_vm4, %v1078_v19 }
 0x18c   : > { %v1112_v20 = vpop.permute.xlu1 %1111 }
 0x18d   : > { %1190 = vst.msk [vmem:[%s1916_s9 + $0x44] sm:$0xf] %vm948_vm4, %v1112_v20  ;;  %v1110_v21 = vpop.permute.xlu0 %1109 }
 0x18e   : > { %1189 = vst.msk [vmem:[%s1916_s9 + $0x40] sm:$0xf] %vm948_vm4, %v1110_v21 }
 0x191   : > { %v1082_v22 = vpop.permute.xlu1 %1081  ;;  %v1080_v23 = vpop.permute.xlu0 %1079 }
 0x192   : > { %1175 = vst.msk [vmem:[%s1916_s9 + $0x8] sm:$0xf] %vm948_vm4, %v1082_v22  ;;  %1174 = vst.msk [vmem:[%s1916_s9 + $0x4] sm:$0xf] %vm948_vm4, %v1080_v23 }
 0x195   : > { %v1084_v24 = vpop.permute.xlu1 %1083  ;;  %v1114_v25 = vpop.permute.xlu0 %1113 }
 0x196   : > { %1176 = vst.msk [vmem:[%s1916_s9 + $0xc] sm:$0xf] %vm948_vm4, %v1084_v24  ;;  %1191 = vst.msk [vmem:[%s1916_s9 + $0x48] sm:$0xf] %vm948_vm4, %v1114_v25 }
 0x199   : > { %v1116_v26 = vpop.permute.xlu1 %1115  ;;  %v1086_v27 = vpop.permute.xlu0 %1085 }
 0x19a   : > { %1192 = vst.msk [vmem:[%s1916_s9 + $0x4c] sm:$0xf] %vm948_vm4, %v1116_v26  ;;  %1177 = vst.msk [vmem:[%s1916_s9 + $0x10] sm:$0xf] %vm948_vm4, %v1086_v27 }
 0x19d   : > { %v1088_v28 = vpop.permute.xlu1 %1087  ;;  %v1118_v29 = vpop.permute.xlu0 %1117 }
 0x19e   : > { %1178 = vst.msk [vmem:[%s1916_s9 + $0x14] sm:$0xf] %vm948_vm4, %v1088_v28  ;;  %1193 = vst.msk [vmem:[%s1916_s9 + $0x50] sm:$0xf] %vm948_vm4, %v1118_v29 }
 0x1a1   : > { %v1120_v30 = vpop.permute.xlu1 %1119  ;;  %v1090_v31 = vpop.permute.xlu0 %1089 }
 0x1a2   : > { %1194 = vst.msk [vmem:[%s1916_s9 + $0x54] sm:$0xf] %vm948_vm4, %v1120_v30  ;;  %1179 = vst.msk [vmem:[%s1916_s9 + $0x18] sm:$0xf] %vm948_vm4, %v1090_v31 }
 0x1a5   : > { %v1092_v32 = vpop.permute.xlu1 %1091  ;;  %v1122_v33 = vpop.permute.xlu0 %1121 }
 0x1a6   : > { %1180 = vst.msk [vmem:[%s1916_s9 + $0x1c] sm:$0xf] %vm948_vm4, %v1092_v32  ;;  %1195 = vst.msk [vmem:[%s1916_s9 + $0x58] sm:$0xf] %vm948_vm4, %v1122_v33 }
 0x1a9   : > { %v1124_v34 = vpop.permute.xlu1 %1123  ;;  %v1094_v35 = vpop.permute.xlu0 %1093 }
 0x1aa   : > { %1196 = vst.msk [vmem:[%s1916_s9 + $0x5c] sm:$0xf] %vm948_vm4, %v1124_v34  ;;  %1181 = vst.msk [vmem:[%s1916_s9 + $0x20] sm:$0xf] %vm948_vm4, %v1094_v35 }
 0x1ad   : > { %v1096_v36 = vpop.permute.xlu1 %1095  ;;  %v1126_v37 = vpop.permute.xlu0 %1125 }
 0x1ae   : > { %1182 = vst.msk [vmem:[%s1916_s9 + $0x24] sm:$0xf] %vm948_vm4, %v1096_v36  ;;  %1197 = vst.msk [vmem:[%s1916_s9 + $0x60] sm:$0xf] %vm948_vm4, %v1126_v37 }
 0x1b1   : > { %v1128_v38 = vpop.permute.xlu1 %1127  ;;  %v1098_v39 = vpop.permute.xlu0 %1097 }
 0x1b2   : > { %1198 = vst.msk [vmem:[%s1916_s9 + $0x64] sm:$0xf] %vm948_vm4, %v1128_v38  ;;  %1183 = vst.msk [vmem:[%s1916_s9 + $0x28] sm:$0xf] %vm948_vm4, %v1098_v39 }
 0x1b5   : > { %v1100_v40 = vpop.permute.xlu1 %1099  ;;  %v1130_v41 = vpop.permute.xlu0 %1129 }
 0x1b6   : > { %1184 = vst.msk [vmem:[%s1916_s9 + $0x2c] sm:$0xf] %vm948_vm4, %v1100_v40  ;;  %1199 = vst.msk [vmem:[%s1916_s9 + $0x68] sm:$0xf] %vm948_vm4, %v1130_v41 }
 0x1b9   : > { %v1132_v42 = vpop.permute.xlu1 %1131  ;;  %v1102_v43 = vpop.permute.xlu0 %1101 }
 0x1ba   : > { %1200 = vst.msk [vmem:[%s1916_s9 + $0x6c] sm:$0xf] %vm948_vm4, %v1132_v42  ;;  %1185 = vst.msk [vmem:[%s1916_s9 + $0x30] sm:$0xf] %vm948_vm4, %v1102_v43 }
 0x1bd   : > { %v1104_v44 = vpop.permute.xlu1 %1103  ;;  %v1134_v45 = vpop.permute.xlu0 %1133 }
 0x1be   : > { %1186 = vst.msk [vmem:[%s1916_s9 + $0x34] sm:$0xf] %vm948_vm4, %v1104_v44  ;;  %1201 = vst.msk [vmem:[%s1916_s9 + $0x70] sm:$0xf] %vm948_vm4, %v1134_v45 }
 0x1c1   : > { %v1136_v46 = vpop.permute.xlu1 %1135  ;;  %v1106_v47 = vpop.permute.xlu0 %1105 }
 0x1c2   : > { %1202 = vst.msk [vmem:[%s1916_s9 + $0x74] sm:$0xf] %vm948_vm4, %v1136_v46  ;;  %1187 = vst.msk [vmem:[%s1916_s9 + $0x38] sm:$0xf] %vm948_vm4, %v1106_v47 }
 0x1c5   : > { %v1108_v49 = vpop.permute.xlu1 %1107  ;;  %v1138_v50 = vpop.permute.xlu0 %1137 }
 0x1c6   : > { %1188 = vst.msk [vmem:[%s1916_s9 + $0x3c] sm:$0xf] %vm948_vm4, %v1108_v49  ;;  %1203 = vst.msk [vmem:[%s1916_s9 + $0x78] sm:$0xf] %vm948_vm4, %v1138_v50 }
 0x1c9   : > { %v1140_v51 = vpop.permute.xlu1 %1139 }
 0x1ca   : > { %1204 = vst.msk [vmem:[%s1916_s9 + $0x7c] sm:$0xf] %vm948_vm4, %v1140_v51 }
 0x1cb PF: > { %s15_s15 = sadd.s32 1, %s1607_s15  }
 0x1cc   : > { %p12_p4 = scmp.ge.s32.totalorder %s15_s15, 4  }
 0x1ce   :  { %14 = sbr.rel (!%p12_p4) target bundleno = 1 (0x1), region = 74 }

// kernel: encoder_forward.15
= control target key start
LH: loop header
LB: loop body
LE: loop exit
PB: predicated region body
PF: predicated region fallthrough
CT: control target
= control target key end

     0   :  { %s2154_s15 = smov 0   ;;  %s2477_s0 = inlined_call_operand.vmem [shape: bf16[512,432], index: 0, kind: input, shape index: {}]   ;;  %s2478_s1 = inlined_call_operand.vmem [shape: bf16[432,16], index: 1, kind: input, shape index: {}]   ;;  %s2479_s2 = inlined_call_operand.vmem [shape: f32[1,16], index: 2, kind: input, shape index: {}]   ;;  %s2480_s3 = inlined_call_operand.vmem [shape: bf16[512,16], index: 3, kind: input, shape index: {}]   ;;  %s2481_s4 = inlined_call_operand.vmem [shape: bf16[512,16], index: 4, kind: output, shape index: {}]  }
   0x1 LB: > { %s1610_s16 = sadd.s32 4294967295, %s2126_s15   ;;  %p1614_p0 = scmp.ge.s32.totalorder %s2126_s15, 1  ;;  %s2126_s15 = sphi %s2154_s15, %s14_s15  }
   0x2   : > { %p175_p1 = scmp.lt.s32.totalorder %s2126_s15, 3 }
   0x4   : > { %p176_p2 = pnand %p1614_p0, %p175_p1 }
   0x5   : > { %v1997_v0 = vld [vmem:[%s2478_s1 + $0x80] sm:$0xff] (!%p176_p2)   ;;  %v2128_v1 = vmov (!%p176_p2), 0   ;;  %v2000_v4 = vld [vmem:[%s2478_s1 + $0x88] sm:$0xff] (!%p176_p2)   ;;  %v2003_v7 = vld [vmem:[%s2478_s1 + $0x90] sm:$0xff] (!%p176_p2)   ;;  %s1615_s11 = sshll.u32 (!%p176_p2), %s1610_s16, 5  ;;  %vm818_vm0 = vcmask (!%p176_p2), 392192  }
   0x6   : > { %179 = sbr.rel (%p176_p2) target bundleno = 394 (0x18a), region = 36  ;;  %1028 = vmatprep.subr.bf16.mxu1 (!%p176_p2), %v2128_v1  ;;  %v1998_v2 = vld [vmem:[%s2478_s1 + $0x40] sm:$0xff] (!%p176_p2)   ;;  %v2001_v5 = vld [vmem:[%s2478_s1 + $0x48] sm:$0xff] (!%p176_p2)   ;;  %v2004_v8 = vld [vmem:[%s2478_s1 + $0x50] sm:$0xff] (!%p176_p2)   ;;  %p208_p3 = scmp.lt.s32.totalorder (!%p176_p2), %s1615_s11, 63  ;;  %vm1509_vm2 = vcmask (!%p176_p2), 125952  }
   0x7   : > { %1029 = vmatpush1.bf16.msra.mxu1 (!%p176_p2), %v1997_v0  ;;  %v1999_v3 = vld [vmem:[%s2478_s1] sm:$0xff] (!%p176_p2)   ;;  %1876 = vmatprep.subr.bf16.mxu0 (!%p176_p2), %v1998_v2  ;;  %v2002_v6 = vld [vmem:[%s2478_s1 + $0x8] sm:$0xff] (!%p176_p2)   ;;  %v2005_v9 = vld [vmem:[%s2478_s1 + $0x10] sm:$0xff] (!%p176_p2)  }
   0x8   : > { %1030 = vmatprep.subr.bf16.mxu1 (!%p176_p2), %v2128_v1  ;;  %1877 = vmatpush3.bf16.msra.mxu0 (!%p176_p2), %v1999_v3  ;;  %v2006_v10 = vld [vmem:[%s2478_s1 + $0x98] sm:$0xff] (!%p176_p2)   ;;  %v2010_v13 = vld [vmem:[%s2478_s1 + $0x60] sm:$0xff] (!%p176_p2)   ;;  %v2013_v16 = vld [vmem:[%s2478_s1 + $0x68] sm:$0xff] (!%p176_p2)  }
   0x9   : > { %1878 = vmatprep.subr.bf16.mxu0 (!%p176_p2), %v2001_v5  ;;  %v2007_v11 = vld [vmem:[%s2478_s1 + $0x58] sm:$0xff] (!%p176_p2)   ;;  %v2009_v14 = vld [vmem:[%s2478_s1 + $0xa0] sm:$0xff] (!%p176_p2)   ;;  %v2012_v17 = vld [vmem:[%s2478_s1 + $0xa8] sm:$0xff] (!%p176_p2)  }
   0xa   : > { %v2008_v12 = vld [vmem:[%s2478_s1 + $0x18] sm:$0xff] (!%p176_p2)   ;;  %v2011_v15 = vld [vmem:[%s2478_s1 + $0x20] sm:$0xff] (!%p176_p2)   ;;  %v2014_v18 = vld [vmem:[%s2478_s1 + $0x28] sm:$0xff] (!%p176_p2)  }
   0xb   : > { %1031 = vmatpush1.bf16.msra.mxu1 (!%p176_p2), %v2000_v4  ;;  %v2016_v19 = vld [vmem:[%s2478_s1 + $0x70] sm:$0xff] (!%p176_p2)   ;;  %v2018_v22 = vld [vmem:[%s2478_s1 + $0xb8] sm:$0xff] (!%p176_p2)   ;;  %v2021_v26 = vld [vmem:[%s2478_s1 + $0xc0] sm:$0xff] (!%p176_p2)  }
   0xc   : > { %1032 = vmatprep.subr.bf16.mxu1 (!%p176_p2), %v2128_v1  ;;  %1879 = vmatpush3.bf16.msra.mxu0 (!%p176_p2), %v2002_v6  ;;  %v2015_v20 = vld [vmem:[%s2478_s1 + $0xb0] sm:$0xff] (!%p176_p2)   ;;  %v2019_v23 = vld [vmem:[%s2478_s1 + $0x78] sm:$0xff] (!%p176_p2)   ;;  %v2025_v30 = vld [vmem:[%s2478_s1 + $0xc8] sm:$0xff] (!%p176_p2)  }
   0xd   : > { %1880 = vmatprep.subr.bf16.mxu0 %v2004_v8  ;;  %s2483_s11 = smov (!%p208_p3, %s1615_s11), 63  ;;  %v2017_v21 = vld [vmem:[%s2478_s1 + $0x30] sm:$0xff]   ;;  %v2020_v25 = vld [vmem:[%s2478_s1 + $0x38] sm:$0xff]  }
   0xe   : > { %s1764_s29 = sshll.u32 %s2483_s11, 4  ;;  %v2026_v31 = vld [vmem:[%s2478_s1 + $0xd0] sm:$0xff]   ;;  %s1619_s27 = sshll.u32 %s2483_s11, 2 }
   0xf   : > { %1033 = vmatpush1.bf16.msra.mxu1 %v2003_v7  ;;  %s2238_s13 = scalar_lea.vmem %s2477_s0, %s1764_s29  ;;  %s2348_s30 = scalar_lea.vmem %s2480_s3, %s1619_s27 }
  0x10   : > { %1034 = vmatprep.subr.bf16.mxu1 %v2128_v1  ;;  %1881 = vmatpush3.bf16.msra.mxu0 %v2005_v9  ;;  %v2024_v24 = vld [vmem:[%s2238_s13 + $0x4] ss:$16 sps:$4 sm:$0xff]   ;;  %v2031_v27 = vld [vmem:[%s2238_s13 + $0xc] ss:$16 sps:$4 sm:$0xff]   ;;  %v2022_v28 = vld [vmem:[%s2238_s13] ss:$16 sps:$4 sm:$0xff]   ;;  %s2365_s9 = scalar_lea.vmem %s2481_s4, %s1619_s27 }
  0x11   : > { %1882 = vmatprep.subr.bf16.mxu0 %v2007_v11  ;;  %899 = vmatprep.mubr.bf16.mxu0 %v2024_v24  ;;  %v2027_v29 = vld [vmem:[%s2238_s13 + $0x24] ss:$16 sps:$4 sm:$0xff]   ;;  %v2032_v32 = vld [vmem:[%s2238_s13 + $0x20] ss:$16 sps:$4 sm:$0xff]   ;;  %v2029_v34 = vld [vmem:[%s2238_s13 + $0x8] ss:$16 sps:$4 sm:$0xff]  }
  0x12   : > { %1714 = vmatprep.mubr.msk.bf16.mxu1 %vm818_vm0, %v2031_v27  ;;  %v2033_v33 = vld [vmem:[%s2238_s13 + $0x44] ss:$16 sps:$4 sm:$0xff]   ;;  %v2035_v35 = vld [vmem:[%s2238_s13 + $0x2c] ss:$16 sps:$4 sm:$0xff]   ;;  %v2037_v36 = vld [vmem:[%s2238_s13 + $0x40] ss:$16 sps:$4 sm:$0xff]  }
  0x13   : > { %1035 = vmatpush1.bf16.msra.mxu1 %v2006_v10  ;;  %v2039_v37 = vld [vmem:[%s2238_s13 + $0x64] ss:$16 sps:$4 sm:$0xff]   ;;  %v2038_v38 = vld [vmem:[%s2238_s13 + $0x28] ss:$16 sps:$4 sm:$0xff]   ;;  %v2041_v39 = vld [vmem:[%s2238_s13 + $0x4c] ss:$16 sps:$4 sm:$0xff]  }
  0x14   : > { %1036 = vmatprep.subr.bf16.mxu1 %v2128_v1  ;;  %1883 = vmatpush3.bf16.msra.mxu0 %v2008_v12  ;;  %v2043_v40 = vld [vmem:[%s2238_s13 + $0x60] ss:$16 sps:$4 sm:$0xff]   ;;  %v2045_v41 = vld [vmem:[%s2238_s13 + $0x84] ss:$16 sps:$4 sm:$0xff]   ;;  %v2044_v42 = vld [vmem:[%s2238_s13 + $0x48] ss:$16 sps:$4 sm:$0xff]  }
  0x15   : > { %1884 = vmatprep.subr.bf16.mxu0 %v2010_v13  ;;  %v2047_v43 = vld [vmem:[%s2238_s13 + $0x6c] ss:$16 sps:$4 sm:$0xff]   ;;  %v2049_v44 = vld [vmem:[%s2238_s13 + $0x80] ss:$16 sps:$4 sm:$0xff]   ;;  %v2051_v45 = vld [vmem:[%s2238_s13 + $0xa4] ss:$16 sps:$4 sm:$0xff]  }
  0x16   : > { %v2050_v46 = vld [vmem:[%s2238_s13 + $0x68] ss:$16 sps:$4 sm:$0xff]   ;;  %v2053_v47 = vld [vmem:[%s2238_s13 + $0x8c] ss:$16 sps:$4 sm:$0xff]   ;;  %v2055_v48 = vld [vmem:[%s2238_s13 + $0xa0] ss:$16 sps:$4 sm:$0xff]  }
  0x17   : > { %1037 = vmatpush1.bf16.msra.mxu1 %v2009_v14  ;;  %v2057_v49 = vld [vmem:[%s2238_s13 + $0xc4] ss:$16 sps:$4 sm:$0xff]   ;;  %v2056_v50 = vld [vmem:[%s2238_s13 + $0x88] ss:$16 sps:$4 sm:$0xff]   ;;  %v2059_v51 = vld [vmem:[%s2238_s13 + $0xac] ss:$16 sps:$4 sm:$0xff]  }
  0x18   : > { %1038 = vmatprep.subr.bf16.mxu1 %v2128_v1  ;;  %1885 = vmatpush3.bf16.msra.mxu0 %v2011_v15  ;;  %v2061_v52 = vld [vmem:[%s2238_s13 + $0xc0] ss:$16 sps:$4 sm:$0xff]   ;;  %v2063_v53 = vld [vmem:[%s2238_s13 + $0xe4] ss:$16 sps:$4 sm:$0xff]   ;;  %v2062_v54 = vld [vmem:[%s2238_s13 + $0xa8] ss:$16 sps:$4 sm:$0xff]  }
  0x19   : > { %1886 = vmatprep.subr.bf16.mxu0 %v2013_v16  ;;  %v2065_v55 = vld [vmem:[%s2238_s13 + $0xcc] ss:$16 sps:$4 sm:$0xff]   ;;  %v2067_v56 = vld [vmem:[%s2238_s13 + $0xe0] ss:$16 sps:$4 sm:$0xff]   ;;  %v2069_v57 = vld [vmem:[%s2238_s13 + $0x104] ss:$16 sps:$4 sm:$0xff]  }
  0x1a   : > { %v2068_v58 = vld [vmem:[%s2238_s13 + $0xc8] ss:$16 sps:$4 sm:$0xff]   ;;  %v2071_v59 = vld [vmem:[%s2238_s13 + $0xec] ss:$16 sps:$4 sm:$0xff]   ;;  %v2073_v60 = vld [vmem:[%s2238_s13 + $0x100] ss:$16 sps:$4 sm:$0xff]  }
  0x1b   : > { %1039 = vmatpush1.bf16.msra.mxu1 %v2012_v17  ;;  %v2075_v61 = vld [vmem:[%s2238_s13 + $0x124] ss:$16 sps:$4 sm:$0xff]   ;;  %v2074_v62 = vld [vmem:[%s2238_s13 + $0xe8] ss:$16 sps:$4 sm:$0xff]   ;;  %v2077_v63 = vld [vmem:[%s2238_s13 + $0x10c] ss:$16 sps:$4 sm:$0xff]  }
  0x1c   : > { %1040 = vmatprep.subr.bf16.mxu1 %v2128_v1  ;;  %1887 = vmatpush3.bf16.msra.mxu0 %v2014_v18  ;;  %v2079_v0 = vld [vmem:[%s2238_s13 + $0x120] ss:$16 sps:$4 sm:$0xff]   ;;  %v2080_v2 = vld [vmem:[%s2238_s13 + $0x108] ss:$16 sps:$4 sm:$0xff]   ;;  %v2083_v3 = vld [vmem:[%s2238_s13 + $0x12c] ss:$16 sps:$4 sm:$0xff]  }
  0x1d   : > { %1888 = vmatprep.subr.bf16.mxu0 %v2016_v19  ;;  %v2085_v4 = vld [vmem:[%s2238_s13 + $0x140] ss:$16 sps:$4 sm:$0xff]   ;;  %v2087_v5 = vld [vmem:[%s2238_s13 + $0x164] ss:$16 sps:$4 sm:$0xff]   ;;  %v2086_v6 = vld [vmem:[%s2238_s13 + $0x128] ss:$16 sps:$4 sm:$0xff]  }
  0x1e   : > { %v2089_v7 = vld [vmem:[%s2238_s13 + $0x14c] ss:$16 sps:$4 sm:$0xff]   ;;  %v2091_v8 = vld [vmem:[%s2238_s13 + $0x160] ss:$16 sps:$4 sm:$0xff]   ;;  %v2093_v9 = vld [vmem:[%s2238_s13 + $0x184] ss:$16 sps:$4 sm:$0xff]  }
  0x1f   : > { %1041 = vmatpush1.bf16.msra.mxu1 %v2015_v20  ;;  %v2092_v10 = vld [vmem:[%s2238_s13 + $0x148] ss:$16 sps:$4 sm:$0xff]   ;;  %v2095_v11 = vld [vmem:[%s2238_s13 + $0x16c] ss:$16 sps:$4 sm:$0xff]   ;;  %v2097_v12 = vld [vmem:[%s2238_s13 + $0x180] ss:$16 sps:$4 sm:$0xff]  }
  0x20   : > { %1042 = vmatprep.subr.bf16.mxu1 %v2128_v1  ;;  %1889 = vmatpush3.bf16.msra.mxu0 %v2017_v21  ;;  %v2099_v13 = vld [vmem:[%s2238_s13 + $0x1a4] ss:$16 sps:$4 sm:$0xff]   ;;  %v2098_v14 = vld [vmem:[%s2238_s13 + $0x168] ss:$16 sps:$4 sm:$0xff]   ;;  %v2101_v15 = vld [vmem:[%s2238_s13 + $0x18c] ss:$16 sps:$4 sm:$0xff]  }
  0x21   : > { %1890 = vmatprep.subr.bf16.mxu0 %v2019_v23  ;;  %v2103_v16 = vld [vmem:[%s2238_s13 + $0x1a0] ss:$16 sps:$4 sm:$0xff]   ;;  %v2105_v17 = vld [vmem:[%s2238_s13 + $0x1c4] ss:$16 sps:$4 sm:$0xff]   ;;  %v2104_v18 = vld [vmem:[%s2238_s13 + $0x188] ss:$16 sps:$4 sm:$0xff]  }
  0x22   : > { %v2107_v19 = vld [vmem:[%s2238_s13 + $0x1ac] ss:$16 sps:$4 sm:$0xff]   ;;  %v2109_v20 = vld [vmem:[%s2238_s13 + $0x1c0] ss:$16 sps:$4 sm:$0xff]   ;;  %v2111_v21 = vld [vmem:[%s2238_s13 + $0x1e4] ss:$16 sps:$4 sm:$0xff]  }
  0x23   : > { %1043 = vmatpush1.bf16.msra.mxu1 %v2018_v22  ;;  %v2110_v22 = vld [vmem:[%s2238_s13 + $0x1a8] ss:$16 sps:$4 sm:$0xff]   ;;  %v2113_v23 = vld [vmem:[%s2238_s13 + $0x1cc] ss:$16 sps:$4 sm:$0xff]   ;;  %v2115_v24 = vld [vmem:[%s2238_s13 + $0x1e0] ss:$16 sps:$4 sm:$0xff]  }
  0x24   : > { %1044 = vmatprep.subr.bf16.mxu1 %v2128_v1  ;;  %1891 = vmatpush3.bf16.msra.mxu0 %v2020_v25  ;;  %v2116_v25 = vld [vmem:[%s2238_s13 + $0x1c8] ss:$16 sps:$4 sm:$0xff]  }
  0x25   : > { %v2119_v27 = vld [vmem:[%s2238_s13 + $0x1e8] ss:$16 sps:$4 sm:$0xff]  }
  0x27   : > { %1045 = vmatpush1.bf16.msra.mxu1 %v2021_v26  ;;  %900 = vmatmul.mubr.bf16.vlgmr.msra.gmra.mrb[0].mxu0 %v2022_v28  ;;  %v2117_v26 = vld [vmem:[%s2238_s13 + $0x1ec] ss:$16 sps:$4 sm:$0xff]  }
  0x28   : > { %1046 = vmatprep.subr.bf16.mxu1 %v2128_v1  ;;  %907 = vmatprep.mubr.bf16.mxu0 %v2027_v29 }
  0x2b   : > { %1047 = vmatpush1.bf16.msra.mxu1 %v2025_v30 }
  0x2c   : > { %1048 = vmatprep.subr.bf16.mxu1 %v2128_v1  ;;  %v2081_v1 = vld [vmem:[%s2238_s13 + $0x144] ss:$16 sps:$4 sm:$0xff]  }
  0x2f   : > { %1049 = vmatpush1.bf16.msra.mxu1 %v2026_v31  ;;  %908 = vmatmul.mubr.bf16.gmra.mrb[4].mxu0 %v2032_v32 }
  0x30   : > { %915 = vmatprep.mubr.bf16.mxu0 %v2033_v33 }
  0x32   : > { %1061 = vmatmul.mubr.bf16.vlgmr.msra.gmra.mrb[0].mxu1 %v2029_v34  ;;  %v2353_v34 = vld [vmem:[%s2479_s2] ss:$0 sm:$0xff] }
  0x33   : > { %1715 = vmatprep.mubr.msk.bf16.mxu1 %vm818_vm0, %v2035_v35  ;;  %v1798_v35 = vld [vmem:[%s2348_s30] sm:$0xff]  }
  0x37   : > { %916 = vmatmul.mubr.bf16.gmra.mrb[8].mxu0 %v2037_v36 }
  0x38   : > { %923 = vmatprep.mubr.bf16.mxu0 %v2039_v37 }
  0x3a   : > { %1069 = vmatmul.mubr.bf16.gmra.mrb[4].mxu1 %v2038_v38  ;;  %v1799_v38 = vunpack.c.l.bf16 %v1798_v35 }
  0x3b   : > { %1716 = vmatprep.mubr.msk.bf16.mxu1 %vm818_vm0, %v2041_v39 }
  0x3f   : > { %924 = vmatmul.mubr.bf16.gmra.mrb[12].mxu0 %v2043_v40 }
  0x40   : > { %931 = vmatprep.mubr.bf16.mxu0 %v2045_v41 }
  0x42   : > { %1077 = vmatmul.mubr.bf16.gmra.mrb[8].mxu1 %v2044_v42 }
  0x43   : > { %1717 = vmatprep.mubr.msk.bf16.mxu1 %vm818_vm0, %v2047_v43 }
  0x47   : > { %932 = vmatmul.mubr.bf16.gmra.mrb[16].mxu0 %v2049_v44 }
  0x48   : > { %939 = vmatprep.mubr.bf16.mxu0 %v2051_v45 }
  0x4a   : > { %1085 = vmatmul.mubr.bf16.gmra.mrb[12].mxu1 %v2050_v46  ;;  %v1800_v46 = vunpack.c.h.bf16 %v1798_v35 }
  0x4b   : > { %1718 = vmatprep.mubr.msk.bf16.mxu1 %vm818_vm0, %v2053_v47 }
  0x4f   : > { %940 = vmatmul.mubr.bf16.gmra.mrb[20].mxu0 %v2055_v48 }
  0x50   : > { %947 = vmatprep.mubr.bf16.mxu0 %v2057_v49 }
  0x52   : > { %1093 = vmatmul.mubr.bf16.gmra.mrb[16].mxu1 %v2056_v50 }
  0x53   : > { %1719 = vmatprep.mubr.msk.bf16.mxu1 %vm818_vm0, %v2059_v51 }
  0x57   : > { %948 = vmatmul.mubr.bf16.gmra.mrb[24].mxu0 %v2061_v52 }
  0x58   : > { %955 = vmatprep.mubr.bf16.mxu0 %v2063_v53  ;;  %v1861_v53 = vld [vmem:[%s2348_s30 + $0x8] sm:$0xff]  }
  0x5a   : > { %1101 = vmatmul.mubr.bf16.gmra.mrb[20].mxu1 %v2062_v54 }
  0x5b   : > { %1720 = vmatprep.mubr.msk.bf16.mxu1 %vm818_vm0, %v2065_v55 }
  0x5f   : > { %956 = vmatmul.mubr.bf16.gmra.mrb[28].mxu0 %v2067_v56 }
  0x60   : > { %963 = vmatprep.mubr.bf16.mxu0 %v2069_v57 }
  0x62   : > { %1109 = vmatmul.mubr.bf16.gmra.mrb[24].mxu1 %v2068_v58 }
  0x63   : > { %1721 = vmatprep.mubr.msk.bf16.mxu1 %vm818_vm0, %v2071_v59 }
  0x67   : > { %964 = vmatmul.mubr.bf16.gmra.mrb[32].mxu0 %v2073_v60  ;;  %v1803_v60 = vunpack.c.l.bf16 %v1861_v53 }
  0x68   : > { %971 = vmatprep.mubr.bf16.mxu0 %v2075_v61 }
  0x6a   : > { %1117 = vmatmul.mubr.bf16.gmra.mrb[28].mxu1 %v2074_v62 }
  0x6b   : > { %1722 = vmatprep.mubr.msk.bf16.mxu1 %vm818_vm0, %v2077_v63 }
  0x6f   : > { %972 = vmatmul.mubr.bf16.gmra.mrb[36].mxu0 %v2079_v0 }
  0x70   : > { %979 = vmatprep.mubr.bf16.mxu0 %v2081_v1 }
  0x72   : > { %1125 = vmatmul.mubr.bf16.gmra.mrb[32].mxu1 %v2080_v2 }
  0x73   : > { %1723 = vmatprep.mubr.msk.bf16.mxu1 %vm818_vm0, %v2083_v3 }
  0x77   : > { %980 = vmatmul.mubr.bf16.gmra.mrb[40].mxu0 %v2085_v4 }
  0x78   : > { %987 = vmatprep.mubr.bf16.mxu0 %v2087_v5 }
  0x7a   : > { %1133 = vmatmul.mubr.bf16.gmra.mrb[36].mxu1 %v2086_v6  ;;  %v1804_v6 = vunpack.c.h.bf16 %v1861_v53 }
  0x7b   : > { %1724 = vmatprep.mubr.msk.bf16.mxu1 %vm818_vm0, %v2089_v7 }
  0x7f   : > { %988 = vmatmul.mubr.bf16.gmra.mrb[44].mxu0 %v2091_v8 }
  0x80   : > { %995 = vmatprep.mubr.bf16.mxu0 %v2093_v9 }
  0x82   : > { %1141 = vmatmul.mubr.bf16.gmra.mrb[40].mxu1 %v2092_v10 }
  0x83   : > { %1725 = vmatprep.mubr.msk.bf16.mxu1 %vm818_vm0, %v2095_v11 }
  0x87   : > { %996 = vmatmul.mubr.bf16.gmra.mrb[48].mxu0 %v2097_v12 }
  0x88   : > { %1003 = vmatprep.mubr.bf16.mxu0 %v2099_v13 }
  0x8a   : > { %1149 = vmatmul.mubr.bf16.gmra.mrb[44].mxu1 %v2098_v14  ;;  %v1862_v14 = vld [vmem:[%s2348_s30 + $0x10] sm:$0xff]  }
  0x8b   : > { %1726 = vmatprep.mubr.msk.bf16.mxu1 %vm818_vm0, %v2101_v15 }
  0x8f   : > { %1004 = vmatmul.mubr.bf16.gmra.mrb[52].mxu0 %v2103_v16 }
  0x90   : > { %1011 = vmatprep.mubr.bf16.mxu0 %v2105_v17 }
  0x92   : > { %1157 = vmatmul.mubr.bf16.gmra.mrb[48].mxu1 %v2104_v18 }
  0x93   : > { %1727 = vmatprep.mubr.msk.bf16.mxu1 %vm818_vm0, %v2107_v19 }
  0x97   : > { %1012 = vmatmul.mubr.bf16.gmra.mrb[56].mxu0 %v2109_v20 }
  0x98   : > { %1019 = vmatprep.mubr.bf16.mxu0 %v2111_v21  ;;  %v1807_v21 = vunpack.c.l.bf16 %v1862_v14 }
  0x9a   : > { %1165 = vmatmul.mubr.bf16.gmra.mrb[52].mxu1 %v2110_v22 }
  0x9b   : > { %1728 = vmatprep.mubr.msk.bf16.mxu1 %vm818_vm0, %v2113_v23 }
  0x9f   : > { %1020 = vmatmul.mubr.bf16.gmra.mrb[60].mxu0 %v2115_v24 }
  0xa2   : > { %1173 = vmatmul.mubr.bf16.gmra.mrb[56].mxu1 %v2116_v25 }
  0xa3   : > { %1729 = vmatprep.mubr.msk.bf16.mxu1 %vm818_vm0, %v2117_v26 }
  0xaa   : > { %1181 = vmatmul.mubr.bf16.gmra.mrb[60].mxu1 %v2119_v27 }
  0xfa   : > { %v1892_v28 = vpop.f32.mrb[0].mxu0 }
  0xfb   : > { %v1893_v29 = vpop.f32.mrb[1].mxu0 }
  0xfc   : > { %v1894_v30 = vadd.f32 %v1893_v29, %v1892_v28  ;;  %v1895_v31 = vpop.f32.mrb[2].mxu0 }
  0xfd   : > { %v1896_v32 = vpop.f32.mrb[3].mxu0 }
  0xfe   : > { %v1897_v33 = vadd.f32 %v1896_v32, %v1895_v31  ;;  %v902_v36 = vadd.f32 %v1894_v30, %v2353_v34  ;;  %v1808_v31 = vunpack.c.h.bf16 %v1862_v14 }
 0x100   : > { %v905_v45 = vadd.f32 %v1897_v33, %v2353_v34 }
 0x102   : > { %v1898_v37 = vpop.f32.mrb[4].mxu0 }
 0x103   : > { %v1899_v39 = vpop.f32.mrb[5].mxu0 }
 0x104   : > { %v1900_v41 = vadd.f32 %v1899_v39, %v1898_v37  ;;  %v1901_v42 = vpop.f32.mrb[6].mxu0 }
 0x105   : > { %v1062_v40 = vpop.f32.mrb[0].mxu1  ;;  %v1902_v47 = vpop.f32.mrb[7].mxu0 }
 0x106   : > { %v1063_v43 = vadd.f32 %v1062_v40, %v902_v36  ;;  %v1064_v44 = vpop.f32.mrb[1].mxu1  ;;  %v1903_v49 = vadd.f32 %v1902_v47, %v1901_v42  ;;  %v910_v56 = vadd.f32 %v1900_v41, %v2353_v34  ;;  %v1863_v40 = vld [vmem:[%s2348_s30 + $0x18] sm:$0xff]  }
 0x107   : > { %v1065_v48 = vpop.f32.mrb[2].mxu1  ;;  %v1811_v47 = vunpack.c.l.bf16 %v1863_v40 }
 0x108   : > { %v1253_v50 = vadd.f32 %v1799_v38, %v1063_v43  ;;  %v1066_v51 = vadd.f32 %v1065_v48, %v905_v45  ;;  %v1067_v52 = vpop.f32.mrb[3].mxu1  ;;  %v913_v5 = vadd.f32 %v1903_v49, %v2353_v34 }
 0x10a   : > { %vm1285_vm1 = vcmp.ge.f32.partialorder %v1253_v50, 0.0  ;;  %v1317_v54 = vmul.f32 0.01, %v1253_v50  ;;  %v1254_v55 = vadd.f32 %v1800_v46, %v1066_v51  ;;  %v1904_v57 = vpop.f32.mrb[8].mxu0 }
 0x10b   : > { %v1905_v61 = vpop.f32.mrb[9].mxu0 }
 0x10c   : > { %v1349_v58 = vsel %vm1285_vm1, %v1253_v50, %v1317_v54  ;;  %vm1286_vm3 = vcmp.ge.f32.partialorder %v1254_v55, 0.0  ;;  %v1318_v59 = vmul.f32 0.01, %v1254_v55  ;;  %v1906_v0 = vadd.f32 %v1905_v61, %v1904_v57  ;;  %v1907_v1 = vpop.f32.mrb[10].mxu0 }
 0x10d   : > { %v1765_v62 = vpack.c.bf16 %v1349_v58, %v1349_v58  ;;  %v1070_v63 = vpop.f32.mrb[4].mxu1  ;;  %v1908_v7 = vpop.f32.mrb[11].mxu0  ;;  %v1812_v57 = vunpack.c.h.bf16 %v1863_v40 }
 0x10e   : > { %v1350_v2 = vsel %vm1286_vm3, %v1254_v55, %v1318_v59  ;;  %v1071_v3 = vadd.f32 %v1070_v63, %v910_v56  ;;  %v1072_v4 = vpop.f32.mrb[5].mxu1  ;;  %v1909_v10 = vadd.f32 %v1908_v7, %v1907_v1  ;;  %v918_v17 = vadd.f32 %v1906_v0, %v2353_v34  ;;  %v1864_v1 = vld [vmem:[%s2348_s30 + $0x20] sm:$0xff]  }
 0x10f   : > { %1510 = vst.msk [vmem:[%s2365_s9] sm:$0xf] %vm1509_vm2, %v1765_v62  ;;  %v1766_v8 = vpack.c.bf16 %v1350_v2, %v1350_v2  ;;  %v1073_v9 = vpop.f32.mrb[6].mxu1 }
 0x110   : > { %v1255_v11 = vadd.f32 %v1803_v60, %v1071_v3  ;;  %v1074_v12 = vadd.f32 %v1073_v9, %v913_v5  ;;  %v1075_v13 = vpop.f32.mrb[7].mxu1  ;;  %v921_v30 = vadd.f32 %v1909_v10, %v2353_v34 }
 0x111   : > { %1511 = vst.msk [vmem:[%s2365_s9 + $0x4] sm:$0xf] %vm1509_vm2, %v1766_v8  ;;  %v1815_v8 = vunpack.c.l.bf16 %v1864_v1 }
 0x112   : > { %vm1287_vm4 = vcmp.ge.f32.partialorder %v1255_v11, 0.0  ;;  %v1319_v15 = vmul.f32 0.01, %v1255_v11  ;;  %v1256_v16 = vadd.f32 %v1804_v6, %v1074_v12  ;;  %v1910_v18 = vpop.f32.mrb[12].mxu0 }
 0x113   : > { %v1911_v22 = vpop.f32.mrb[13].mxu0 }
 0x114   : > { %v1351_v19 = vsel %vm1287_vm4, %v1255_v11, %v1319_v15  ;;  %vm1288_vm5 = vcmp.ge.f32.partialorder %v1256_v16, 0.0  ;;  %v1320_v20 = vmul.f32 0.01, %v1256_v16  ;;  %v1912_v25 = vadd.f32 %v1911_v22, %v1910_v18  ;;  %v1913_v26 = vpop.f32.mrb[14].mxu0 }
 0x115   : > { %v1767_v23 = vpack.c.bf16 %v1351_v19, %v1351_v19  ;;  %v1078_v24 = vpop.f32.mrb[8].mxu1  ;;  %v1914_v32 = vpop.f32.mrb[15].mxu0  ;;  %v1816_v18 = vunpack.c.h.bf16 %v1864_v1 }
 0x116   : > { %v1352_v27 = vsel %vm1288_vm5, %v1256_v16, %v1320_v20  ;;  %v1079_v28 = vadd.f32 %v1078_v24, %v918_v17  ;;  %v1080_v29 = vpop.f32.mrb[9].mxu1  ;;  %v1915_v36 = vadd.f32 %v1914_v32, %v1913_v26  ;;  %v926_v43 = vadd.f32 %v1912_v25, %v2353_v34  ;;  %v1865_v26 = vld [vmem:[%s2348_s30 + $0x28] sm:$0xff]  }
 0x117   : > { %1512 = vst.msk [vmem:[%s2365_s9 + $0x8] sm:$0xf] %vm1509_vm2, %v1767_v23  ;;  %v1768_v33 = vpack.c.bf16 %v1352_v27, %v1352_v27  ;;  %v1081_v35 = vpop.f32.mrb[10].mxu1 }
 0x118   : > { %v1257_v37 = vadd.f32 %v1807_v21, %v1079_v28  ;;  %v1082_v38 = vadd.f32 %v1081_v35, %v921_v30  ;;  %v1083_v39 = vpop.f32.mrb[11].mxu1  ;;  %v929_v56 = vadd.f32 %v1915_v36, %v2353_v34 }
 0x119   : > { %1513 = vst.msk [vmem:[%s2365_s9 + $0xc] sm:$0xf] %vm1509_vm2, %v1768_v33  ;;  %v1819_v33 = vunpack.c.l.bf16 %v1865_v26 }
 0x11a   : > { %vm1289_vm6 = vcmp.ge.f32.partialorder %v1257_v37, 0.0  ;;  %v1321_v41 = vmul.f32 0.01, %v1257_v37  ;;  %v1258_v42 = vadd.f32 %v1808_v31, %v1082_v38  ;;  %v1916_v44 = vpop.f32.mrb[16].mxu0 }
 0x11b   : > { %v1917_v48 = vpop.f32.mrb[17].mxu0 }
 0x11c   : > { %v1353_v45 = vsel %vm1289_vm6, %v1257_v37, %v1321_v41  ;;  %vm1290_vm7 = vcmp.ge.f32.partialorder %v1258_v42, 0.0  ;;  %v1322_v46 = vmul.f32 0.01, %v1258_v42  ;;  %v1918_v51 = vadd.f32 %v1917_v48, %v1916_v44  ;;  %v1919_v52 = vpop.f32.mrb[18].mxu0 }
 0x11d   : > { %v1769_v49 = vpack.c.bf16 %v1353_v45, %v1353_v45  ;;  %v1086_v50 = vpop.f32.mrb[12].mxu1  ;;  %v1920_v58 = vpop.f32.mrb[19].mxu0  ;;  %v1820_v44 = vunpack.c.h.bf16 %v1865_v26 }
 0x11e   : > { %v1354_v53 = vsel %vm1290_vm7, %v1258_v42, %v1322_v46  ;;  %v1087_v54 = vadd.f32 %v1086_v50, %v926_v43  ;;  %v1088_v55 = vpop.f32.mrb[13].mxu1  ;;  %v1921_v61 = vadd.f32 %v1920_v58, %v1919_v52  ;;  %v934_v4 = vadd.f32 %v1918_v51, %v2353_v34  ;;  %v1866_v52 = vld [vmem:[%s2348_s30 + $0x30] sm:$0xff]  }
 0x11f   : > { %1514 = vst.msk [vmem:[%s2365_s9 + $0x10] sm:$0xf] %vm1509_vm2, %v1769_v49  ;;  %v1770_v59 = vpack.c.bf16 %v1354_v53, %v1354_v53  ;;  %v1089_v60 = vpop.f32.mrb[14].mxu1 }
 0x120   : > { %v1259_v62 = vadd.f32 %v1811_v47, %v1087_v54  ;;  %v1090_v63 = vadd.f32 %v1089_v60, %v929_v56  ;;  %v1091_v0 = vpop.f32.mrb[15].mxu1  ;;  %v937_v17 = vadd.f32 %v1921_v61, %v2353_v34 }
 0x121   : > { %1515 = vst.msk [vmem:[%s2365_s9 + $0x14] sm:$0xf] %vm1509_vm2, %v1770_v59  ;;  %v1823_v59 = vunpack.c.l.bf16 %v1866_v52 }
 0x122   : > { %vm1291_vm8 = vcmp.ge.f32.partialorder %v1259_v62, 0.0  ;;  %v1323_v2 = vmul.f32 0.01, %v1259_v62  ;;  %v1260_v3 = vadd.f32 %v1812_v57, %v1090_v63  ;;  %v1922_v5 = vpop.f32.mrb[20].mxu0 }
 0x123   : > { %v1923_v9 = vpop.f32.mrb[21].mxu0 }
 0x124   : > { %v1355_v6 = vsel %vm1291_vm8, %v1259_v62, %v1323_v2  ;;  %vm1292_vm9 = vcmp.ge.f32.partialorder %v1260_v3, 0.0  ;;  %v1324_v7 = vmul.f32 0.01, %v1260_v3  ;;  %v1924_v12 = vadd.f32 %v1923_v9, %v1922_v5  ;;  %v1925_v13 = vpop.f32.mrb[22].mxu0 }
 0x125   : > { %v1771_v10 = vpack.c.bf16 %v1355_v6, %v1355_v6  ;;  %v1094_v11 = vpop.f32.mrb[16].mxu1  ;;  %v1926_v19 = vpop.f32.mrb[23].mxu0  ;;  %v1824_v5 = vunpack.c.h.bf16 %v1866_v52 }
 0x126   : > { %v1356_v14 = vsel %vm1292_vm9, %v1260_v3, %v1324_v7  ;;  %v1095_v15 = vadd.f32 %v1094_v11, %v934_v4  ;;  %v1096_v16 = vpop.f32.mrb[17].mxu1  ;;  %v1927_v22 = vadd.f32 %v1926_v19, %v1925_v13  ;;  %v942_v29 = vadd.f32 %v1924_v12, %v2353_v34  ;;  %v1867_v13 = vld [vmem:[%s2348_s30 + $0x38] sm:$0xff]  }
 0x127   : > { %1516 = vst.msk [vmem:[%s2365_s9 + $0x18] sm:$0xf] %vm1509_vm2, %v1771_v10  ;;  %v1772_v20 = vpack.c.bf16 %v1356_v14, %v1356_v14  ;;  %v1097_v21 = vpop.f32.mrb[18].mxu1 }
 0x128   : > { %v1261_v23 = vadd.f32 %v1815_v8, %v1095_v15  ;;  %v1098_v24 = vadd.f32 %v1097_v21, %v937_v17  ;;  %v1099_v25 = vpop.f32.mrb[19].mxu1  ;;  %v945_v43 = vadd.f32 %v1927_v22, %v2353_v34 }
 0x129   : > { %1517 = vst.msk [vmem:[%s2365_s9 + $0x1c] sm:$0xf] %vm1509_vm2, %v1772_v20  ;;  %v1827_v20 = vunpack.c.l.bf16 %v1867_v13 }
 0x12a   : > { %vm1293_vm10 = vcmp.ge.f32.partialorder %v1261_v23, 0.0  ;;  %v1325_v27 = vmul.f32 0.01, %v1261_v23  ;;  %v1262_v28 = vadd.f32 %v1816_v18, %v1098_v24  ;;  %v1928_v30 = vpop.f32.mrb[24].mxu0 }
 0x12b   : > { %v1929_v35 = vpop.f32.mrb[25].mxu0 }
 0x12c   : > { %v1357_v31 = vsel %vm1293_vm10, %v1261_v23, %v1325_v27  ;;  %vm1294_vm11 = vcmp.ge.f32.partialorder %v1262_v28, 0.0  ;;  %v1326_v32 = vmul.f32 0.01, %v1262_v28  ;;  %v1930_v38 = vadd.f32 %v1929_v35, %v1928_v30  ;;  %v1931_v39 = vpop.f32.mrb[26].mxu0 }
 0x12d   : > { %v1773_v36 = vpack.c.bf16 %v1357_v31, %v1357_v31  ;;  %v1102_v37 = vpop.f32.mrb[20].mxu1  ;;  %v1932_v45 = vpop.f32.mrb[27].mxu0  ;;  %v1828_v30 = vunpack.c.h.bf16 %v1867_v13 }
 0x12e   : > { %v1358_v40 = vsel %vm1294_vm11, %v1262_v28, %v1326_v32  ;;  %v1103_v41 = vadd.f32 %v1102_v37, %v942_v29  ;;  %v1104_v42 = vpop.f32.mrb[21].mxu1  ;;  %v1933_v48 = vadd.f32 %v1932_v45, %v1931_v39  ;;  %v950_v55 = vadd.f32 %v1930_v38, %v2353_v34  ;;  %v1868_v39 = vld [vmem:[%s2348_s30 + $0x40] sm:$0xff]  }
 0x12f   : > { %1518 = vst.msk [vmem:[%s2365_s9 + $0x20] sm:$0xf] %vm1509_vm2, %v1773_v36  ;;  %v1774_v46 = vpack.c.bf16 %v1358_v40, %v1358_v40  ;;  %v1105_v47 = vpop.f32.mrb[22].mxu1 }
 0x130   : > { %v1263_v49 = vadd.f32 %v1819_v33, %v1103_v41  ;;  %v1106_v50 = vadd.f32 %v1105_v47, %v945_v43  ;;  %v1107_v51 = vpop.f32.mrb[23].mxu1  ;;  %v953_v4 = vadd.f32 %v1933_v48, %v2353_v34 }
 0x131   : > { %1519 = vst.msk [vmem:[%s2365_s9 + $0x24] sm:$0xf] %vm1509_vm2, %v1774_v46  ;;  %v1831_v46 = vunpack.c.l.bf16 %v1868_v39 }
 0x132   : > { %vm1295_vm12 = vcmp.ge.f32.partialorder %v1263_v49, 0.0  ;;  %v1327_v53 = vmul.f32 0.01, %v1263_v49  ;;  %v1264_v54 = vadd.f32 %v1820_v44, %v1106_v50  ;;  %v1934_v56 = vpop.f32.mrb[28].mxu0 }
 0x133   : > { %v1935_v60 = vpop.f32.mrb[29].mxu0 }
 0x134   : > { %v1359_v57 = vsel %vm1295_vm12, %v1263_v49, %v1327_v53  ;;  %vm1296_vm13 = vcmp.ge.f32.partialorder %v1264_v54, 0.0  ;;  %v1328_v58 = vmul.f32 0.01, %v1264_v54  ;;  %v1936_v63 = vadd.f32 %v1935_v60, %v1934_v56  ;;  %v1937_v0 = vpop.f32.mrb[30].mxu0 }
 0x135   : > { %v1775_v61 = vpack.c.bf16 %v1359_v57, %v1359_v57  ;;  %v1110_v62 = vpop.f32.mrb[24].mxu1  ;;  %v1938_v6 = vpop.f32.mrb[31].mxu0  ;;  %v1832_v56 = vunpack.c.h.bf16 %v1868_v39 }
 0x136   : > { %v1360_v1 = vsel %vm1296_vm13, %v1264_v54, %v1328_v58  ;;  %v1111_v2 = vadd.f32 %v1110_v62, %v950_v55  ;;  %v1112_v3 = vpop.f32.mrb[25].mxu1  ;;  %v1939_v9 = vadd.f32 %v1938_v6, %v1937_v0  ;;  %v958_v16 = vadd.f32 %v1936_v63, %v2353_v34  ;;  %v1869_v0 = vld [vmem:[%s2348_s30 + $0x48] sm:$0xff]  }
 0x137   : > { %1520 = vst.msk [vmem:[%s2365_s9 + $0x28] sm:$0xf] %vm1509_vm2, %v1775_v61  ;;  %v1776_v7 = vpack.c.bf16 %v1360_v1, %v1360_v1  ;;  %v1113_v8 = vpop.f32.mrb[26].mxu1 }
 0x138   : > { %v1265_v10 = vadd.f32 %v1823_v59, %v1111_v2  ;;  %v1114_v11 = vadd.f32 %v1113_v8, %v953_v4  ;;  %v1115_v12 = vpop.f32.mrb[27].mxu1  ;;  %v961_v29 = vadd.f32 %v1939_v9, %v2353_v34 }
 0x139   : > { %1521 = vst.msk [vmem:[%s2365_s9 + $0x2c] sm:$0xf] %vm1509_vm2, %v1776_v7  ;;  %v1835_v7 = vunpack.c.l.bf16 %v1869_v0 }
 0x13a   : > { %vm1297_vm14 = vcmp.ge.f32.partialorder %v1265_v10, 0.0  ;;  %v1329_v14 = vmul.f32 0.01, %v1265_v10  ;;  %v1266_v15 = vadd.f32 %v1824_v5, %v1114_v11  ;;  %v1940_v17 = vpop.f32.mrb[32].mxu0 }
 0x13b   : > { %v1941_v21 = vpop.f32.mrb[33].mxu0 }
 0x13c   : > { %v1361_v18 = vsel %vm1297_vm14, %v1265_v10, %v1329_v14  ;;  %vm1298_vm15 = vcmp.ge.f32.partialorder %v1266_v15, 0.0  ;;  %v1330_v19 = vmul.f32 0.01, %v1266_v15  ;;  %v1942_v24 = vadd.f32 %v1941_v21, %v1940_v17  ;;  %v1943_v25 = vpop.f32.mrb[34].mxu0 }
 0x13d   : > { %v1777_v22 = vpack.c.bf16 %v1361_v18, %v1361_v18  ;;  %v1118_v23 = vpop.f32.mrb[28].mxu1  ;;  %v1944_v31 = vpop.f32.mrb[35].mxu0  ;;  %v1836_v17 = vunpack.c.h.bf16 %v1869_v0 }
 0x13e   : > { %v1362_v26 = vsel %vm1298_vm15, %v1266_v15, %v1330_v19  ;;  %v1119_v27 = vadd.f32 %v1118_v23, %v958_v16  ;;  %v1120_v28 = vpop.f32.mrb[29].mxu1  ;;  %v1945_v35 = vadd.f32 %v1944_v31, %v1943_v25  ;;  %v966_v42 = vadd.f32 %v1942_v24, %v2353_v34  ;;  %v1870_v25 = vld [vmem:[%s2348_s30 + $0x50] sm:$0xff]  }
 0x13f   : > { %1522 = vst.msk [vmem:[%s2365_s9 + $0x30] sm:$0xf] %vm1509_vm2, %v1777_v22  ;;  %v1778_v32 = vpack.c.bf16 %v1362_v26, %v1362_v26  ;;  %v1121_v33 = vpop.f32.mrb[30].mxu1 }
 0x140   : > { %v1267_v36 = vadd.f32 %v1827_v20, %v1119_v27  ;;  %v1122_v37 = vadd.f32 %v1121_v33, %v961_v29  ;;  %v1123_v38 = vpop.f32.mrb[31].mxu1  ;;  %v969_v55 = vadd.f32 %v1945_v35, %v2353_v34 }
 0x141   : > { %1523 = vst.msk [vmem:[%s2365_s9 + $0x34] sm:$0xf] %vm1509_vm2, %v1778_v32  ;;  %v1839_v32 = vunpack.c.l.bf16 %v1870_v25 }
 0x142   : > { %vm1299_vm0 = vcmp.ge.f32.partialorder %v1267_v36, 0.0  ;;  %v1331_v40 = vmul.f32 0.01, %v1267_v36  ;;  %v1268_v41 = vadd.f32 %v1828_v30, %v1122_v37  ;;  %v1946_v43 = vpop.f32.mrb[36].mxu0 }
 0x143   : > { %v1947_v47 = vpop.f32.mrb[37].mxu0 }
 0x144   : > { %v1363_v44 = vsel %vm1299_vm0, %v1267_v36, %v1331_v40  ;;  %vm1300_vm1 = vcmp.ge.f32.partialorder %v1268_v41, 0.0  ;;  %v1332_v45 = vmul.f32 0.01, %v1268_v41  ;;  %v1948_v50 = vadd.f32 %v1947_v47, %v1946_v43  ;;  %v1949_v51 = vpop.f32.mrb[38].mxu0 }
 0x145   : > { %v1779_v48 = vpack.c.bf16 %v1363_v44, %v1363_v44  ;;  %v1126_v49 = vpop.f32.mrb[32].mxu1  ;;  %v1950_v57 = vpop.f32.mrb[39].mxu0  ;;  %v1840_v43 = vunpack.c.h.bf16 %v1870_v25 }
 0x146   : > { %v1364_v52 = vsel %vm1300_vm1, %v1268_v41, %v1332_v45  ;;  %v1127_v53 = vadd.f32 %v1126_v49, %v966_v42  ;;  %v1128_v54 = vpop.f32.mrb[33].mxu1  ;;  %v1951_v60 = vadd.f32 %v1950_v57, %v1949_v51  ;;  %v974_v3 = vadd.f32 %v1948_v50, %v2353_v34  ;;  %v1871_v51 = vld [vmem:[%s2348_s30 + $0x58] sm:$0xff]  }
 0x147   : > { %1524 = vst.msk [vmem:[%s2365_s9 + $0x38] sm:$0xf] %vm1509_vm2, %v1779_v48  ;;  %v1780_v58 = vpack.c.bf16 %v1364_v52, %v1364_v52  ;;  %v1129_v59 = vpop.f32.mrb[34].mxu1 }
 0x148   : > { %v1269_v61 = vadd.f32 %v1831_v46, %v1127_v53  ;;  %v1130_v62 = vadd.f32 %v1129_v59, %v969_v55  ;;  %v1131_v63 = vpop.f32.mrb[35].mxu1  ;;  %v977_v16 = vadd.f32 %v1951_v60, %v2353_v34 }
 0x149   : > { %1525 = vst.msk [vmem:[%s2365_s9 + $0x3c] sm:$0xf] %vm1509_vm2, %v1780_v58  ;;  %v1843_v58 = vunpack.c.l.bf16 %v1871_v51 }
 0x14a   : > { %vm1301_vm3 = vcmp.ge.f32.partialorder %v1269_v61, 0.0  ;;  %v1333_v1 = vmul.f32 0.01, %v1269_v61  ;;  %v1270_v2 = vadd.f32 %v1832_v56, %v1130_v62  ;;  %v1952_v4 = vpop.f32.mrb[40].mxu0 }
 0x14b   : > { %v1953_v8 = vpop.f32.mrb[41].mxu0 }
 0x14c   : > { %v1365_v5 = vsel %vm1301_vm3, %v1269_v61, %v1333_v1  ;;  %vm1302_vm4 = vcmp.ge.f32.partialorder %v1270_v2, 0.0  ;;  %v1334_v6 = vmul.f32 0.01, %v1270_v2  ;;  %v1954_v11 = vadd.f32 %v1953_v8, %v1952_v4  ;;  %v1955_v12 = vpop.f32.mrb[42].mxu0 }
 0x14d   : > { %v1781_v9 = vpack.c.bf16 %v1365_v5, %v1365_v5  ;;  %v1134_v10 = vpop.f32.mrb[36].mxu1  ;;  %v1956_v18 = vpop.f32.mrb[43].mxu0  ;;  %v1844_v4 = vunpack.c.h.bf16 %v1871_v51 }
 0x14e   : > { %v1366_v13 = vsel %vm1302_vm4, %v1270_v2, %v1334_v6  ;;  %v1135_v14 = vadd.f32 %v1134_v10, %v974_v3  ;;  %v1136_v15 = vpop.f32.mrb[37].mxu1  ;;  %v1957_v21 = vadd.f32 %v1956_v18, %v1955_v12  ;;  %v982_v28 = vadd.f32 %v1954_v11, %v2353_v34  ;;  %v1872_v12 = vld [vmem:[%s2348_s30 + $0x60] sm:$0xff]  }
 0x14f   : > { %1526 = vst.msk [vmem:[%s2365_s9 + $0x40] sm:$0xf] %vm1509_vm2, %v1781_v9  ;;  %v1782_v19 = vpack.c.bf16 %v1366_v13, %v1366_v13  ;;  %v1137_v20 = vpop.f32.mrb[38].mxu1 }
 0x150   : > { %v1271_v22 = vadd.f32 %v1835_v7, %v1135_v14  ;;  %v1138_v23 = vadd.f32 %v1137_v20, %v977_v16  ;;  %v1139_v24 = vpop.f32.mrb[39].mxu1  ;;  %v985_v42 = vadd.f32 %v1957_v21, %v2353_v34 }
 0x151   : > { %1527 = vst.msk [vmem:[%s2365_s9 + $0x44] sm:$0xf] %vm1509_vm2, %v1782_v19  ;;  %v1847_v19 = vunpack.c.l.bf16 %v1872_v12 }
 0x152   : > { %vm1303_vm5 = vcmp.ge.f32.partialorder %v1271_v22, 0.0  ;;  %v1335_v26 = vmul.f32 0.01, %v1271_v22  ;;  %v1272_v27 = vadd.f32 %v1836_v17, %v1138_v23  ;;  %v1958_v29 = vpop.f32.mrb[44].mxu0 }
 0x153   : > { %v1959_v33 = vpop.f32.mrb[45].mxu0 }
 0x154   : > { %v1367_v30 = vsel %vm1303_vm5, %v1271_v22, %v1335_v26  ;;  %vm1304_vm6 = vcmp.ge.f32.partialorder %v1272_v27, 0.0  ;;  %v1336_v31 = vmul.f32 0.01, %v1272_v27  ;;  %v1960_v37 = vadd.f32 %v1959_v33, %v1958_v29  ;;  %v1961_v38 = vpop.f32.mrb[46].mxu0 }
 0x155   : > { %v1783_v35 = vpack.c.bf16 %v1367_v30, %v1367_v30  ;;  %v1142_v36 = vpop.f32.mrb[40].mxu1  ;;  %v1962_v44 = vpop.f32.mrb[47].mxu0  ;;  %v1848_v29 = vunpack.c.h.bf16 %v1872_v12 }
 0x156   : > { %v1368_v39 = vsel %vm1304_vm6, %v1272_v27, %v1336_v31  ;;  %v1143_v40 = vadd.f32 %v1142_v36, %v982_v28  ;;  %v1144_v41 = vpop.f32.mrb[41].mxu1  ;;  %v1963_v47 = vadd.f32 %v1962_v44, %v1961_v38  ;;  %v990_v54 = vadd.f32 %v1960_v37, %v2353_v34  ;;  %v1873_v38 = vld [vmem:[%s2348_s30 + $0x68] sm:$0xff]  }
 0x157   : > { %1528 = vst.msk [vmem:[%s2365_s9 + $0x48] sm:$0xf] %vm1509_vm2, %v1783_v35  ;;  %v1784_v45 = vpack.c.bf16 %v1368_v39, %v1368_v39  ;;  %v1145_v46 = vpop.f32.mrb[42].mxu1 }
 0x158   : > { %v1273_v48 = vadd.f32 %v1839_v32, %v1143_v40  ;;  %v1146_v49 = vadd.f32 %v1145_v46, %v985_v42  ;;  %v1147_v50 = vpop.f32.mrb[43].mxu1  ;;  %v993_v3 = vadd.f32 %v1963_v47, %v2353_v34 }
 0x159   : > { %1529 = vst.msk [vmem:[%s2365_s9 + $0x4c] sm:$0xf] %vm1509_vm2, %v1784_v45  ;;  %v1851_v45 = vunpack.c.l.bf16 %v1873_v38 }
 0x15a   : > { %vm1305_vm7 = vcmp.ge.f32.partialorder %v1273_v48, 0.0  ;;  %v1337_v52 = vmul.f32 0.01, %v1273_v48  ;;  %v1274_v53 = vadd.f32 %v1840_v43, %v1146_v49  ;;  %v1964_v55 = vpop.f32.mrb[48].mxu0 }
 0x15b   : > { %v1965_v59 = vpop.f32.mrb[49].mxu0 }
 0x15c   : > { %v1369_v56 = vsel %vm1305_vm7, %v1273_v48, %v1337_v52  ;;  %vm1306_vm8 = vcmp.ge.f32.partialorder %v1274_v53, 0.0  ;;  %v1338_v57 = vmul.f32 0.01, %v1274_v53  ;;  %v1966_v62 = vadd.f32 %v1965_v59, %v1964_v55  ;;  %v1967_v63 = vpop.f32.mrb[50].mxu0 }
 0x15d   : > { %v1785_v60 = vpack.c.bf16 %v1369_v56, %v1369_v56  ;;  %v1150_v61 = vpop.f32.mrb[44].mxu1  ;;  %v1968_v5 = vpop.f32.mrb[51].mxu0  ;;  %v1852_v55 = vunpack.c.h.bf16 %v1873_v38 }
 0x15e   : > { %v1370_v0 = vsel %vm1306_vm8, %v1274_v53, %v1338_v57  ;;  %v1151_v1 = vadd.f32 %v1150_v61, %v990_v54  ;;  %v1152_v2 = vpop.f32.mrb[45].mxu1  ;;  %v1969_v8 = vadd.f32 %v1968_v5, %v1967_v63  ;;  %v998_v15 = vadd.f32 %v1966_v62, %v2353_v34  ;;  %v1874_v63 = vld [vmem:[%s2348_s30 + $0x70] sm:$0xff]  }
 0x15f   : > { %1530 = vst.msk [vmem:[%s2365_s9 + $0x50] sm:$0xf] %vm1509_vm2, %v1785_v60  ;;  %v1786_v6 = vpack.c.bf16 %v1370_v0, %v1370_v0  ;;  %v1153_v7 = vpop.f32.mrb[46].mxu1 }
 0x160   : > { %v1275_v9 = vadd.f32 %v1843_v58, %v1151_v1  ;;  %v1154_v10 = vadd.f32 %v1153_v7, %v993_v3  ;;  %v1155_v11 = vpop.f32.mrb[47].mxu1  ;;  %v1001_v28 = vadd.f32 %v1969_v8, %v2353_v34 }
 0x161   : > { %1531 = vst.msk [vmem:[%s2365_s9 + $0x54] sm:$0xf] %vm1509_vm2, %v1786_v6  ;;  %v1855_v6 = vunpack.c.l.bf16 %v1874_v63 }
 0x162   : > { %vm1307_vm9 = vcmp.ge.f32.partialorder %v1275_v9, 0.0  ;;  %v1339_v13 = vmul.f32 0.01, %v1275_v9  ;;  %v1276_v14 = vadd.f32 %v1844_v4, %v1154_v10  ;;  %v1970_v16 = vpop.f32.mrb[52].mxu0 }
 0x163   : > { %v1971_v20 = vpop.f32.mrb[53].mxu0 }
 0x164   : > { %v1371_v17 = vsel %vm1307_vm9, %v1275_v9, %v1339_v13  ;;  %vm1308_vm10 = vcmp.ge.f32.partialorder %v1276_v14, 0.0  ;;  %v1340_v18 = vmul.f32 0.01, %v1276_v14  ;;  %v1972_v23 = vadd.f32 %v1971_v20, %v1970_v16  ;;  %v1973_v24 = vpop.f32.mrb[54].mxu0 }
 0x165   : > { %v1787_v21 = vpack.c.bf16 %v1371_v17, %v1371_v17  ;;  %v1158_v22 = vpop.f32.mrb[48].mxu1  ;;  %v1974_v30 = vpop.f32.mrb[55].mxu0  ;;  %v1856_v16 = vunpack.c.h.bf16 %v1874_v63 }
 0x166   : > { %v1372_v25 = vsel %vm1308_vm10, %v1276_v14, %v1340_v18  ;;  %v1159_v26 = vadd.f32 %v1158_v22, %v998_v15  ;;  %v1160_v27 = vpop.f32.mrb[49].mxu1  ;;  %v1975_v33 = vadd.f32 %v1974_v30, %v1973_v24  ;;  %v1006_v41 = vadd.f32 %v1972_v23, %v2353_v34  ;;  %v1875_v24 = vld [vmem:[%s2348_s30 + $0x78] sm:$0xff]  }
 0x167   : > { %1532 = vst.msk [vmem:[%s2365_s9 + $0x58] sm:$0xf] %vm1509_vm2, %v1787_v21  ;;  %v1788_v31 = vpack.c.bf16 %v1372_v25, %v1372_v25  ;;  %v1161_v32 = vpop.f32.mrb[50].mxu1  ;;  %v1859_v30 = vunpack.c.l.bf16 %v1875_v24  ;;  %v1860_v38 = vunpack.c.h.bf16 %v1875_v24 }
 0x168   : > { %v1277_v35 = vadd.f32 %v1847_v19, %v1159_v26  ;;  %v1162_v36 = vadd.f32 %v1161_v32, %v1001_v28  ;;  %v1163_v37 = vpop.f32.mrb[51].mxu1  ;;  %v1009_v54 = vadd.f32 %v1975_v33, %v2353_v34 }
 0x169   : > { %1533 = vst.msk [vmem:[%s2365_s9 + $0x5c] sm:$0xf] %vm1509_vm2, %v1788_v31 }
 0x16a   : > { %vm1309_vm11 = vcmp.ge.f32.partialorder %v1277_v35, 0.0  ;;  %v1341_v39 = vmul.f32 0.01, %v1277_v35  ;;  %v1278_v40 = vadd.f32 %v1848_v29, %v1162_v36  ;;  %v1976_v42 = vpop.f32.mrb[56].mxu0 }
 0x16b   : > { %v1977_v46 = vpop.f32.mrb[57].mxu0 }
 0x16c   : > { %v1373_v43 = vsel %vm1309_vm11, %v1277_v35, %v1341_v39  ;;  %vm1310_vm12 = vcmp.ge.f32.partialorder %v1278_v40, 0.0  ;;  %v1342_v44 = vmul.f32 0.01, %v1278_v40  ;;  %v1978_v49 = vadd.f32 %v1977_v46, %v1976_v42  ;;  %v1979_v50 = vpop.f32.mrb[58].mxu0 }
 0x16d   : > { %v1789_v47 = vpack.c.bf16 %v1373_v43, %v1373_v43  ;;  %v1166_v48 = vpop.f32.mrb[52].mxu1  ;;  %v1980_v56 = vpop.f32.mrb[59].mxu0 }
 0x16e   : > { %v1374_v51 = vsel %vm1310_vm12, %v1278_v40, %v1342_v44  ;;  %v1167_v52 = vadd.f32 %v1166_v48, %v1006_v41  ;;  %v1168_v53 = vpop.f32.mrb[53].mxu1  ;;  %v1981_v59 = vadd.f32 %v1980_v56, %v1979_v50  ;;  %v1014_v2 = vadd.f32 %v1978_v49, %v2353_v34 }
 0x16f   : > { %1534 = vst.msk [vmem:[%s2365_s9 + $0x60] sm:$0xf] %vm1509_vm2, %v1789_v47  ;;  %v1790_v57 = vpack.c.bf16 %v1374_v51, %v1374_v51  ;;  %v1169_v58 = vpop.f32.mrb[54].mxu1 }
 0x170   : > { %v1279_v60 = vadd.f32 %v1851_v45, %v1167_v52  ;;  %v1170_v61 = vadd.f32 %v1169_v58, %v1009_v54  ;;  %v1171_v62 = vpop.f32.mrb[55].mxu1  ;;  %v1017_v15 = vadd.f32 %v1981_v59, %v2353_v34 }
 0x171   : > { %1535 = vst.msk [vmem:[%s2365_s9 + $0x64] sm:$0xf] %vm1509_vm2, %v1790_v57 }
 0x172   : > { %vm1311_vm13 = vcmp.ge.f32.partialorder %v1279_v60, 0.0  ;;  %v1343_v0 = vmul.f32 0.01, %v1279_v60  ;;  %v1280_v1 = vadd.f32 %v1852_v55, %v1170_v61  ;;  %v1982_v3 = vpop.f32.mrb[60].mxu0 }
 0x173   : > { %v1983_v7 = vpop.f32.mrb[61].mxu0 }
 0x174   : > { %v1375_v4 = vsel %vm1311_vm13, %v1279_v60, %v1343_v0  ;;  %vm1312_vm14 = vcmp.ge.f32.partialorder %v1280_v1, 0.0  ;;  %v1344_v5 = vmul.f32 0.01, %v1280_v1  ;;  %v1984_v10 = vadd.f32 %v1983_v7, %v1982_v3  ;;  %v1985_v11 = vpop.f32.mrb[62].mxu0 }
 0x175   : > { %v1791_v8 = vpack.c.bf16 %v1375_v4, %v1375_v4  ;;  %v1174_v9 = vpop.f32.mrb[56].mxu1  ;;  %v1986_v17 = vpop.f32.mrb[63].mxu0 }
 0x176   : > { %v1376_v12 = vsel %vm1312_vm14, %v1280_v1, %v1344_v5  ;;  %v1175_v13 = vadd.f32 %v1174_v9, %v1014_v2  ;;  %v1176_v14 = vpop.f32.mrb[57].mxu1  ;;  %v1987_v20 = vadd.f32 %v1986_v17, %v1985_v11  ;;  %v1022_v27 = vadd.f32 %v1984_v10, %v2353_v34 }
 0x177   : > { %1536 = vst.msk [vmem:[%s2365_s9 + $0x68] sm:$0xf] %vm1509_vm2, %v1791_v8  ;;  %v1792_v18 = vpack.c.bf16 %v1376_v12, %v1376_v12  ;;  %v1177_v19 = vpop.f32.mrb[58].mxu1 }
 0x178   : > { %v1281_v21 = vadd.f32 %v1855_v6, %v1175_v13  ;;  %v1178_v22 = vadd.f32 %v1177_v19, %v1017_v15  ;;  %v1179_v23 = vpop.f32.mrb[59].mxu1  ;;  %v1025_v37 = vadd.f32 %v1987_v20, %v2353_v34 }
 0x179   : > { %1537 = vst.msk [vmem:[%s2365_s9 + $0x6c] sm:$0xf] %vm1509_vm2, %v1792_v18 }
 0x17a   : > { %vm1313_vm15 = vcmp.ge.f32.partialorder %v1281_v21, 0.0  ;;  %v1345_v25 = vmul.f32 0.01, %v1281_v21  ;;  %v1282_v26 = vadd.f32 %v1856_v16, %v1178_v22 }
 0x17c   : > { %v1377_v28 = vsel %vm1313_vm15, %v1281_v21, %v1345_v25  ;;  %vm1314_vm0 = vcmp.ge.f32.partialorder %v1282_v26, 0.0  ;;  %v1346_v29 = vmul.f32 0.01, %v1282_v26 }
 0x17d   : > { %v1793_v31 = vpack.c.bf16 %v1377_v28, %v1377_v28  ;;  %v1182_v32 = vpop.f32.mrb[60].mxu1 }
 0x17e   : > { %v1378_v33 = vsel %vm1314_vm0, %v1282_v26, %v1346_v29  ;;  %v1183_v35 = vadd.f32 %v1182_v32, %v1022_v27  ;;  %v1184_v36 = vpop.f32.mrb[61].mxu1 }
 0x17f   : > { %1538 = vst.msk [vmem:[%s2365_s9 + $0x70] sm:$0xf] %vm1509_vm2, %v1793_v31  ;;  %v1794_v39 = vpack.c.bf16 %v1378_v33, %v1378_v33  ;;  %v1185_v40 = vpop.f32.mrb[62].mxu1 }
 0x180   : > { %v1283_v41 = vadd.f32 %v1859_v30, %v1183_v35  ;;  %v1186_v42 = vadd.f32 %v1185_v40, %v1025_v37  ;;  %v1187_v43 = vpop.f32.mrb[63].mxu1 }
 0x181   : > { %1539 = vst.msk [vmem:[%s2365_s9 + $0x74] sm:$0xf] %vm1509_vm2, %v1794_v39 }
 0x182   : > { %vm1315_vm1 = vcmp.ge.f32.partialorder %v1283_v41, 0.0  ;;  %v1347_v44 = vmul.f32 0.01, %v1283_v41  ;;  %v1284_v45 = vadd.f32 %v1860_v38, %v1186_v42 }
 0x184   : > { %v1379_v46 = vsel %vm1315_vm1, %v1283_v41, %v1347_v44  ;;  %vm1316_vm3 = vcmp.ge.f32.partialorder %v1284_v45, 0.0  ;;  %v1348_v47 = vmul.f32 0.01, %v1284_v45 }
 0x185   : > { %v1795_v48 = vpack.c.bf16 %v1379_v46, %v1379_v46 }
 0x186   : > { %v1380_v34 = vsel %vm1316_vm3, %v1284_v45, %v1348_v47 }
 0x187   : > { %1540 = vst.msk [vmem:[%s2365_s9 + $0x78] sm:$0xf] %vm1509_vm2, %v1795_v48  ;;  %v1796_v49 = vpack.c.bf16 %v1380_v34, %v1380_v34 }
 0x189   : > { %1541 = vst.msk [vmem:[%s2365_s9 + $0x7c] sm:$0xf] %vm1509_vm2, %v1796_v49 }
 0x18a PF: > { %s14_s15 = sadd.s32 1, %s2126_s15  }
 0x18b   : > { %p11_p4 = scmp.ge.s32.totalorder %s14_s15, 4  }
 0x18d   :  { %13 = sbr.rel (!%p11_p4) target bundleno = 1 (0x1), region = 69 }

// kernel: encoder_forward.16
= control target key start
LH: loop header
LB: loop body
LE: loop exit
PB: predicated region body
PF: predicated region fallthrough
CT: control target
= control target key end

     0   :  { %v777_v0 = vmov 0   ;;  %vm332_vm0 = vcmask 392192   ;;  %vm531_vm2 = vcmask 257024   ;;  %s1033_s1 = inlined_call_operand.vmem [shape: bf16[432,64], index: 1, kind: input, shape index: {}]   ;;  %s1034_s0 = inlined_call_operand.vmem [shape: bf16[64,432], index: 0, kind: input, shape index: {}]   ;;  %s1035_s2 = inlined_call_operand.vmem [shape: f32[1,64], index: 2, kind: input, shape index: {}]   ;;  %s1036_s3 = inlined_call_operand.vmem [shape: bf16[64,32], index: 3, kind: output, shape index: {0}]   ;;  %s1037_s4 = inlined_call_operand.vmem [shape: bf16[64,32], index: 4, kind: output, shape index: {1}]  }
   0x1   :  { %410 = vmatprep.subr.bf16.mxu1 %v777_v0  ;;  %v726_v1 = vld [vmem:[%s1033_s1 + $0x80] sm:$0xff]   ;;  %v729_v4 = vld [vmem:[%s1033_s1 + $0x88] sm:$0xff]   ;;  %v732_v7 = vld [vmem:[%s1033_s1 + $0x90] sm:$0xff]  }
   0x2   :  { %v727_v2 = vld [vmem:[%s1033_s1 + $0x40] sm:$0xff]   ;;  %411 = vmatpush1.bf16.msra.mxu1 %v726_v1  ;;  %v730_v5 = vld [vmem:[%s1033_s1 + $0x48] sm:$0xff]   ;;  %v733_v8 = vld [vmem:[%s1033_s1 + $0x50] sm:$0xff]  }
   0x3   :  { %v728_v3 = vld [vmem:[%s1033_s1] sm:$0xff]   ;;  %684 = vmatprep.subr.bf16.mxu0 %v727_v2  ;;  %412 = vmatprep.subr.bf16.mxu1 %v777_v0  ;;  %v731_v6 = vld [vmem:[%s1033_s1 + $0x8] sm:$0xff]   ;;  %v734_v9 = vld [vmem:[%s1033_s1 + $0x10] sm:$0xff]  }
   0x4   :  { %685 = vmatpush3.bf16.msra.mxu0 %v728_v3  ;;  %v735_v10 = vld [vmem:[%s1033_s1 + $0x98] sm:$0xff]   ;;  %v739_v13 = vld [vmem:[%s1033_s1 + $0x60] sm:$0xff]   ;;  %v742_v16 = vld [vmem:[%s1033_s1 + $0x68] sm:$0xff]  }
   0x5   :  { %686 = vmatprep.subr.bf16.mxu0 %v730_v5  ;;  %v736_v11 = vld [vmem:[%s1033_s1 + $0x58] sm:$0xff]   ;;  %v738_v14 = vld [vmem:[%s1033_s1 + $0xa0] sm:$0xff]   ;;  %v741_v17 = vld [vmem:[%s1033_s1 + $0xa8] sm:$0xff]  }
   0x6   :  { %413 = vmatpush1.bf16.msra.mxu1 %v729_v4  ;;  %v737_v12 = vld [vmem:[%s1033_s1 + $0x18] sm:$0xff]   ;;  %v740_v15 = vld [vmem:[%s1033_s1 + $0x20] sm:$0xff]   ;;  %v743_v18 = vld [vmem:[%s1033_s1 + $0x28] sm:$0xff]  }
   0x7   :  { %414 = vmatprep.subr.bf16.mxu1 %v777_v0  ;;  %v745_v19 = vld [vmem:[%s1033_s1 + $0x70] sm:$0xff]   ;;  %v747_v22 = vld [vmem:[%s1033_s1 + $0xb8] sm:$0xff]   ;;  %v750_v26 = vld [vmem:[%s1033_s1 + $0xc0] sm:$0xff]  }
   0x8   :  { %687 = vmatpush3.bf16.msra.mxu0 %v731_v6  ;;  %v744_v20 = vld [vmem:[%s1033_s1 + $0xb0] sm:$0xff]   ;;  %v748_v23 = vld [vmem:[%s1033_s1 + $0x78] sm:$0xff]   ;;  %v754_v30 = vld [vmem:[%s1033_s1 + $0xc8] sm:$0xff]  }
   0x9   :  { %688 = vmatprep.subr.bf16.mxu0 %v733_v8  ;;  %v746_v21 = vld [vmem:[%s1033_s1 + $0x30] sm:$0xff]   ;;  %v749_v25 = vld [vmem:[%s1033_s1 + $0x38] sm:$0xff]   ;;  %v951_v50 = vld [vmem:[%s1035_s2] ss:$0 sm:$0xff] }
   0xa   :  { %415 = vmatpush1.bf16.msra.mxu1 %v732_v7  ;;  %v753_v24 = vld [vmem:[%s1034_s0 + $0x4] ss:$16 sps:$4 sm:$0xff]   ;;  %v760_v27 = vld [vmem:[%s1034_s0 + $0xc] ss:$16 sps:$4 sm:$0xff]   ;;  %v751_v28 = vld [vmem:[%s1034_s0] ss:$16 sps:$4 sm:$0xff]  }
   0xb   :  { %416 = vmatprep.subr.bf16.mxu1 %v777_v0  ;;  %377 = vmatprep.mubr.bf16.mxu0 %v753_v24  ;;  %v756_v29 = vld [vmem:[%s1034_s0 + $0x24] ss:$16 sps:$4 sm:$0xff]   ;;  %v761_v32 = vld [vmem:[%s1034_s0 + $0x20] ss:$16 sps:$4 sm:$0xff]   ;;  %v758_v34 = vld [vmem:[%s1034_s0 + $0x8] ss:$16 sps:$4 sm:$0xff]  }
   0xc   :  { %689 = vmatpush3.bf16.msra.mxu0 %v734_v9  ;;  %648 = vmatprep.mubr.msk.bf16.mxu1 %vm332_vm0, %v760_v27  ;;  %v755_v31 = vld [vmem:[%s1033_s1 + $0xd0] sm:$0xff]   ;;  %v764_v35 = vld [vmem:[%s1034_s0 + $0x2c] ss:$16 sps:$4 sm:$0xff]   ;;  %v767_v38 = vld [vmem:[%s1034_s0 + $0x28] ss:$16 sps:$4 sm:$0xff]  }
   0xd   :  { %690 = vmatprep.subr.bf16.mxu0 %v736_v11  ;;  %v762_v33 = vld [vmem:[%s1034_s0 + $0x44] ss:$16 sps:$4 sm:$0xff]   ;;  %v766_v36 = vld [vmem:[%s1034_s0 + $0x40] ss:$16 sps:$4 sm:$0xff]   ;;  %v770_v39 = vld [vmem:[%s1034_s0 + $0x4c] ss:$16 sps:$4 sm:$0xff]  }
   0xe   :  { %417 = vmatpush1.bf16.msra.mxu1 %v735_v10  ;;  %v768_v37 = vld [vmem:[%s1034_s0 + $0x64] ss:$16 sps:$4 sm:$0xff]   ;;  %v772_v40 = vld [vmem:[%s1034_s0 + $0x60] ss:$16 sps:$4 sm:$0xff]   ;;  %v773_v41 = vld [vmem:[%s1034_s0 + $0x48] ss:$16 sps:$4 sm:$0xff]  }
   0xf   :  { %418 = vmatprep.subr.bf16.mxu1 %v777_v0  ;;  %v774_v42 = vld [vmem:[%s1034_s0 + $0x6c] ss:$16 sps:$4 sm:$0xff]   ;;  %v776_v43 = vld [vmem:[%s1034_s0 + $0x68] ss:$16 sps:$4 sm:$0xff]   ;;  %s778_s0 = smov 96  }
  0x10   :  { %691 = vmatpush3.bf16.msra.mxu0 %v737_v12 }
  0x11   :  { %692 = vmatprep.subr.bf16.mxu0 %v739_v13 }
  0x12   :  { %419 = vmatpush1.bf16.msra.mxu1 %v738_v14 }
  0x13   :  { %420 = vmatprep.subr.bf16.mxu1 %v777_v0 }
  0x14   :  { %693 = vmatpush3.bf16.msra.mxu0 %v740_v15 }
  0x15   :  { %694 = vmatprep.subr.bf16.mxu0 %v742_v16 }
  0x16   :  { %421 = vmatpush1.bf16.msra.mxu1 %v741_v17 }
  0x17   :  { %422 = vmatprep.subr.bf16.mxu1 %v777_v0 }
  0x18   :  { %695 = vmatpush3.bf16.msra.mxu0 %v743_v18 }
  0x19   :  { %696 = vmatprep.subr.bf16.mxu0 %v745_v19 }
  0x1a   :  { %423 = vmatpush1.bf16.msra.mxu1 %v744_v20 }
  0x1b   :  { %424 = vmatprep.subr.bf16.mxu1 %v777_v0 }
  0x1c   :  { %697 = vmatpush3.bf16.msra.mxu0 %v746_v21 }
  0x1d   :  { %698 = vmatprep.subr.bf16.mxu0 %v748_v23 }
  0x1e   :  { %425 = vmatpush1.bf16.msra.mxu1 %v747_v22 }
  0x1f   :  { %426 = vmatprep.subr.bf16.mxu1 %v777_v0 }
  0x20   :  { %699 = vmatpush3.bf16.msra.mxu0 %v749_v25 }
  0x22   :  { %427 = vmatpush1.bf16.msra.mxu1 %v750_v26 }
  0x23   :  { %378 = vmatmul.mubr.bf16.vlgmr.msra.gmra.mrb[0].mxu0 %v751_v28  ;;  %428 = vmatprep.subr.bf16.mxu1 %v777_v0 }
  0x24   :  { %385 = vmatprep.mubr.bf16.mxu0 %v756_v29 }
  0x26   :  { %429 = vmatpush1.bf16.msra.mxu1 %v754_v30 }
  0x27   :  { %430 = vmatprep.subr.bf16.mxu1 %v777_v0 }
  0x2a   :  { %431 = vmatpush1.bf16.msra.mxu1 %v755_v31 }
  0x2b   :  { %386 = vmatmul.mubr.bf16.gmra.mrb[4].mxu0 %v761_v32 }
  0x2c   :  { %393 = vmatprep.mubr.bf16.mxu0 %v762_v33 }
  0x2d   :  { %443 = vmatmul.mubr.bf16.vlgmr.msra.gmra.mrb[0].mxu1 %v758_v34 }
  0x2e   :  { %649 = vmatprep.mubr.msk.bf16.mxu1 %vm332_vm0, %v764_v35 }
  0x33   :  { %394 = vmatmul.mubr.bf16.gmra.mrb[8].mxu0 %v766_v36 }
  0x34   :  { %401 = vmatprep.mubr.bf16.mxu0 %v768_v37 }
  0x35   :  { %451 = vmatmul.mubr.bf16.gmra.mrb[4].mxu1 %v767_v38 }
  0x36   :  { %650 = vmatprep.mubr.msk.bf16.mxu1 %vm332_vm0, %v770_v39 }
  0x3b   :  { %402 = vmatmul.mubr.bf16.gmra.mrb[12].mxu0 %v772_v40 }
  0x3d   :  { %459 = vmatmul.mubr.bf16.gmra.mrb[8].mxu1 %v773_v41 }
  0x3e   :  { %651 = vmatprep.mubr.msk.bf16.mxu1 %vm332_vm0, %v774_v42 }
  0x45   :  { %467 = vmatmul.mubr.bf16.gmra.mrb[12].mxu1 %v776_v43 }
  0xf6   :  { %v700_v44 = vpop.f32.mrb[0].mxu0 }
  0xf7   :  { %v701_v45 = vpop.f32.mrb[1].mxu0 }
  0xf8   :  { %v702_v46 = vadd.f32 %v701_v45, %v700_v44  ;;  %v703_v47 = vpop.f32.mrb[2].mxu0 }
  0xf9   :  { %v704_v48 = vpop.f32.mrb[3].mxu0 }
  0xfa   :  { %v705_v49 = vadd.f32 %v704_v48, %v703_v47  ;;  %v380_v51 = vadd.f32 %v702_v46, %v951_v50 }
  0xfc   :  { %v383_v59 = vadd.f32 %v705_v49, %v951_v50 }
  0xfe   :  { %v706_v52 = vpop.f32.mrb[4].mxu0 }
  0xff   :  { %v707_v53 = vpop.f32.mrb[5].mxu0 }
 0x100   :  { %v444_v54 = vpop.f32.mrb[0].mxu1  ;;  %v708_v55 = vadd.f32 %v707_v53, %v706_v52  ;;  %v709_v56 = vpop.f32.mrb[6].mxu0 }
 0x101   :  { %v445_v57 = vadd.f32 %v444_v54, %v380_v51  ;;  %v446_v58 = vpop.f32.mrb[1].mxu1  ;;  %v710_v60 = vpop.f32.mrb[7].mxu0 }
 0x102   :  { %v447_v61 = vpop.f32.mrb[2].mxu1  ;;  %v711_v62 = vadd.f32 %v710_v60, %v709_v56  ;;  %v388_v5 = vadd.f32 %v708_v55, %v951_v50 }
 0x103   :  { %vm475_vm1 = vcmp.ge.f32.partialorder %v445_v57, 0.0  ;;  %v483_v63 = vmul.f32 0.01, %v445_v57  ;;  %v448_v0 = vadd.f32 %v447_v61, %v383_v59  ;;  %v449_v1 = vpop.f32.mrb[3].mxu1  ;;  %v676_v2 = vpack.c.bf16 %v445_v57, %v445_v57 }
 0x104   :  { %v391_v17 = vadd.f32 %v711_v62, %v951_v50 }
 0x105   :  { %v491_v3 = vsel %vm475_vm1, %v445_v57, %v483_v63  ;;  %vm476_vm3 = vcmp.ge.f32.partialorder %v448_v0, 0.0  ;;  %v484_v4 = vmul.f32 0.01, %v448_v0  ;;  %564 = vrot.lane.b32.xlu0 %v676_v2, %s778_s0  ;;  %v677_v10 = vpack.c.bf16 %v448_v0, %v448_v0 }
 0x106   :  { %v668_v6 = vpack.c.bf16 %v491_v3, %v491_v3  ;;  %v712_v7 = vpop.f32.mrb[8].mxu0 }
 0x107   :  { %v492_v8 = vsel %vm476_vm3, %v448_v0, %v484_v4  ;;  %v713_v9 = vpop.f32.mrb[9].mxu0 }
 0x108   :  { %532 = vst.msk [vmem:[%s1036_s3] sm:$0xf] %vm531_vm2, %v668_v6  ;;  %v669_v11 = vpack.c.bf16 %v492_v8, %v492_v8  ;;  %v452_v12 = vpop.f32.mrb[4].mxu1  ;;  %v714_v13 = vadd.f32 %v713_v9, %v712_v7  ;;  %v715_v14 = vpop.f32.mrb[10].mxu0 }
 0x109   :  { %v453_v15 = vadd.f32 %v452_v12, %v388_v5  ;;  %v454_v16 = vpop.f32.mrb[5].mxu1  ;;  %566 = vrot.lane.b32.xlu0 %v677_v10, %s778_s0  ;;  %v716_v18 = vpop.f32.mrb[11].mxu0 }
 0x10a   :  { %533 = vst.msk [vmem:[%s1036_s3 + $0x4] sm:$0xf] %vm531_vm2, %v669_v11  ;;  %v455_v19 = vpop.f32.mrb[6].mxu1  ;;  %v717_v20 = vadd.f32 %v716_v18, %v715_v14  ;;  %v396_v27 = vadd.f32 %v714_v13, %v951_v50 }
 0x10b   :  { %vm477_vm4 = vcmp.ge.f32.partialorder %v453_v15, 0.0  ;;  %v485_v21 = vmul.f32 0.01, %v453_v15  ;;  %v456_v22 = vadd.f32 %v455_v19, %v391_v17  ;;  %v457_v23 = vpop.f32.mrb[7].mxu1  ;;  %v678_v24 = vpack.c.bf16 %v453_v15, %v453_v15 }
 0x10c   :  { %v399_v39 = vadd.f32 %v717_v20, %v951_v50 }
 0x10d   :  { %v493_v25 = vsel %vm477_vm4, %v453_v15, %v485_v21  ;;  %vm478_vm5 = vcmp.ge.f32.partialorder %v456_v22, 0.0  ;;  %v486_v26 = vmul.f32 0.01, %v456_v22  ;;  %568 = vrot.lane.b32.xlu1 %v678_v24, %s778_s0  ;;  %v679_v32 = vpack.c.bf16 %v456_v22, %v456_v22 }
 0x10e   :  { %v670_v28 = vpack.c.bf16 %v493_v25, %v493_v25  ;;  %v718_v29 = vpop.f32.mrb[12].mxu0 }
 0x10f   :  { %v494_v30 = vsel %vm478_vm5, %v456_v22, %v486_v26  ;;  %v719_v31 = vpop.f32.mrb[13].mxu0 }
 0x110   :  { %534 = vst.msk [vmem:[%s1036_s3 + $0x8] sm:$0xf] %vm531_vm2, %v670_v28  ;;  %v671_v33 = vpack.c.bf16 %v494_v30, %v494_v30  ;;  %v460_v34 = vpop.f32.mrb[8].mxu1  ;;  %v720_v35 = vadd.f32 %v719_v31, %v718_v29  ;;  %v721_v36 = vpop.f32.mrb[14].mxu0 }
 0x111   :  { %v461_v37 = vadd.f32 %v460_v34, %v396_v27  ;;  %v462_v38 = vpop.f32.mrb[9].mxu1  ;;  %570 = vrot.lane.b32.xlu1 %v679_v32, %s778_s0  ;;  %v722_v40 = vpop.f32.mrb[15].mxu0 }
 0x112   :  { %535 = vst.msk [vmem:[%s1036_s3 + $0xc] sm:$0xf] %vm531_vm2, %v671_v33  ;;  %v463_v41 = vpop.f32.mrb[10].mxu1  ;;  %v723_v42 = vadd.f32 %v722_v40, %v721_v36  ;;  %v404_v47 = vadd.f32 %v720_v35, %v951_v50 }
 0x113   :  { %vm479_vm6 = vcmp.ge.f32.partialorder %v461_v37, 0.0  ;;  %v487_v43 = vmul.f32 0.01, %v461_v37  ;;  %v464_v44 = vadd.f32 %v463_v41, %v399_v39  ;;  %v465_v45 = vpop.f32.mrb[11].mxu1  ;;  %v680_v46 = vpack.c.bf16 %v461_v37, %v461_v37 }
 0x114   :  { %v407_v58 = vadd.f32 %v723_v42, %v951_v50 }
 0x115   :  { %v495_v48 = vsel %vm479_vm6, %v461_v37, %v487_v43  ;;  %vm480_vm7 = vcmp.ge.f32.partialorder %v464_v44, 0.0  ;;  %v488_v49 = vmul.f32 0.01, %v464_v44  ;;  %572 = vrot.lane.b32.xlu0 %v680_v46, %s778_s0  ;;  %v681_v51 = vpack.c.bf16 %v464_v44, %v464_v44 }
 0x116   :  { %v672_v52 = vpack.c.bf16 %v495_v48, %v495_v48 }
 0x117   :  { %v496_v53 = vsel %vm480_vm7, %v464_v44, %v488_v49  ;;  %574 = vrot.lane.b32.xlu1 %v681_v51, %s778_s0 }
 0x118   :  { %536 = vst.msk [vmem:[%s1036_s3 + $0x10] sm:$0xf] %vm531_vm2, %v672_v52  ;;  %v673_v54 = vpack.c.bf16 %v496_v53, %v496_v53  ;;  %v468_v55 = vpop.f32.mrb[12].mxu1 }
 0x119   :  { %v469_v56 = vadd.f32 %v468_v55, %v404_v47  ;;  %v470_v57 = vpop.f32.mrb[13].mxu1 }
 0x11a   :  { %537 = vst.msk [vmem:[%s1036_s3 + $0x14] sm:$0xf] %vm531_vm2, %v673_v54  ;;  %v471_v59 = vpop.f32.mrb[14].mxu1 }
 0x11b   :  { %vm481_vm8 = vcmp.ge.f32.partialorder %v469_v56, 0.0  ;;  %v489_v60 = vmul.f32 0.01, %v469_v56  ;;  %v472_v61 = vadd.f32 %v471_v59, %v407_v58  ;;  %v473_v62 = vpop.f32.mrb[15].mxu1  ;;  %v682_v63 = vpack.c.bf16 %v469_v56, %v469_v56 }
 0x11d   :  { %v497_v0 = vsel %vm481_vm8, %v469_v56, %v489_v60  ;;  %vm482_vm9 = vcmp.ge.f32.partialorder %v472_v61, 0.0  ;;  %v490_v1 = vmul.f32 0.01, %v472_v61  ;;  %576 = vrot.lane.b32.xlu0 %v682_v63, %s778_s0  ;;  %v683_v2 = vpack.c.bf16 %v472_v61, %v472_v61 }
 0x11e   :  { %v674_v3 = vpack.c.bf16 %v497_v0, %v497_v0 }
 0x11f   :  { %v498_v4 = vsel %vm482_vm9, %v472_v61, %v490_v1  ;;  %578 = vrot.lane.b32.xlu1 %v683_v2, %s778_s0 }
 0x120   :  { %538 = vst.msk [vmem:[%s1036_s3 + $0x18] sm:$0xf] %vm531_vm2, %v674_v3  ;;  %v675_v50 = vpack.c.bf16 %v498_v4, %v498_v4 }
 0x122   :  { %539 = vst.msk [vmem:[%s1036_s3 + $0x1c] sm:$0xf] %vm531_vm2, %v675_v50 }
 0x177   :  { %v565_v5 = vpop.permute.xlu0 %564 }
 0x178   :  { %588 = vst.msk [vmem:[%s1037_s4] sm:$0xf] %vm531_vm2, %v565_v5 }
 0x17b   :  { %v567_v6 = vpop.permute.xlu0 %566 }
 0x17c   :  { %589 = vst.msk [vmem:[%s1037_s4 + $0x4] sm:$0xf] %vm531_vm2, %v567_v6 }
 0x17f   :  { %v569_v7 = vpop.permute.xlu1 %568 }
 0x180   :  { %590 = vst.msk [vmem:[%s1037_s4 + $0x8] sm:$0xf] %vm531_vm2, %v569_v7 }
 0x183   :  { %v571_v8 = vpop.permute.xlu1 %570 }
 0x184   :  { %591 = vst.msk [vmem:[%s1037_s4 + $0xc] sm:$0xf] %vm531_vm2, %v571_v8 }
 0x187   :  { %v573_v9 = vpop.permute.xlu0 %572 }
 0x188   :  { %592 = vst.msk [vmem:[%s1037_s4 + $0x10] sm:$0xf] %vm531_vm2, %v573_v9 }
 0x189   :  { %v575_v10 = vpop.permute.xlu1 %574 }
 0x18a   :  { %593 = vst.msk [vmem:[%s1037_s4 + $0x14] sm:$0xf] %vm531_vm2, %v575_v10 }
 0x18f   :  { %v577_v11 = vpop.permute.xlu0 %576 }
 0x190   :  { %594 = vst.msk [vmem:[%s1037_s4 + $0x18] sm:$0xf] %vm531_vm2, %v577_v11 }
 0x191   :  { %v579_v12 = vpop.permute.xlu1 %578 }
 0x192   :  { %595 = vst.msk [vmem:[%s1037_s4 + $0x1c] sm:$0xf] %vm531_vm2, %v579_v12 }

// kernel: encoder_forward.17
= control target key start
LH: loop header
LB: loop body
LE: loop exit
PB: predicated region body
PF: predicated region fallthrough
CT: control target
= control target key end

     0   :  { %vm629_vm0 = vcmask 785408   ;;  %vm982_vm2 = vcmask 257024   ;;  %s1704_s1 = inlined_call_operand.vmem [shape: bf16[864,32], index: 1, kind: input, shape index: {}]   ;;  %s1705_s0 = inlined_call_operand.vmem [shape: bf16[64,864], index: 0, kind: input, shape index: {}]   ;;  %s1706_s2 = inlined_call_operand.vmem [shape: f32[1,32], index: 2, kind: input, shape index: {}]   ;;  %s1707_s3 = inlined_call_operand.vmem [shape: bf16[64,32], index: 3, kind: input, shape index: {}]   ;;  %s1708_s4 = inlined_call_operand.vmem [shape: bf16[64,32], index: 4, kind: output, shape index: {}]  }
   0x1   :  { %v1267_v0 = vld [vmem:[%s1704_s1 + $0x40] sm:$0xff]   ;;  %v1271_v4 = vld [vmem:[%s1704_s1 + $0x48] sm:$0xff]   ;;  %v1275_v8 = vld [vmem:[%s1704_s1 + $0x50] sm:$0xff]  }
   0x2   :  { %v1268_v1 = vld [vmem:[%s1704_s1] sm:$0xff]   ;;  %1117 = vmatprep.subr.bf16.mxu0 %v1267_v0  ;;  %v1272_v5 = vld [vmem:[%s1704_s1 + $0x8] sm:$0xff]   ;;  %v1276_v9 = vld [vmem:[%s1704_s1 + $0x10] sm:$0xff]  }
   0x3   :  { %v1269_v2 = vld [vmem:[%s1704_s1 + $0xc0] sm:$0xff]   ;;  %1118 = vmatpush3.bf16.msra.mxu0 %v1268_v1  ;;  %v1273_v6 = vld [vmem:[%s1704_s1 + $0xc8] sm:$0xff]   ;;  %v1277_v10 = vld [vmem:[%s1704_s1 + $0xd0] sm:$0xff]  }
   0x4   :  { %v1270_v3 = vld [vmem:[%s1704_s1 + $0x80] sm:$0xff]   ;;  %1157 = vmatprep.subr.bf16.mxu1 %v1269_v2  ;;  %1119 = vmatprep.subr.bf16.mxu0 %v1271_v4  ;;  %v1274_v7 = vld [vmem:[%s1704_s1 + $0x88] sm:$0xff]   ;;  %v1278_v11 = vld [vmem:[%s1704_s1 + $0x90] sm:$0xff]  }
   0x5   :  { %1158 = vmatpush3.bf16.msra.mxu1 %v1270_v3  ;;  %v1279_v12 = vld [vmem:[%s1704_s1 + $0x58] sm:$0xff]   ;;  %v1283_v16 = vld [vmem:[%s1704_s1 + $0x60] sm:$0xff]   ;;  %v1287_v20 = vld [vmem:[%s1704_s1 + $0x68] sm:$0xff]  }
   0x6   :  { %1159 = vmatprep.subr.bf16.mxu1 %v1273_v6  ;;  %v1280_v13 = vld [vmem:[%s1704_s1 + $0x18] sm:$0xff]   ;;  %v1284_v17 = vld [vmem:[%s1704_s1 + $0x20] sm:$0xff]   ;;  %v1288_v21 = vld [vmem:[%s1704_s1 + $0x28] sm:$0xff]  }
   0x7   :  { %1120 = vmatpush3.bf16.msra.mxu0 %v1272_v5  ;;  %v1281_v14 = vld [vmem:[%s1704_s1 + $0xd8] sm:$0xff]   ;;  %v1285_v18 = vld [vmem:[%s1704_s1 + $0xe0] sm:$0xff]   ;;  %v1289_v22 = vld [vmem:[%s1704_s1 + $0xe8] sm:$0xff]  }
   0x8   :  { %1121 = vmatprep.subr.bf16.mxu0 %v1275_v8  ;;  %v1282_v15 = vld [vmem:[%s1704_s1 + $0x98] sm:$0xff]   ;;  %v1286_v19 = vld [vmem:[%s1704_s1 + $0xa0] sm:$0xff]   ;;  %v1290_v23 = vld [vmem:[%s1704_s1 + $0xa8] sm:$0xff]  }
   0x9   :  { %1160 = vmatpush3.bf16.msra.mxu1 %v1274_v7  ;;  %v1291_v24 = vld [vmem:[%s1704_s1 + $0x70] sm:$0xff]   ;;  %v1295_v28 = vld [vmem:[%s1704_s1 + $0x78] sm:$0xff]   ;;  %v1300_v32 = vld [vmem:[%s1705_s0 + $0x4] ss:$28 sps:$4 sm:$0xff]  }
   0xa   :  { %1161 = vmatprep.subr.bf16.mxu1 %v1277_v10  ;;  %v1292_v25 = vld [vmem:[%s1704_s1 + $0x30] sm:$0xff]   ;;  %v1296_v29 = vld [vmem:[%s1704_s1 + $0x38] sm:$0xff]   ;;  %674 = vmatprep.mubr.bf16.mxu0 %v1300_v32  ;;  %v1302_v34 = vld [vmem:[%s1704_s1 + $0x140] sm:$0xff]  }
   0xb   :  { %1122 = vmatpush3.bf16.msra.mxu0 %v1276_v9  ;;  %v1293_v26 = vld [vmem:[%s1704_s1 + $0xf0] sm:$0xff]   ;;  %v1297_v30 = vld [vmem:[%s1704_s1 + $0xf8] sm:$0xff]   ;;  %v1303_v35 = vld [vmem:[%s1705_s0 + $0x8] ss:$28 sps:$4 sm:$0xff]  }
   0xc   :  { %1123 = vmatprep.subr.bf16.mxu0 %v1279_v12  ;;  %v1294_v27 = vld [vmem:[%s1704_s1 + $0xb0] sm:$0xff]   ;;  %v1298_v31 = vld [vmem:[%s1705_s0] ss:$28 sps:$4 sm:$0xff]   ;;  %v1305_v36 = vld [vmem:[%s1705_s0 + $0xc] ss:$28 sps:$4 sm:$0xff]  }
   0xd   :  { %1162 = vmatpush3.bf16.msra.mxu1 %v1278_v11  ;;  %v1301_v33 = vld [vmem:[%s1704_s1 + $0xb8] sm:$0xff]   ;;  %v1306_v37 = vld [vmem:[%s1704_s1 + $0x100] sm:$0xff]   ;;  %739 = vmatprep.mubr.bf16.mxu1 %v1305_v36  ;;  %v1307_v38 = vld [vmem:[%s1704_s1 + $0x148] sm:$0xff]  }
   0xe   :  { %1163 = vmatprep.subr.bf16.mxu1 %v1281_v14  ;;  %v1308_v39 = vld [vmem:[%s1704_s1 + $0x108] sm:$0xff]   ;;  %v1309_v40 = vld [vmem:[%s1705_s0 + $0x3c] ss:$28 sps:$4 sm:$0xff]   ;;  %v1312_v42 = vld [vmem:[%s1704_s1 + $0x150] sm:$0xff]  }
   0xf   :  { %1124 = vmatpush3.bf16.msra.mxu0 %v1280_v13  ;;  %v1311_v41 = vld [vmem:[%s1705_s0 + $0x38] ss:$28 sps:$4 sm:$0xff]   ;;  %v1313_v43 = vld [vmem:[%s1705_s0 + $0x44] ss:$28 sps:$4 sm:$0xff]   ;;  %v1322_v50 = vld [vmem:[%s1705_s0 + $0x70] ss:$28 sps:$4 sm:$0xff]  }
  0x10   :  { %1125 = vmatprep.subr.bf16.mxu0 %v1283_v16  ;;  %v1315_v44 = vld [vmem:[%s1704_s1 + $0x110] sm:$0xff]   ;;  %v1316_v45 = vld [vmem:[%s1705_s0 + $0x40] ss:$28 sps:$4 sm:$0xff]   ;;  %v1324_v52 = vld [vmem:[%s1704_s1 + $0x188] sm:$0xff]  }
  0x11   :  { %1164 = vmatpush3.bf16.msra.mxu1 %v1282_v15  ;;  %v1317_v46 = vld [vmem:[%s1704_s1 + $0x158] sm:$0xff]   ;;  %v1318_v47 = vld [vmem:[%s1704_s1 + $0x180] sm:$0xff]   ;;  %v1320_v49 = vld [vmem:[%s1705_s0 + $0x74] ss:$28 sps:$4 sm:$0xff]  }
  0x12   :  { %1165 = vmatprep.subr.bf16.mxu1 %v1285_v18  ;;  %v1319_v48 = vld [vmem:[%s1704_s1 + $0x118] sm:$0xff]   ;;  %v1323_v51 = vld [vmem:[%s1704_s1 + $0x160] sm:$0xff]   ;;  %v1329_v56 = vld [vmem:[%s1704_s1 + $0x168] sm:$0xff]  }
  0x13   :  { %1126 = vmatpush3.bf16.msra.mxu0 %v1284_v17  ;;  %v1325_v53 = vld [vmem:[%s1705_s0 + $0x7c] ss:$28 sps:$4 sm:$0xff]   ;;  %v1327_v54 = vld [vmem:[%s1704_s1 + $0x120] sm:$0xff]   ;;  %v1330_v57 = vld [vmem:[%s1704_s1 + $0x190] sm:$0xff]  }
  0x14   :  { %1127 = vmatprep.subr.bf16.mxu0 %v1287_v20  ;;  %v1328_v55 = vld [vmem:[%s1705_s0 + $0x78] ss:$28 sps:$4 sm:$0xff]   ;;  %v1331_v58 = vld [vmem:[%s1704_s1 + $0x128] sm:$0xff]   ;;  %v1342_v3 = vld [vmem:[%s1704_s1 + $0x1a0] sm:$0xff]  }
  0x15   :  { %1166 = vmatpush3.bf16.msra.mxu1 %v1286_v19  ;;  %v1332_v59 = vld [vmem:[%s1705_s0 + $0xac] ss:$28 sps:$4 sm:$0xff]   ;;  %v1335_v61 = vld [vmem:[%s1704_s1 + $0x170] sm:$0xff]   ;;  %v1336_v62 = vld [vmem:[%s1704_s1 + $0x198] sm:$0xff]  }
  0x16   :  { %1167 = vmatprep.subr.bf16.mxu1 %v1289_v22  ;;  %v1334_v60 = vld [vmem:[%s1705_s0 + $0xa8] ss:$28 sps:$4 sm:$0xff]   ;;  %v1337_v63 = vld [vmem:[%s1705_s0 + $0xb4] ss:$28 sps:$4 sm:$0xff]   ;;  %v1341_v2 = vld [vmem:[%s1704_s1 + $0x178] sm:$0xff]  }
  0x17   :  { %1128 = vmatpush3.bf16.msra.mxu0 %v1288_v21  ;;  %v1339_v0 = vld [vmem:[%s1704_s1 + $0x130] sm:$0xff]   ;;  %v1343_v4 = vld [vmem:[%s1704_s1 + $0x138] sm:$0xff]   ;;  %v1347_v7 = vld [vmem:[%s1704_s1 + $0x1a8] sm:$0xff]  }
  0x18   :  { %1129 = vmatprep.subr.bf16.mxu0 %v1291_v24  ;;  %v1340_v1 = vld [vmem:[%s1705_s0 + $0xb0] ss:$28 sps:$4 sm:$0xff]   ;;  %v1348_v8 = vld [vmem:[%s1705_s0 + $0x18] ss:$28 sps:$4 sm:$0xff]   ;;  %v1356_v11 = vld [vmem:[%s1705_s0 + $0x88] ss:$28 sps:$4 sm:$0xff]  }
  0x19   :  { %1168 = vmatpush3.bf16.msra.mxu1 %v1290_v23  ;;  %v1344_v5 = vld [vmem:[%s1705_s0 + $0x10] ss:$28 sps:$4 sm:$0xff]   ;;  %v1352_v12 = vld [vmem:[%s1705_s0 + $0x48] ss:$28 sps:$4 sm:$0xff]   ;;  %v1357_v14 = vld [vmem:[%s1705_s0 + $0xc0] ss:$28 sps:$4 sm:$0xff]  }
  0x1a   :  { %1169 = vmatprep.subr.bf16.mxu1 %v1293_v26  ;;  %v1346_v6 = vld [vmem:[%s1705_s0 + $0x14] ss:$28 sps:$4 sm:$0xff]   ;;  %v1350_v10 = vld [vmem:[%s1705_s0 + $0x4c] ss:$28 sps:$4 sm:$0xff]   ;;  %v1353_v13 = vld [vmem:[%s1705_s0 + $0x84] ss:$28 sps:$4 sm:$0xff]  }
  0x1b   :  { %1130 = vmatpush3.bf16.msra.mxu0 %v1292_v25  ;;  %v1349_v9 = vld [vmem:[%s1705_s0 + $0x50] ss:$28 sps:$4 sm:$0xff]   ;;  %v1355_v15 = vld [vmem:[%s1705_s0 + $0x80] ss:$28 sps:$4 sm:$0xff]   ;;  %v1360_v17 = vld [vmem:[%s1705_s0 + $0xb8] ss:$28 sps:$4 sm:$0xff]  }
  0x1c   :  { %1131 = vmatprep.subr.bf16.mxu0 %v1295_v28  ;;  %v1358_v16 = vld [vmem:[%s1705_s0 + $0xbc] ss:$28 sps:$4 sm:$0xff]   ;;  %v995_v19 = vld [vmem:[%s1706_s2] ss:$0 sm:$0xff] }
  0x1d   :  { %1170 = vmatpush3.bf16.msra.mxu1 %v1294_v27 }
  0x1e   :  { %1171 = vmatprep.subr.bf16.mxu1 %v1297_v30 }
  0x1f   :  { %1132 = vmatpush3.bf16.msra.mxu0 %v1296_v29 }
  0x20   :  { %1197 = vmatprep.subr.bf16.mxu0 %v1302_v34 }
  0x21   :  { %1172 = vmatpush3.bf16.msra.mxu1 %v1301_v33 }
  0x22   :  { %675 = vmatmul.mubr.bf16.vlgmr.msra.gmra.mrb[0].mxu0 %v1298_v31  ;;  %1247 = vmatprep.subr.bf16.mxu1 %v1318_v47 }
  0x23   :  { %1198 = vmatpush3.bf16.msra.mxu0 %v1306_v37  ;;  %682 = vmatprep.mubr.bf16.mxu0 %v1309_v40 }
  0x24   :  { %740 = vmatmul.mubr.bf16.vlgmr.msra.gmra.mrb[0].mxu1 %v1303_v35  ;;  %1199 = vmatprep.subr.bf16.mxu0 %v1307_v38 }
  0x25   :  { %747 = vmatprep.mubr.bf16.mxu1 %v1313_v43  ;;  %1248 = vmatpush3.bf16.msra.mxu1 %v1318_v47 }
  0x26   :  { %1249 = vmatprep.subr.bf16.mxu1 %v1324_v52 }
  0x27   :  { %1200 = vmatpush3.bf16.msra.mxu0 %v1308_v39 }
  0x28   :  { %1201 = vmatprep.subr.bf16.mxu0 %v1312_v42 }
  0x29   :  { %1250 = vmatpush3.bf16.msra.mxu1 %v1324_v52 }
  0x2a   :  { %683 = vmatmul.mubr.bf16.gmra.mrb[4].mxu0 %v1311_v41  ;;  %1251 = vmatprep.subr.bf16.mxu1 %v1330_v57 }
  0x2b   :  { %1202 = vmatpush3.bf16.msra.mxu0 %v1315_v44  ;;  %690 = vmatprep.mubr.bf16.mxu0 %v1320_v49 }
  0x2c   :  { %748 = vmatmul.mubr.bf16.gmra.mrb[4].mxu1 %v1316_v45  ;;  %1203 = vmatprep.subr.bf16.mxu0 %v1317_v46 }
  0x2d   :  { %755 = vmatprep.mubr.bf16.mxu1 %v1325_v53  ;;  %1252 = vmatpush3.bf16.msra.mxu1 %v1330_v57 }
  0x2e   :  { %1253 = vmatprep.subr.bf16.mxu1 %v1336_v62 }
  0x2f   :  { %1204 = vmatpush3.bf16.msra.mxu0 %v1319_v48 }
  0x30   :  { %1205 = vmatprep.subr.bf16.mxu0 %v1323_v51 }
  0x31   :  { %1254 = vmatpush3.bf16.msra.mxu1 %v1336_v62 }
  0x32   :  { %691 = vmatmul.mubr.bf16.gmra.mrb[8].mxu0 %v1322_v50  ;;  %1255 = vmatprep.subr.bf16.mxu1 %v1342_v3 }
  0x33   :  { %1206 = vmatpush3.bf16.msra.mxu0 %v1327_v54  ;;  %698 = vmatprep.mubr.bf16.mxu0 %v1332_v59 }
  0x34   :  { %756 = vmatmul.mubr.bf16.gmra.mrb[8].mxu1 %v1328_v55  ;;  %1207 = vmatprep.subr.bf16.mxu0 %v1329_v56 }
  0x35   :  { %763 = vmatprep.mubr.bf16.mxu1 %v1337_v63  ;;  %1256 = vmatpush3.bf16.msra.mxu1 %v1342_v3 }
  0x36   :  { %1257 = vmatprep.subr.bf16.mxu1 %v1347_v7 }
  0x37   :  { %1208 = vmatpush3.bf16.msra.mxu0 %v1331_v58 }
  0x38   :  { %1209 = vmatprep.subr.bf16.mxu0 %v1335_v61 }
  0x39   :  { %1258 = vmatpush3.bf16.msra.mxu1 %v1347_v7 }
  0x3a   :  { %699 = vmatmul.mubr.bf16.gmra.mrb[12].mxu0 %v1334_v60 }
  0x3b   :  { %1210 = vmatpush3.bf16.msra.mxu0 %v1339_v0  ;;  %804 = vmatprep.mubr.bf16.mxu0 %v1346_v6 }
  0x3c   :  { %764 = vmatmul.mubr.bf16.gmra.mrb[12].mxu1 %v1340_v1  ;;  %1211 = vmatprep.subr.bf16.mxu0 %v1341_v2 }
  0x3d   :  { %1259 = vmatprep.mubr.msk.bf16.mxu1 %vm629_vm0, %v1348_v8 }
  0x3f   :  { %1212 = vmatpush3.bf16.msra.mxu0 %v1343_v4 }
  0x42   :  { %805 = vmatmul.mubr.bf16.vlgmr.msra.gmra.mrb[16].mxu0 %v1344_v5 }
  0x43   :  { %812 = vmatprep.mubr.bf16.mxu0 %v1350_v10 }
  0x44   :  { %1260 = vmatmul.mubr.msk.bf16.vlgmr.msra.gmra.mrb[16].mxu1 %vm629_vm0, %v1349_v9 }
  0x45   :  { %1263 = vmatprep.mubr.msk.bf16.mxu1 %vm629_vm0, %v1356_v11 }
  0x4a   :  { %813 = vmatmul.mubr.bf16.gmra.mrb[20].mxu0 %v1352_v12 }
  0x4b   :  { %820 = vmatprep.mubr.bf16.mxu0 %v1353_v13 }
  0x4c   :  { %1264 = vmatmul.mubr.msk.bf16.gmra.mrb[20].mxu1 %vm629_vm0, %v1357_v14 }
  0x52   :  { %821 = vmatmul.mubr.bf16.gmra.mrb[24].mxu0 %v1355_v15 }
  0x53   :  { %828 = vmatprep.mubr.bf16.mxu0 %v1358_v16 }
  0x5a   :  { %829 = vmatmul.mubr.bf16.gmra.mrb[28].mxu0 %v1360_v17 }
  0xf5   :  { %v1133_v18 = vpop.f32.mrb[0].mxu0 }
  0xf6   :  { %v1134_v20 = vpop.f32.mrb[1].mxu0 }
  0xf7   :  { %v1135_v21 = vadd.f32 %v1134_v20, %v1133_v18  ;;  %v1136_v22 = vpop.f32.mrb[2].mxu0  ;;  %v1173_v23 = vpop.f32.mrb[0].mxu1 }
  0xf8   :  { %v1137_v24 = vpop.f32.mrb[3].mxu0  ;;  %v1174_v27 = vpop.f32.mrb[1].mxu1 }
  0xf9   :  { %v677_v25 = vadd.f32 %v1135_v21, %v995_v19  ;;  %v1138_v26 = vadd.f32 %v1137_v24, %v1136_v22  ;;  %v1175_v28 = vadd.f32 %v1174_v27, %v1173_v23  ;;  %v1176_v29 = vpop.f32.mrb[2].mxu1  ;;  %v1099_v22 = vld [vmem:[%s1707_s3] sm:$0xff]  }
  0xfa   :  { %v1177_v31 = vpop.f32.mrb[3].mxu1 }
  0xfb   :  { %v680_v30 = vadd.f32 %v1138_v26, %v995_v19  ;;  %v742_v32 = vadd.f32 %v1175_v28, %v677_v25  ;;  %v1178_v33 = vadd.f32 %v1177_v31, %v1176_v29 }
  0xfd   :  { %v1139_v34 = vpop.f32.mrb[4].mxu0  ;;  %v745_v35 = vadd.f32 %v1178_v33, %v680_v30 }
  0xfe   :  { %v1140_v36 = vpop.f32.mrb[5].mxu0 }
  0xff   :  { %v1141_v37 = vadd.f32 %v1140_v36, %v1139_v34  ;;  %v1142_v38 = vpop.f32.mrb[6].mxu0  ;;  %v1179_v39 = vpop.f32.mrb[4].mxu1  ;;  %v1101_v36 = vunpack.c.h.bf16 %v1099_v22 }
 0x100   :  { %v1143_v40 = vpop.f32.mrb[7].mxu0  ;;  %v1180_v43 = vpop.f32.mrb[5].mxu1 }
 0x101   :  { %v685_v41 = vadd.f32 %v1141_v37, %v995_v19  ;;  %v1144_v42 = vadd.f32 %v1143_v40, %v1142_v38  ;;  %v1181_v44 = vadd.f32 %v1180_v43, %v1179_v39  ;;  %v1182_v45 = vpop.f32.mrb[6].mxu1  ;;  %v1114_v40 = vld [vmem:[%s1707_s3 + $0x8] sm:$0xff]  }
 0x102   :  { %v1183_v47 = vpop.f32.mrb[7].mxu1 }
 0x103   :  { %v688_v46 = vadd.f32 %v1144_v42, %v995_v19  ;;  %v1639_v48 = vadd.f32 %v1181_v44, %v685_v41  ;;  %v1184_v49 = vadd.f32 %v1183_v47, %v1182_v45  ;;  %v1104_v45 = vunpack.c.l.bf16 %v1114_v40 }
 0x105   :  { %v1145_v50 = vpop.f32.mrb[8].mxu0  ;;  %v1641_v51 = vadd.f32 %v1184_v49, %v688_v46 }
 0x106   :  { %v1146_v52 = vpop.f32.mrb[9].mxu0 }
 0x107   :  { %v1147_v53 = vadd.f32 %v1146_v52, %v1145_v50  ;;  %v1148_v54 = vpop.f32.mrb[10].mxu0  ;;  %v1185_v55 = vpop.f32.mrb[8].mxu1 }
 0x108   :  { %v1149_v56 = vpop.f32.mrb[11].mxu0  ;;  %v1186_v59 = vpop.f32.mrb[9].mxu1 }
 0x109   :  { %v693_v57 = vadd.f32 %v1147_v53, %v995_v19  ;;  %v1150_v58 = vadd.f32 %v1149_v56, %v1148_v54  ;;  %v1187_v60 = vadd.f32 %v1186_v59, %v1185_v55  ;;  %v1188_v61 = vpop.f32.mrb[10].mxu1 }
 0x10a   :  { %v1189_v63 = vpop.f32.mrb[11].mxu1 }
 0x10b   :  { %v696_v62 = vadd.f32 %v1150_v58, %v995_v19  ;;  %v1643_v0 = vadd.f32 %v1187_v60, %v693_v57  ;;  %v1190_v1 = vadd.f32 %v1189_v63, %v1188_v61  ;;  %v1105_v61 = vunpack.c.h.bf16 %v1114_v40 }
 0x10d   :  { %v1151_v2 = vpop.f32.mrb[12].mxu0  ;;  %v1645_v3 = vadd.f32 %v1190_v1, %v696_v62 }
 0x10e   :  { %v1152_v4 = vpop.f32.mrb[13].mxu0 }
 0x10f   :  { %v1153_v5 = vadd.f32 %v1152_v4, %v1151_v2  ;;  %v1154_v6 = vpop.f32.mrb[14].mxu0  ;;  %v1191_v7 = vpop.f32.mrb[12].mxu1  ;;  %v1115_v2 = vld [vmem:[%s1707_s3 + $0x10] sm:$0xff]  }
 0x110   :  { %v1155_v8 = vpop.f32.mrb[15].mxu0  ;;  %v1192_v11 = vpop.f32.mrb[13].mxu1 }
 0x111   :  { %v701_v9 = vadd.f32 %v1153_v5, %v995_v19  ;;  %v1156_v10 = vadd.f32 %v1155_v8, %v1154_v6  ;;  %v1193_v12 = vadd.f32 %v1192_v11, %v1191_v7  ;;  %v1194_v13 = vpop.f32.mrb[14].mxu1  ;;  %v1108_v11 = vunpack.c.l.bf16 %v1115_v2 }
 0x112   :  { %v1195_v15 = vpop.f32.mrb[15].mxu1 }
 0x113   :  { %v704_v14 = vadd.f32 %v1156_v10, %v995_v19  ;;  %v1647_v16 = vadd.f32 %v1193_v12, %v701_v9  ;;  %v1196_v17 = vadd.f32 %v1195_v15, %v1194_v13  ;;  %v1100_v19 = vunpack.c.l.bf16 %v1099_v22 }
 0x115   :  { %v1649_v18 = vadd.f32 %v1196_v17, %v704_v14  ;;  %v1213_v20 = vpop.f32.mrb[16].mxu0  ;;  %v1109_v17 = vunpack.c.h.bf16 %v1115_v2 }
 0x116   :  { %v1214_v21 = vpop.f32.mrb[17].mxu0 }
 0x117   :  { %v1215_v23 = vadd.f32 %v1214_v21, %v1213_v20  ;;  %v1216_v24 = vpop.f32.mrb[18].mxu0  ;;  %v1261_v26 = vpop.f32.mrb[16].mxu1 }
 0x118   :  { %v1217_v25 = vpop.f32.mrb[19].mxu0  ;;  %v871_v29 = vpop.f32.mrb[17].mxu1 }
 0x119   :  { %v1218_v27 = vadd.f32 %v1217_v25, %v1216_v24  ;;  %v807_v28 = vadd.f32 %v1215_v23, %v742_v32  ;;  %v1262_v30 = vpop.f32.mrb[18].mxu1 }
 0x11a   :  { %v874_v34 = vpop.f32.mrb[19].mxu1 }
 0x11b   :  { %v872_v31 = vadd.f32 %v871_v29, %v807_v28  ;;  %v810_v33 = vadd.f32 %v1218_v27, %v745_v35 }
 0x11d   :  { %v918_v37 = vadd.f32 %v1100_v19, %v872_v31  ;;  %v875_v38 = vadd.f32 %v874_v34, %v810_v33  ;;  %v1219_v39 = vpop.f32.mrb[20].mxu0 }
 0x11e   :  { %v1220_v41 = vpop.f32.mrb[21].mxu0 }
 0x11f   :  { %vm926_vm1 = vcmp.ge.f32.partialorder %v918_v37, 0.0  ;;  %v934_v42 = vmul.f32 0.01, %v918_v37  ;;  %v919_v43 = vadd.f32 %v1101_v36, %v875_v38  ;;  %v1221_v44 = vadd.f32 %v1220_v41, %v1219_v39  ;;  %v1222_v32 = vpop.f32.mrb[22].mxu0  ;;  %v1657_v47 = vpop.f32.mrb[20].mxu1 }
 0x120   :  { %v1223_v46 = vpop.f32.mrb[23].mxu0  ;;  %v887_v52 = vpop.f32.mrb[21].mxu1 }
 0x121   :  { %v942_v35 = vsel %vm926_vm1, %v918_v37, %v934_v42  ;;  %vm927_vm3 = vcmp.ge.f32.partialorder %v919_v43, 0.0  ;;  %v935_v49 = vmul.f32 0.01, %v919_v43  ;;  %v815_v50 = vadd.f32 %v1221_v44, %v1639_v48  ;;  %v1266_v55 = vpop.f32.mrb[22].mxu1 }
 0x122   :  { %v1090_v53 = vpack.c.bf16 %v942_v35, %v942_v35  ;;  %v1224_v54 = vadd.f32 %v1223_v46, %v1222_v32  ;;  %v890_v58 = vpop.f32.mrb[23].mxu1 }
 0x123   :  { %v943_v56 = vsel %vm927_vm3, %v919_v43, %v935_v49  ;;  %v880_v57 = vadd.f32 %v1261_v26, %v815_v50 }
 0x124   :  { %983 = vst.msk [vmem:[%s1708_s4] sm:$0xf] %vm982_vm2, %v1090_v53  ;;  %v1091_v59 = vpack.c.bf16 %v943_v56, %v943_v56  ;;  %v818_v60 = vadd.f32 %v1224_v54, %v1641_v51 }
 0x125   :  { %v920_v62 = vadd.f32 %v1104_v45, %v880_v57  ;;  %v1225_v63 = vpop.f32.mrb[24].mxu0 }
 0x126   :  { %984 = vst.msk [vmem:[%s1708_s4 + $0x4] sm:$0xf] %vm982_vm2, %v1091_v59  ;;  %v883_v48 = vadd.f32 %v1262_v30, %v818_v60  ;;  %v1226_v1 = vpop.f32.mrb[25].mxu0 }
 0x127   :  { %vm928_vm4 = vcmp.ge.f32.partialorder %v920_v62, 0.0  ;;  %v936_v4 = vmul.f32 0.01, %v920_v62  ;;  %v1227_v5 = vadd.f32 %v1226_v1, %v1225_v63  ;;  %v1228_v6 = vpop.f32.mrb[26].mxu0 }
 0x128   :  { %v921_v7 = vadd.f32 %v1105_v61, %v883_v48  ;;  %v1229_v51 = vpop.f32.mrb[27].mxu0 }
 0x129   :  { %v944_v8 = vsel %vm928_vm4, %v920_v62, %v936_v4  ;;  %v1230_v9 = vadd.f32 %v1229_v51, %v1228_v6  ;;  %v823_v10 = vadd.f32 %v1227_v5, %v1643_v0  ;;  %v1116_v0 = vld [vmem:[%s1707_s3 + $0x18] sm:$0xff]  }
 0x12a   :  { %v1092_v12 = vpack.c.bf16 %v944_v8, %v944_v8  ;;  %vm929_vm5 = vcmp.ge.f32.partialorder %v921_v7, 0.0  ;;  %v937_v13 = vmul.f32 0.01, %v921_v7  ;;  %v1112_v29 = vunpack.c.l.bf16 %v1116_v0 }
 0x12b   :  { %v888_v14 = vadd.f32 %v887_v52, %v823_v10  ;;  %v826_v15 = vadd.f32 %v1230_v9, %v1645_v3  ;;  %v1113_v41 = vunpack.c.h.bf16 %v1116_v0 }
 0x12c   :  { %985 = vst.msk [vmem:[%s1708_s4 + $0x8] sm:$0xf] %vm982_vm2, %v1092_v12  ;;  %v945_v20 = vsel %vm929_vm5, %v921_v7, %v937_v13 }
 0x12d   :  { %v1093_v21 = vpack.c.bf16 %v945_v20, %v945_v20  ;;  %v922_v22 = vadd.f32 %v1108_v11, %v888_v14  ;;  %v891_v23 = vadd.f32 %v890_v58, %v826_v15  ;;  %v1231_v24 = vpop.f32.mrb[28].mxu0 }
 0x12e   :  { %v1232_v25 = vpop.f32.mrb[29].mxu0 }
 0x12f   :  { %986 = vst.msk [vmem:[%s1708_s4 + $0xc] sm:$0xf] %vm982_vm2, %v1093_v21  ;;  %vm930_vm6 = vcmp.ge.f32.partialorder %v922_v22, 0.0  ;;  %v938_v3 = vmul.f32 0.01, %v922_v22  ;;  %v923_v26 = vadd.f32 %v1109_v17, %v891_v23  ;;  %v1233_v27 = vadd.f32 %v1232_v25, %v1231_v24  ;;  %v1234_v28 = vpop.f32.mrb[30].mxu0 }
 0x130   :  { %v1235_v19 = vpop.f32.mrb[31].mxu0 }
 0x131   :  { %v946_v30 = vsel %vm930_vm6, %v922_v22, %v938_v3  ;;  %vm931_vm7 = vcmp.ge.f32.partialorder %v923_v26, 0.0  ;;  %v939_v31 = vmul.f32 0.01, %v923_v26  ;;  %v831_v33 = vadd.f32 %v1233_v27, %v1647_v16 }
 0x132   :  { %v1094_v34 = vpack.c.bf16 %v946_v30, %v946_v30  ;;  %v1236_v36 = vadd.f32 %v1235_v19, %v1234_v28 }
 0x133   :  { %v947_v37 = vsel %vm931_vm7, %v923_v26, %v939_v31  ;;  %v896_v38 = vadd.f32 %v1657_v47, %v831_v33 }
 0x134   :  { %987 = vst.msk [vmem:[%s1708_s4 + $0x10] sm:$0xf] %vm982_vm2, %v1094_v34  ;;  %v1095_v39 = vpack.c.bf16 %v947_v37, %v947_v37  ;;  %v834_v40 = vadd.f32 %v1236_v36, %v1649_v18 }
 0x135   :  { %v924_v42 = vadd.f32 %v1112_v29, %v896_v38 }
 0x136   :  { %988 = vst.msk [vmem:[%s1708_s4 + $0x14] sm:$0xf] %vm982_vm2, %v1095_v39  ;;  %v899_v16 = vadd.f32 %v1266_v55, %v834_v40 }
 0x137   :  { %vm932_vm8 = vcmp.ge.f32.partialorder %v924_v42, 0.0  ;;  %v940_v43 = vmul.f32 0.01, %v924_v42 }
 0x138   :  { %v925_v44 = vadd.f32 %v1113_v41, %v899_v16 }
 0x139   :  { %v948_v32 = vsel %vm932_vm8, %v924_v42, %v940_v43 }
 0x13a   :  { %v1096_v45 = vpack.c.bf16 %v948_v32, %v948_v32  ;;  %vm933_vm9 = vcmp.ge.f32.partialorder %v925_v44, 0.0  ;;  %v941_v46 = vmul.f32 0.01, %v925_v44 }
 0x13c   :  { %989 = vst.msk [vmem:[%s1708_s4 + $0x18] sm:$0xf] %vm982_vm2, %v1096_v45  ;;  %v949_v18 = vsel %vm933_vm9, %v925_v44, %v941_v46 }
 0x13d   :  { %v1097_v47 = vpack.c.bf16 %v949_v18, %v949_v18 }
 0x13f   :  { %990 = vst.msk [vmem:[%s1708_s4 + $0x1c] sm:$0xf] %vm982_vm2, %v1097_v47 }

// kernel: encoder_forward.18
= control target key start
LH: loop header
LB: loop body
LE: loop exit
PB: predicated region body
PF: predicated region fallthrough
CT: control target
= control target key end

     0   :  { %v933_v38 = vmov 0.0   ;;  %vm934_vm0 = vmmov 0   ;;  %vm499_vm1 = vcmask 785408   ;;  %vm681_vm4 = vcmask 519168   ;;  %s1159_s1 = inlined_call_operand.vmem [shape: bf16[864,128], index: 1, kind: input, shape index: {}]   ;;  %s1160_s0 = inlined_call_operand.vmem [shape: bf16[16,864], index: 0, kind: input, shape index: {}]   ;;  %s1161_s2 = inlined_call_operand.vmem [shape: f32[1,128], index: 2, kind: input, shape index: {}]   ;;  %s1162_s3 = inlined_call_operand.vmem [shape: bf16[16,64], index: 3, kind: output, shape index: {0}]   ;;  %s1163_s4 = inlined_call_operand.vmem [shape: bf16[16,64], index: 4, kind: output, shape index: {1}]  }
   0x1   :  { %v869_v0 = vld [vmem:[%s1159_s1 + $0x40] sm:$0xff]   ;;  %v873_v4 = vld [vmem:[%s1159_s1 + $0x48] sm:$0xff]   ;;  %v877_v8 = vld [vmem:[%s1159_s1 + $0x50] sm:$0xff]  }
   0x2   :  { %v870_v1 = vld [vmem:[%s1159_s1] sm:$0xff]   ;;  %777 = vmatprep.subr.bf16.mxu0 %v869_v0  ;;  %v874_v5 = vld [vmem:[%s1159_s1 + $0x8] sm:$0xff]   ;;  %v878_v9 = vld [vmem:[%s1159_s1 + $0x10] sm:$0xff]  }
   0x3   :  { %v871_v2 = vld [vmem:[%s1159_s1 + $0xc0] sm:$0xff]   ;;  %778 = vmatpush3.bf16.msra.mxu0 %v870_v1  ;;  %v875_v6 = vld [vmem:[%s1159_s1 + $0xc8] sm:$0xff]   ;;  %v879_v10 = vld [vmem:[%s1159_s1 + $0xd0] sm:$0xff]  }
   0x4   :  { %v872_v3 = vld [vmem:[%s1159_s1 + $0x80] sm:$0xff]   ;;  %799 = vmatprep.subr.bf16.mxu1 %v871_v2  ;;  %779 = vmatprep.subr.bf16.mxu0 %v873_v4  ;;  %v876_v7 = vld [vmem:[%s1159_s1 + $0x88] sm:$0xff]   ;;  %v880_v11 = vld [vmem:[%s1159_s1 + $0x90] sm:$0xff]  }
   0x5   :  { %800 = vmatpush3.bf16.msra.mxu1 %v872_v3  ;;  %v881_v12 = vld [vmem:[%s1159_s1 + $0x58] sm:$0xff]   ;;  %v885_v16 = vld [vmem:[%s1159_s1 + $0x60] sm:$0xff]   ;;  %v889_v20 = vld [vmem:[%s1159_s1 + $0x68] sm:$0xff]  }
   0x6   :  { %801 = vmatprep.subr.bf16.mxu1 %v875_v6  ;;  %v882_v13 = vld [vmem:[%s1159_s1 + $0x18] sm:$0xff]   ;;  %v886_v17 = vld [vmem:[%s1159_s1 + $0x20] sm:$0xff]   ;;  %v890_v21 = vld [vmem:[%s1159_s1 + $0x28] sm:$0xff]  }
   0x7   :  { %780 = vmatpush3.bf16.msra.mxu0 %v874_v5  ;;  %v883_v14 = vld [vmem:[%s1159_s1 + $0xd8] sm:$0xff]   ;;  %v887_v18 = vld [vmem:[%s1159_s1 + $0xe0] sm:$0xff]   ;;  %v891_v22 = vld [vmem:[%s1159_s1 + $0xe8] sm:$0xff]  }
   0x8   :  { %781 = vmatprep.subr.bf16.mxu0 %v877_v8  ;;  %v884_v15 = vld [vmem:[%s1159_s1 + $0x98] sm:$0xff]   ;;  %v888_v19 = vld [vmem:[%s1159_s1 + $0xa0] sm:$0xff]   ;;  %v892_v23 = vld [vmem:[%s1159_s1 + $0xa8] sm:$0xff]  }
   0x9   :  { %802 = vmatpush3.bf16.msra.mxu1 %v876_v7  ;;  %v893_v24 = vld [vmem:[%s1159_s1 + $0x70] sm:$0xff]   ;;  %v897_v28 = vld [vmem:[%s1159_s1 + $0x78] sm:$0xff]   ;;  %v902_v32 = vld [vmem:[%s1160_s0 + $0x4] ss:$28 sps:$4 sm:$0xff]  }
   0xa   :  { %803 = vmatprep.subr.bf16.mxu1 %v879_v10  ;;  %v894_v25 = vld [vmem:[%s1159_s1 + $0x30] sm:$0xff]   ;;  %v898_v29 = vld [vmem:[%s1159_s1 + $0x38] sm:$0xff]   ;;  %535 = vmatprep.mubr.bf16.mxu0 %v902_v32  ;;  %v904_v34 = vld [vmem:[%s1159_s1 + $0x140] sm:$0xff]  }
   0xb   :  { %782 = vmatpush3.bf16.msra.mxu0 %v878_v9  ;;  %v895_v26 = vld [vmem:[%s1159_s1 + $0xf0] sm:$0xff]   ;;  %v899_v30 = vld [vmem:[%s1159_s1 + $0xf8] sm:$0xff]   ;;  %v905_v35 = vld [vmem:[%s1160_s0 + $0x8] ss:$28 sps:$4 sm:$0xff]  }
   0xc   :  { %783 = vmatprep.subr.bf16.mxu0 %v881_v12  ;;  %v896_v27 = vld [vmem:[%s1159_s1 + $0xb0] sm:$0xff]   ;;  %v900_v31 = vld [vmem:[%s1160_s0] ss:$28 sps:$4 sm:$0xff]   ;;  %v907_v36 = vld [vmem:[%s1160_s0 + $0xc] ss:$28 sps:$4 sm:$0xff]  }
   0xd   :  { %804 = vmatpush3.bf16.msra.mxu1 %v880_v11  ;;  %v903_v33 = vld [vmem:[%s1159_s1 + $0xb8] sm:$0xff]   ;;  %v908_v37 = vld [vmem:[%s1159_s1 + $0x100] sm:$0xff]   ;;  %576 = vmatprep.mubr.bf16.mxu1 %v907_v36  ;;  %v909_v39 = vld [vmem:[%s1159_s1 + $0x148] sm:$0xff]  }
   0xe   :  { %805 = vmatprep.subr.bf16.mxu1 %v883_v14  ;;  %v910_v40 = vld [vmem:[%s1159_s1 + $0x108] sm:$0xff]   ;;  %v911_v41 = vld [vmem:[%s1159_s1 + $0x150] sm:$0xff]   ;;  %v913_v42 = vld [vmem:[%s1159_s1 + $0x180] sm:$0xff]  }
   0xf   :  { %784 = vmatpush3.bf16.msra.mxu0 %v882_v13  ;;  %v912_v43 = vld [vmem:[%s1159_s1 + $0x110] sm:$0xff]   ;;  %v914_v44 = vld [vmem:[%s1159_s1 + $0x158] sm:$0xff]   ;;  %v916_v45 = vld [vmem:[%s1159_s1 + $0x188] sm:$0xff]  }
  0x10   :  { %785 = vmatprep.subr.bf16.mxu0 %v885_v16  ;;  %v915_v46 = vld [vmem:[%s1159_s1 + $0x118] sm:$0xff]   ;;  %v917_v47 = vld [vmem:[%s1159_s1 + $0x160] sm:$0xff]   ;;  %v919_v48 = vld [vmem:[%s1159_s1 + $0x190] sm:$0xff]  }
  0x11   :  { %806 = vmatpush3.bf16.msra.mxu1 %v884_v15  ;;  %v918_v49 = vld [vmem:[%s1159_s1 + $0x120] sm:$0xff]   ;;  %v920_v50 = vld [vmem:[%s1159_s1 + $0x168] sm:$0xff]   ;;  %v922_v51 = vld [vmem:[%s1159_s1 + $0x198] sm:$0xff]  }
  0x12   :  { %807 = vmatprep.subr.bf16.mxu1 %v887_v18  ;;  %v921_v52 = vld [vmem:[%s1159_s1 + $0x128] sm:$0xff]   ;;  %v923_v53 = vld [vmem:[%s1159_s1 + $0x170] sm:$0xff]   ;;  %v925_v54 = vld [vmem:[%s1159_s1 + $0x1a0] sm:$0xff]  }
  0x13   :  { %786 = vmatpush3.bf16.msra.mxu0 %v886_v17  ;;  %v930_v55 = vld [vmem:[%s1160_s0 + $0x14] ss:$28 sps:$4 sm:$0xff]   ;;  %v926_v57 = vld [vmem:[%s1159_s1 + $0x178] sm:$0xff]   ;;  %v931_v58 = vld [vmem:[%s1159_s1 + $0x1a8] sm:$0xff]  }
  0x14   :  { %787 = vmatprep.subr.bf16.mxu0 %v889_v20  ;;  %v924_v56 = vld [vmem:[%s1159_s1 + $0x130] sm:$0xff]   ;;  %v927_v59 = vld [vmem:[%s1159_s1 + $0x138] sm:$0xff]   ;;  %v706_v63 = vld [vmem:[%s1161_s2] ss:$0 sm:$0xff] }
  0x15   :  { %808 = vmatpush3.bf16.msra.mxu1 %v888_v19  ;;  %v932_v60 = vld [vmem:[%s1160_s0 + $0x18] ss:$28 sps:$4 sm:$0xff]   ;;  %v928_v61 = vld [vmem:[%s1160_s0 + $0x10] ss:$28 sps:$4 sm:$0xff]   ;;  %s935_s0 = smov 64  }
  0x16   :  { %809 = vmatprep.subr.bf16.mxu1 %v891_v22 }
  0x17   :  { %788 = vmatpush3.bf16.msra.mxu0 %v890_v21 }
  0x18   :  { %789 = vmatprep.subr.bf16.mxu0 %v893_v24 }
  0x19   :  { %810 = vmatpush3.bf16.msra.mxu1 %v892_v23 }
  0x1a   :  { %811 = vmatprep.subr.bf16.mxu1 %v895_v26 }
  0x1b   :  { %790 = vmatpush3.bf16.msra.mxu0 %v894_v25 }
  0x1c   :  { %791 = vmatprep.subr.bf16.mxu0 %v897_v28 }
  0x1d   :  { %812 = vmatpush3.bf16.msra.mxu1 %v896_v27 }
  0x1e   :  { %813 = vmatprep.subr.bf16.mxu1 %v899_v30 }
  0x1f   :  { %792 = vmatpush3.bf16.msra.mxu0 %v898_v29 }
  0x20   :  { %821 = vmatprep.subr.bf16.mxu0 %v904_v34 }
  0x21   :  { %814 = vmatpush3.bf16.msra.mxu1 %v903_v33 }
  0x22   :  { %536 = vmatmul.mubr.bf16.vlgmr.msra.gmra.mrb[0].mxu0 %v900_v31  ;;  %850 = vmatprep.subr.bf16.mxu1 %v933_v38 }
  0x23   :  { %822 = vmatpush3.bf16.msra.mxu0 %v908_v37  ;;  %617 = vmatprep.mubr.bf16.mxu0 %v930_v55 }
  0x24   :  { %577 = vmatmul.mubr.bf16.vlgmr.msra.gmra.mrb[0].mxu1 %v905_v35  ;;  %823 = vmatprep.subr.bf16.mxu0 %v909_v39 }
  0x25   :  { %862 = vmatprep.mubr.msk.bf16.mxu1 %vm934_vm0, %v933_v38  ;;  %851 = vmatpush3.bf16.msra.mxu1 %v913_v42 }
  0x26   :  { %852 = vmatprep.subr.bf16.mxu1 %v933_v38 }
  0x27   :  { %824 = vmatpush3.bf16.msra.mxu0 %v910_v40 }
  0x28   :  { %825 = vmatprep.subr.bf16.mxu0 %v911_v41 }
  0x29   :  { %853 = vmatpush3.bf16.msra.mxu1 %v916_v45 }
  0x2a   :  { %854 = vmatprep.subr.bf16.mxu1 %v933_v38 }
  0x2b   :  { %826 = vmatpush3.bf16.msra.mxu0 %v912_v43 }
  0x2c   :  { %827 = vmatprep.subr.bf16.mxu0 %v914_v44 }
  0x2d   :  { %855 = vmatpush3.bf16.msra.mxu1 %v919_v48 }
  0x2e   :  { %856 = vmatprep.subr.bf16.mxu1 %v933_v38 }
  0x2f   :  { %828 = vmatpush3.bf16.msra.mxu0 %v915_v46 }
  0x30   :  { %829 = vmatprep.subr.bf16.mxu0 %v917_v47 }
  0x31   :  { %857 = vmatpush3.bf16.msra.mxu1 %v922_v51 }
  0x32   :  { %858 = vmatprep.subr.bf16.mxu1 %v933_v38 }
  0x33   :  { %830 = vmatpush3.bf16.msra.mxu0 %v918_v49 }
  0x34   :  { %831 = vmatprep.subr.bf16.mxu0 %v920_v50 }
  0x35   :  { %859 = vmatpush3.bf16.msra.mxu1 %v925_v54 }
  0x36   :  { %860 = vmatprep.subr.bf16.mxu1 %v933_v38 }
  0x37   :  { %832 = vmatpush3.bf16.msra.mxu0 %v921_v52 }
  0x38   :  { %833 = vmatprep.subr.bf16.mxu0 %v923_v53 }
  0x39   :  { %861 = vmatpush3.bf16.msra.mxu1 %v931_v58 }
  0x3b   :  { %834 = vmatpush3.bf16.msra.mxu0 %v924_v56 }
  0x3c   :  { %835 = vmatprep.subr.bf16.mxu0 %v926_v57  ;;  %863 = vmatmul.mubr.msk.bf16.vlgmr.msra.gmra.mrb[4].mxu1 %vm499_vm1, %v932_v60 }
  0x3f   :  { %836 = vmatpush3.bf16.msra.mxu0 %v927_v59 }
  0x42   :  { %618 = vmatmul.mubr.bf16.vlgmr.msra.gmra.mrb[4].mxu0 %v928_v61 }
  0xf5   :  { %v793_v62 = vpop.f32.mrb[0].mxu0 }
  0xf6   :  { %v794_v0 = vpop.f32.mrb[1].mxu0 }
  0xf7   :  { %v795_v1 = vadd.f32 %v794_v0, %v793_v62  ;;  %v796_v2 = vpop.f32.mrb[2].mxu0  ;;  %v815_v3 = vpop.f32.mrb[0].mxu1 }
  0xf8   :  { %v797_v4 = vpop.f32.mrb[3].mxu0  ;;  %v816_v7 = vpop.f32.mrb[1].mxu1 }
  0xf9   :  { %v538_v5 = vadd.f32 %v795_v1, %v706_v63  ;;  %v798_v6 = vadd.f32 %v797_v4, %v796_v2  ;;  %v817_v8 = vadd.f32 %v816_v7, %v815_v3  ;;  %v818_v9 = vpop.f32.mrb[2].mxu1 }
  0xfa   :  { %v819_v11 = vpop.f32.mrb[3].mxu1 }
  0xfb   :  { %v541_v10 = vadd.f32 %v798_v6, %v706_v63  ;;  %v579_v12 = vadd.f32 %v817_v8, %v538_v5  ;;  %v820_v13 = vadd.f32 %v819_v11, %v818_v9 }
  0xfd   :  { %v582_v14 = vadd.f32 %v820_v13, %v541_v10 }
 0x10f   :  { %v660_v15 = vpop.f32.mrb[4].mxu1 }
 0x110   :  { %v864_v16 = vpop.f32.mrb[5].mxu1 }
 0x111   :  { %v663_v17 = vpop.f32.mrb[6].mxu1 }
 0x112   :  { %v865_v19 = vpop.f32.mrb[7].mxu1 }
 0x115   :  { %v837_v18 = vpop.f32.mrb[4].mxu0 }
 0x116   :  { %v838_v20 = vpop.f32.mrb[5].mxu0 }
 0x117   :  { %v839_v21 = vadd.f32 %v838_v20, %v837_v18  ;;  %v840_v22 = vpop.f32.mrb[6].mxu0 }
 0x118   :  { %v841_v23 = vpop.f32.mrb[7].mxu0 }
 0x119   :  { %v620_v24 = vadd.f32 %v839_v21, %v579_v12  ;;  %v842_v25 = vadd.f32 %v841_v23, %v840_v22 }
 0x11b   :  { %v661_v26 = vadd.f32 %v660_v15, %v620_v24  ;;  %v623_v27 = vadd.f32 %v842_v25, %v582_v14 }
 0x11d   :  { %vm667_vm2 = vcmp.ge.f32.partialorder %v661_v26, 0.0  ;;  %v669_v28 = vmul.f32 0.01, %v661_v26  ;;  %v664_v29 = vadd.f32 %v663_v17, %v623_v27  ;;  %v775_v30 = vpack.c.bf16 %v661_v26, %v661_v26 }
 0x11f   :  { %v671_v31 = vsel %vm667_vm2, %v661_v26, %v669_v28  ;;  %vm668_vm3 = vcmp.ge.f32.partialorder %v664_v29, 0.0  ;;  %v670_v32 = vmul.f32 0.01, %v664_v29  ;;  %690 = vrot.lane.b32.xlu0 %v775_v30, %s935_s0  ;;  %v776_v35 = vpack.c.bf16 %v664_v29, %v664_v29 }
 0x120   :  { %v773_v33 = vpack.c.bf16 %v671_v31, %v671_v31 }
 0x121   :  { %v672_v34 = vsel %vm668_vm3, %v664_v29, %v670_v32 }
 0x122   :  { %v774_v36 = vpack.c.bf16 %v672_v34, %v672_v34  ;;  %682 = vst.msk [vmem:[%s1162_s3] sm:$0xf] %vm681_vm4, %v773_v33 }
 0x123   :  { %692 = vrot.lane.b32.xlu0 %v776_v35, %s935_s0 }
 0x124   :  { %683 = vst.msk [vmem:[%s1162_s3 + $0x4] sm:$0xf] %vm681_vm4, %v774_v36 }
 0x191   :  { %v691_v37 = vpop.permute.xlu0 %690 }
 0x192   :  { %696 = vst.msk [vmem:[%s1163_s4] sm:$0xf] %vm681_vm4, %v691_v37 }
 0x195   :  { %v693_v38 = vpop.permute.xlu0 %692 }
 0x196   :  { %697 = vst.msk [vmem:[%s1163_s4 + $0x4] sm:$0xf] %vm681_vm4, %v693_v38 }

// kernel: encoder_forward.19
= control target key start
LH: loop header
LB: loop body
LE: loop exit
PB: predicated region body
PF: predicated region fallthrough
CT: control target
= control target key end

     0   :  { %vm972_vm0 = vcmask 523264   ;;  %vm1283_vm2 = vcmask 519168   ;;  %s2100_s1 = inlined_call_operand.vmem [shape: bf16[1728,64], index: 1, kind: input, shape index: {}]   ;;  %s2101_s0 = inlined_call_operand.vmem [shape: bf16[16,1728], index: 0, kind: input, shape index: {}]   ;;  %s2102_s2 = inlined_call_operand.vmem [shape: f32[1,64], index: 2, kind: input, shape index: {}]   ;;  %s2103_s3 = inlined_call_operand.vmem [shape: bf16[16,64], index: 3, kind: input, shape index: {}]   ;;  %s2104_s4 = inlined_call_operand.vmem [shape: bf16[16,64], index: 4, kind: output, shape index: {}]  }
   0x1   :  { %v1555_v0 = vld [vmem:[%s2100_s1 + $0x40] sm:$0xff]   ;;  %v1557_v2 = vld [vmem:[%s2100_s1 + $0x48] sm:$0xff]   ;;  %v1559_v4 = vld [vmem:[%s2100_s1 + $0x50] sm:$0xff]  }
   0x2   :  { %v1556_v1 = vld [vmem:[%s2100_s1] sm:$0xff]   ;;  %1422 = vmatprep.subr.bf16.mxu1 %v1555_v0  ;;  %v1558_v3 = vld [vmem:[%s2100_s1 + $0x8] sm:$0xff]   ;;  %v1560_v5 = vld [vmem:[%s2100_s1 + $0x10] sm:$0xff]  }
   0x3   :  { %1423 = vmatpush3.bf16.msra.mxu1 %v1556_v1  ;;  %v1561_v6 = vld [vmem:[%s2100_s1 + $0x58] sm:$0xff]   ;;  %v1565_v8 = vld [vmem:[%s2100_s1 + $0x140] sm:$0xff]   ;;  %v1569_v12 = vld [vmem:[%s2100_s1 + $0x148] sm:$0xff]  }
   0x4   :  { %1424 = vmatprep.subr.bf16.mxu1 %v1557_v2  ;;  %v1562_v7 = vld [vmem:[%s2100_s1 + $0x18] sm:$0xff]   ;;  %v1566_v9 = vld [vmem:[%s2100_s1 + $0x100] sm:$0xff]   ;;  %1466 = vmatprep.subr.bf16.mxu0 %v1565_v8  ;;  %v1570_v13 = vld [vmem:[%s2100_s1 + $0x108] sm:$0xff]  }
   0x5   :  { %v1563_v10 = vld [vmem:[%s2100_s1 + $0x60] sm:$0xff]   ;;  %1467 = vmatpush3.bf16.msra.mxu0 %v1566_v9  ;;  %v1567_v14 = vld [vmem:[%s2100_s1 + $0x68] sm:$0xff]   ;;  %v1573_v16 = vld [vmem:[%s2100_s1 + $0x150] sm:$0xff]  }
   0x6   :  { %v1564_v11 = vld [vmem:[%s2100_s1 + $0x20] sm:$0xff]   ;;  %1468 = vmatprep.subr.bf16.mxu0 %v1569_v12  ;;  %v1568_v15 = vld [vmem:[%s2100_s1 + $0x28] sm:$0xff]   ;;  %v1574_v17 = vld [vmem:[%s2100_s1 + $0x110] sm:$0xff]  }
   0x7   :  { %1425 = vmatpush3.bf16.msra.mxu1 %v1558_v3  ;;  %v1571_v18 = vld [vmem:[%s2100_s1 + $0x70] sm:$0xff]   ;;  %v1577_v20 = vld [vmem:[%s2100_s1 + $0x158] sm:$0xff]   ;;  %v1582_v25 = vld [vmem:[%s2100_s1 + $0xc0] sm:$0xff]  }
   0x8   :  { %1426 = vmatprep.subr.bf16.mxu1 %v1559_v4  ;;  %v1572_v19 = vld [vmem:[%s2100_s1 + $0x30] sm:$0xff]   ;;  %v1575_v21 = vld [vmem:[%s2100_s1 + $0x78] sm:$0xff]   ;;  %v1584_v27 = vld [vmem:[%s2100_s1 + $0x160] sm:$0xff]  }
   0x9   :  { %1469 = vmatpush3.bf16.msra.mxu0 %v1570_v13  ;;  %v1580_v22 = vld [vmem:[%s2101_s0 + $0x4] ss:$56 sps:$4 sm:$0xff]   ;;  %v1578_v26 = vld [vmem:[%s2101_s0] ss:$56 sps:$4 sm:$0xff]   ;;  %v1586_v30 = vld [vmem:[%s2100_s1 + $0xc8] sm:$0xff]  }
   0xa   :  { %1470 = vmatprep.subr.bf16.mxu0 %v1573_v16  ;;  %v1581_v23 = vld [vmem:[%s2100_s1 + $0x118] sm:$0xff]   ;;  %1008 = vmatprep.mubr.bf16.mxu1 %v1580_v22  ;;  %v1585_v28 = vld [vmem:[%s2100_s1 + $0x120] sm:$0xff]   ;;  %v1588_v31 = vld [vmem:[%s2100_s1 + $0x168] sm:$0xff]  }
   0xb   :  { %1427 = vmatpush3.bf16.msra.mxu1 %v1560_v5  ;;  %v1576_v24 = vld [vmem:[%s2100_s1 + $0x38] sm:$0xff]   ;;  %v1583_v29 = vld [vmem:[%s2100_s1 + $0x80] sm:$0xff]   ;;  %v1589_v32 = vld [vmem:[%s2100_s1 + $0x128] sm:$0xff]  }
   0xc   :  { %1428 = vmatprep.subr.bf16.mxu1 %v1561_v6  ;;  %v1587_v33 = vld [vmem:[%s2100_s1 + $0x88] sm:$0xff]   ;;  %v1590_v34 = vld [vmem:[%s2100_s1 + $0xd0] sm:$0xff]   ;;  %v1594_v38 = vld [vmem:[%s2100_s1 + $0xd8] sm:$0xff]  }
   0xd   :  { %1471 = vmatpush3.bf16.msra.mxu0 %v1574_v17  ;;  %v1592_v35 = vld [vmem:[%s2100_s1 + $0x170] sm:$0xff]   ;;  %v1596_v39 = vld [vmem:[%s2100_s1 + $0x178] sm:$0xff]   ;;  %v1598_v42 = vld [vmem:[%s2100_s1 + $0xe0] sm:$0xff]   ;;  %v1684_v17 = vmov 0  }
   0xe   :  { %1472 = vmatprep.subr.bf16.mxu0 %v1577_v20  ;;  %v1593_v36 = vld [vmem:[%s2100_s1 + $0x130] sm:$0xff]   ;;  %v1597_v40 = vld [vmem:[%s2100_s1 + $0x138] sm:$0xff]   ;;  %v1603_v45 = vld [vmem:[%s2100_s1 + $0x240] sm:$0xff]  }
   0xf   :  { %1429 = vmatpush3.bf16.msra.mxu1 %v1562_v7  ;;  %v1591_v37 = vld [vmem:[%s2100_s1 + $0x90] sm:$0xff]   ;;  %v1595_v41 = vld [vmem:[%s2100_s1 + $0x98] sm:$0xff]   ;;  %v1604_v46 = vld [vmem:[%s2100_s1 + $0x200] sm:$0xff]  }
  0x10   :  { %1430 = vmatprep.subr.bf16.mxu1 %v1563_v10  ;;  %v1600_v43 = vld [vmem:[%s2101_s0 + $0x10] ss:$56 sps:$4 sm:$0xff]   ;;  %v1602_v44 = vld [vmem:[%s2101_s0 + $0x14] ss:$56 sps:$4 sm:$0xff]   ;;  %v1599_v47 = vld [vmem:[%s2100_s1 + $0xa0] sm:$0xff]  }
  0x11   :  { %1473 = vmatpush3.bf16.msra.mxu0 %v1581_v23  ;;  %1090 = vmatprep.mubr.bf16.mxu0 %v1602_v44  ;;  %v1605_v48 = vld [vmem:[%s2100_s1 + $0xe8] sm:$0xff]   ;;  %v1609_v52 = vld [vmem:[%s2100_s1 + $0xf0] sm:$0xff]   ;;  %v1613_v56 = vld [vmem:[%s2100_s1 + $0xf8] sm:$0xff]  }
  0x12   :  { %1474 = vmatprep.subr.bf16.mxu0 %v1584_v27  ;;  %v1607_v49 = vld [vmem:[%s2100_s1 + $0x248] sm:$0xff]   ;;  %v1611_v53 = vld [vmem:[%s2100_s1 + $0x250] sm:$0xff]   ;;  %v1615_v57 = vld [vmem:[%s2100_s1 + $0x258] sm:$0xff]  }
  0x13   :  { %1431 = vmatpush3.bf16.msra.mxu1 %v1564_v11  ;;  %v1608_v50 = vld [vmem:[%s2100_s1 + $0x208] sm:$0xff]   ;;  %v1612_v54 = vld [vmem:[%s2100_s1 + $0x210] sm:$0xff]   ;;  %v1614_v58 = vld [vmem:[%s2100_s1 + $0xb8] sm:$0xff]  }
  0x14   :  { %1432 = vmatprep.subr.bf16.mxu1 %v1567_v14  ;;  %v1606_v51 = vld [vmem:[%s2100_s1 + $0xa8] sm:$0xff]   ;;  %v1610_v55 = vld [vmem:[%s2100_s1 + $0xb0] sm:$0xff]   ;;  %v1619_v60 = vld [vmem:[%s2100_s1 + $0x218] sm:$0xff]  }
  0x15   :  { %1475 = vmatpush3.bf16.msra.mxu0 %v1585_v28  ;;  %v1618_v59 = vld [vmem:[%s2101_s0 + $0xc] ss:$56 sps:$4 sm:$0xff]   ;;  %v1616_v61 = vld [vmem:[%s2101_s0 + $0x8] ss:$56 sps:$4 sm:$0xff]   ;;  %v1628_v6 = vld [vmem:[%s2100_s1 + $0x1d0] sm:$0xff]  }
  0x16   :  { %1476 = vmatprep.subr.bf16.mxu0 %v1588_v31  ;;  %v1620_v62 = vld [vmem:[%s2100_s1 + $0x1c0] sm:$0xff]   ;;  %v1624_v2 = vld [vmem:[%s2100_s1 + $0x1c8] sm:$0xff]   ;;  %v1629_v7 = vld [vmem:[%s2100_s1 + $0x190] sm:$0xff]  }
  0x17   :  { %1433 = vmatpush3.bf16.msra.mxu1 %v1568_v15  ;;  %v1621_v63 = vld [vmem:[%s2100_s1 + $0x180] sm:$0xff]   ;;  %v1625_v3 = vld [vmem:[%s2100_s1 + $0x188] sm:$0xff]   ;;  %v1630_v8 = vld [vmem:[%s2100_s1 + $0x270] sm:$0xff]  }
  0x18   :  { %1434 = vmatprep.subr.bf16.mxu1 %v1571_v18  ;;  %v1622_v0 = vld [vmem:[%s2100_s1 + $0x260] sm:$0xff]   ;;  %v1626_v4 = vld [vmem:[%s2100_s1 + $0x268] sm:$0xff]   ;;  %v1631_v9 = vld [vmem:[%s2100_s1 + $0x230] sm:$0xff]  }
  0x19   :  { %1477 = vmatpush3.bf16.msra.mxu0 %v1589_v32  ;;  %v1623_v1 = vld [vmem:[%s2100_s1 + $0x220] sm:$0xff]   ;;  %v1627_v5 = vld [vmem:[%s2100_s1 + $0x228] sm:$0xff]   ;;  %v1632_v10 = vld [vmem:[%s2100_s1 + $0x1d8] sm:$0xff]  }
  0x1a   :  { %1478 = vmatprep.subr.bf16.mxu0 %v1592_v35  ;;  %v1633_v11 = vld [vmem:[%s2100_s1 + $0x198] sm:$0xff]   ;;  %v1636_v14 = vld [vmem:[%s2100_s1 + $0x1e0] sm:$0xff]   ;;  %v1642_v20 = vld [vmem:[%s2100_s1 + $0x1e8] sm:$0xff]  }
  0x1b   :  { %1435 = vmatpush3.bf16.msra.mxu1 %v1572_v19  ;;  %v1634_v12 = vld [vmem:[%s2100_s1 + $0x278] sm:$0xff]   ;;  %v1637_v15 = vld [vmem:[%s2100_s1 + $0x1a0] sm:$0xff]   ;;  %v1644_v22 = vld [vmem:[%s2100_s1 + $0x308] sm:$0xff]  }
  0x1c   :  { %1436 = vmatprep.subr.bf16.mxu1 %v1575_v21  ;;  %v1635_v13 = vld [vmem:[%s2100_s1 + $0x238] sm:$0xff]   ;;  %v1641_v19 = vld [vmem:[%s2100_s1 + $0x300] sm:$0xff]   ;;  %v1643_v21 = vld [vmem:[%s2100_s1 + $0x1a8] sm:$0xff]  }
  0x1d   :  { %1479 = vmatpush3.bf16.msra.mxu0 %v1593_v36  ;;  %v1638_v16 = vld [vmem:[%s2101_s0 + $0x20] ss:$56 sps:$4 sm:$0xff]   ;;  %v1640_v18 = vld [vmem:[%s2101_s0 + $0x24] ss:$56 sps:$4 sm:$0xff]   ;;  %v1645_v23 = vld [vmem:[%s2100_s1 + $0x1f0] sm:$0xff]  }
  0x1e   :  { %1480 = vmatprep.subr.bf16.mxu0 %v1596_v39  ;;  %v1652_v27 = vld [vmem:[%s2101_s0 + $0x1c] ss:$56 sps:$4 sm:$0xff]   ;;  %v1650_v31 = vld [vmem:[%s2101_s0 + $0x18] ss:$56 sps:$4 sm:$0xff]   ;;  %v1655_v32 = vld [vmem:[%s2100_s1 + $0x280] sm:$0xff]  }
  0x1f   :  { %1437 = vmatpush3.bf16.msra.mxu1 %v1576_v24  ;;  %v1646_v24 = vld [vmem:[%s2100_s1 + $0x1b0] sm:$0xff]   ;;  %v1649_v28 = vld [vmem:[%s2100_s1 + $0x1b8] sm:$0xff]   ;;  %v1658_v35 = vld [vmem:[%s2100_s1 + $0x288] sm:$0xff]  }
  0x20   :  { %1444 = vmatprep.subr.bf16.mxu1 %v1582_v25  ;;  %v1647_v25 = vld [vmem:[%s2100_s1 + $0x310] sm:$0xff]   ;;  %v1659_v36 = vld [vmem:[%s2100_s1 + $0x328] sm:$0xff]   ;;  %v1667_v44 = vld [vmem:[%s2100_s1 + $0x2a0] sm:$0xff]  }
  0x21   :  { %1481 = vmatpush3.bf16.msra.mxu0 %v1597_v40  ;;  %v1662_v39 = vld [vmem:[%s2100_s1 + $0x330] sm:$0xff]   ;;  %v1663_v40 = vld [vmem:[%s2100_s1 + $0x2d8] sm:$0xff]  }
  0x22   :  { %1009 = vmatmul.mubr.bf16.vlgmr.msra.gmra.mrb[0].mxu1 %v1578_v26  ;;  %1510 = vmatprep.subr.bf16.mxu0 %v1603_v45  ;;  %v1648_v26 = vld [vmem:[%s2100_s1 + $0x1f8] sm:$0xff]   ;;  %v1668_v45 = vld [vmem:[%s2100_s1 + $0x340] sm:$0xff]  }
  0x23   :  { %1445 = vmatpush3.bf16.msra.mxu1 %v1583_v29  ;;  %1049 = vmatprep.mubr.bf16.mxu1 %v1618_v59  ;;  %v1653_v29 = vld [vmem:[%s2100_s1 + $0x318] sm:$0xff]  }
  0x24   :  { %1446 = vmatprep.subr.bf16.mxu1 %v1586_v30  ;;  %1091 = vmatmul.mubr.bf16.vlgmr.msra.gmra.mrb[0].mxu0 %v1600_v43  ;;  %v1654_v30 = vld [vmem:[%s2100_s1 + $0x2c0] sm:$0xff]  }
  0x25   :  { %1511 = vmatpush3.bf16.msra.mxu0 %v1604_v46  ;;  %1172 = vmatprep.mubr.bf16.mxu0 %v1640_v18  ;;  %v1666_v43 = vld [vmem:[%s2100_s1 + $0x2e0] sm:$0xff]   ;;  %v1669_v46 = vld [vmem:[%s2100_s1 + $0x2e8] sm:$0xff]  }
  0x26   :  { %1512 = vmatprep.subr.bf16.mxu0 %v1607_v49  ;;  %v1679_v49 = vld [vmem:[%s2101_s0 + $0x2c] ss:$56 sps:$4 sm:$0xff]  }
  0x27   :  { %1447 = vmatpush3.bf16.msra.mxu1 %v1587_v33  ;;  %v1656_v33 = vld [vmem:[%s2100_s1 + $0x320] sm:$0xff]  }
  0x28   :  { %1448 = vmatprep.subr.bf16.mxu1 %v1590_v34  ;;  %v1657_v34 = vld [vmem:[%s2100_s1 + $0x2c8] sm:$0xff]  }
  0x29   :  { %1513 = vmatpush3.bf16.msra.mxu0 %v1608_v50  ;;  %v1672_v50 = vld [vmem:[%s2100_s1 + $0x2f0] sm:$0xff]  }
  0x2a   :  { %1514 = vmatprep.subr.bf16.mxu0 %v1611_v53  ;;  %v1674_v53 = vld [vmem:[%s2100_s1 + $0x350] sm:$0xff]  }
  0x2b   :  { %1449 = vmatpush3.bf16.msra.mxu1 %v1591_v37  ;;  %v1660_v37 = vld [vmem:[%s2100_s1 + $0x2d0] sm:$0xff]  }
  0x2c   :  { %1450 = vmatprep.subr.bf16.mxu1 %v1594_v38  ;;  %v1661_v38 = vld [vmem:[%s2100_s1 + $0x290] sm:$0xff]  }
  0x2d   :  { %1515 = vmatpush3.bf16.msra.mxu0 %v1612_v54  ;;  %v1675_v54 = vld [vmem:[%s2100_s1 + $0x2f8] sm:$0xff]  }
  0x2e   :  { %1516 = vmatprep.subr.bf16.mxu0 %v1615_v57  ;;  %v1677_v57 = vld [vmem:[%s2101_s0 + $0x28] ss:$56 sps:$4 sm:$0xff]  }
  0x2f   :  { %1451 = vmatpush3.bf16.msra.mxu1 %v1595_v41  ;;  %v1664_v41 = vld [vmem:[%s2100_s1 + $0x298] sm:$0xff]  }
  0x30   :  { %1452 = vmatprep.subr.bf16.mxu1 %v1598_v42  ;;  %v1665_v42 = vld [vmem:[%s2100_s1 + $0x338] sm:$0xff]  }
  0x31   :  { %1517 = vmatpush3.bf16.msra.mxu0 %v1619_v60 }
  0x32   :  { %1518 = vmatprep.subr.bf16.mxu0 %v1622_v0 }
  0x33   :  { %1453 = vmatpush3.bf16.msra.mxu1 %v1599_v47  ;;  %v1670_v47 = vld [vmem:[%s2100_s1 + $0x2a8] sm:$0xff]  }
  0x34   :  { %1454 = vmatprep.subr.bf16.mxu1 %v1605_v48  ;;  %v1671_v48 = vld [vmem:[%s2100_s1 + $0x348] sm:$0xff]  }
  0x35   :  { %1519 = vmatpush3.bf16.msra.mxu0 %v1623_v1 }
  0x36   :  { %1520 = vmatprep.subr.bf16.mxu0 %v1626_v4 }
  0x37   :  { %1455 = vmatpush3.bf16.msra.mxu1 %v1606_v51  ;;  %v1681_v51 = vld [vmem:[%s2101_s0 + $0x34] ss:$56 sps:$4 sm:$0xff]  }
  0x38   :  { %1456 = vmatprep.subr.bf16.mxu1 %v1609_v52  ;;  %v1673_v52 = vld [vmem:[%s2100_s1 + $0x2b0] sm:$0xff]  }
  0x39   :  { %1521 = vmatpush3.bf16.msra.mxu0 %v1627_v5 }
  0x3a   :  { %1522 = vmatprep.subr.bf16.mxu0 %v1630_v8 }
  0x3b   :  { %1457 = vmatpush3.bf16.msra.mxu1 %v1610_v55  ;;  %v1676_v55 = vld [vmem:[%s2100_s1 + $0x2b8] sm:$0xff]  }
  0x3c   :  { %1458 = vmatprep.subr.bf16.mxu1 %v1613_v56  ;;  %v1680_v56 = vld [vmem:[%s2100_s1 + $0x358] sm:$0xff]  }
  0x3d   :  { %1523 = vmatpush3.bf16.msra.mxu0 %v1631_v9 }
  0x3e   :  { %1524 = vmatprep.subr.bf16.mxu0 %v1634_v12 }
  0x3f   :  { %1459 = vmatpush3.bf16.msra.mxu1 %v1614_v58  ;;  %v1683_v58 = vld [vmem:[%s2101_s0 + $0x30] ss:$56 sps:$4 sm:$0xff]  }
  0x40   :  { %1488 = vmatprep.subr.bf16.mxu1 %v1620_v62 }
  0x41   :  { %1525 = vmatpush3.bf16.msra.mxu0 %v1635_v13 }
  0x42   :  { %1050 = vmatmul.mubr.bf16.vlgmr.msra.gmra.mrb[4].mxu1 %v1616_v61  ;;  %1222 = vmatprep.subr.bf16.mxu0 %v1684_v17 }
  0x43   :  { %1489 = vmatpush3.bf16.msra.mxu1 %v1621_v63  ;;  %1131 = vmatprep.mubr.bf16.mxu1 %v1652_v27 }
  0x44   :  { %1490 = vmatprep.subr.bf16.mxu1 %v1624_v2  ;;  %1173 = vmatmul.mubr.bf16.vlgmr.msra.gmra.mrb[4].mxu0 %v1638_v16 }
  0x45   :  { %1223 = vmatpush1.bf16.msra.mxu0 %v1641_v19  ;;  %1413 = vmatprep.mubr.msk.bf16.mxu0 %vm972_vm0, %v1681_v51 }
  0x46   :  { %1224 = vmatprep.subr.bf16.mxu0 %v1684_v17 }
  0x47   :  { %1491 = vmatpush3.bf16.msra.mxu1 %v1625_v3 }
  0x48   :  { %1492 = vmatprep.subr.bf16.mxu1 %v1628_v6 }
  0x49   :  { %1225 = vmatpush1.bf16.msra.mxu0 %v1644_v22 }
  0x4a   :  { %1226 = vmatprep.subr.bf16.mxu0 %v1684_v17 }
  0x4b   :  { %1493 = vmatpush3.bf16.msra.mxu1 %v1629_v7  ;;  %v1290_v7 = vld [vmem:[%s2102_s2] ss:$0 sm:$0xff] }
  0x4c   :  { %1494 = vmatprep.subr.bf16.mxu1 %v1632_v10 }
  0x4d   :  { %1227 = vmatpush1.bf16.msra.mxu0 %v1647_v25 }
  0x4e   :  { %1228 = vmatprep.subr.bf16.mxu0 %v1684_v17 }
  0x4f   :  { %1495 = vmatpush3.bf16.msra.mxu1 %v1633_v11 }
  0x50   :  { %1496 = vmatprep.subr.bf16.mxu1 %v1636_v14 }
  0x51   :  { %1229 = vmatpush1.bf16.msra.mxu0 %v1653_v29 }
  0x52   :  { %1230 = vmatprep.subr.bf16.mxu0 %v1684_v17 }
  0x53   :  { %1497 = vmatpush3.bf16.msra.mxu1 %v1637_v15 }
  0x54   :  { %1498 = vmatprep.subr.bf16.mxu1 %v1642_v20 }
  0x55   :  { %1231 = vmatpush1.bf16.msra.mxu0 %v1656_v33 }
  0x56   :  { %1232 = vmatprep.subr.bf16.mxu0 %v1684_v17 }
  0x57   :  { %1499 = vmatpush3.bf16.msra.mxu1 %v1643_v21 }
  0x58   :  { %1500 = vmatprep.subr.bf16.mxu1 %v1645_v23 }
  0x59   :  { %1233 = vmatpush1.bf16.msra.mxu0 %v1659_v36 }
  0x5a   :  { %1234 = vmatprep.subr.bf16.mxu0 %v1684_v17 }
  0x5b   :  { %1501 = vmatpush3.bf16.msra.mxu1 %v1646_v24 }
  0x5c   :  { %1502 = vmatprep.subr.bf16.mxu1 %v1648_v26 }
  0x5d   :  { %1235 = vmatpush1.bf16.msra.mxu0 %v1662_v39  ;;  %v1419_v39 = vld [vmem:[%s2103_s3] sm:$0xff]  }
  0x5e   :  { %1236 = vmatprep.subr.bf16.mxu0 %v1684_v17  ;;  %v1421_v51 = vunpack.c.h.bf16 %v1419_v39 }
  0x5f   :  { %1503 = vmatpush3.bf16.msra.mxu1 %v1649_v28 }
  0x60   :  { %1532 = vmatprep.subr.bf16.mxu1 %v1654_v30 }
  0x61   :  { %1237 = vmatpush1.bf16.msra.mxu0 %v1665_v42 }
  0x62   :  { %1132 = vmatmul.mubr.bf16.vlgmr.msra.gmra.mrb[8].mxu1 %v1650_v31  ;;  %1238 = vmatprep.subr.bf16.mxu0 %v1684_v17 }
  0x63   :  { %1533 = vmatpush3.bf16.msra.mxu1 %v1655_v32  ;;  %1213 = vmatprep.mubr.bf16.mxu1 %v1679_v49 }
  0x64   :  { %1534 = vmatprep.subr.bf16.mxu1 %v1657_v34 }
  0x65   :  { %1239 = vmatpush1.bf16.msra.mxu0 %v1668_v45 }
  0x66   :  { %1240 = vmatprep.subr.bf16.mxu0 %v1684_v17 }
  0x67   :  { %1535 = vmatpush3.bf16.msra.mxu1 %v1658_v35 }
  0x68   :  { %1536 = vmatprep.subr.bf16.mxu1 %v1660_v37 }
  0x69   :  { %1241 = vmatpush1.bf16.msra.mxu0 %v1671_v48 }
  0x6a   :  { %1242 = vmatprep.subr.bf16.mxu0 %v1684_v17 }
  0x6b   :  { %1537 = vmatpush3.bf16.msra.mxu1 %v1661_v38 }
  0x6c   :  { %1538 = vmatprep.subr.bf16.mxu1 %v1663_v40 }
  0x6d   :  { %1243 = vmatpush1.bf16.msra.mxu0 %v1674_v53 }
  0x6e   :  { %1244 = vmatprep.subr.bf16.mxu0 %v1684_v17 }
  0x6f   :  { %1539 = vmatpush3.bf16.msra.mxu1 %v1664_v41 }
  0x70   :  { %1540 = vmatprep.subr.bf16.mxu1 %v1666_v43 }
  0x71   :  { %1245 = vmatpush1.bf16.msra.mxu0 %v1680_v56 }
  0x73   :  { %1541 = vmatpush3.bf16.msra.mxu1 %v1667_v44 }
  0x74   :  { %1542 = vmatprep.subr.bf16.mxu1 %v1669_v46  ;;  %1255 = vmatmul.mubr.bf16.vlgmr.msra.gmra.mrb[8].mxu0 %v1683_v58 }
  0x77   :  { %1543 = vmatpush3.bf16.msra.mxu1 %v1670_v47  ;;  %v1420_v47 = vunpack.c.l.bf16 %v1419_v39 }
  0x78   :  { %1544 = vmatprep.subr.bf16.mxu1 %v1672_v50 }
  0x7b   :  { %1545 = vmatpush3.bf16.msra.mxu1 %v1673_v52 }
  0x7c   :  { %1546 = vmatprep.subr.bf16.mxu1 %v1675_v54 }
  0x7f   :  { %1547 = vmatpush3.bf16.msra.mxu1 %v1676_v55 }
  0x82   :  { %1214 = vmatmul.mubr.bf16.vlgmr.msra.gmra.mrb[12].mxu1 %v1677_v57 }
  0xf5   :  { %v1438_v59 = vpop.f32.mrb[0].mxu1 }
  0xf6   :  { %v1439_v60 = vpop.f32.mrb[1].mxu1 }
  0xf7   :  { %v1440_v61 = vadd.f32 %v1439_v60, %v1438_v59  ;;  %v1441_v62 = vpop.f32.mrb[2].mxu1  ;;  %v1482_v1 = vpop.f32.mrb[0].mxu0 }
  0xf8   :  { %v1442_v63 = vpop.f32.mrb[3].mxu1  ;;  %v1483_v2 = vpop.f32.mrb[1].mxu0 }
  0xf9   :  { %v1443_v0 = vadd.f32 %v1442_v63, %v1441_v62  ;;  %v1484_v3 = vadd.f32 %v1483_v2, %v1482_v1  ;;  %v1485_v4 = vpop.f32.mrb[2].mxu0  ;;  %v1011_v10 = vadd.f32 %v1440_v61, %v1290_v7 }
  0xfa   :  { %v1486_v5 = vpop.f32.mrb[3].mxu0 }
  0xfb   :  { %v1487_v6 = vadd.f32 %v1486_v5, %v1485_v4  ;;  %v1014_v14 = vadd.f32 %v1443_v0, %v1290_v7 }
 0x115   :  { %v1460_v8 = vpop.f32.mrb[4].mxu1 }
 0x116   :  { %v1461_v9 = vpop.f32.mrb[5].mxu1 }
 0x117   :  { %v1462_v11 = vadd.f32 %v1461_v9, %v1460_v8  ;;  %v1463_v12 = vpop.f32.mrb[6].mxu1  ;;  %v1526_v20 = vpop.f32.mrb[4].mxu0 }
 0x118   :  { %v1464_v13 = vpop.f32.mrb[7].mxu1  ;;  %v1527_v21 = vpop.f32.mrb[5].mxu0 }
 0x119   :  { %v1052_v15 = vadd.f32 %v1462_v11, %v1011_v10  ;;  %v1465_v16 = vadd.f32 %v1464_v13, %v1463_v12  ;;  %v1528_v22 = vadd.f32 %v1527_v21, %v1526_v20  ;;  %v1529_v23 = vpop.f32.mrb[6].mxu0 }
 0x11a   :  { %v1530_v24 = vpop.f32.mrb[7].mxu0 }
 0x11b   :  { %v1055_v17 = vadd.f32 %v1465_v16, %v1014_v14  ;;  %v1093_v18 = vadd.f32 %v1484_v3, %v1052_v15  ;;  %v1531_v25 = vadd.f32 %v1530_v24, %v1529_v23 }
 0x11d   :  { %v1096_v19 = vadd.f32 %v1487_v6, %v1055_v17 }
 0x135   :  { %v1504_v26 = vpop.f32.mrb[8].mxu1 }
 0x136   :  { %v1505_v27 = vpop.f32.mrb[9].mxu1 }
 0x137   :  { %v1506_v28 = vadd.f32 %v1505_v27, %v1504_v26  ;;  %v1507_v29 = vpop.f32.mrb[10].mxu1 }
 0x138   :  { %v1508_v30 = vpop.f32.mrb[11].mxu1 }
 0x139   :  { %v1134_v31 = vadd.f32 %v1506_v28, %v1093_v18  ;;  %v1509_v32 = vadd.f32 %v1508_v30, %v1507_v29 }
 0x13b   :  { %v1137_v33 = vadd.f32 %v1509_v32, %v1096_v19  ;;  %v1175_v34 = vadd.f32 %v1528_v22, %v1134_v31 }
 0x13d   :  { %v1178_v35 = vadd.f32 %v1531_v25, %v1137_v33 }
 0x147   :  { %v1256_v37 = vpop.f32.mrb[8].mxu0 }
 0x148   :  { %v1258_v40 = vpop.f32.mrb[9].mxu0 }
 0x149   :  { %v1259_v43 = vpop.f32.mrb[10].mxu0 }
 0x14a   :  { %v1261_v45 = vpop.f32.mrb[11].mxu0 }
 0x155   :  { %v1548_v36 = vpop.f32.mrb[12].mxu1 }
 0x156   :  { %v1549_v38 = vpop.f32.mrb[13].mxu1 }
 0x157   :  { %v1550_v41 = vadd.f32 %v1549_v38, %v1548_v36  ;;  %v1551_v42 = vpop.f32.mrb[14].mxu1 }
 0x158   :  { %v1552_v44 = vpop.f32.mrb[15].mxu1 }
 0x159   :  { %v1216_v46 = vadd.f32 %v1550_v41, %v1175_v34  ;;  %v1553_v48 = vadd.f32 %v1552_v44, %v1551_v42 }
 0x15b   :  { %v1257_v49 = vadd.f32 %v1256_v37, %v1216_v46  ;;  %v1219_v50 = vadd.f32 %v1553_v48, %v1178_v35 }
 0x15d   :  { %v1267_v52 = vadd.f32 %v1420_v47, %v1257_v49  ;;  %v1260_v53 = vadd.f32 %v1259_v43, %v1219_v50 }
 0x15f   :  { %vm1269_vm1 = vcmp.ge.f32.partialorder %v1267_v52, 0.0  ;;  %v1271_v54 = vmul.f32 0.01, %v1267_v52  ;;  %v1268_v55 = vadd.f32 %v1421_v51, %v1260_v53 }
 0x161   :  { %v1273_v56 = vsel %vm1269_vm1, %v1267_v52, %v1271_v54  ;;  %vm1270_vm3 = vcmp.ge.f32.partialorder %v1268_v55, 0.0  ;;  %v1272_v57 = vmul.f32 0.01, %v1268_v55 }
 0x162   :  { %v1416_v58 = vpack.c.bf16 %v1273_v56, %v1273_v56 }
 0x163   :  { %v1274_v59 = vsel %vm1270_vm3, %v1268_v55, %v1272_v57 }
 0x164   :  { %1284 = vst.msk [vmem:[%s2104_s4] sm:$0xf] %vm1283_vm2, %v1416_v58  ;;  %v1417_v60 = vpack.c.bf16 %v1274_v59, %v1274_v59 }
 0x166   :  { %1285 = vst.msk [vmem:[%s2104_s4 + $0x4] sm:$0xf] %vm1283_vm2, %v1417_v60 }

// kernel: encoder_forward.21
= control target key start
LH: loop header
LB: loop body
LE: loop exit
PB: predicated region body
PF: predicated region fallthrough
CT: control target
= control target key end

     0   :  { %v790_v2 = vmov 0   ;;  %vm141_vm0 = vcmask 523264   ;;  %s987_s0 = inlined_call_operand.vmem [shape: bf16[2,64], index: 0, kind: input, shape index: {}]   ;;  %s988_s1 = inlined_call_operand.vmem [shape: bf16[64,512], index: 1, kind: input, shape index: {}]   ;;  %s989_s2 = inlined_call_operand.vmem [shape: f32[1,512], index: 2, kind: input, shape index: {}]   ;;  %s990_s3 = inlined_call_operand.vmem [shape: bf16[512,64], index: 3, kind: input, shape index: {}]   ;;  %s991_s4 = inlined_call_operand.vmem [shape: f32[1,64], index: 4, kind: input, shape index: {}]   ;;  %s992_s5 = inlined_call_operand.hbm [shape: f32[2,64], index: 5, kind: output, shape index: {}]  }
   0x1   :  { %v698_v0 = vld [vmem:[%s988_s1 + $0x4] ss:$16 sps:$4 sm:$0xff]   ;;  %v700_v1 = vld [vmem:[%s988_s1 + $0xc] ss:$16 sps:$4 sm:$0xff]   ;;  %177 = vmatprep.mubr.bf16.mxu0 %v790_v2  ;;  %218 = vmatprep.mubr.bf16.mxu1 %v790_v2  ;;  %v702_v3 = vld [vmem:[%s988_s1] ss:$16 sps:$4 sm:$0xff]  }
   0x2   :  { %145 = vmatprep.subr.bf16.mxu0 %v698_v0  ;;  %v703_v4 = vld [vmem:[%s988_s1 + $0x8] ss:$16 sps:$4 sm:$0xff]   ;;  %186 = vmatprep.subr.bf16.mxu1 %v700_v1  ;;  %v704_v5 = vld [vmem:[%s988_s1 + $0x24] ss:$16 sps:$4 sm:$0xff]   ;;  %v706_v6 = vld [vmem:[%s988_s1 + $0x2c] ss:$16 sps:$4 sm:$0xff]  }
   0x3   :  { %146 = vmatpush1.bf16.msra.mxu0 %v702_v3  ;;  %187 = vmatpush1.bf16.msra.mxu1 %v703_v4  ;;  %v708_v7 = vld [vmem:[%s988_s1 + $0x20] ss:$16 sps:$4 sm:$0xff]   ;;  %v709_v8 = vld [vmem:[%s988_s1 + $0x28] ss:$16 sps:$4 sm:$0xff]   ;;  %v710_v9 = vld [vmem:[%s988_s1 + $0x44] ss:$16 sps:$4 sm:$0xff]  }
   0x4   :  { %147 = vmatprep.subr.bf16.mxu0 %v704_v5  ;;  %188 = vmatprep.subr.bf16.mxu1 %v706_v6  ;;  %v712_v10 = vld [vmem:[%s988_s1 + $0x4c] ss:$16 sps:$4 sm:$0xff]   ;;  %v714_v11 = vld [vmem:[%s988_s1 + $0x40] ss:$16 sps:$4 sm:$0xff]   ;;  %v715_v12 = vld [vmem:[%s988_s1 + $0x48] ss:$16 sps:$4 sm:$0xff]  }
   0x5   :  { %v716_v13 = vld [vmem:[%s988_s1 + $0x64] ss:$16 sps:$4 sm:$0xff]   ;;  %v718_v14 = vld [vmem:[%s988_s1 + $0x6c] ss:$16 sps:$4 sm:$0xff]   ;;  %v720_v15 = vld [vmem:[%s988_s1 + $0x60] ss:$16 sps:$4 sm:$0xff]  }
   0x6   :  { %v721_v16 = vld [vmem:[%s988_s1 + $0x68] ss:$16 sps:$4 sm:$0xff]   ;;  %v722_v17 = vld [vmem:[%s990_s3 + $0x40] sm:$0xff]   ;;  %v730_v26 = vld [vmem:[%s990_s3 + $0x50] sm:$0xff]  }
   0x7   :  { %148 = vmatpush1.bf16.msra.mxu0 %v708_v7  ;;  %189 = vmatpush1.bf16.msra.mxu1 %v709_v8  ;;  %v723_v18 = vld [vmem:[%s990_s3 + $0xc0] sm:$0xff]   ;;  %v726_v22 = vld [vmem:[%s990_s3 + $0x48] sm:$0xff]   ;;  %v731_v27 = vld [vmem:[%s990_s3 + $0xd0] sm:$0xff]  }
   0x8   :  { %149 = vmatprep.subr.bf16.mxu0 %v710_v9  ;;  %190 = vmatprep.subr.bf16.mxu1 %v712_v10  ;;  %v22_v19 = vld [vmem:[%s987_s0] sm:$0x1]  ;;  %v727_v23 = vld [vmem:[%s990_s3 + $0xc8] sm:$0xff]   ;;  %v732_v28 = vld [vmem:[%s990_s3 + $0x10] sm:$0xff]  }
   0x9   :  { %v724_v20 = vld [vmem:[%s990_s3] sm:$0xff]   ;;  %v728_v24 = vld [vmem:[%s990_s3 + $0x8] sm:$0xff]   ;;  %v733_v29 = vld [vmem:[%s990_s3 + $0x90] sm:$0xff]  }
   0xa   :  { %v725_v21 = vld [vmem:[%s990_s3 + $0x80] sm:$0xff]   ;;  %v729_v25 = vld [vmem:[%s990_s3 + $0x88] sm:$0xff]   ;;  %v734_v30 = vld [vmem:[%s990_s3 + $0x58] sm:$0xff]  }
   0xb   :  { %150 = vmatpush1.bf16.msra.mxu0 %v714_v11  ;;  %191 = vmatpush1.bf16.msra.mxu1 %v715_v12  ;;  %v735_v31 = vld [vmem:[%s990_s3 + $0xd8] sm:$0xff]  }
   0xc   :  { %151 = vmatprep.subr.bf16.mxu0 %v716_v13  ;;  %192 = vmatprep.subr.bf16.mxu1 %v718_v14  ;;  %v736_v32 = vld [vmem:[%s990_s3 + $0x18] sm:$0xff]  }
   0xd   :  { %v737_v33 = vld [vmem:[%s990_s3 + $0x98] sm:$0xff]  }
   0xf   :  { %152 = vmatpush1.bf16.msra.mxu0 %v720_v15  ;;  %193 = vmatpush1.bf16.msra.mxu1 %v721_v16 }
  0x10   :  { %652 = vmatprep.subr.bf16.mxu0 %v722_v17  ;;  %674 = vmatprep.subr.bf16.mxu1 %v723_v18 }
  0x12   :  { %616 = vmatmul.mubr.msk.bf16.vlgmr.msra.gmra.mrb[0].mxu0 %vm141_vm0, %v22_v19  ;;  %617 = vmatmul.mubr.msk.bf16.vlgmr.msra.gmra.mrb[0].mxu1 %vm141_vm0, %v22_v19 }
  0x13   :  { %653 = vmatpush3.bf16.msra.mxu0 %v724_v20  ;;  %675 = vmatpush3.bf16.msra.mxu1 %v725_v21 }
  0x14   :  { %654 = vmatprep.subr.bf16.mxu0 %v726_v22  ;;  %676 = vmatprep.subr.bf16.mxu1 %v727_v23 }
  0x17   :  { %655 = vmatpush3.bf16.msra.mxu0 %v728_v24  ;;  %677 = vmatpush3.bf16.msra.mxu1 %v729_v25 }
  0x18   :  { %656 = vmatprep.subr.bf16.mxu0 %v730_v26  ;;  %678 = vmatprep.subr.bf16.mxu1 %v731_v27 }
  0x1b   :  { %657 = vmatpush3.bf16.msra.mxu0 %v732_v28  ;;  %679 = vmatpush3.bf16.msra.mxu1 %v733_v29 }
  0x1c   :  { %658 = vmatprep.subr.bf16.mxu0 %v734_v30  ;;  %680 = vmatprep.subr.bf16.mxu1 %v735_v31 }
  0x1f   :  { %659 = vmatpush3.bf16.msra.mxu0 %v736_v32  ;;  %681 = vmatpush3.bf16.msra.mxu1 %v737_v33 }
  0x20   :  { %10 = vsyncpa [#allocation3], 0  ;;  %v738_v34 = vld [vmem:[%s990_s3 + $0x60] sm:$0xff]   ;;  %v742_v38 = vld [vmem:[%s990_s3 + $0x68] sm:$0xff]   ;;  %v41_v50 = vlaneseq  ;;  %s791_s0 = smov [#allocation2]   ;;  %vm584_vm1 = vcmask 517120  }
  0x21   :  { %v739_v35 = vld [vmem:[%s990_s3 + $0xe0] sm:$0xff]   ;;  %660 = vmatprep.subr.bf16.mxu0 %v738_v34  ;;  %v743_v39 = vld [vmem:[%s990_s3 + $0xe8] sm:$0xff]   ;;  %v746_v42 = vld [vmem:[%s990_s3 + $0x70] sm:$0xff]   ;;  %s592_s13 = sshll.u32 %s791_s0, 4  ;;  %s593_s13 = int_to_ptr.vmem [resolvable:$true] %s592_s13 }
  0x22   :  { %v740_v36 = vld [vmem:[%s990_s3 + $0x20] sm:$0xff]   ;;  %682 = vmatprep.subr.bf16.mxu1 %v739_v35  ;;  %v744_v40 = vld [vmem:[%s990_s3 + $0x28] sm:$0xff]   ;;  %v747_v43 = vld [vmem:[%s990_s3 + $0xf0] sm:$0xff]   ;;  %v42_v51 = vshrl.u32 %v41_v50, 7  ;;  %p771_p1 = scmp.lt.s32.totalorder %s593_s13, %s593_s13 }
  0x23   :  { %v741_v37 = vld [vmem:[%s990_s3 + $0xa0] sm:$0xff]   ;;  %661 = vmatpush3.bf16.msra.mxu0 %v740_v36  ;;  %v745_v41 = vld [vmem:[%s990_s3 + $0xa8] sm:$0xff]   ;;  %v748_v44 = vld [vmem:[%s990_s3 + $0x30] sm:$0xff]  }
  0x24   :  { %683 = vmatpush3.bf16.msra.mxu1 %v741_v37  ;;  %662 = vmatprep.subr.bf16.mxu0 %v742_v38  ;;  %v749_v45 = vld [vmem:[%s990_s3 + $0xb0] sm:$0xff]   ;;  %v750_v46 = vld [vmem:[%s990_s3 + $0x78] sm:$0xff]   ;;  %v43_v52 = vsub.s32 0, %v42_v51  ;;  %v51_v53 = vsub.s32 2, %v42_v51  ;;  %v39_v54 = vld [vmem:[%s989_s2] sm:$0xf] }
  0x25   :  { %684 = vmatprep.subr.bf16.mxu1 %v743_v39  ;;  %v751_v47 = vld [vmem:[%s990_s3 + $0xf8] sm:$0xff]   ;;  %v47_v55 = vsub.s32 1, %v42_v51  ;;  %v55_v56 = vsub.s32 3, %v42_v51  ;;  %v618_v19 = vld [vmem:[%s991_s4] ss:$0 sm:$0xff]  ;;  %s766_s4 = scalar_lea.vmem %s593_s13, 32 }
  0x26   :  { %v752_v48 = vld [vmem:[%s990_s3 + $0x38] sm:$0xff]   ;;  %v44_v57 = vrot.slane %v39_v54, %v43_v52  ;;  %v52_v58 = vrot.slane %v39_v54, %v51_v53  ;;  %p767_p0 = scmp.ne.s32.totalorder %s593_s13, %s766_s4  ;;  %p772_p2 = scmp.lt.s32.totalorder %s766_s4, %s766_s4 }
  0x27   :  { %663 = vmatpush3.bf16.msra.mxu0 %v744_v40  ;;  %v753_v49 = vld [vmem:[%s990_s3 + $0xb8] sm:$0xff]   ;;  %v48_v59 = vrot.slane %v39_v54, %v47_v55  ;;  %v56_v60 = vrot.slane %v39_v54, %v55_v56 }
  0x28   :  { %685 = vmatpush3.bf16.msra.mxu1 %v745_v41  ;;  %664 = vmatprep.subr.bf16.mxu0 %v746_v42  ;;  %p773_p3 = por %p772_p2, %p771_p1 }
  0x29   :  { %686 = vmatprep.subr.bf16.mxu1 %v747_v43 }
  0x2a   :  { %p774_p4 = pnand %p773_p3, %p767_p0 }
  0x2b   :  { %665 = vmatpush3.bf16.msra.mxu0 %v748_v44 }
  0x2c   :  { %687 = vmatpush3.bf16.msra.mxu1 %v749_v45  ;;  %666 = vmatprep.subr.bf16.mxu0 %v750_v46 }
  0x2d   :  { %688 = vmatprep.subr.bf16.mxu1 %v751_v47 }
  0x2f   :  { %667 = vmatpush3.bf16.msra.mxu0 %v752_v48 }
  0x30   :  { %689 = vmatpush3.bf16.msra.mxu1 %v753_v49 }
  0xe5   :  { %v179_v61 = vpop.f32.mrb[0].mxu0  ;;  %v220_v62 = vpop.f32.mrb[0].mxu1 }
  0xe6   :  { %v180_v63 = vadd.f32 %v179_v61, %v44_v57  ;;  %v221_v0 = vadd.f32 %v220_v62, %v52_v58  ;;  %v181_v1 = vpop.f32.mrb[1].mxu0  ;;  %v222_v2 = vpop.f32.mrb[1].mxu1 }
  0xe7   :  { %v182_v3 = vadd.f32 %v181_v1, %v48_v59  ;;  %v223_v4 = vadd.f32 %v222_v2, %v56_v60  ;;  %v183_v5 = vpop.f32.mrb[2].mxu0  ;;  %v224_v6 = vpop.f32.mrb[2].mxu1 }
  0xe8   :  { %754 = vtanh.f32 %v180_v63  ;;  %v184_v7 = vpop.f32.mrb[3].mxu0  ;;  %v225_v8 = vpop.f32.mrb[3].mxu1 }
  0xe9   :  { %756 = vtanh.f32 %v221_v0 }
  0xea   :  { %758 = vtanh.f32 %v182_v3 }
  0xeb   :  { %760 = vtanh.f32 %v223_v4 }
  0xf2   :  { %v755_v9 = vpop.eup %754 }
  0xf3   :  { %v757_v10 = vpop.eup %756  ;;  %v231_v15 = vpack.c.bf16 %v755_v9, %v755_v9 }
  0xf4   :  { %v759_v11 = vpop.eup %758  ;;  %v233_v13 = vpack.c.bf16 %v757_v10, %v757_v10 }
  0xf5   :  { %v761_v12 = vpop.eup %760  ;;  %v232_v14 = vpack.c.bf16 %v759_v11, %v759_v11 }
  0xf6   :  { %v234_v16 = vpack.c.bf16 %v761_v12, %v761_v12 }
  0xf7   :  { %530 = vmatprep.mubr.bf16.mxu0 %v232_v14 }
  0xf8   :  { %570 = vmatprep.mubr.bf16.mxu1 %v234_v16  ;;  %531 = vmatmul.mubr.bf16.vlgmr.msra.gmra.mrb[4].mxu0 %v231_v15 }
  0xf9   :  { %571 = vmatmul.mubr.bf16.vlgmr.msra.gmra.mrb[4].mxu1 %v233_v13 }
 0x1cb   :  { %v668_v17 = vpop.f32.mrb[4].mxu0 }
 0x1cc   :  { %v690_v18 = vpop.f32.mrb[4].mxu1  ;;  %v669_v20 = vpop.f32.mrb[5].mxu0 }
 0x1cd   :  { %v670_v21 = vadd.f32 %v669_v20, %v668_v17  ;;  %v691_v22 = vpop.f32.mrb[5].mxu1  ;;  %v671_v23 = vpop.f32.mrb[6].mxu0 }
 0x1ce   :  { %v692_v24 = vadd.f32 %v691_v22, %v690_v18  ;;  %v693_v25 = vpop.f32.mrb[6].mxu1  ;;  %v672_v26 = vpop.f32.mrb[7].mxu0 }
 0x1cf   :  { %v533_v27 = vadd.f32 %v670_v21, %v618_v19  ;;  %v694_v28 = vpop.f32.mrb[7].mxu1 }
 0x1d1   :  { %v573_v29 = vadd.f32 %v692_v24, %v533_v27 }
 0x1d3   :  { %v651_v30 = vmul.f32 -1.442695, %v573_v29 }
 0x1d5   :  { %762 = vpow2.f32 %v651_v30 }
 0x1df   :  { %v763_v31 = vpop.eup %762 }
 0x1e0   :  { %v581_v32 = vadd.f32 1.0, %v763_v31 }
 0x1e2   :  { %764 = vrcp.f32 %v581_v32 }
 0x1ec   :  { %v765_v33 = vpop.eup %764 }
 0x1ed   :  { %585 = vst.msk [vmem:[#allocation2] sm:$0x3] %vm584_vm1, %v765_v33 }
 0x1ee   :  { %777 = shalt.err (!%p774_p4)
}
 0x1ef   :  { %s778_s16 = scalar_lea.hbm %s992_s5, 32 }
 0x1f0   :  { %p779_p5 = scmp.ne.s32.totalorder %s992_s5, %s778_s16  ;;  %p782_p6 = scmp.lt.u32.totalorder %s778_s16, %s992_s5 }
 0x1f2   :  { %p784_p7 = pnand %p782_p6, %p779_p5 }
 0x1f4   :  { %787 = shalt.err (!%p784_p7)
}
 0x1f5   :  { %595 = dma.vmem_to_hbm [thread:$0]  %s593_s13, 32, %s992_s5, [#allocation3]  }
 0x1f6   :  { %788 = dma.done.wait [#allocation3], 32  }
 0x1f7   :  { %789 = vsyncadd [#allocation3], 4294967264 }
 0x1f8   :  { %599 = vsyncpa [#allocation3], 1 }

// kernel: encoder_forward.22
= control target key start
LH: loop header
LB: loop body
LE: loop exit
PB: predicated region body
PF: predicated region fallthrough
CT: control target
= control target key end

     0   :  { %v142_v3 = vlaneseq  ;;  %v740_v4 = vmov 1966171168   ;;  %vm247_vm0 = vcmask 523264   ;;  %vm535_vm2 = vcmask 516096   ;;  %s1180_s0 = inlined_call_operand.vmem [shape: bf16[2,1,1,1,27,64], index: 0, kind: input, shape index: {}, may-alias: {0,4}]   ;;  %s1181_s1 = inlined_call_operand.vmem [shape: bf16[2,1728], index: 1, kind: input, shape index: {}]   ;;  %s1182_s2 = inlined_call_operand.vmem [shape: bf16[1728,128], index: 2, kind: input, shape index: {}]   ;;  %s1183_s3 = inlined_call_operand.vmem [shape: f32[1,128], index: 3, kind: input, shape index: {}]   ;;  %s1184_s4 = inlined_call_operand.vmem [shape: bf16[2,1,1,1,27,64], index: 4, kind: output, shape index: {0}, may-alias: {0,4}]   ;;  %s1185_s5 = inlined_call_operand.vmem [shape: bf16[2,64], index: 5, kind: output, shape index: {1}]  }
   0x1   :  { %v29_v0 = vld [vmem:[%s1182_s2 + $0x40] sm:$0xff]  ;;  %v30_v2 = vld [vmem:[%s1182_s2 + $0x48] sm:$0xff]  ;;  %v140_v5 = vunpack.c.l.s4 %v740_v4  ;;  %v31_v11 = vld [vmem:[%s1182_s2 + $0x50] sm:$0xff] }
   0x2   :  { %v21_v1 = vld [vmem:[%s1182_s2] sm:$0xff]  ;;  %603 = vmatprep.subr.bf16.mxu1 %v29_v0  ;;  %v143_v6 = vshrl.u32 %v142_v3, 7  ;;  %v22_v7 = vld [vmem:[%s1182_s2 + $0x8] sm:$0xff]  ;;  %v23_v15 = vld [vmem:[%s1182_s2 + $0x10] sm:$0xff] }
   0x3   :  { %604 = vmatpush3.bf16.msra.mxu1 %v21_v1  ;;  %v61_v8 = vld [vmem:[%s1182_s2 + $0x140] sm:$0xff]  ;;  %v141_v10 = vunpack.c.0.s8 %v140_v5  ;;  %v62_v12 = vld [vmem:[%s1182_s2 + $0x148] sm:$0xff]  ;;  %v63_v16 = vld [vmem:[%s1182_s2 + $0x150] sm:$0xff] }
   0x4   :  { %605 = vmatprep.subr.bf16.mxu1 %v30_v2  ;;  %v53_v9 = vld [vmem:[%s1182_s2 + $0x100] sm:$0xff]  ;;  %647 = vmatprep.subr.bf16.mxu0 %v61_v8  ;;  %v54_v14 = vld [vmem:[%s1182_s2 + $0x108] sm:$0xff]  ;;  %v32_v18 = vld [vmem:[%s1182_s2 + $0x58] sm:$0xff] }
   0x5   :  { %648 = vmatpush3.bf16.msra.mxu0 %v53_v9  ;;  %v797_v13 = vsub.s32 %v141_v10, %v143_v6  ;;  %v19_v17 = vld [vmem:[%s1181_s1] sm:$0xff]  ;;  %v55_v21 = vld [vmem:[%s1182_s2 + $0x110] sm:$0xff]  ;;  %v24_v24 = vld [vmem:[%s1182_s2 + $0x18] sm:$0xff] }
   0x6   :  { %649 = vmatprep.subr.bf16.mxu0 %v62_v12  ;;  %v138_v20 = vcombine.high %v19_v17, %v19_v17  ;;  %v64_v25 = vld [vmem:[%s1182_s2 + $0x158] sm:$0xff]  ;;  %v33_v26 = vld [vmem:[%s1182_s2 + $0x60] sm:$0xff]  ;;  %v34_v33 = vld [vmem:[%s1182_s2 + $0x68] sm:$0xff] }
   0x7   :  { %606 = vmatpush3.bf16.msra.mxu1 %v22_v7  ;;  %v145_v19 = vrot.slane %v19_v17, %v797_v13  ;;  %v56_v29 = vld [vmem:[%s1182_s2 + $0x118] sm:$0xff]  ;;  %v25_v31 = vld [vmem:[%s1182_s2 + $0x20] sm:$0xff]  ;;  %v26_v35 = vld [vmem:[%s1182_s2 + $0x28] sm:$0xff] }
   0x8   :  { %607 = vmatprep.subr.bf16.mxu1 %v31_v11  ;;  %v152_v23 = vrot.slane %v138_v20, %v797_v13  ;;  %v65_v32 = vld [vmem:[%s1182_s2 + $0x160] sm:$0xff]  ;;  %v66_v36 = vld [vmem:[%s1182_s2 + $0x168] sm:$0xff]  ;;  %v35_v37 = vld [vmem:[%s1182_s2 + $0x70] sm:$0xff] }
   0x9   :  { %650 = vmatpush3.bf16.msra.mxu0 %v54_v14  ;;  %v153_v22 = vcombine.high %v145_v19, %v145_v19  ;;  %v57_v34 = vld [vmem:[%s1182_s2 + $0x120] sm:$0xff]  ;;  %v58_v38 = vld [vmem:[%s1182_s2 + $0x128] sm:$0xff]  ;;  %v27_v39 = vld [vmem:[%s1182_s2 + $0x30] sm:$0xff]  ;;  %v891_v48 = vrot.slane %v145_v19, %v797_v13 }
   0xa   :  { %651 = vmatprep.subr.bf16.mxu0 %v63_v16  ;;  %v154_v28 = vcombine.high %v152_v23, %v152_v23  ;;  %v67_v40 = vld [vmem:[%s1182_s2 + $0x170] sm:$0xff]  ;;  %v36_v41 = vld [vmem:[%s1182_s2 + $0x78] sm:$0xff]  ;;  %v872_v42 = vld [vmem:[%s1181_s1 + $0x8] sm:$0x3f]  ;;  %v908_v55 = vrot.slane %v152_v23, %v797_v13 }
   0xb   :  { %608 = vmatpush3.bf16.msra.mxu1 %v23_v15  ;;  %v175_v27 = vrot.slane %v153_v22, %v797_v13  ;;  %v59_v43 = vld [vmem:[%s1182_s2 + $0x130] sm:$0xff]  ;;  %v879_v44 = vrot.slane %v872_v42, %v797_v13  ;;  %v28_v45 = vld [vmem:[%s1182_s2 + $0x38] sm:$0xff]  ;;  %v45_v47 = vld [vmem:[%s1182_s2 + $0xc0] sm:$0xff]  ;;  %v187_v14 = vcombine.high %v872_v42, %v872_v42 }
   0xc   :  { %609 = vmatprep.subr.bf16.mxu1 %v32_v18  ;;  %v833_v30 = vrot.slane %v154_v28, %v797_v13  ;;  %v68_v46 = vld [vmem:[%s1182_s2 + $0x178] sm:$0xff]  ;;  %v37_v52 = vld [vmem:[%s1182_s2 + $0x80] sm:$0xff]  ;;  %v46_v54 = vld [vmem:[%s1182_s2 + $0xc8] sm:$0xff] }
   0xd   :  { %652 = vmatpush3.bf16.msra.mxu0 %v55_v21  ;;  %283 = vmatprep.mubr.bf16.mxu1 %v175_v27  ;;  %v202_v49 = vcombine.high %v879_v44, %v879_v44  ;;  %v60_v50 = vld [vmem:[%s1182_s2 + $0x138] sm:$0xff]  ;;  %v185_v51 = vcombine.high %v175_v27, %v175_v27  ;;  %v93_v53 = vld [vmem:[%s1182_s2 + $0x240] sm:$0xff]  ;;  %v38_v58 = vld [vmem:[%s1182_s2 + $0x88] sm:$0xff]  ;;  %v991_v19 = vrot.slane %v187_v14, %v797_v13 }
   0xe   :  { %653 = vmatprep.subr.bf16.mxu0 %v64_v25  ;;  %363 = vmatprep.mubr.bf16.mxu0 %v833_v30  ;;  %v85_v57 = vld [vmem:[%s1182_s2 + $0x200] sm:$0xff]  ;;  %v94_v59 = vld [vmem:[%s1182_s2 + $0x248] sm:$0xff]  ;;  %v47_v60 = vld [vmem:[%s1182_s2 + $0xd0] sm:$0xff]  ;;  %v186_v27 = vcombine.high %v833_v30, %v833_v30 }
   0xf   :  { %610 = vmatpush3.bf16.msra.mxu1 %v24_v24  ;;  %v912_v56 = vrot.slane %v202_v49, %v797_v13  ;;  %v86_v61 = vld [vmem:[%s1182_s2 + $0x208] sm:$0xff]  ;;  %v39_v62 = vld [vmem:[%s1182_s2 + $0x90] sm:$0xff]  ;;  %v48_v0 = vld [vmem:[%s1182_s2 + $0xd8] sm:$0xff]  ;;  %v183_v24 = vcombine.high %v891_v48, %v891_v48  ;;  %v203_v25 = vcombine.high %v991_v19, %v991_v19 }
  0x10   :  { %611 = vmatprep.subr.bf16.mxu1 %v33_v26  ;;  %v95_v63 = vld [vmem:[%s1182_s2 + $0x250] sm:$0xff]  ;;  %v40_v2 = vld [vmem:[%s1182_s2 + $0x98] sm:$0xff]  ;;  %v49_v4 = vld [vmem:[%s1182_s2 + $0xe0] sm:$0xff] }
  0x11   :  { %654 = vmatpush3.bf16.msra.mxu0 %v56_v29  ;;  %v87_v1 = vld [vmem:[%s1182_s2 + $0x210] sm:$0xff]  ;;  %v96_v3 = vld [vmem:[%s1182_s2 + $0x258] sm:$0xff]  ;;  %v41_v6 = vld [vmem:[%s1182_s2 + $0xa0] sm:$0xff] }
  0x12   :  { %655 = vmatprep.subr.bf16.mxu0 %v65_v32  ;;  %v88_v5 = vld [vmem:[%s1182_s2 + $0x218] sm:$0xff]  ;;  %v97_v7 = vld [vmem:[%s1182_s2 + $0x260] sm:$0xff]  ;;  %v50_v8 = vld [vmem:[%s1182_s2 + $0xe8] sm:$0xff]  ;;  %v231_v32 = vrot.slane %v203_v25, %v797_v13 }
  0x13   :  { %612 = vmatpush3.bf16.msra.mxu1 %v25_v31  ;;  %v89_v9 = vld [vmem:[%s1182_s2 + $0x220] sm:$0xff]  ;;  %v42_v10 = vld [vmem:[%s1182_s2 + $0xa8] sm:$0xff]  ;;  %v51_v12 = vld [vmem:[%s1182_s2 + $0xf0] sm:$0xff]  ;;  %v1022_v31 = vrot.slane %v879_v44, %v797_v13 }
  0x14   :  { %613 = vmatprep.subr.bf16.mxu1 %v34_v33  ;;  %v98_v11 = vld [vmem:[%s1182_s2 + $0x268] sm:$0xff]  ;;  %v43_v16 = vld [vmem:[%s1182_s2 + $0xb0] sm:$0xff]  ;;  %v52_v18 = vld [vmem:[%s1182_s2 + $0xf8] sm:$0xff]  ;;  %v741_v33 = vmov 0  }
  0x15   :  { %656 = vmatpush3.bf16.msra.mxu0 %v57_v34  ;;  %v90_v15 = vld [vmem:[%s1182_s2 + $0x228] sm:$0xff]  ;;  %v99_v17 = vld [vmem:[%s1182_s2 + $0x270] sm:$0xff]  ;;  %v44_v21 = vld [vmem:[%s1182_s2 + $0xb8] sm:$0xff]  ;;  %v232_v14 = vcombine.high %v1022_v31, %v1022_v31 }
  0x16   :  { %657 = vmatprep.subr.bf16.mxu0 %v66_v36  ;;  %v91_v20 = vld [vmem:[%s1182_s2 + $0x230] sm:$0xff]  ;;  %v100_v22 = vld [vmem:[%s1182_s2 + $0x278] sm:$0xff]  ;;  %v77_v23 = vld [vmem:[%s1182_s2 + $0x1c0] sm:$0xff] }
  0x17   :  { %614 = vmatpush3.bf16.msra.mxu1 %v26_v35  ;;  %v92_v26 = vld [vmem:[%s1182_s2 + $0x238] sm:$0xff]  ;;  %v69_v28 = vld [vmem:[%s1182_s2 + $0x180] sm:$0xff]  ;;  %v78_v29 = vld [vmem:[%s1182_s2 + $0x1c8] sm:$0xff] }
  0x18   :  { %615 = vmatprep.subr.bf16.mxu1 %v35_v37  ;;  %v117_v30 = vld [vmem:[%s1182_s2 + $0x300] sm:$0xff]  ;;  %v70_v34 = vld [vmem:[%s1182_s2 + $0x188] sm:$0xff]  ;;  %v79_v35 = vld [vmem:[%s1182_s2 + $0x1d0] sm:$0xff] }
  0x19   :  { %658 = vmatpush3.bf16.msra.mxu0 %v58_v38  ;;  %v118_v36 = vld [vmem:[%s1182_s2 + $0x308] sm:$0xff]  ;;  %v71_v37 = vld [vmem:[%s1182_s2 + $0x190] sm:$0xff]  ;;  %v80_v38 = vld [vmem:[%s1182_s2 + $0x1d8] sm:$0xff] }
  0x1a   :  { %659 = vmatprep.subr.bf16.mxu0 %v67_v40  ;;  %v72_v40 = vld [vmem:[%s1182_s2 + $0x198] sm:$0xff]  ;;  %v82_v44 = vld [vmem:[%s1182_s2 + $0x1e8] sm:$0xff]  ;;  %v75_v49 = vld [vmem:[%s1182_s2 + $0x1b0] sm:$0xff] }
  0x1b   :  { %616 = vmatpush3.bf16.msra.mxu1 %v27_v39  ;;  %v119_v39 = vld [vmem:[%s1182_s2 + $0x310] sm:$0xff]  ;;  %v120_v42 = vld [vmem:[%s1182_s2 + $0x318] sm:$0xff]  ;;  %v600_v25 = vld [vmem:[%s1183_s3] ss:$0 sm:$0xff] }
  0x1c   :  { %617 = vmatprep.subr.bf16.mxu1 %v36_v41  ;;  %v81_v41 = vld [vmem:[%s1182_s2 + $0x1e0] sm:$0xff] }
  0x1d   :  { %660 = vmatpush3.bf16.msra.mxu0 %v59_v43  ;;  %v73_v43 = vld [vmem:[%s1182_s2 + $0x1a0] sm:$0xff] }
  0x1e   :  { %661 = vmatprep.subr.bf16.mxu0 %v68_v46  ;;  %v74_v46 = vld [vmem:[%s1182_s2 + $0x1a8] sm:$0xff] }
  0x1f   :  { %618 = vmatpush3.bf16.msra.mxu1 %v28_v45  ;;  %v121_v45 = vld [vmem:[%s1182_s2 + $0x320] sm:$0xff] }
  0x20   :  { %625 = vmatprep.subr.bf16.mxu1 %v45_v47  ;;  %v83_v47 = vld [vmem:[%s1182_s2 + $0x1f0] sm:$0xff] }
  0x21   :  { %662 = vmatpush3.bf16.msra.mxu0 %v60_v50  ;;  %v84_v50 = vld [vmem:[%s1182_s2 + $0x1f8] sm:$0xff] }
  0x22   :  { %284 = vmatmul.mubr.bf16.vlgmr.msra.gmra.mrb[0].mxu1 %v891_v48  ;;  %691 = vmatprep.subr.bf16.mxu0 %v93_v53  ;;  %v122_v48 = vld [vmem:[%s1182_s2 + $0x328] sm:$0xff]  ;;  %v109_v53 = vld [vmem:[%s1182_s2 + $0x2c0] sm:$0xff] }
  0x23   :  { %626 = vmatpush3.bf16.msra.mxu1 %v37_v52  ;;  %323 = vmatprep.mubr.bf16.mxu1 %v185_v51  ;;  %v123_v51 = vld [vmem:[%s1182_s2 + $0x330] sm:$0xff]  ;;  %v76_v52 = vld [vmem:[%s1182_s2 + $0x1b8] sm:$0xff] }
  0x24   :  { %627 = vmatprep.subr.bf16.mxu1 %v46_v54  ;;  %364 = vmatmul.mubr.bf16.vlgmr.msra.gmra.mrb[0].mxu0 %v908_v55  ;;  %v184_v54 = vcombine.high %v908_v55, %v908_v55  ;;  %v110_v55 = vld [vmem:[%s1182_s2 + $0x2c8] sm:$0xff] }
  0x25   :  { %692 = vmatpush3.bf16.msra.mxu0 %v85_v57  ;;  %443 = vmatprep.mubr.bf16.mxu0 %v912_v56  ;;  %v124_v57 = vld [vmem:[%s1182_s2 + $0x338] sm:$0xff] }
  0x26   :  { %693 = vmatprep.subr.bf16.mxu0 %v94_v59  ;;  %v233_v59 = vcombine.high %v912_v56, %v912_v56  ;;  %v111_v56 = vld [vmem:[%s1182_s2 + $0x2d0] sm:$0xff] }
  0x27   :  { %628 = vmatpush3.bf16.msra.mxu1 %v38_v58  ;;  %v101_v58 = vld [vmem:[%s1182_s2 + $0x280] sm:$0xff] }
  0x28   :  { %629 = vmatprep.subr.bf16.mxu1 %v47_v60  ;;  %v125_v60 = vld [vmem:[%s1182_s2 + $0x340] sm:$0xff] }
  0x29   :  { %694 = vmatpush3.bf16.msra.mxu0 %v86_v61  ;;  %v102_v61 = vld [vmem:[%s1182_s2 + $0x288] sm:$0xff] }
  0x2a   :  { %695 = vmatprep.subr.bf16.mxu0 %v95_v63  ;;  %v103_v63 = vld [vmem:[%s1182_s2 + $0x290] sm:$0xff] }
  0x2b   :  { %630 = vmatpush3.bf16.msra.mxu1 %v39_v62  ;;  %v126_v62 = vld [vmem:[%s1182_s2 + $0x348] sm:$0xff] }
  0x2c   :  { %631 = vmatprep.subr.bf16.mxu1 %v48_v0  ;;  %v112_v0 = vld [vmem:[%s1182_s2 + $0x2d8] sm:$0xff] }
  0x2d   :  { %696 = vmatpush3.bf16.msra.mxu0 %v87_v1  ;;  %v127_v1 = vld [vmem:[%s1182_s2 + $0x350] sm:$0xff] }
  0x2e   :  { %697 = vmatprep.subr.bf16.mxu0 %v96_v3  ;;  %v113_v3 = vld [vmem:[%s1182_s2 + $0x2e0] sm:$0xff] }
  0x2f   :  { %632 = vmatpush3.bf16.msra.mxu1 %v40_v2  ;;  %v104_v2 = vld [vmem:[%s1182_s2 + $0x298] sm:$0xff] }
  0x30   :  { %633 = vmatprep.subr.bf16.mxu1 %v49_v4  ;;  %v128_v4 = vld [vmem:[%s1182_s2 + $0x358] sm:$0xff] }
  0x31   :  { %698 = vmatpush3.bf16.msra.mxu0 %v88_v5  ;;  %v105_v5 = vld [vmem:[%s1182_s2 + $0x2a0] sm:$0xff] }
  0x32   :  { %699 = vmatprep.subr.bf16.mxu0 %v97_v7  ;;  %v217_v7 = vrot.slane %v991_v19, %v797_v13 }
  0x33   :  { %634 = vmatpush3.bf16.msra.mxu1 %v41_v6  ;;  %v114_v6 = vld [vmem:[%s1182_s2 + $0x2e8] sm:$0xff] }
  0x34   :  { %635 = vmatprep.subr.bf16.mxu1 %v50_v8  ;;  %v106_v8 = vld [vmem:[%s1182_s2 + $0x2a8] sm:$0xff] }
  0x35   :  { %700 = vmatpush3.bf16.msra.mxu0 %v89_v9  ;;  %v115_v9 = vld [vmem:[%s1182_s2 + $0x2f0] sm:$0xff] }
  0x36   :  { %701 = vmatprep.subr.bf16.mxu0 %v98_v11  ;;  %v116_v11 = vld [vmem:[%s1182_s2 + $0x2f8] sm:$0xff] }
  0x37   :  { %636 = vmatpush3.bf16.msra.mxu1 %v42_v10  ;;  %v107_v10 = vld [vmem:[%s1182_s2 + $0x2b0] sm:$0xff] }
  0x38   :  { %637 = vmatprep.subr.bf16.mxu1 %v51_v12  ;;  %v108_v12 = vld [vmem:[%s1182_s2 + $0x2b8] sm:$0xff]  ;;  %s742_s2 = smov 64  }
  0x39   :  { %702 = vmatpush3.bf16.msra.mxu0 %v90_v15 }
  0x3a   :  { %703 = vmatprep.subr.bf16.mxu0 %v99_v17 }
  0x3b   :  { %638 = vmatpush3.bf16.msra.mxu1 %v43_v16 }
  0x3c   :  { %639 = vmatprep.subr.bf16.mxu1 %v52_v18 }
  0x3d   :  { %704 = vmatpush3.bf16.msra.mxu0 %v91_v20 }
  0x3e   :  { %705 = vmatprep.subr.bf16.mxu0 %v100_v22 }
  0x3f   :  { %640 = vmatpush3.bf16.msra.mxu1 %v44_v21 }
  0x40   :  { %669 = vmatprep.subr.bf16.mxu1 %v77_v23 }
  0x41   :  { %706 = vmatpush3.bf16.msra.mxu0 %v92_v26 }
  0x42   :  { %324 = vmatmul.mubr.bf16.vlgmr.msra.gmra.mrb[4].mxu1 %v183_v24  ;;  %491 = vmatprep.subr.bf16.mxu0 %v741_v33 }
  0x43   :  { %670 = vmatpush3.bf16.msra.mxu1 %v69_v28  ;;  %403 = vmatprep.mubr.bf16.mxu1 %v186_v27 }
  0x44   :  { %671 = vmatprep.subr.bf16.mxu1 %v78_v29  ;;  %444 = vmatmul.mubr.bf16.vlgmr.msra.gmra.mrb[4].mxu0 %v1022_v31 }
  0x45   :  { %492 = vmatpush1.bf16.msra.mxu0 %v117_v30  ;;  %601 = vmatprep.mubr.msk.bf16.mxu0 %vm247_vm0, %v231_v32 }
  0x46   :  { %493 = vmatprep.subr.bf16.mxu0 %v741_v33 }
  0x47   :  { %672 = vmatpush3.bf16.msra.mxu1 %v70_v34 }
  0x48   :  { %673 = vmatprep.subr.bf16.mxu1 %v79_v35 }
  0x49   :  { %494 = vmatpush1.bf16.msra.mxu0 %v118_v36 }
  0x4a   :  { %495 = vmatprep.subr.bf16.mxu0 %v741_v33 }
  0x4b   :  { %674 = vmatpush3.bf16.msra.mxu1 %v71_v37 }
  0x4c   :  { %675 = vmatprep.subr.bf16.mxu1 %v80_v38 }
  0x4d   :  { %496 = vmatpush1.bf16.msra.mxu0 %v119_v39 }
  0x4e   :  { %497 = vmatprep.subr.bf16.mxu0 %v741_v33 }
  0x4f   :  { %676 = vmatpush3.bf16.msra.mxu1 %v72_v40 }
  0x50   :  { %677 = vmatprep.subr.bf16.mxu1 %v81_v41 }
  0x51   :  { %498 = vmatpush1.bf16.msra.mxu0 %v120_v42 }
  0x52   :  { %499 = vmatprep.subr.bf16.mxu0 %v741_v33 }
  0x53   :  { %678 = vmatpush3.bf16.msra.mxu1 %v73_v43 }
  0x54   :  { %679 = vmatprep.subr.bf16.mxu1 %v82_v44 }
  0x55   :  { %500 = vmatpush1.bf16.msra.mxu0 %v121_v45 }
  0x56   :  { %501 = vmatprep.subr.bf16.mxu0 %v741_v33 }
  0x57   :  { %680 = vmatpush3.bf16.msra.mxu1 %v74_v46 }
  0x58   :  { %681 = vmatprep.subr.bf16.mxu1 %v83_v47 }
  0x59   :  { %502 = vmatpush1.bf16.msra.mxu0 %v122_v48 }
  0x5a   :  { %503 = vmatprep.subr.bf16.mxu0 %v741_v33 }
  0x5b   :  { %682 = vmatpush3.bf16.msra.mxu1 %v75_v49 }
  0x5c   :  { %683 = vmatprep.subr.bf16.mxu1 %v84_v50 }
  0x5d   :  { %504 = vmatpush1.bf16.msra.mxu0 %v123_v51 }
  0x5e   :  { %505 = vmatprep.subr.bf16.mxu0 %v741_v33 }
  0x5f   :  { %684 = vmatpush3.bf16.msra.mxu1 %v76_v52 }
  0x60   :  { %713 = vmatprep.subr.bf16.mxu1 %v109_v53 }
  0x61   :  { %506 = vmatpush1.bf16.msra.mxu0 %v124_v57 }
  0x62   :  { %404 = vmatmul.mubr.bf16.vlgmr.msra.gmra.mrb[8].mxu1 %v184_v54  ;;  %507 = vmatprep.subr.bf16.mxu0 %v741_v33 }
  0x63   :  { %714 = vmatpush3.bf16.msra.mxu1 %v101_v58  ;;  %483 = vmatprep.mubr.bf16.mxu1 %v233_v59 }
  0x64   :  { %715 = vmatprep.subr.bf16.mxu1 %v110_v55 }
  0x65   :  { %508 = vmatpush1.bf16.msra.mxu0 %v125_v60 }
  0x66   :  { %509 = vmatprep.subr.bf16.mxu0 %v741_v33 }
  0x67   :  { %716 = vmatpush3.bf16.msra.mxu1 %v102_v61 }
  0x68   :  { %717 = vmatprep.subr.bf16.mxu1 %v111_v56 }
  0x69   :  { %510 = vmatpush1.bf16.msra.mxu0 %v126_v62 }
  0x6a   :  { %511 = vmatprep.subr.bf16.mxu0 %v741_v33 }
  0x6b   :  { %718 = vmatpush3.bf16.msra.mxu1 %v103_v63 }
  0x6c   :  { %719 = vmatprep.subr.bf16.mxu1 %v112_v0 }
  0x6d   :  { %512 = vmatpush1.bf16.msra.mxu0 %v127_v1 }
  0x6e   :  { %513 = vmatprep.subr.bf16.mxu0 %v741_v33 }
  0x6f   :  { %720 = vmatpush3.bf16.msra.mxu1 %v104_v2 }
  0x70   :  { %721 = vmatprep.subr.bf16.mxu1 %v113_v3 }
  0x71   :  { %514 = vmatpush1.bf16.msra.mxu0 %v128_v4 }
  0x73   :  { %722 = vmatpush3.bf16.msra.mxu1 %v105_v5 }
  0x74   :  { %723 = vmatprep.subr.bf16.mxu1 %v114_v6  ;;  %524 = vmatmul.mubr.bf16.vlgmr.msra.gmra.mrb[8].mxu0 %v217_v7 }
  0x77   :  { %724 = vmatpush3.bf16.msra.mxu1 %v106_v8 }
  0x78   :  { %725 = vmatprep.subr.bf16.mxu1 %v115_v9 }
  0x7b   :  { %726 = vmatpush3.bf16.msra.mxu1 %v107_v10 }
  0x7c   :  { %727 = vmatprep.subr.bf16.mxu1 %v116_v11 }
  0x7f   :  { %728 = vmatpush3.bf16.msra.mxu1 %v108_v12 }
  0x82   :  { %484 = vmatmul.mubr.bf16.vlgmr.msra.gmra.mrb[12].mxu1 %v232_v14 }
  0xf5   :  { %v619_v15 = vpop.f32.mrb[0].mxu1 }
  0xf6   :  { %v620_v16 = vpop.f32.mrb[1].mxu1 }
  0xf7   :  { %v621_v17 = vadd.f32 %v620_v16, %v619_v15  ;;  %v622_v18 = vpop.f32.mrb[2].mxu1  ;;  %v663_v20 = vpop.f32.mrb[0].mxu0 }
  0xf8   :  { %v623_v19 = vpop.f32.mrb[3].mxu1  ;;  %v664_v21 = vpop.f32.mrb[1].mxu0 }
  0xf9   :  { %v665_v22 = vadd.f32 %v664_v21, %v663_v20  ;;  %v666_v23 = vpop.f32.mrb[2].mxu0  ;;  %v286_v28 = vadd.f32 %v621_v17, %v600_v25 }
  0xfa   :  { %v667_v24 = vpop.f32.mrb[3].mxu0 }
 0x115   :  { %v641_v26 = vpop.f32.mrb[4].mxu1 }
 0x116   :  { %v642_v27 = vpop.f32.mrb[5].mxu1 }
 0x117   :  { %v643_v29 = vadd.f32 %v642_v27, %v641_v26  ;;  %v644_v31 = vpop.f32.mrb[6].mxu1  ;;  %v707_v33 = vpop.f32.mrb[4].mxu0 }
 0x118   :  { %v645_v32 = vpop.f32.mrb[7].mxu1  ;;  %v708_v34 = vpop.f32.mrb[5].mxu0 }
 0x119   :  { %v326_v30 = vadd.f32 %v643_v29, %v286_v28  ;;  %v709_v35 = vadd.f32 %v708_v34, %v707_v33  ;;  %v710_v36 = vpop.f32.mrb[6].mxu0 }
 0x11a   :  { %v711_v37 = vpop.f32.mrb[7].mxu0 }
 0x11b   :  { %v366_v38 = vadd.f32 %v665_v22, %v326_v30 }
 0x135   :  { %v685_v39 = vpop.f32.mrb[8].mxu1 }
 0x136   :  { %v686_v40 = vpop.f32.mrb[9].mxu1 }
 0x137   :  { %v687_v41 = vadd.f32 %v686_v40, %v685_v39  ;;  %v688_v42 = vpop.f32.mrb[10].mxu1 }
 0x138   :  { %v689_v43 = vpop.f32.mrb[11].mxu1 }
 0x139   :  { %v406_v44 = vadd.f32 %v687_v41, %v366_v38 }
 0x13b   :  { %v446_v45 = vadd.f32 %v709_v35, %v406_v44 }
 0x147   :  { %v525_v46 = vpop.f32.mrb[8].mxu0 }
 0x148   :  { %v527_v47 = vpop.f32.mrb[9].mxu0 }
 0x149   :  { %v528_v48 = vpop.f32.mrb[10].mxu0 }
 0x14a   :  { %v529_v49 = vpop.f32.mrb[11].mxu0 }
 0x155   :  { %v729_v50 = vpop.f32.mrb[12].mxu1 }
 0x156   :  { %v730_v51 = vpop.f32.mrb[13].mxu1 }
 0x157   :  { %v731_v52 = vadd.f32 %v730_v51, %v729_v50  ;;  %v732_v53 = vpop.f32.mrb[14].mxu1 }
 0x158   :  { %v733_v54 = vpop.f32.mrb[15].mxu1 }
 0x159   :  { %v486_v57 = vadd.f32 %v731_v52, %v446_v45 }
 0x15b   :  { %v526_v58 = vadd.f32 %v525_v46, %v486_v57 }
 0x15d   :  { %v532_v59 = vmul.f32 0.01, %v526_v58  ;;  %v537_v55 = vpack.c.bf16 %v526_v58, %v526_v58  ;;  %vm531_vm1 = vcmp.ge.f32.partialorder %v526_v58, 0.0 }
 0x15f   :  { %v545_v60 = vrot.slane %v537_v55, %v797_v13  ;;  %v533_v61 = vsel %vm531_vm1, %v526_v58, %v532_v59 }
 0x160   :  { %v534_v56 = vpack.c.bf16 %v533_v61, %v533_v61 }
 0x161   :  { %v552_v62 = vrot.slane %v545_v60, %v797_v13 }
 0x162   :  { %536 = vst.msk [vmem:[#allocation2] sm:$0x1] %vm535_vm2, %v534_v56 }
 0x163   :  { %553 = vrot.lane.b32.xlu0 %v552_v62, %s742_s2 }
 0x169   :  { %v574_v63 = vld [vmem:[#allocation2] sm:$0x1] }
 0x16a   :  { %602 = vst [vmem:[%s1184_s4 + $0xd] sm:$0x1] %v574_v63 }
 0x1d5   :  { %v554_v0 = vpop.permute.xlu0 %553 }
 0x1d6   :  { %556 = vst.msk [vmem:[%s1185_s5] sm:$0x1] %vm535_vm2, %v554_v0 }

// kernel: encoder_forward.20
= control target key start
LH: loop header
LB: loop body
LE: loop exit
PB: predicated region body
PF: predicated region fallthrough
CT: control target
= control target key end

     0   :  { %v1653_v11 = vmov 1966171168   ;;  %v249_v13 = vlaneseq  ;;  %vm1002_vm0 = vcmask 523264   ;;  %vm1293_vm2 = vcmask 516096   ;;  %s2085_s1 = inlined_call_operand.vmem [shape: bf16[1728,64], index: 1, kind: input, shape index: {}]   ;;  %s2086_s0 = inlined_call_operand.vmem [shape: bf16[2,1728], index: 0, kind: input, shape index: {}]   ;;  %s2087_s2 = inlined_call_operand.vmem [shape: f32[1,64], index: 2, kind: input, shape index: {}]   ;;  %s2088_s3 = inlined_call_operand.vmem [shape: bf16[2,64], index: 3, kind: input, shape index: {}]   ;;  %s2089_s4 = inlined_call_operand.vmem [shape: bf16[2,64], index: 4, kind: output, shape index: {}]  }
   0x1   :  { %v1543_v0 = vld [vmem:[%s2085_s1 + $0x40] sm:$0xff]   ;;  %v1545_v2 = vld [vmem:[%s2085_s1 + $0x48] sm:$0xff]   ;;  %v1547_v4 = vld [vmem:[%s2085_s1 + $0x50] sm:$0xff]   ;;  %v247_v12 = vunpack.c.l.s4 %v1653_v11 }
   0x2   :  { %v1544_v1 = vld [vmem:[%s2085_s1] sm:$0xff]   ;;  %1409 = vmatprep.subr.bf16.mxu1 %v1543_v0  ;;  %v1546_v3 = vld [vmem:[%s2085_s1 + $0x8] sm:$0xff]   ;;  %v1548_v5 = vld [vmem:[%s2085_s1 + $0x10] sm:$0xff]   ;;  %v250_v19 = vshrl.u32 %v249_v13, 7 }
   0x3   :  { %1410 = vmatpush3.bf16.msra.mxu1 %v1544_v1  ;;  %v1549_v6 = vld [vmem:[%s2085_s1 + $0x58] sm:$0xff]   ;;  %v1553_v8 = vld [vmem:[%s2085_s1 + $0x140] sm:$0xff]   ;;  %v1557_v15 = vld [vmem:[%s2085_s1 + $0x148] sm:$0xff]   ;;  %v248_v18 = vunpack.c.0.s8 %v247_v12 }
   0x4   :  { %1411 = vmatprep.subr.bf16.mxu1 %v1545_v2  ;;  %v1550_v7 = vld [vmem:[%s2085_s1 + $0x18] sm:$0xff]   ;;  %v1554_v9 = vld [vmem:[%s2085_s1 + $0x100] sm:$0xff]   ;;  %1453 = vmatprep.subr.bf16.mxu0 %v1553_v8  ;;  %v1558_v16 = vld [vmem:[%s2085_s1 + $0x108] sm:$0xff]  }
   0x5   :  { %v1551_v10 = vld [vmem:[%s2085_s1 + $0x60] sm:$0xff]   ;;  %1454 = vmatpush3.bf16.msra.mxu0 %v1554_v9  ;;  %v1555_v17 = vld [vmem:[%s2085_s1 + $0x68] sm:$0xff]   ;;  %v1561_v21 = vld [vmem:[%s2085_s1 + $0x150] sm:$0xff]   ;;  %v1737_v24 = vsub.s32 %v248_v18, %v250_v19 }
   0x6   :  { %v1552_v14 = vld [vmem:[%s2085_s1 + $0x20] sm:$0xff]   ;;  %1455 = vmatprep.subr.bf16.mxu0 %v1557_v15  ;;  %v1556_v20 = vld [vmem:[%s2085_s1 + $0x28] sm:$0xff]   ;;  %v1562_v22 = vld [vmem:[%s2085_s1 + $0x110] sm:$0xff]  }
   0x7   :  { %1412 = vmatpush3.bf16.msra.mxu1 %v1546_v3  ;;  %v1559_v23 = vld [vmem:[%s2085_s1 + $0x70] sm:$0xff]   ;;  %v1565_v26 = vld [vmem:[%s2085_s1 + $0x158] sm:$0xff]   ;;  %v18_v28 = vld [vmem:[%s2086_s0] sm:$0xff] }
   0x8   :  { %1413 = vmatprep.subr.bf16.mxu1 %v1547_v4  ;;  %v1560_v25 = vld [vmem:[%s2085_s1 + $0x30] sm:$0xff]   ;;  %v1563_v27 = vld [vmem:[%s2085_s1 + $0x78] sm:$0xff]   ;;  %v252_v29 = vrot.slane %v18_v28, %v1737_v24  ;;  %v245_v31 = vcombine.high %v18_v28, %v18_v28  ;;  %v1568_v34 = vld [vmem:[%s2085_s1 + $0xc0] sm:$0xff]  }
   0x9   :  { %1456 = vmatpush3.bf16.msra.mxu0 %v1558_v16  ;;  %v1567_v30 = vld [vmem:[%s2085_s1 + $0x118] sm:$0xff]   ;;  %v1570_v36 = vld [vmem:[%s2085_s1 + $0x160] sm:$0xff]   ;;  %v1772_v40 = vld [vmem:[%s2086_s0 + $0x8] sm:$0x3f] }
   0xa   :  { %1457 = vmatprep.subr.bf16.mxu0 %v1561_v21  ;;  %v1564_v32 = vld [vmem:[%s2085_s1 + $0x38] sm:$0xff]   ;;  %v260_v33 = vcombine.high %v252_v29, %v252_v29  ;;  %v259_v35 = vrot.slane %v245_v31, %v1737_v24  ;;  %v1571_v38 = vld [vmem:[%s2085_s1 + $0x120] sm:$0xff]   ;;  %v1778_v42 = vrot.slane %v252_v29, %v1737_v24  ;;  %v1572_v43 = vld [vmem:[%s2085_s1 + $0xc8] sm:$0xff]   ;;  %v1802_v50 = vrot.slane %v1772_v40, %v1737_v24 }
   0xb   :  { %1414 = vmatpush3.bf16.msra.mxu1 %v1548_v5  ;;  %v1569_v41 = vld [vmem:[%s2085_s1 + $0x80] sm:$0xff]   ;;  %v1574_v46 = vld [vmem:[%s2085_s1 + $0x168] sm:$0xff]   ;;  %v1576_v49 = vld [vmem:[%s2085_s1 + $0xd0] sm:$0xff]  }
   0xc   :  { %1415 = vmatprep.subr.bf16.mxu1 %v1549_v6  ;;  %v282_v37 = vrot.slane %v260_v33, %v1737_v24  ;;  %v261_v39 = vcombine.high %v259_v35, %v259_v35  ;;  %v1575_v47 = vld [vmem:[%s2085_s1 + $0x128] sm:$0xff]   ;;  %v1578_v51 = vld [vmem:[%s2085_s1 + $0x170] sm:$0xff]   ;;  %v1580_v54 = vld [vmem:[%s2085_s1 + $0xd8] sm:$0xff]   ;;  %v309_v55 = vcombine.high %v1802_v50, %v1802_v50  ;;  %v1828_v59 = vrot.slane %v259_v35, %v1737_v24 }
   0xd   :  { %1458 = vmatpush3.bf16.msra.mxu0 %v1562_v22  ;;  %v1573_v48 = vld [vmem:[%s2085_s1 + $0x88] sm:$0xff]   ;;  %v1579_v52 = vld [vmem:[%s2085_s1 + $0x130] sm:$0xff]   ;;  %v1582_v56 = vld [vmem:[%s2085_s1 + $0x178] sm:$0xff]   ;;  %v290_v18 = vcombine.high %v1778_v42, %v1778_v42 }
   0xe   :  { %1459 = vmatprep.subr.bf16.mxu0 %v1565_v26  ;;  %1038 = vmatprep.mubr.bf16.mxu1 %v282_v37  ;;  %v1784_v44 = vrot.slane %v261_v39, %v1737_v24  ;;  %v292_v45 = vcombine.high %v282_v37, %v282_v37  ;;  %v1577_v53 = vld [vmem:[%s2085_s1 + $0x90] sm:$0xff]   ;;  %v1583_v57 = vld [vmem:[%s2085_s1 + $0x138] sm:$0xff]   ;;  %v1584_v60 = vld [vmem:[%s2085_s1 + $0xe0] sm:$0xff]   ;;  %v1834_v61 = vrot.slane %v309_v55, %v1737_v24  ;;  %v1654_v37 = vmov 0  }
   0xf   :  { %1416 = vmatpush3.bf16.msra.mxu1 %v1550_v7  ;;  %v1581_v58 = vld [vmem:[%s2085_s1 + $0x98] sm:$0xff]   ;;  %v1587_v62 = vld [vmem:[%s2085_s1 + $0x240] sm:$0xff]   ;;  %v1589_v1 = vld [vmem:[%s2085_s1 + $0xe8] sm:$0xff]  }
  0x10   :  { %1417 = vmatprep.subr.bf16.mxu1 %v1551_v10  ;;  %1118 = vmatprep.mubr.bf16.mxu0 %v1784_v44  ;;  %v1588_v63 = vld [vmem:[%s2085_s1 + $0x200] sm:$0xff]   ;;  %v1591_v2 = vld [vmem:[%s2085_s1 + $0x248] sm:$0xff]   ;;  %v1593_v5 = vld [vmem:[%s2085_s1 + $0xf0] sm:$0xff]  }
  0x11   :  { %1460 = vmatpush3.bf16.msra.mxu0 %v1567_v30  ;;  %v1585_v0 = vld [vmem:[%s2085_s1 + $0xa0] sm:$0xff]   ;;  %v1592_v3 = vld [vmem:[%s2085_s1 + $0x208] sm:$0xff]   ;;  %v1595_v6 = vld [vmem:[%s2085_s1 + $0x250] sm:$0xff]  }
  0x12   :  { %1461 = vmatprep.subr.bf16.mxu0 %v1570_v36  ;;  %v1590_v4 = vld [vmem:[%s2085_s1 + $0xa8] sm:$0xff]   ;;  %v1596_v7 = vld [vmem:[%s2085_s1 + $0x210] sm:$0xff]   ;;  %v1597_v9 = vld [vmem:[%s2085_s1 + $0xf8] sm:$0xff]  }
  0x13   :  { %1418 = vmatpush3.bf16.msra.mxu1 %v1552_v14  ;;  %v1594_v8 = vld [vmem:[%s2085_s1 + $0xb0] sm:$0xff]   ;;  %v1599_v10 = vld [vmem:[%s2085_s1 + $0x258] sm:$0xff]   ;;  %v1601_v13 = vld [vmem:[%s2085_s1 + $0x1c0] sm:$0xff]  }
  0x14   :  { %1419 = vmatprep.subr.bf16.mxu1 %v1555_v17  ;;  %v1600_v11 = vld [vmem:[%s2085_s1 + $0x218] sm:$0xff]   ;;  %v1603_v14 = vld [vmem:[%s2085_s1 + $0x260] sm:$0xff]   ;;  %v294_v17 = vcombine.high %v1772_v40, %v1772_v40  ;;  %v1605_v19 = vld [vmem:[%s2085_s1 + $0x1c8] sm:$0xff]  }
  0x15   :  { %1462 = vmatpush3.bf16.msra.mxu0 %v1571_v38  ;;  %v1598_v12 = vld [vmem:[%s2085_s1 + $0xb8] sm:$0xff]   ;;  %v1604_v15 = vld [vmem:[%s2085_s1 + $0x220] sm:$0xff]   ;;  %v1607_v21 = vld [vmem:[%s2085_s1 + $0x268] sm:$0xff]  }
  0x16   :  { %1463 = vmatprep.subr.bf16.mxu0 %v1574_v46  ;;  %v1602_v16 = vld [vmem:[%s2085_s1 + $0x180] sm:$0xff]   ;;  %v1608_v22 = vld [vmem:[%s2085_s1 + $0x228] sm:$0xff]   ;;  %v1917_v26 = vrot.slane %v294_v17, %v1737_v24  ;;  %v1612_v28 = vld [vmem:[%s2085_s1 + $0x230] sm:$0xff]  }
  0x17   :  { %1420 = vmatpush3.bf16.msra.mxu1 %v1556_v20  ;;  %v293_v20 = vcombine.high %v1784_v44, %v1784_v44  ;;  %v1610_v29 = vld [vmem:[%s2085_s1 + $0x190] sm:$0xff]   ;;  %v1613_v30 = vld [vmem:[%s2085_s1 + $0x1d8] sm:$0xff]   ;;  %v1619_v38 = vld [vmem:[%s2085_s1 + $0x300] sm:$0xff]  }
  0x18   :  { %1421 = vmatprep.subr.bf16.mxu1 %v1559_v23  ;;  %v1606_v23 = vld [vmem:[%s2085_s1 + $0x188] sm:$0xff]   ;;  %v310_v31 = vcombine.high %v1917_v26, %v1917_v26  ;;  %v1616_v33 = vld [vmem:[%s2085_s1 + $0x238] sm:$0xff]   ;;  %v1617_v39 = vld [vmem:[%s2085_s1 + $0x1e0] sm:$0xff]  }
  0x19   :  { %1464 = vmatpush3.bf16.msra.mxu0 %v1575_v47  ;;  %v1614_v35 = vld [vmem:[%s2085_s1 + $0x198] sm:$0xff]   ;;  %v1622_v40 = vld [vmem:[%s2085_s1 + $0x308] sm:$0xff]   ;;  %v1624_v47 = vld [vmem:[%s2085_s1 + $0x1b0] sm:$0xff]  }
  0x1a   :  { %1465 = vmatprep.subr.bf16.mxu0 %v1578_v51  ;;  %v338_v36 = vrot.slane %v310_v31, %v1737_v24  ;;  %v1621_v44 = vld [vmem:[%s2085_s1 + $0x1a8] sm:$0xff]   ;;  %v1628_v46 = vld [vmem:[%s2085_s1 + $0x318] sm:$0xff]   ;;  %v1629_v51 = vld [vmem:[%s2085_s1 + $0x2c0] sm:$0xff]  }
  0x1b   :  { %1422 = vmatpush3.bf16.msra.mxu1 %v1560_v25  ;;  %v1609_v25 = vld [vmem:[%s2085_s1 + $0x1d0] sm:$0xff]   ;;  %v1632_v55 = vld [vmem:[%s2085_s1 + $0x2c8] sm:$0xff]  }
  0x1c   :  { %1423 = vmatprep.subr.bf16.mxu1 %v1563_v27  ;;  %v1611_v27 = vld [vmem:[%s2085_s1 + $0x270] sm:$0xff]  }
  0x1d   :  { %1466 = vmatpush3.bf16.msra.mxu0 %v1579_v52  ;;  %v291_v52 = vcombine.high %v1828_v59, %v1828_v59 }
  0x1e   :  { %1467 = vmatprep.subr.bf16.mxu0 %v1582_v56  ;;  %v340_v56 = vcombine.high %v1834_v61, %v1834_v61 }
  0x1f   :  { %1424 = vmatpush3.bf16.msra.mxu1 %v1564_v32  ;;  %v1615_v32 = vld [vmem:[%s2085_s1 + $0x278] sm:$0xff]  }
  0x20   :  { %1431 = vmatprep.subr.bf16.mxu1 %v1568_v34  ;;  %v1941_v34 = vrot.slane %v1802_v50, %v1737_v24  ;;  %v1627_v50 = vld [vmem:[%s2085_s1 + $0x1b8] sm:$0xff]  }
  0x21   :  { %1468 = vmatpush3.bf16.msra.mxu0 %v1583_v57  ;;  %v1637_v57 = vld [vmem:[%s2085_s1 + $0x330] sm:$0xff]  }
  0x22   :  { %1039 = vmatmul.mubr.bf16.vlgmr.msra.gmra.mrb[0].mxu1 %v1778_v42  ;;  %1497 = vmatprep.subr.bf16.mxu0 %v1587_v62  ;;  %v1620_v42 = vld [vmem:[%s2085_s1 + $0x1e8] sm:$0xff]   ;;  %v1638_v62 = vld [vmem:[%s2085_s1 + $0x2d8] sm:$0xff]  }
  0x23   :  { %1432 = vmatpush3.bf16.msra.mxu1 %v1569_v41  ;;  %1078 = vmatprep.mubr.bf16.mxu1 %v292_v45  ;;  %v1618_v41 = vld [vmem:[%s2085_s1 + $0x1a0] sm:$0xff]   ;;  %v1623_v45 = vld [vmem:[%s2085_s1 + $0x1f0] sm:$0xff]  }
  0x24   :  { %1433 = vmatprep.subr.bf16.mxu1 %v1572_v43  ;;  %1119 = vmatmul.mubr.bf16.vlgmr.msra.gmra.mrb[0].mxu0 %v1828_v59  ;;  %v1625_v43 = vld [vmem:[%s2085_s1 + $0x310] sm:$0xff]  }
  0x25   :  { %1498 = vmatpush3.bf16.msra.mxu0 %v1588_v63  ;;  %1198 = vmatprep.mubr.bf16.mxu0 %v1834_v61  ;;  %v1635_v59 = vld [vmem:[%s2085_s1 + $0x2d0] sm:$0xff]   ;;  %v1643_v63 = vld [vmem:[%s2085_s1 + $0x340] sm:$0xff]  }
  0x26   :  { %1499 = vmatprep.subr.bf16.mxu0 %v1591_v2  ;;  %v1636_v61 = vld [vmem:[%s2085_s1 + $0x290] sm:$0xff]   ;;  %v1646_v2 = vld [vmem:[%s2085_s1 + $0x348] sm:$0xff]  }
  0x27   :  { %1434 = vmatpush3.bf16.msra.mxu1 %v1573_v48  ;;  %v1626_v48 = vld [vmem:[%s2085_s1 + $0x1f8] sm:$0xff]  }
  0x28   :  { %1435 = vmatprep.subr.bf16.mxu1 %v1576_v49  ;;  %v1631_v49 = vld [vmem:[%s2085_s1 + $0x320] sm:$0xff]  }
  0x29   :  { %1500 = vmatpush3.bf16.msra.mxu0 %v1592_v3  ;;  %v1642_v3 = vld [vmem:[%s2085_s1 + $0x2a0] sm:$0xff]  }
  0x2a   :  { %1501 = vmatprep.subr.bf16.mxu0 %v1595_v6  ;;  %v1645_v6 = vld [vmem:[%s2085_s1 + $0x2a8] sm:$0xff]  }
  0x2b   :  { %1436 = vmatpush3.bf16.msra.mxu1 %v1577_v53  ;;  %v1634_v53 = vld [vmem:[%s2085_s1 + $0x328] sm:$0xff]  }
  0x2c   :  { %1437 = vmatprep.subr.bf16.mxu1 %v1580_v54  ;;  %v1630_v54 = vld [vmem:[%s2085_s1 + $0x280] sm:$0xff]  }
  0x2d   :  { %1502 = vmatpush3.bf16.msra.mxu0 %v1596_v7  ;;  %v1647_v7 = vld [vmem:[%s2085_s1 + $0x2f0] sm:$0xff]  }
  0x2e   :  { %1503 = vmatprep.subr.bf16.mxu0 %v1599_v10  ;;  %v1650_v10 = vld [vmem:[%s2085_s1 + $0x2f8] sm:$0xff]  }
  0x2f   :  { %1438 = vmatpush3.bf16.msra.mxu1 %v1581_v58  ;;  %v1633_v58 = vld [vmem:[%s2085_s1 + $0x288] sm:$0xff]  }
  0x30   :  { %1439 = vmatprep.subr.bf16.mxu1 %v1584_v60  ;;  %v1640_v60 = vld [vmem:[%s2085_s1 + $0x338] sm:$0xff]  }
  0x31   :  { %1504 = vmatpush3.bf16.msra.mxu0 %v1600_v11  ;;  %v324_v11 = vrot.slane %v1917_v26, %v1737_v24 }
  0x32   :  { %1505 = vmatprep.subr.bf16.mxu0 %v1603_v14 }
  0x33   :  { %1440 = vmatpush3.bf16.msra.mxu1 %v1585_v0  ;;  %v1639_v0 = vld [vmem:[%s2085_s1 + $0x298] sm:$0xff]  }
  0x34   :  { %1441 = vmatprep.subr.bf16.mxu1 %v1589_v1  ;;  %v1641_v1 = vld [vmem:[%s2085_s1 + $0x2e0] sm:$0xff]  }
  0x35   :  { %1506 = vmatpush3.bf16.msra.mxu0 %v1604_v15 }
  0x36   :  { %1507 = vmatprep.subr.bf16.mxu0 %v1607_v21 }
  0x37   :  { %1442 = vmatpush3.bf16.msra.mxu1 %v1590_v4  ;;  %v1644_v4 = vld [vmem:[%s2085_s1 + $0x2e8] sm:$0xff]  }
  0x38   :  { %1443 = vmatprep.subr.bf16.mxu1 %v1593_v5  ;;  %v1649_v5 = vld [vmem:[%s2085_s1 + $0x350] sm:$0xff]  }
  0x39   :  { %1508 = vmatpush3.bf16.msra.mxu0 %v1608_v22 }
  0x3a   :  { %1509 = vmatprep.subr.bf16.mxu0 %v1611_v27 }
  0x3b   :  { %1444 = vmatpush3.bf16.msra.mxu1 %v1594_v8  ;;  %v1652_v8 = vld [vmem:[%s2085_s1 + $0x358] sm:$0xff]  }
  0x3c   :  { %1445 = vmatprep.subr.bf16.mxu1 %v1597_v9  ;;  %v1648_v9 = vld [vmem:[%s2085_s1 + $0x2b0] sm:$0xff]  }
  0x3d   :  { %1510 = vmatpush3.bf16.msra.mxu0 %v1612_v28 }
  0x3e   :  { %1511 = vmatprep.subr.bf16.mxu0 %v1615_v32 }
  0x3f   :  { %1446 = vmatpush3.bf16.msra.mxu1 %v1598_v12  ;;  %v1651_v12 = vld [vmem:[%s2085_s1 + $0x2b8] sm:$0xff]  }
  0x40   :  { %1475 = vmatprep.subr.bf16.mxu1 %v1601_v13  ;;  %v339_v13 = vcombine.high %v1941_v34, %v1941_v34 }
  0x41   :  { %1512 = vmatpush3.bf16.msra.mxu0 %v1616_v33 }
  0x42   :  { %1079 = vmatmul.mubr.bf16.vlgmr.msra.gmra.mrb[4].mxu1 %v290_v18  ;;  %1246 = vmatprep.subr.bf16.mxu0 %v1654_v37 }
  0x43   :  { %1476 = vmatpush3.bf16.msra.mxu1 %v1602_v16  ;;  %1158 = vmatprep.mubr.bf16.mxu1 %v293_v20 }
  0x44   :  { %1477 = vmatprep.subr.bf16.mxu1 %v1605_v19  ;;  %1199 = vmatmul.mubr.bf16.vlgmr.msra.gmra.mrb[4].mxu0 %v1941_v34 }
  0x45   :  { %1247 = vmatpush1.bf16.msra.mxu0 %v1619_v38  ;;  %1408 = vmatprep.mubr.msk.bf16.mxu0 %vm1002_vm0, %v338_v36 }
  0x46   :  { %1248 = vmatprep.subr.bf16.mxu0 %v1654_v37 }
  0x47   :  { %1478 = vmatpush3.bf16.msra.mxu1 %v1606_v23  ;;  %v1299_v23 = vld [vmem:[%s2087_s2] ss:$0 sm:$0xff] }
  0x48   :  { %1479 = vmatprep.subr.bf16.mxu1 %v1609_v25 }
  0x49   :  { %1249 = vmatpush1.bf16.msra.mxu0 %v1622_v40 }
  0x4a   :  { %1250 = vmatprep.subr.bf16.mxu0 %v1654_v37 }
  0x4b   :  { %1480 = vmatpush3.bf16.msra.mxu1 %v1610_v29 }
  0x4c   :  { %1481 = vmatprep.subr.bf16.mxu1 %v1613_v30 }
  0x4d   :  { %1251 = vmatpush1.bf16.msra.mxu0 %v1625_v43 }
  0x4e   :  { %1252 = vmatprep.subr.bf16.mxu0 %v1654_v37 }
  0x4f   :  { %1482 = vmatpush3.bf16.msra.mxu1 %v1614_v35 }
  0x50   :  { %1483 = vmatprep.subr.bf16.mxu1 %v1617_v39 }
  0x51   :  { %1253 = vmatpush1.bf16.msra.mxu0 %v1628_v46 }
  0x52   :  { %1254 = vmatprep.subr.bf16.mxu0 %v1654_v37 }
  0x53   :  { %1484 = vmatpush3.bf16.msra.mxu1 %v1618_v41 }
  0x54   :  { %1485 = vmatprep.subr.bf16.mxu1 %v1620_v42 }
  0x55   :  { %1255 = vmatpush1.bf16.msra.mxu0 %v1631_v49 }
  0x56   :  { %1256 = vmatprep.subr.bf16.mxu0 %v1654_v37 }
  0x57   :  { %1486 = vmatpush3.bf16.msra.mxu1 %v1621_v44 }
  0x58   :  { %1487 = vmatprep.subr.bf16.mxu1 %v1623_v45 }
  0x59   :  { %1257 = vmatpush1.bf16.msra.mxu0 %v1634_v53 }
  0x5a   :  { %1258 = vmatprep.subr.bf16.mxu0 %v1654_v37 }
  0x5b   :  { %1488 = vmatpush3.bf16.msra.mxu1 %v1624_v47 }
  0x5c   :  { %1489 = vmatprep.subr.bf16.mxu1 %v1626_v48 }
  0x5d   :  { %1259 = vmatpush1.bf16.msra.mxu0 %v1637_v57 }
  0x5e   :  { %1260 = vmatprep.subr.bf16.mxu0 %v1654_v37 }
  0x5f   :  { %1490 = vmatpush3.bf16.msra.mxu1 %v1627_v50 }
  0x60   :  { %1519 = vmatprep.subr.bf16.mxu1 %v1629_v51  ;;  %v1286_v51 = vld [vmem:[%s2088_s3] sm:$0x1] }
  0x61   :  { %1261 = vmatpush1.bf16.msra.mxu0 %v1640_v60 }
  0x62   :  { %1159 = vmatmul.mubr.bf16.vlgmr.msra.gmra.mrb[8].mxu1 %v291_v52  ;;  %1262 = vmatprep.subr.bf16.mxu0 %v1654_v37 }
  0x63   :  { %1520 = vmatpush3.bf16.msra.mxu1 %v1630_v54  ;;  %1238 = vmatprep.mubr.bf16.mxu1 %v340_v56  ;;  %v1287_v56 = vunpack.c.l.bf16 %v1286_v51 }
  0x64   :  { %1521 = vmatprep.subr.bf16.mxu1 %v1632_v55 }
  0x65   :  { %1263 = vmatpush1.bf16.msra.mxu0 %v1643_v63 }
  0x66   :  { %1264 = vmatprep.subr.bf16.mxu0 %v1654_v37 }
  0x67   :  { %1522 = vmatpush3.bf16.msra.mxu1 %v1633_v58 }
  0x68   :  { %1523 = vmatprep.subr.bf16.mxu1 %v1635_v59 }
  0x69   :  { %1265 = vmatpush1.bf16.msra.mxu0 %v1646_v2 }
  0x6a   :  { %1266 = vmatprep.subr.bf16.mxu0 %v1654_v37 }
  0x6b   :  { %1524 = vmatpush3.bf16.msra.mxu1 %v1636_v61 }
  0x6c   :  { %1525 = vmatprep.subr.bf16.mxu1 %v1638_v62 }
  0x6d   :  { %1267 = vmatpush1.bf16.msra.mxu0 %v1649_v5 }
  0x6e   :  { %1268 = vmatprep.subr.bf16.mxu0 %v1654_v37 }
  0x6f   :  { %1526 = vmatpush3.bf16.msra.mxu1 %v1639_v0 }
  0x70   :  { %1527 = vmatprep.subr.bf16.mxu1 %v1641_v1 }
  0x71   :  { %1269 = vmatpush1.bf16.msra.mxu0 %v1652_v8 }
  0x73   :  { %1528 = vmatpush3.bf16.msra.mxu1 %v1642_v3 }
  0x74   :  { %1529 = vmatprep.subr.bf16.mxu1 %v1644_v4  ;;  %1279 = vmatmul.mubr.bf16.vlgmr.msra.gmra.mrb[8].mxu0 %v324_v11 }
  0x77   :  { %1530 = vmatpush3.bf16.msra.mxu1 %v1645_v6 }
  0x78   :  { %1531 = vmatprep.subr.bf16.mxu1 %v1647_v7 }
  0x7b   :  { %1532 = vmatpush3.bf16.msra.mxu1 %v1648_v9 }
  0x7c   :  { %1533 = vmatprep.subr.bf16.mxu1 %v1650_v10 }
  0x7f   :  { %1534 = vmatpush3.bf16.msra.mxu1 %v1651_v12 }
  0x82   :  { %1239 = vmatmul.mubr.bf16.vlgmr.msra.gmra.mrb[12].mxu1 %v339_v13 }
  0xf5   :  { %v1425_v14 = vpop.f32.mrb[0].mxu1 }
  0xf6   :  { %v1426_v15 = vpop.f32.mrb[1].mxu1 }
  0xf7   :  { %v1427_v16 = vadd.f32 %v1426_v15, %v1425_v14  ;;  %v1428_v17 = vpop.f32.mrb[2].mxu1  ;;  %v1469_v19 = vpop.f32.mrb[0].mxu0 }
  0xf8   :  { %v1429_v18 = vpop.f32.mrb[3].mxu1  ;;  %v1470_v24 = vpop.f32.mrb[1].mxu0 }
  0xf9   :  { %v1471_v20 = vadd.f32 %v1470_v24, %v1469_v19  ;;  %v1472_v21 = vpop.f32.mrb[2].mxu0  ;;  %v1041_v27 = vadd.f32 %v1427_v16, %v1299_v23 }
  0xfa   :  { %v1473_v22 = vpop.f32.mrb[3].mxu0 }
 0x115   :  { %v1447_v25 = vpop.f32.mrb[4].mxu1 }
 0x116   :  { %v1448_v26 = vpop.f32.mrb[5].mxu1 }
 0x117   :  { %v1449_v28 = vadd.f32 %v1448_v26, %v1447_v25  ;;  %v1450_v29 = vpop.f32.mrb[6].mxu1  ;;  %v1513_v33 = vpop.f32.mrb[4].mxu0 }
 0x118   :  { %v1451_v30 = vpop.f32.mrb[7].mxu1  ;;  %v1514_v34 = vpop.f32.mrb[5].mxu0 }
 0x119   :  { %v1081_v31 = vadd.f32 %v1449_v28, %v1041_v27  ;;  %v1515_v35 = vadd.f32 %v1514_v34, %v1513_v33  ;;  %v1516_v36 = vpop.f32.mrb[6].mxu0 }
 0x11a   :  { %v1517_v37 = vpop.f32.mrb[7].mxu0 }
 0x11b   :  { %v1121_v32 = vadd.f32 %v1471_v20, %v1081_v31 }
 0x135   :  { %v1491_v38 = vpop.f32.mrb[8].mxu1 }
 0x136   :  { %v1492_v39 = vpop.f32.mrb[9].mxu1 }
 0x137   :  { %v1493_v40 = vadd.f32 %v1492_v39, %v1491_v38  ;;  %v1494_v41 = vpop.f32.mrb[10].mxu1 }
 0x138   :  { %v1495_v42 = vpop.f32.mrb[11].mxu1 }
 0x139   :  { %v1161_v43 = vadd.f32 %v1493_v40, %v1121_v32 }
 0x13b   :  { %v1201_v44 = vadd.f32 %v1515_v35, %v1161_v43 }
 0x147   :  { %v1280_v45 = vpop.f32.mrb[8].mxu0 }
 0x148   :  { %v1282_v46 = vpop.f32.mrb[9].mxu0 }
 0x149   :  { %v1283_v47 = vpop.f32.mrb[10].mxu0 }
 0x14a   :  { %v1284_v48 = vpop.f32.mrb[11].mxu0 }
 0x155   :  { %v1535_v49 = vpop.f32.mrb[12].mxu1 }
 0x156   :  { %v1536_v50 = vpop.f32.mrb[13].mxu1 }
 0x157   :  { %v1537_v52 = vadd.f32 %v1536_v50, %v1535_v49  ;;  %v1538_v53 = vpop.f32.mrb[14].mxu1 }
 0x158   :  { %v1539_v54 = vpop.f32.mrb[15].mxu1 }
 0x159   :  { %v1241_v55 = vadd.f32 %v1537_v52, %v1201_v44 }
 0x15b   :  { %v1281_v57 = vadd.f32 %v1280_v45, %v1241_v55 }
 0x15d   :  { %v1288_v58 = vadd.f32 %v1287_v56, %v1281_v57 }
 0x15f   :  { %vm1289_vm1 = vcmp.ge.f32.partialorder %v1288_v58, 0.0  ;;  %v1290_v59 = vmul.f32 0.01, %v1288_v58 }
 0x161   :  { %v1291_v60 = vsel %vm1289_vm1, %v1288_v58, %v1290_v59 }
 0x162   :  { %v1292_v61 = vpack.c.bf16 %v1291_v60, %v1291_v60 }
 0x164   :  { %1294 = vst.msk [vmem:[%s2089_s4] sm:$0x1] %vm1293_vm2, %v1292_v61 }

</bundles_post_ra>
